<compile_context>
chip_gen: v5e
topology: v5e:2x2
jax: 0.10.0
libtpu: 0.0.40
codegen_flags: <defaults>
</compile_context>

<pallas_src>
import numpy as np

import jax
import jax.numpy as jnp
from jax.experimental import pallas as pl
from jax.experimental.pallas import tpu as pltpu


# ----------------------------- fused Pallas kernel ---------------------------

def _mnist_fused_kernel(x_ref, m1_ref, b1_ref, ph1_ref, pw1_ref,
                        m2_ref, b2_ref, ph2_ref, pw2_ref,
                        w1f_ref, bf1_ref, w2f_ref, bf2_ref, o_ref):
    f32, bf16 = jnp.float32, jnp.bfloat16

    def dot(a, b):
        return jnp.dot(a, b, preferred_element_type=f32)

    x = x_ref[0]                                                  # (28, 28) f32

    # conv1 (5x5, 1->32): 5 banded matmuls over the kernel-row axis.
    y1 = b1_ref[...] + dot(x[0:24, :].astype(bf16), m1_ref[0])    # (24, 768)
    for u in range(1, 5):
        y1 = y1 + dot(x[u:u + 24, :].astype(bf16), m1_ref[u])

    # 2x2 max-pool + relu, fused (exact 0/1 selection matmuls).
    a1 = jnp.maximum(dot(ph1_ref[0], y1), dot(ph1_ref[1], y1))    # (12, 768)
    p1 = jnp.maximum(
        jnp.maximum(dot(a1, pw1_ref[0]), dot(a1, pw1_ref[1])), 0.0)   # (12, 384)

    # conv2 (3x3, 32->32): 3 banded matmuls.
    y2 = b2_ref[...] + dot(p1[0:10, :].astype(bf16), m2_ref[0])   # (10, 320)
    for u in range(1, 3):
        y2 = y2 + dot(p1[u:u + 10, :].astype(bf16), m2_ref[u])

    a2 = jnp.maximum(dot(ph2_ref[0], y2), dot(ph2_ref[1], y2))    # (5, 320)
    p2 = jnp.maximum(
        jnp.maximum(dot(a2, pw2_ref[0]), dot(a2, pw2_ref[1])), 0.0)   # (5, 160)

    # fc1 (800 -> 64): PyTorch NCHW flatten folded into per-row weight slabs,
    # contracted row-by-row so no in-kernel flatten/reshape is needed.
    h = bf1_ref[...] + dot(p2[0:1, :].astype(bf16), w1f_ref[0])   # (1, 64)
    for i in range(1, 5):
        h = h + dot(p2[i:i + 1, :].astype(bf16), w1f_ref[i])
    h = jnp.maximum(h, 0.0)

    # fc2 (64 -> 10) + log_softmax(dim=1)
    logits = dot(h.astype(bf16), w2f_ref[...]) + bf2_ref[...]     # (1, 10)
    m = jnp.max(logits, axis=-1, keepdims=True)
    s = logits - m
    lse = jnp.log(jnp.sum(jnp.exp(s), axis=-1, keepdims=True))
    o_ref[0] = s - lse


def _whole(arr):
    # Full-array block, resident in VMEM, DMA'd once (constant index map).
    nd = arr.ndim

    def idx(b):
        return (0,) * nd

    return pl.BlockSpec(arr.shape, idx)


def mnist_net_forward(prepared, x_nchw):
    B = x_nchw.shape[0]
    x = x_nchw.astype(jnp.float32).reshape(B, 28, 28)
    names = ("m1", "b1", "ph1", "pw1", "m2", "b2", "ph2", "pw2",
             "w1f", "bf1", "w2f", "bf2")
    weights = [prepared[k] for k in names]

    out = pl.pallas_call(
        _mnist_fused_kernel,
        out_shape=jax.ShapeDtypeStruct((B, 1, 10), jnp.float32),
        grid=(B,),
        in_specs=[pl.BlockSpec((1, 28, 28), lambda b: (b, 0, 0))]
                 + [_whole(w) for w in weights],
        out_specs=pl.BlockSpec((1, 1, 10), lambda b: (b, 0, 0)),
        compiler_params=pltpu.CompilerParams(
            dimension_semantics=("parallel",),
            vmem_limit_bytes=32 * 1024 * 1024),
    )(x, *weights)
    return out.reshape(B, 10)


# ----------------- one-time weight preparation (outside jit) -----------------

def prepare_params(params):
    f32 = np.float32
    w1 = np.asarray(params["conv1_w"], f32)     # (32, 1, 5, 5)  OIHW
    b1 = np.asarray(params["conv1_b"], f32)     # (32,)
    w2 = np.asarray(params["conv2_w"], f32)     # (32, 32, 3, 3) OIHW
    b2 = np.asarray(params["conv2_b"], f32)
    fw1 = np.asarray(params["fc1_w"], f32)      # (64, 800)
    fb1 = np.asarray(params["fc1_b"], f32)
    fw2 = np.asarray(params["fc2_w"], f32)      # (10, 64)
    fb2 = np.asarray(params["fc2_b"], f32)

    # conv1 band matrices: M1[u, j+v, j*32+o] = w1[o, 0, u, v]
    M1 = np.zeros((5, 28, 24 * 32), f32)
    for u in range(5):
        for v in range(5):
            for j in range(24):
                M1[u, j + v, j * 32:(j + 1) * 32] = w1[:, 0, u, v]
    B1 = np.tile(b1, 24)[None, :]               # (1, 768)

    # conv2 band matrices: M2[u, (j+v)*32+c, j*32+o] = w2[o, c, u, v]
    M2 = np.zeros((3, 12 * 32, 10 * 32), f32)
    for u in range(3):
        for v in range(3):
            for j in range(10):
                M2[u, (j + v) * 32:(j + v + 1) * 32,
                   j * 32:(j + 1) * 32] = w2[:, :, u, v].T
    B2 = np.tile(b2, 10)[None, :]               # (1, 320)

    # 2x2 max-pool selection matrices (exact 0/1).
    def pool_mats(h, w, c):
        ph = np.zeros((2, h // 2, h), f32)
        for i in range(h // 2):
            ph[0, i, 2 * i] = 1.0
            ph[1, i, 2 * i + 1] = 1.0
        pw = np.zeros((2, w * c, (w // 2) * c), f32)
        for j in range(w // 2):
            for cc in range(c):
                pw[0, (2 * j) * c + cc, j * c + cc] = 1.0
                pw[1, (2 * j + 1) * c + cc, j * c + cc] = 1.0
        return ph, pw

    PH1, PW1 = pool_mats(24, 24, 32)
    PH2, PW2 = pool_mats(10, 10, 32)

    # fc1: fold the NCHW view(-1, 800) order (c*25 + i*5 + j) into per-row
    # weight slabs: W1f[i, j*32 + c, n] = fc1_w[n, c*25 + i*5 + j]
    fw1_r = fw1.reshape(64, 32, 5, 5)           # (n, c, i, j)
    W1f = np.zeros((5, 160, 64), f32)
    for i in range(5):
        for j in range(5):
            W1f[i, j * 32:(j + 1) * 32, :] = fw1_r[:, :, i, j].T   # (c, n)

    bf16 = jnp.bfloat16
    return dict(
        m1=jnp.asarray(M1, bf16), b1=jnp.asarray(B1),
        ph1=jnp.asarray(PH1), pw1=jnp.asarray(PW1),
        m2=jnp.asarray(M2, bf16), b2=jnp.asarray(B2),
        ph2=jnp.asarray(PH2), pw2=jnp.asarray(PW2),
        w1f=jnp.asarray(W1f, bf16), bf1=jnp.asarray(fb1[None, :]),
        w2f=jnp.asarray(fw2.T, bf16), bf2=jnp.asarray(fb2[None, :]),
    )


# ---------------------- params & pure-JAX reference --------------------------

def init_params(key):
    ks = jax.random.split(key, 8)
    nrm = lambda k, shape, s: s * jax.random.normal(k, shape, jnp.float32)
    return {
        "conv1_w": nrm(ks[0], (32, 1, 5, 5), 0.10),
        "conv1_b": nrm(ks[1], (32,), 0.10),
        "conv2_w": nrm(ks[2], (32, 32, 3, 3), 0.05),
        "conv2_b": nrm(ks[3], (32,), 0.05),
        "fc1_w": nrm(ks[4], (64, 800), 0.02),
        "fc1_b": nrm(ks[5], (64,), 0.02),
        "fc2_w": nrm(ks[6], (10, 64), 0.05),
        "fc2_b": nrm(ks[7], (10,), 0.05),
    }


def reference_forward(params, x):
    hi = jax.lax.Precision.HIGHEST

    def conv(y, w, b):
        y = jax.lax.conv_general_dilated(
            y, w, (1, 1), "VALID",
            dimension_numbers=("NCHW", "OIHW", "NCHW"), precision=hi)
        return y + b[None, :, None, None]

    def pool_relu(y):
        y = jax.lax.reduce_window(y, -jnp.inf, jax.lax.max,
                                  (1, 1, 2, 2), (1, 1, 2, 2), "VALID")
        return jnp.maximum(y, 0.0)

    y = pool_relu(conv(x, params["conv1_w"], params["conv1_b"]))
    y = pool_relu(conv(y, params["conv2_w"], params["conv2_b"]))
    y = y.reshape(y.shape[0], -1)
    y = jnp.maximum(jnp.matmul(y, params["fc1_w"].T, precision=hi) + params["fc1_b"], 0.0)
    logits = jnp.matmul(y, params["fc2_w"].T, precision=hi) + params["fc2_b"]
    return jax.nn.log_softmax(logits, axis=1)


if __name__ == "__main__":
    key = jax.random.PRNGKey(0)
    pkey, xkey = jax.random.split(key)
    params = init_params(pkey)
    prepared = prepare_params(params)           # one-time, outside jit
    # MNIST geometry is forced by the module (view(-1, 800)): 1x28x28 input.
    x = jax.random.normal(xkey, (2, 1, 28, 28), jnp.float32)

    fwd = jax.jit(mnist_net_forward)
    out = jax.block_until_ready(fwd(prepared, x))

    ref = reference_forward(params, x)
    assert out.shape == (2, 10) and out.dtype == jnp.float32
    max_err = float(jnp.max(jnp.abs(out - ref)))
    # bf16 matmul operands with f32 accumulation -> small, bounded deviation.
    assert jnp.allclose(out, ref, atol=1e-2, rtol=1e-2), max_err
    print("KERNEL_OK")
</pallas_src>

<mosaic_0001>
module attributes {stable_mosaic.version = 11 : i64} {
  func.func @_mnist_fused_kernel(%arg0: i32, %arg1: memref<1x28x28xf32, #tpu.memory_space<vmem>>, %arg2: memref<5x28x768xbf16, #tpu.memory_space<vmem>>, %arg3: memref<1x768xf32, #tpu.memory_space<vmem>>, %arg4: memref<2x12x24xf32, #tpu.memory_space<vmem>>, %arg5: memref<2x768x384xf32, #tpu.memory_space<vmem>>, %arg6: memref<3x384x320xbf16, #tpu.memory_space<vmem>>, %arg7: memref<1x320xf32, #tpu.memory_space<vmem>>, %arg8: memref<2x5x10xf32, #tpu.memory_space<vmem>>, %arg9: memref<2x320x160xf32, #tpu.memory_space<vmem>>, %arg10: memref<5x160x64xbf16, #tpu.memory_space<vmem>>, %arg11: memref<1x64xf32, #tpu.memory_space<vmem>>, %arg12: memref<64x10xbf16, #tpu.memory_space<vmem>>, %arg13: memref<1x10xf32, #tpu.memory_space<vmem>>, %arg14: memref<1x1x10xf32, #tpu.memory_space<vmem>>) attributes {dimension_semantics = [#tpu.dimension_semantics<parallel>], iteration_bounds = array<i64: 2>, scalar_prefetch = 0 : i64, scratch_operands = 0 : i64, tpu.core_type = #tpu.core_type<tc>, window_params = [{transform_indices = @transform_0, window_bounds = array<i64: 1, 28, 28>}, {pipeline_mode = #tpu.pipeline_mode<synchronous>, transform_indices = @transform_1, window_bounds = array<i64: 5, 28, 768>}, {pipeline_mode = #tpu.pipeline_mode<synchronous>, transform_indices = @transform_2, window_bounds = array<i64: 1, 768>}, {pipeline_mode = #tpu.pipeline_mode<synchronous>, transform_indices = @transform_3, window_bounds = array<i64: 2, 12, 24>}, {pipeline_mode = #tpu.pipeline_mode<synchronous>, transform_indices = @transform_4, window_bounds = array<i64: 2, 768, 384>}, {pipeline_mode = #tpu.pipeline_mode<synchronous>, transform_indices = @transform_5, window_bounds = array<i64: 3, 384, 320>}, {pipeline_mode = #tpu.pipeline_mode<synchronous>, transform_indices = @transform_6, window_bounds = array<i64: 1, 320>}, {pipeline_mode = #tpu.pipeline_mode<synchronous>, transform_indices = @transform_7, window_bounds = array<i64: 2, 5, 10>}, {pipeline_mode = #tpu.pipeline_mode<synchronous>, transform_indices = @transform_8, window_bounds = array<i64: 2, 320, 160>}, {pipeline_mode = #tpu.pipeline_mode<synchronous>, transform_indices = @transform_9, window_bounds = array<i64: 5, 160, 64>}, {pipeline_mode = #tpu.pipeline_mode<synchronous>, transform_indices = @transform_10, window_bounds = array<i64: 1, 64>}, {pipeline_mode = #tpu.pipeline_mode<synchronous>, transform_indices = @transform_11, window_bounds = array<i64: 64, 10>}, {pipeline_mode = #tpu.pipeline_mode<synchronous>, transform_indices = @transform_12, window_bounds = array<i64: 1, 10>}, {transform_indices = @transform_13, window_bounds = array<i64: 1, 1, 10>}]} {
    %c0 = arith.constant 0 : index
    %c0_0 = arith.constant 0 : index
    %c0_1 = arith.constant 0 : index
    %0 = vector.load %arg1[%c0, %c0_0, %c0_1] : memref<1x28x28xf32, #tpu.memory_space<vmem>>, vector<1x28x28xf32>
    %1 = vector.shape_cast %0 : vector<1x28x28xf32> to vector<28x28xf32>
    %c0_2 = arith.constant 0 : index
    %c0_3 = arith.constant 0 : index
    %2 = vector.load %arg3[%c0_2, %c0_3] : memref<1x768xf32, #tpu.memory_space<vmem>>, vector<1x768xf32>
    %3 = vector.extract_strided_slice %1 {offsets = [0, 0], sizes = [24, 28], strides = [1, 1]} : vector<28x28xf32> to vector<24x28xf32>
    %4 = arith.truncf %3 : vector<24x28xf32> to vector<24x28xbf16>
    %c0_4 = arith.constant 0 : index
    %c0_5 = arith.constant 0 : index
    %c0_6 = arith.constant 0 : index
    %5 = vector.load %arg2[%c0_4, %c0_5, %c0_6] : memref<5x28x768xbf16, #tpu.memory_space<vmem>>, vector<1x28x768xbf16>
    %6 = vector.shape_cast %5 : vector<1x28x768xbf16> to vector<28x768xbf16>
    %cst = arith.constant dense<0.000000e+00> : vector<24x768xf32>
    %7 = tpu.matmul %4, %6, %cst {dimension_numbers = #tpu.dot_dimension_numbers<[1], [0], [0], [1], [0, 0, 1, 1], [], []>} : vector<24x28xbf16>, vector<28x768xbf16>, vector<24x768xf32> -> vector<24x768xf32>
    %8 = vector.broadcast %2 : vector<1x768xf32> to vector<24x768xf32>
    %9 = arith.addf %8, %7 : vector<24x768xf32>
    %10 = vector.extract_strided_slice %1 {offsets = [1, 0], sizes = [24, 28], strides = [1, 1]} : vector<28x28xf32> to vector<24x28xf32>
    %11 = arith.truncf %10 : vector<24x28xf32> to vector<24x28xbf16>
    %c1 = arith.constant 1 : index
    %c0_7 = arith.constant 0 : index
    %c0_8 = arith.constant 0 : index
    %12 = vector.load %arg2[%c1, %c0_7, %c0_8] : memref<5x28x768xbf16, #tpu.memory_space<vmem>>, vector<1x28x768xbf16>
    %13 = vector.shape_cast %12 : vector<1x28x768xbf16> to vector<28x768xbf16>
    %cst_9 = arith.constant dense<0.000000e+00> : vector<24x768xf32>
    %14 = tpu.matmul %11, %13, %cst_9 {dimension_numbers = #tpu.dot_dimension_numbers<[1], [0], [0], [1], [0, 0, 1, 1], [], []>} : vector<24x28xbf16>, vector<28x768xbf16>, vector<24x768xf32> -> vector<24x768xf32>
    %15 = arith.addf %9, %14 : vector<24x768xf32>
    %16 = vector.extract_strided_slice %1 {offsets = [2, 0], sizes = [24, 28], strides = [1, 1]} : vector<28x28xf32> to vector<24x28xf32>
    %17 = arith.truncf %16 : vector<24x28xf32> to vector<24x28xbf16>
    %c2 = arith.constant 2 : index
    %c0_10 = arith.constant 0 : index
    %c0_11 = arith.constant 0 : index
    %18 = vector.load %arg2[%c2, %c0_10, %c0_11] : memref<5x28x768xbf16, #tpu.memory_space<vmem>>, vector<1x28x768xbf16>
    %19 = vector.shape_cast %18 : vector<1x28x768xbf16> to vector<28x768xbf16>
    %cst_12 = arith.constant dense<0.000000e+00> : vector<24x768xf32>
    %20 = tpu.matmul %17, %19, %cst_12 {dimension_numbers = #tpu.dot_dimension_numbers<[1], [0], [0], [1], [0, 0, 1, 1], [], []>} : vector<24x28xbf16>, vector<28x768xbf16>, vector<24x768xf32> -> vector<24x768xf32>
    %21 = arith.addf %15, %20 : vector<24x768xf32>
    %22 = vector.extract_strided_slice %1 {offsets = [3, 0], sizes = [24, 28], strides = [1, 1]} : vector<28x28xf32> to vector<24x28xf32>
    %23 = arith.truncf %22 : vector<24x28xf32> to vector<24x28xbf16>
    %c3 = arith.constant 3 : index
    %c0_13 = arith.constant 0 : index
    %c0_14 = arith.constant 0 : index
    %24 = vector.load %arg2[%c3, %c0_13, %c0_14] : memref<5x28x768xbf16, #tpu.memory_space<vmem>>, vector<1x28x768xbf16>
    %25 = vector.shape_cast %24 : vector<1x28x768xbf16> to vector<28x768xbf16>
    %cst_15 = arith.constant dense<0.000000e+00> : vector<24x768xf32>
    %26 = tpu.matmul %23, %25, %cst_15 {dimension_numbers = #tpu.dot_dimension_numbers<[1], [0], [0], [1], [0, 0, 1, 1], [], []>} : vector<24x28xbf16>, vector<28x768xbf16>, vector<24x768xf32> -> vector<24x768xf32>
    %27 = arith.addf %21, %26 : vector<24x768xf32>
    %28 = vector.extract_strided_slice %1 {offsets = [4, 0], sizes = [24, 28], strides = [1, 1]} : vector<28x28xf32> to vector<24x28xf32>
    %29 = arith.truncf %28 : vector<24x28xf32> to vector<24x28xbf16>
    %c4 = arith.constant 4 : index
    %c0_16 = arith.constant 0 : index
    %c0_17 = arith.constant 0 : index
    %30 = vector.load %arg2[%c4, %c0_16, %c0_17] : memref<5x28x768xbf16, #tpu.memory_space<vmem>>, vector<1x28x768xbf16>
    %31 = vector.shape_cast %30 : vector<1x28x768xbf16> to vector<28x768xbf16>
    %cst_18 = arith.constant dense<0.000000e+00> : vector<24x768xf32>
    %32 = tpu.matmul %29, %31, %cst_18 {dimension_numbers = #tpu.dot_dimension_numbers<[1], [0], [0], [1], [0, 0, 1, 1], [], []>} : vector<24x28xbf16>, vector<28x768xbf16>, vector<24x768xf32> -> vector<24x768xf32>
    %33 = arith.addf %27, %32 : vector<24x768xf32>
    %c0_19 = arith.constant 0 : index
    %c0_20 = arith.constant 0 : index
    %c0_21 = arith.constant 0 : index
    %34 = vector.load %arg4[%c0_19, %c0_20, %c0_21] : memref<2x12x24xf32, #tpu.memory_space<vmem>>, vector<1x12x24xf32>
    %35 = vector.shape_cast %34 : vector<1x12x24xf32> to vector<12x24xf32>
    %cst_22 = arith.constant dense<0.000000e+00> : vector<12x768xf32>
    %36 = tpu.matmul %35, %33, %cst_22 {dimension_numbers = #tpu.dot_dimension_numbers<[1], [0], [0], [1], [0, 0, 1, 1], [], []>} : vector<12x24xf32>, vector<24x768xf32>, vector<12x768xf32> -> vector<12x768xf32>
    %c1_23 = arith.constant 1 : index
    %c0_24 = arith.constant 0 : index
    %c0_25 = arith.constant 0 : index
    %37 = vector.load %arg4[%c1_23, %c0_24, %c0_25] : memref<2x12x24xf32, #tpu.memory_space<vmem>>, vector<1x12x24xf32>
    %38 = vector.shape_cast %37 : vector<1x12x24xf32> to vector<12x24xf32>
    %cst_26 = arith.constant dense<0.000000e+00> : vector<12x768xf32>
    %39 = tpu.matmul %38, %33, %cst_26 {dimension_numbers = #tpu.dot_dimension_numbers<[1], [0], [0], [1], [0, 0, 1, 1], [], []>} : vector<12x24xf32>, vector<24x768xf32>, vector<12x768xf32> -> vector<12x768xf32>
    %40 = arith.maximumf %36, %39 : vector<12x768xf32>
    %c0_27 = arith.constant 0 : index
    %c0_28 = arith.constant 0 : index
    %c0_29 = arith.constant 0 : index
    %41 = vector.load %arg5[%c0_27, %c0_28, %c0_29] : memref<2x768x384xf32, #tpu.memory_space<vmem>>, vector<1x768x384xf32>
    %42 = vector.shape_cast %41 : vector<1x768x384xf32> to vector<768x384xf32>
    %cst_30 = arith.constant dense<0.000000e+00> : vector<12x384xf32>
    %43 = tpu.matmul %40, %42, %cst_30 {dimension_numbers = #tpu.dot_dimension_numbers<[1], [0], [0], [1], [0, 0, 1, 1], [], []>} : vector<12x768xf32>, vector<768x384xf32>, vector<12x384xf32> -> vector<12x384xf32>
    %c1_31 = arith.constant 1 : index
    %c0_32 = arith.constant 0 : index
    %c0_33 = arith.constant 0 : index
    %44 = vector.load %arg5[%c1_31, %c0_32, %c0_33] : memref<2x768x384xf32, #tpu.memory_space<vmem>>, vector<1x768x384xf32>
    %45 = vector.shape_cast %44 : vector<1x768x384xf32> to vector<768x384xf32>
    %cst_34 = arith.constant dense<0.000000e+00> : vector<12x384xf32>
    %46 = tpu.matmul %40, %45, %cst_34 {dimension_numbers = #tpu.dot_dimension_numbers<[1], [0], [0], [1], [0, 0, 1, 1], [], []>} : vector<12x768xf32>, vector<768x384xf32>, vector<12x384xf32> -> vector<12x384xf32>
    %47 = arith.maximumf %43, %46 : vector<12x384xf32>
    %cst_35 = arith.constant 0.000000e+00 : f32
    %48 = vector.broadcast %cst_35 : f32 to vector<12x384xf32>
    %49 = arith.maximumf %47, %48 : vector<12x384xf32>
    %c0_36 = arith.constant 0 : index
    %c0_37 = arith.constant 0 : index
    %50 = vector.load %arg7[%c0_36, %c0_37] : memref<1x320xf32, #tpu.memory_space<vmem>>, vector<1x320xf32>
    %51 = vector.extract_strided_slice %49 {offsets = [0, 0], sizes = [10, 384], strides = [1, 1]} : vector<12x384xf32> to vector<10x384xf32>
    %52 = arith.truncf %51 : vector<10x384xf32> to vector<10x384xbf16>
    %c0_38 = arith.constant 0 : index
    %c0_39 = arith.constant 0 : index
    %c0_40 = arith.constant 0 : index
    %53 = vector.load %arg6[%c0_38, %c0_39, %c0_40] : memref<3x384x320xbf16, #tpu.memory_space<vmem>>, vector<1x384x320xbf16>
    %54 = vector.shape_cast %53 : vector<1x384x320xbf16> to vector<384x320xbf16>
    %cst_41 = arith.constant dense<0.000000e+00> : vector<10x320xf32>
    %55 = tpu.matmul %52, %54, %cst_41 {dimension_numbers = #tpu.dot_dimension_numbers<[1], [0], [0], [1], [0, 0, 1, 1], [], []>} : vector<10x384xbf16>, vector<384x320xbf16>, vector<10x320xf32> -> vector<10x320xf32>
    %56 = vector.broadcast %50 : vector<1x320xf32> to vector<10x320xf32>
    %57 = arith.addf %56, %55 : vector<10x320xf32>
    %58 = vector.extract_strided_slice %49 {offsets = [1, 0], sizes = [10, 384], strides = [1, 1]} : vector<12x384xf32> to vector<10x384xf32>
    %59 = arith.truncf %58 : vector<10x384xf32> to vector<10x384xbf16>
    %c1_42 = arith.constant 1 : index
    %c0_43 = arith.constant 0 : index
    %c0_44 = arith.constant 0 : index
    %60 = vector.load %arg6[%c1_42, %c0_43, %c0_44] : memref<3x384x320xbf16, #tpu.memory_space<vmem>>, vector<1x384x320xbf16>
    %61 = vector.shape_cast %60 : vector<1x384x320xbf16> to vector<384x320xbf16>
    %cst_45 = arith.constant dense<0.000000e+00> : vector<10x320xf32>
    %62 = tpu.matmul %59, %61, %cst_45 {dimension_numbers = #tpu.dot_dimension_numbers<[1], [0], [0], [1], [0, 0, 1, 1], [], []>} : vector<10x384xbf16>, vector<384x320xbf16>, vector<10x320xf32> -> vector<10x320xf32>
    %63 = arith.addf %57, %62 : vector<10x320xf32>
    %64 = vector.extract_strided_slice %49 {offsets = [2, 0], sizes = [10, 384], strides = [1, 1]} : vector<12x384xf32> to vector<10x384xf32>
    %65 = arith.truncf %64 : vector<10x384xf32> to vector<10x384xbf16>
    %c2_46 = arith.constant 2 : index
    %c0_47 = arith.constant 0 : index
    %c0_48 = arith.constant 0 : index
    %66 = vector.load %arg6[%c2_46, %c0_47, %c0_48] : memref<3x384x320xbf16, #tpu.memory_space<vmem>>, vector<1x384x320xbf16>
    %67 = vector.shape_cast %66 : vector<1x384x320xbf16> to vector<384x320xbf16>
    %cst_49 = arith.constant dense<0.000000e+00> : vector<10x320xf32>
    %68 = tpu.matmul %65, %67, %cst_49 {dimension_numbers = #tpu.dot_dimension_numbers<[1], [0], [0], [1], [0, 0, 1, 1], [], []>} : vector<10x384xbf16>, vector<384x320xbf16>, vector<10x320xf32> -> vector<10x320xf32>
    %69 = arith.addf %63, %68 : vector<10x320xf32>
    %c0_50 = arith.constant 0 : index
    %c0_51 = arith.constant 0 : index
    %c0_52 = arith.constant 0 : index
    %70 = vector.load %arg8[%c0_50, %c0_51, %c0_52] : memref<2x5x10xf32, #tpu.memory_space<vmem>>, vector<1x5x10xf32>
    %71 = vector.shape_cast %70 : vector<1x5x10xf32> to vector<5x10xf32>
    %cst_53 = arith.constant dense<0.000000e+00> : vector<5x320xf32>
    %72 = tpu.matmul %71, %69, %cst_53 {dimension_numbers = #tpu.dot_dimension_numbers<[1], [0], [0], [1], [0, 0, 1, 1], [], []>} : vector<5x10xf32>, vector<10x320xf32>, vector<5x320xf32> -> vector<5x320xf32>
    %c1_54 = arith.constant 1 : index
    %c0_55 = arith.constant 0 : index
    %c0_56 = arith.constant 0 : index
    %73 = vector.load %arg8[%c1_54, %c0_55, %c0_56] : memref<2x5x10xf32, #tpu.memory_space<vmem>>, vector<1x5x10xf32>
    %74 = vector.shape_cast %73 : vector<1x5x10xf32> to vector<5x10xf32>
    %cst_57 = arith.constant dense<0.000000e+00> : vector<5x320xf32>
    %75 = tpu.matmul %74, %69, %cst_57 {dimension_numbers = #tpu.dot_dimension_numbers<[1], [0], [0], [1], [0, 0, 1, 1], [], []>} : vector<5x10xf32>, vector<10x320xf32>, vector<5x320xf32> -> vector<5x320xf32>
    %76 = arith.maximumf %72, %75 : vector<5x320xf32>
    %c0_58 = arith.constant 0 : index
    %c0_59 = arith.constant 0 : index
    %c0_60 = arith.constant 0 : index
    %77 = vector.load %arg9[%c0_58, %c0_59, %c0_60] : memref<2x320x160xf32, #tpu.memory_space<vmem>>, vector<1x320x160xf32>
    %78 = vector.shape_cast %77 : vector<1x320x160xf32> to vector<320x160xf32>
    %cst_61 = arith.constant dense<0.000000e+00> : vector<5x160xf32>
    %79 = tpu.matmul %76, %78, %cst_61 {dimension_numbers = #tpu.dot_dimension_numbers<[1], [0], [0], [1], [0, 0, 1, 1], [], []>} : vector<5x320xf32>, vector<320x160xf32>, vector<5x160xf32> -> vector<5x160xf32>
    %c1_62 = arith.constant 1 : index
    %c0_63 = arith.constant 0 : index
    %c0_64 = arith.constant 0 : index
    %80 = vector.load %arg9[%c1_62, %c0_63, %c0_64] : memref<2x320x160xf32, #tpu.memory_space<vmem>>, vector<1x320x160xf32>
    %81 = vector.shape_cast %80 : vector<1x320x160xf32> to vector<320x160xf32>
    %cst_65 = arith.constant dense<0.000000e+00> : vector<5x160xf32>
    %82 = tpu.matmul %76, %81, %cst_65 {dimension_numbers = #tpu.dot_dimension_numbers<[1], [0], [0], [1], [0, 0, 1, 1], [], []>} : vector<5x320xf32>, vector<320x160xf32>, vector<5x160xf32> -> vector<5x160xf32>
    %83 = arith.maximumf %79, %82 : vector<5x160xf32>
    %cst_66 = arith.constant 0.000000e+00 : f32
    %84 = vector.broadcast %cst_66 : f32 to vector<5x160xf32>
    %85 = arith.maximumf %83, %84 : vector<5x160xf32>
    %c0_67 = arith.constant 0 : index
    %c0_68 = arith.constant 0 : index
    %86 = vector.load %arg11[%c0_67, %c0_68] : memref<1x64xf32, #tpu.memory_space<vmem>>, vector<1x64xf32>
    %87 = vector.extract_strided_slice %85 {offsets = [0, 0], sizes = [1, 160], strides = [1, 1]} : vector<5x160xf32> to vector<1x160xf32>
    %88 = arith.truncf %87 : vector<1x160xf32> to vector<1x160xbf16>
    %c0_69 = arith.constant 0 : index
    %c0_70 = arith.constant 0 : index
    %c0_71 = arith.constant 0 : index
    %89 = vector.load %arg10[%c0_69, %c0_70, %c0_71] : memref<5x160x64xbf16, #tpu.memory_space<vmem>>, vector<1x160x64xbf16>
    %90 = vector.shape_cast %89 : vector<1x160x64xbf16> to vector<160x64xbf16>
    %cst_72 = arith.constant dense<0.000000e+00> : vector<1x64xf32>
    %91 = tpu.matmul %88, %90, %cst_72 {dimension_numbers = #tpu.dot_dimension_numbers<[1], [0], [0], [1], [0, 0, 1, 1], [], []>} : vector<1x160xbf16>, vector<160x64xbf16>, vector<1x64xf32> -> vector<1x64xf32>
    %92 = arith.addf %86, %91 : vector<1x64xf32>
    %93 = vector.extract_strided_slice %85 {offsets = [1, 0], sizes = [1, 160], strides = [1, 1]} : vector<5x160xf32> to vector<1x160xf32>
    %94 = arith.truncf %93 : vector<1x160xf32> to vector<1x160xbf16>
    %c1_73 = arith.constant 1 : index
    %c0_74 = arith.constant 0 : index
    %c0_75 = arith.constant 0 : index
    %95 = vector.load %arg10[%c1_73, %c0_74, %c0_75] : memref<5x160x64xbf16, #tpu.memory_space<vmem>>, vector<1x160x64xbf16>
    %96 = vector.shape_cast %95 : vector<1x160x64xbf16> to vector<160x64xbf16>
    %cst_76 = arith.constant dense<0.000000e+00> : vector<1x64xf32>
    %97 = tpu.matmul %94, %96, %cst_76 {dimension_numbers = #tpu.dot_dimension_numbers<[1], [0], [0], [1], [0, 0, 1, 1], [], []>} : vector<1x160xbf16>, vector<160x64xbf16>, vector<1x64xf32> -> vector<1x64xf32>
    %98 = arith.addf %92, %97 : vector<1x64xf32>
    %99 = vector.extract_strided_slice %85 {offsets = [2, 0], sizes = [1, 160], strides = [1, 1]} : vector<5x160xf32> to vector<1x160xf32>
    %100 = arith.truncf %99 : vector<1x160xf32> to vector<1x160xbf16>
    %c2_77 = arith.constant 2 : index
    %c0_78 = arith.constant 0 : index
    %c0_79 = arith.constant 0 : index
    %101 = vector.load %arg10[%c2_77, %c0_78, %c0_79] : memref<5x160x64xbf16, #tpu.memory_space<vmem>>, vector<1x160x64xbf16>
    %102 = vector.shape_cast %101 : vector<1x160x64xbf16> to vector<160x64xbf16>
    %cst_80 = arith.constant dense<0.000000e+00> : vector<1x64xf32>
    %103 = tpu.matmul %100, %102, %cst_80 {dimension_numbers = #tpu.dot_dimension_numbers<[1], [0], [0], [1], [0, 0, 1, 1], [], []>} : vector<1x160xbf16>, vector<160x64xbf16>, vector<1x64xf32> -> vector<1x64xf32>
    %104 = arith.addf %98, %103 : vector<1x64xf32>
    %105 = vector.extract_strided_slice %85 {offsets = [3, 0], sizes = [1, 160], strides = [1, 1]} : vector<5x160xf32> to vector<1x160xf32>
    %106 = arith.truncf %105 : vector<1x160xf32> to vector<1x160xbf16>
    %c3_81 = arith.constant 3 : index
    %c0_82 = arith.constant 0 : index
    %c0_83 = arith.constant 0 : index
    %107 = vector.load %arg10[%c3_81, %c0_82, %c0_83] : memref<5x160x64xbf16, #tpu.memory_space<vmem>>, vector<1x160x64xbf16>
    %108 = vector.shape_cast %107 : vector<1x160x64xbf16> to vector<160x64xbf16>
    %cst_84 = arith.constant dense<0.000000e+00> : vector<1x64xf32>
    %109 = tpu.matmul %106, %108, %cst_84 {dimension_numbers = #tpu.dot_dimension_numbers<[1], [0], [0], [1], [0, 0, 1, 1], [], []>} : vector<1x160xbf16>, vector<160x64xbf16>, vector<1x64xf32> -> vector<1x64xf32>
    %110 = arith.addf %104, %109 : vector<1x64xf32>
    %111 = vector.extract_strided_slice %85 {offsets = [4, 0], sizes = [1, 160], strides = [1, 1]} : vector<5x160xf32> to vector<1x160xf32>
    %112 = arith.truncf %111 : vector<1x160xf32> to vector<1x160xbf16>
    %c4_85 = arith.constant 4 : index
    %c0_86 = arith.constant 0 : index
    %c0_87 = arith.constant 0 : index
    %113 = vector.load %arg10[%c4_85, %c0_86, %c0_87] : memref<5x160x64xbf16, #tpu.memory_space<vmem>>, vector<1x160x64xbf16>
    %114 = vector.shape_cast %113 : vector<1x160x64xbf16> to vector<160x64xbf16>
    %cst_88 = arith.constant dense<0.000000e+00> : vector<1x64xf32>
    %115 = tpu.matmul %112, %114, %cst_88 {dimension_numbers = #tpu.dot_dimension_numbers<[1], [0], [0], [1], [0, 0, 1, 1], [], []>} : vector<1x160xbf16>, vector<160x64xbf16>, vector<1x64xf32> -> vector<1x64xf32>
    %116 = arith.addf %110, %115 : vector<1x64xf32>
    %cst_89 = arith.constant 0.000000e+00 : f32
    %117 = vector.broadcast %cst_89 : f32 to vector<1x64xf32>
    %118 = arith.maximumf %116, %117 : vector<1x64xf32>
    %119 = arith.truncf %118 : vector<1x64xf32> to vector<1x64xbf16>
    %c0_90 = arith.constant 0 : index
    %c0_91 = arith.constant 0 : index
    %120 = vector.load %arg12[%c0_90, %c0_91] : memref<64x10xbf16, #tpu.memory_space<vmem>>, vector<64x10xbf16>
    %cst_92 = arith.constant dense<0.000000e+00> : vector<1x10xf32>
    %121 = tpu.matmul %119, %120, %cst_92 {dimension_numbers = #tpu.dot_dimension_numbers<[1], [0], [0], [1], [0, 0, 1, 1], [], []>} : vector<1x64xbf16>, vector<64x10xbf16>, vector<1x10xf32> -> vector<1x10xf32>
    %c0_93 = arith.constant 0 : index
    %c0_94 = arith.constant 0 : index
    %122 = vector.load %arg13[%c0_93, %c0_94] : memref<1x10xf32, #tpu.memory_space<vmem>>, vector<1x10xf32>
    %123 = arith.addf %121, %122 : vector<1x10xf32>
    %cst_95 = arith.constant dense<0xFF800000> : vector<1xf32>
    %124 = vector.multi_reduction <maximumf>, %123, %cst_95 [1] : vector<1x10xf32> to vector<1xf32>
    %125 = vector.shape_cast %124 : vector<1xf32> to vector<1x1xf32>
    %126 = vector.broadcast %125 : vector<1x1xf32> to vector<1x10xf32>
    %127 = arith.subf %123, %126 : vector<1x10xf32>
    %128 = math.exp %127 : vector<1x10xf32>
    %cst_96 = arith.constant dense<0.000000e+00> : vector<1xf32>
    %129 = vector.multi_reduction <add>, %128, %cst_96 [1] : vector<1x10xf32> to vector<1xf32>
    %130 = vector.shape_cast %129 : vector<1xf32> to vector<1x1xf32>
    %131 = math.log %130 : vector<1x1xf32>
    %132 = vector.broadcast %131 : vector<1x1xf32> to vector<1x10xf32>
    %133 = arith.subf %127, %132 : vector<1x10xf32>
    %c0_97 = arith.constant 0 : index
    %c0_98 = arith.constant 0 : index
    %c0_99 = arith.constant 0 : index
    %134 = vector.load %arg14[%c0_97, %c0_98, %c0_99] : memref<1x1x10xf32, #tpu.memory_space<vmem>>, vector<1x1x10xf32>
    %135 = vector.shape_cast %134 : vector<1x1x10xf32> to vector<1x10xf32>
    %136 = vector.shape_cast %133 : vector<1x10xf32> to vector<1x1x10xf32>
    tpu.vector_store %arg14[%c0_97, %c0_98, %c0_99], %136 {strides = array<i32>} : memref<1x1x10xf32, #tpu.memory_space<vmem>>, vector<1x1x10xf32>,
    return
  }
  func.func @transform_0(%arg0: i32) -> (i32, i32, i32) {
    %c0_i32 = arith.constant 0 : i32
    %c0_i32_0 = arith.constant 0 : i32
    %c0_i32_1 = arith.constant 0 : i32
    return %arg0, %c0_i32, %c0_i32_0 : i32, i32, i32
  }
  func.func @transform_1(%arg0: i32) -> (i32, i32, i32) {
    %c0_i32 = arith.constant 0 : i32
    %c0_i32_0 = arith.constant 0 : i32
    %c0_i32_1 = arith.constant 0 : i32
    %c0_i32_2 = arith.constant 0 : i32
    return %c0_i32, %c0_i32_0, %c0_i32_1 : i32, i32, i32
  }
  func.func @transform_2(%arg0: i32) -> (i32, i32) {
    %c0_i32 = arith.constant 0 : i32
    %c0_i32_0 = arith.constant 0 : i32
    %c0_i32_1 = arith.constant 0 : i32
    return %c0_i32, %c0_i32_0 : i32, i32
  }
  func.func @transform_3(%arg0: i32) -> (i32, i32, i32) {
    %c0_i32 = arith.constant 0 : i32
    %c0_i32_0 = arith.constant 0 : i32
    %c0_i32_1 = arith.constant 0 : i32
    %c0_i32_2 = arith.constant 0 : i32
    return %c0_i32, %c0_i32_0, %c0_i32_1 : i32, i32, i32
  }
  func.func @transform_4(%arg0: i32) -> (i32, i32, i32) {
    %c0_i32 = arith.constant 0 : i32
    %c0_i32_0 = arith.constant 0 : i32
    %c0_i32_1 = arith.constant 0 : i32
    %c0_i32_2 = arith.constant 0 : i32
    return %c0_i32, %c0_i32_0, %c0_i32_1 : i32, i32, i32
  }
  func.func @transform_5(%arg0: i32) -> (i32, i32, i32) {
    %c0_i32 = arith.constant 0 : i32
    %c0_i32_0 = arith.constant 0 : i32
    %c0_i32_1 = arith.constant 0 : i32
    %c0_i32_2 = arith.constant 0 : i32
    return %c0_i32, %c0_i32_0, %c0_i32_1 : i32, i32, i32
  }
  func.func @transform_6(%arg0: i32) -> (i32, i32) {
    %c0_i32 = arith.constant 0 : i32
    %c0_i32_0 = arith.constant 0 : i32
    %c0_i32_1 = arith.constant 0 : i32
    return %c0_i32, %c0_i32_0 : i32, i32
  }
  func.func @transform_7(%arg0: i32) -> (i32, i32, i32) {
    %c0_i32 = arith.constant 0 : i32
    %c0_i32_0 = arith.constant 0 : i32
    %c0_i32_1 = arith.constant 0 : i32
    %c0_i32_2 = arith.constant 0 : i32
    return %c0_i32, %c0_i32_0, %c0_i32_1 : i32, i32, i32
  }
  func.func @transform_8(%arg0: i32) -> (i32, i32, i32) {
    %c0_i32 = arith.constant 0 : i32
    %c0_i32_0 = arith.constant 0 : i32
    %c0_i32_1 = arith.constant 0 : i32
    %c0_i32_2 = arith.constant 0 : i32
    return %c0_i32, %c0_i32_0, %c0_i32_1 : i32, i32, i32
  }
  func.func @transform_9(%arg0: i32) -> (i32, i32, i32) {
    %c0_i32 = arith.constant 0 : i32
    %c0_i32_0 = arith.constant 0 : i32
    %c0_i32_1 = arith.constant 0 : i32
    %c0_i32_2 = arith.constant 0 : i32
    return %c0_i32, %c0_i32_0, %c0_i32_1 : i32, i32, i32
  }
  func.func @transform_10(%arg0: i32) -> (i32, i32) {
    %c0_i32 = arith.constant 0 : i32
    %c0_i32_0 = arith.constant 0 : i32
    %c0_i32_1 = arith.constant 0 : i32
    return %c0_i32, %c0_i32_0 : i32, i32
  }
  func.func @transform_11(%arg0: i32) -> (i32, i32) {
    %c0_i32 = arith.constant 0 : i32
    %c0_i32_0 = arith.constant 0 : i32
    %c0_i32_1 = arith.constant 0 : i32
    return %c0_i32, %c0_i32_0 : i32, i32
  }
  func.func @transform_12(%arg0: i32) -> (i32, i32) {
    %c0_i32 = arith.constant 0 : i32
    %c0_i32_0 = arith.constant 0 : i32
    %c0_i32_1 = arith.constant 0 : i32
    return %c0_i32, %c0_i32_0 : i32, i32
  }
  func.func @transform_13(%arg0: i32) -> (i32, i32, i32) {
    %c0_i32 = arith.constant 0 : i32
    %c0_i32_0 = arith.constant 0 : i32
    %c0_i32_1 = arith.constant 0 : i32
    return %arg0, %c0_i32, %c0_i32_0 : i32, i32, i32
  }
}

</mosaic_0001>

<bundles_post_ra>
// kernel: mnist_net_forward.1
= control target key start
LH: loop header
LB: loop body
LE: loop exit
PB: predicated region body
PF: predicated region fallthrough
CT: control target
= control target key end

     0   :  { %s13679_s0 = inlined_call_operand.vmem [shape: f32[2,28,28], index: 0, kind: input, shape index: {}]   ;;  %s13680_s1 = inlined_call_operand.hbm [shape: bf16[5,28,768], index: 1, kind: input, shape index: {}]   ;;  %s13681_s2 = inlined_call_operand.vmem [shape: f32[1,768], index: 2, kind: input, shape index: {}]   ;;  %s13682_s3 = inlined_call_operand.vmem [shape: f32[2,12,24], index: 3, kind: input, shape index: {}]   ;;  %s13683_s4 = inlined_call_operand.vmem [shape: f32[2,768,384], index: 4, kind: input, shape index: {}]   ;;  %s13684_s5 = inlined_call_operand.vmem [shape: bf16[3,384,320], index: 5, kind: input, shape index: {}]   ;;  %s13685_s6 = inlined_call_operand.vmem [shape: f32[1,320], index: 6, kind: input, shape index: {}]   ;;  %s13686_s7 = inlined_call_operand.vmem [shape: f32[2,5,10], index: 7, kind: input, shape index: {}]   ;;  %s13687_s8 = inlined_call_operand.vmem [shape: f32[2,320,160], index: 8, kind: input, shape index: {}]   ;;  %s13688_s9 = inlined_call_operand.vmem [shape: bf16[5,160,64], index: 9, kind: input, shape index: {}]   ;;  %s13689_s10 = inlined_call_operand.vmem [shape: f32[1,64], index: 10, kind: input, shape index: {}]   ;;  %s13690_s11 = inlined_call_operand.vmem [shape: bf16[64,10], index: 11, kind: input, shape index: {}]   ;;  %s13691_s12 = inlined_call_operand.vmem [shape: f32[1,10], index: 12, kind: input, shape index: {}]   ;;  %s13692_s13 = inlined_call_operand.hbm [shape: f32[2,1,10], index: 13, kind: output, shape index: {}]  }
   0x1   :  { %13695 = sst [smem:[#allocation38_spill]] %s13679_s0 }
   0x2   :  { %13696 = sst [smem:[#allocation39_spill]] %s13680_s1 }
   0x3   :  { %13697 = sst [smem:[#allocation40_spill]] %s13681_s2 }
   0x4   :  { %13698 = sst [smem:[#allocation41_spill]] %s13682_s3 }
   0x5   :  { %18 = vsyncpa [#allocation3], 0 }
   0x6   :  { %19 = vsyncpa [#allocation4], 0 }
   0x7   :  { %21 = vsyncpa [#allocation4 + $0x1], 0  ;;  %s9113_s25 = smov 0   ;;  %s9115_s26 = smov 0  }
   0x8   :  { %s9117_s27 = smov 0   ;;  %s9119_s28 = smov 0  }
   0x9 LB: > { %s9134_s29 = sadd.s32 4294967295, %s9038_s28   ;;  %s6473_s30 = sadd.s32 4294967294, %s9038_s28   ;;  %s9038_s28 = sphi %s9119_s28, %s13768_s28   ;;  %s9034_s27 = sphi %s9117_s27, %s13767_s27   ;;  %s9030_s26 = sphi %s9115_s26, %s13766_s26   ;;  %s9026_s25 = sphi %s9113_s25, %s13765_s25  }
   0xa   : > { %s9138_s14 = sadd.s32 1, %s9038_s28   ;;  %s312_s15 = sadd.s32 1, %s9034_s27 }
   0xb   : > { %s309_s16 = ssub.s32 %s9038_s28, %s9138_s14  ;;  %p322_p0 = scmp.ne.s32.totalorder %s9034_s27, %s9030_s26 }
   0xc   : > { %p310_p1 = scmp.eq.s32.totalorder %s309_s16, 0  ;;  %p323_p2 = scmp.eq.s32.totalorder %s9134_s29, 1 }
   0xd   : > { %p328_p3 = scmp.ne.s32.totalorder %s9030_s26, %s9026_s25  ;;  %p329_p4 = scmp.eq.s32.totalorder %s6473_s30, 1 }
   0xe   : > { %s9149_s17 = scalar_select %p310_p1, %s9034_s27, %s312_s15  }
   0xf   : > { %p9151_p5 = por %p323_p2, %p322_p0  ;;  %p9155_p6 = por %p329_p4, %p328_p3 }
  0x10   : > { %p6474_p7 = scmp.ge.s32.totalorder %s9038_s28, 1  ;;  %p336_p8 = scmp.lt.s32.totalorder %s9038_s28, 3 }
  0x11   : > { %p8900_p9 = scmp.eq.s32.totalorder %s9134_s29, 0  ;;  %s13701_s1 = sld [smem:[#allocation39_spill]] }
  0x12   : > { %p337_p10 = pnand %p6474_p7, %p336_p8  ;;  %s9040_s23 = smov [#allocation2]  }
  0x13   : > { %s349_s24 = sshll.u32 %s9040_s23, 4  ;;  %s9041_s30 = smov 384   ;;  %s350_s24 = int_to_ptr.vmem [resolvable:$true] %s349_s24 }
  0x14   : > { %p8892_p11 = pneg %p337_p10  ;;  %s9042_s15 = smov 24  }
  0x15   : > { %406 = sbr.rel (%p337_p10) target bundleno = 2179 (0x883), region = 72 }
  0x16   : > { %p8893_p12 = pnand %p8900_p9, %p8892_p11 }
  0x17   : > { %s347_s22 = sshll.u32 %s13701_s1, 4  ;;  %s348_s22 = int_to_ptr.hbm [resolvable:$true] %s347_s22 }
  0x18   : > { %8895 = dma.hbm_to_vmem [thread:$0]  (!%p8893_p12), %s348_s22, 7680, %s350_s24, [#allocation3], %s9041_s30, %s9041_s30, %s9042_s15  }
  0x1a   : > { %9017 = dma.done.wait (%p8900_p9), [#allocation3], 7680  }
  0x1b   : > { %9019 = vsyncadd (%p8900_p9), [#allocation3], 4294959616  ;;  %p450_p13 = scmp.lt.s32.totalorder %s9134_s29, 1  ;;  %vm536_vm0 = vcmask 1045504   ;;  %v6507_v0 = vld [vmem:[#allocation2 + $0x30] sm:$0xf] }
  0x1c   : > { %v8562_v1 = vld [vmem:[#allocation2 + $0x44] sm:$0x30]  ;;  %v8559_v2 = vld [vmem:[#allocation2 + $0x34] sm:$0xf]  ;;  %s13702_s0 = sld [smem:[#allocation38_spill]]  ;;  %vm529_vm1 = vcmask 228352  }
  0x1d   : > { %s451_s16 = scalar_select %p450_p13, %s9134_s29, 1  ;;  %v6508_v3 = vor.u32 %v8562_v1, %v6507_v0  ;;  %v6509_v4 = vld [vmem:[#allocation2 + $0x48] sm:$0x30]  ;;  %v6515_v5 = vld [vmem:[#allocation2 + $0x38] sm:$0xf]  ;;  %vm942_vm3 = vcmask 1046528  }
  0x1e   : > { %v8563_v6 = vld [vmem:[#allocation2 + $0x4c] sm:$0x30]  ;;  %v6512_v7 = vor.u32 %v8559_v2, %v6509_v4  ;;  %v8560_v9 = vld [vmem:[#allocation2 + $0x3c] sm:$0xf]  ;;  %v6517_v10 = vld [vmem:[#allocation2 + $0x50] sm:$0x30] }
  0x1f   : > { %s8552_s20 = sshll.u32 %s451_s16, 5  ;;  %v6516_v8 = vor.u32 %v8563_v6, %v6515_v5  ;;  %v6483_v11 = vld [vmem:[#allocation2] sm:$0xf]  ;;  %v538_v12 = vsel %vm536_vm0, %v6508_v3, 0  ;;  %v6520_v13 = vor.u32 %v8560_v9, %v6517_v10  ;;  %v8556_v14 = vld [vmem:[#allocation2 + $0x14] sm:$0xf0] }
  0x20   : > { %v8553_v15 = vld [vmem:[#allocation2 + $0x4] sm:$0xf]  ;;  %561 = vmatpush.bf16.msra.mxu0 %v538_v12  ;;  %v541_v17 = vsel %vm536_vm0, %v6512_v7, 0  ;;  %v6484_v19 = vor.u32 %v8556_v14, %v6483_v11  ;;  %v6485_v20 = vld [vmem:[#allocation2 + $0x18] sm:$0xf0]  ;;  %s13730_s2 = sld [smem:[#allocation40_spill]] }
  0x21   : > { %v544_v18 = vsel %vm536_vm0, %v6516_v8, 0  ;;  %v6491_v21 = vld [vmem:[#allocation2 + $0x8] sm:$0xf]  ;;  %579 = vmatpush.bf16.msra.mxu1 %v541_v17  ;;  %v547_v22 = vsel %vm536_vm0, %v6520_v13, 0  ;;  %v6488_v23 = vor.u32 %v8553_v15, %v6485_v20  ;;  %v8557_v24 = vld [vmem:[#allocation2 + $0x1c] sm:$0xf0] }
  0x22   : > { %s9176_s22 = scalar_lea.vmem %s13702_s0, %s8552_s20  ;;  %597 = vmatpush.bf16.msra.mxu2 %v544_v18  ;;  %v8554_v25 = vld [vmem:[#allocation2 + $0xc] sm:$0xf]  ;;  %615 = vmatpush.bf16.msra.mxu3 %v547_v22  ;;  %v6492_v27 = vor.u32 %v8557_v24, %v6491_v21  ;;  %v6493_v28 = vld [vmem:[#allocation2 + $0x20] sm:$0xf0]  ;;  %v6523_v32 = vld [vmem:[#allocation2 + $0x40] sm:$0xf]  ;;  %s6402_s20 = scalar_lea.hbm %s13692_s13, %s9134_s29 }
  0x23   : > { %v456_v16 = vld [vmem:[%s9176_s22] sm:$0xff]  ;;  %v457_v26 = vld [vmem:[%s9176_s22 + $0x8] sm:$0xff]  ;;  %v459_v29 = vld [vmem:[%s9176_s22 + $0x18] sm:$0xf]  ;;  %v6496_v30 = vor.u32 %v8554_v25, %v6493_v28  ;;  %vm708_vm2 = vsmask.f32 7424 }
  0x24   : > { %v9185_v31 = vpack.c.bf16 %v457_v26, %v456_v16  ;;  %v8564_v33 = vld [vmem:[#allocation2 + $0x54] sm:$0x30]  ;;  %v8561_v34 = vld [vmem:[#allocation2 + $0x44] sm:$0xf]  ;;  %562 = vmatpush.bf16.msra.mxu0 %v6484_v19  ;;  %v6525_v36 = vld [vmem:[#allocation2 + $0x58] sm:$0x30] }
  0x25   : > { %v6524_v35 = vor.u32 %v8564_v33, %v6523_v32  ;;  %v6567_v37 = vld [vmem:[#allocation2 + $0x90] sm:$0xf]  ;;  %v8574_v38 = vld [vmem:[#allocation2 + $0xa4] sm:$0x30]  ;;  %580 = vmatpush.bf16.msra.mxu1 %v6488_v23  ;;  %v6528_v40 = vor.u32 %v8561_v34, %v6525_v36  ;;  %v8571_v42 = vld [vmem:[#allocation2 + $0x94] sm:$0xf] }
  0x26   : > { %598 = vmatpush.bf16.msra.mxu2 %v6492_v27  ;;  %v458_v39 = vld [vmem:[%s9176_s22 + $0x10] sm:$0xff]  ;;  %v6568_v41 = vor.u32 %v8574_v38, %v6567_v37  ;;  %v6569_v43 = vld [vmem:[#allocation2 + $0xa8] sm:$0x30]  ;;  %616 = vmatpush.bf16.msra.mxu3 %v6496_v30  ;;  %v8558_v48 = vld [vmem:[#allocation2 + $0x24] sm:$0xf0]  ;;  %v709_v4 = vshrl.u32 %v9185_v31, 16 }
  0x27   : > { %v9188_v44 = vpack.c.bf16 %v459_v29, %v458_v39  ;;  %v550_v45 = vsel %vm536_vm0, %v6524_v35, 0  ;;  %v6572_v46 = vor.u32 %v8571_v42, %v6569_v43  ;;  %v6499_v47 = vld [vmem:[#allocation2 + $0x10] sm:$0xf]  ;;  %6529 = vmatmul.msk.bf16.vlgmr.msra.gmra.mxu0 %vm529_vm1, %v9185_v31  ;;  %v553_v49 = vsel %vm536_vm0, %v6528_v40, 0  ;;  %v8555_v51 = vld [vmem:[#allocation2 + $0x14] sm:$0xf] }
  0x28   : > { %v784_v50 = vsel %vm536_vm0, %v6568_v41, 0  ;;  %v6501_v52 = vld [vmem:[#allocation2 + $0x28] sm:$0xf0]  ;;  %6531 = vmatmul.msk.bf16.vlgmr.msra.gmra.mxu1 %vm529_vm1, %v9185_v31  ;;  %v6543_v54 = vld [vmem:[#allocation2 + $0x60] sm:$0xf]  ;;  %633 = vmatpush.bf16.msrb.mxu0 %v550_v45  ;;  %v6500_v56 = vor.u32 %v8558_v48, %v6499_v47  ;;  %v462_v3 = vpack.c.bf16 %v458_v39, %v458_v39  ;;  %v711_v5 = vshll.u32 %v9185_v31, 16 }
  0x29   : > { %6533 = vmatmul.msk.bf16.vlgmr.msra.gmra.mxu2 %vm529_vm1, %v9185_v31  ;;  %v787_v53 = vsel %vm536_vm0, %v6572_v46, 0  ;;  %v8568_v55 = vld [vmem:[#allocation2 + $0x74] sm:$0xf0]  ;;  %6535 = vmatmul.msk.bf16.vlgmr.msra.gmra.mxu3 %vm529_vm1, %v9185_v31  ;;  %v8565_v57 = vld [vmem:[#allocation2 + $0x64] sm:$0xf]  ;;  %v6504_v59 = vor.u32 %v8555_v51, %v6501_v52  ;;  %v716_v61 = vshll.u32 %v9188_v44, 16 }
  0x2a   : > { %v6545_v58 = vld [vmem:[#allocation2 + $0x78] sm:$0xf0]  ;;  %651 = vmatpush.bf16.msrb.mxu1 %v553_v49  ;;  %807 = vmatpush.bf16.msrb.mxu2 %v784_v50  ;;  %v6544_v60 = vor.u32 %v8568_v55, %v6543_v54  ;;  %v720_v62 = vshrl.u32 %v9188_v44, 16  ;;  %v6575_v6 = vld [vmem:[#allocation2 + $0x98] sm:$0xf]  ;;  %v713_v18 = vrot.slane %v711_v5, 1 }
  0x2b   : > { %825 = vmatpush.bf16.msrb.mxu3 %v787_v53  ;;  %v6548_v63 = vor.u32 %v8565_v57, %v6545_v58  ;;  %v1168_v1 = vrot.slane %v716_v61, 2  ;;  %v8575_v7 = vld [vmem:[#allocation2 + $0xac] sm:$0x30]  ;;  %v8572_v8 = vld [vmem:[#allocation2 + $0x9c] sm:$0xf]  ;;  %v718_v37 = vrot.slane %v716_v61, 1 }
  0x2c   : > { %v1167_v0 = vrot.slane %v720_v62, 1  ;;  %634 = vmatpush.bf16.msrb.mxu0 %v6500_v56  ;;  %v6576_v9 = vor.u32 %v8575_v7, %v6575_v6  ;;  %v6577_v10 = vld [vmem:[#allocation2 + $0xb0] sm:$0x30]  ;;  %v6583_v11 = vld [vmem:[#allocation2 + $0xa0] sm:$0xf]  ;;  %v714_v36 = vor.u32 %v713_v18, %v709_v4  ;;  %s13734_s3 = sld [smem:[#allocation41_spill]] }
  0x2d   : > { %v8576_v12 = vld [vmem:[#allocation2 + $0xb4] sm:$0x30]  ;;  %v6580_v13 = vor.u32 %v8572_v8, %v6577_v10  ;;  %v8573_v15 = vld [vmem:[#allocation2 + $0xa4] sm:$0xf]  ;;  %v6585_v16 = vld [vmem:[#allocation2 + $0xb8] sm:$0x30]  ;;  %v722_v39 = vor.u32 %v720_v62, %v718_v37 }
  0x2e   : > { %652 = vmatpush.bf16.msrb.mxu1 %v6504_v59  ;;  %808 = vmatpush.bf16.msrb.mxu2 %v6544_v60  ;;  %v9204_v2 = vor.u32 %v1168_v1, %v1167_v0  ;;  %v6584_v14 = vor.u32 %v8576_v12, %v6583_v11  ;;  %v6551_v17 = vld [vmem:[#allocation2 + $0x68] sm:$0xf]  ;;  %v790_v19 = vsel %vm536_vm0, %v6576_v9, 0  ;;  %v6588_v20 = vor.u32 %v8573_v15, %v6585_v16  ;;  %v8569_v21 = vld [vmem:[#allocation2 + $0x7c] sm:$0xf0]  ;;  %s6406_s1 = sshll.u32 %s6402_s20, 4  ;;  %s6407_s1 = int_to_ptr.hbm [resolvable:$true] %s6406_s1 }
  0x2f   : > { %826 = vmatpush.bf16.msrb.mxu3 %v6548_v63  ;;  %v8566_v22 = vld [vmem:[#allocation2 + $0x6c] sm:$0xf]  ;;  %v793_v23 = vsel %vm536_vm0, %v6580_v13, 0  ;;  %v6552_v25 = vor.u32 %v8569_v21, %v6551_v17  ;;  %v6553_v26 = vld [vmem:[#allocation2 + $0x80] sm:$0xf0]  ;;  %v719_v38 = vsel %vm708_vm2, %v714_v36, %v718_v37  ;;  %vm1598_vm5 = vcmask 195584  }
  0x30   : > { %843 = vmatpush.bf16.msra.mxu0 %v790_v19  ;;  %v796_v24 = vsel %vm536_vm0, %v6584_v14, 0  ;;  %v6559_v27 = vld [vmem:[#allocation2 + $0x70] sm:$0xf]  ;;  %v799_v28 = vsel %vm536_vm0, %v6588_v20, 0  ;;  %v6556_v29 = vor.u32 %v8566_v22, %v6553_v26  ;;  %v8570_v30 = vld [vmem:[#allocation2 + $0x84] sm:$0xf0] }
  0x31   : > { %v8567_v32 = vld [vmem:[#allocation2 + $0x74] sm:$0xf]  ;;  %v6560_v33 = vor.u32 %v8570_v30, %v6559_v27  ;;  %v6561_v34 = vld [vmem:[#allocation2 + $0x88] sm:$0xf0]  ;;  %v6627_v40 = vld [vmem:[#allocation2 + $0xf0] sm:$0xf] }
  0x32   : > { %861 = vmatpush.bf16.msra.mxu1 %v793_v23  ;;  %879 = vmatpush.bf16.msra.mxu2 %v796_v24  ;;  %v6564_v35 = vor.u32 %v8567_v32, %v6561_v34  ;;  %v8586_v41 = vld [vmem:[#allocation2 + $0x104] sm:$0x30]  ;;  %v8583_v42 = vld [vmem:[#allocation2 + $0xf4] sm:$0xf]  ;;  %v6629_v45 = vld [vmem:[#allocation2 + $0x108] sm:$0x30] }
  0x33   : > { %897 = vmatpush.bf16.msra.mxu3 %v799_v28  ;;  %v6628_v43 = vor.u32 %v8586_v41, %v6627_v40  ;;  %v6635_v46 = vld [vmem:[#allocation2 + $0xf8] sm:$0xf]  ;;  %v8587_v47 = vld [vmem:[#allocation2 + $0x10c] sm:$0x30]  ;;  %v6632_v48 = vor.u32 %v8583_v42, %v6629_v45  ;;  %v8584_v50 = vld [vmem:[#allocation2 + $0xfc] sm:$0xf] }
  0x34   : > { %844 = vmatpush.bf16.msra.mxu0 %v6552_v25  ;;  %v6636_v49 = vor.u32 %v8587_v47, %v6635_v46  ;;  %v6637_v51 = vld [vmem:[#allocation2 + $0x110] sm:$0x30]  ;;  %v6603_v52 = vld [vmem:[#allocation2 + $0xc0] sm:$0xf]  ;;  %v8580_v55 = vld [vmem:[#allocation2 + $0xd4] sm:$0xf0] }
  0x35   : > { %v1007_v53 = vsel %vm536_vm0, %v6628_v43, 0  ;;  %v6640_v54 = vor.u32 %v8584_v50, %v6637_v51  ;;  %v8577_v56 = vld [vmem:[#allocation2 + $0xc4] sm:$0xf]  ;;  %v1010_v57 = vsel %vm536_vm0, %v6632_v48, 0  ;;  %v6604_v59 = vor.u32 %v8580_v55, %v6603_v52  ;;  %v6605_v60 = vld [vmem:[#allocation2 + $0xd8] sm:$0xf0] }
  0x36   : > { %862 = vmatpush.bf16.msra.mxu1 %v6556_v29  ;;  %880 = vmatpush.bf16.msra.mxu2 %v6560_v33  ;;  %v1013_v58 = vsel %vm536_vm0, %v6636_v49, 0  ;;  %v6611_v61 = vld [vmem:[#allocation2 + $0xc8] sm:$0xf]  ;;  %v6608_v63 = vor.u32 %v8577_v56, %v6605_v60  ;;  %v8581_v0 = vld [vmem:[#allocation2 + $0xdc] sm:$0xf0]  ;;  %v9247_v24 = vrot.slane %v9188_v44, 1 }
  0x37   : > { %6530 = vmatmul.msk.bf16.gmra.mxu0 %vm529_vm1, %v462_v3  ;;  %898 = vmatpush.bf16.msra.mxu3 %v6564_v35  ;;  %v1016_v62 = vsel %vm536_vm0, %v6640_v54, 0  ;;  %v8578_v1 = vld [vmem:[#allocation2 + $0xcc] sm:$0xf]  ;;  %v6613_v6 = vld [vmem:[#allocation2 + $0xe0] sm:$0xf0]  ;;  %v943_v25 = vrot.slane %v9185_v31, 1 }
  0x38   : > { %6532 = vmatmul.msk.bf16.gmra.mxu1 %vm529_vm1, %v462_v3  ;;  %v6616_v7 = vor.u32 %v8578_v1, %v6613_v6  ;;  %v6643_v8 = vld [vmem:[#allocation2 + $0x100] sm:$0xf]  ;;  %v8588_v9 = vld [vmem:[#allocation2 + $0x114] sm:$0x30]  ;;  %v8585_v10 = vld [vmem:[#allocation2 + $0x104] sm:$0xf] }
  0x39   : > { %6534 = vmatmul.msk.bf16.gmra.mxu2 %vm529_vm1, %v462_v3  ;;  %6536 = vmatmul.msk.bf16.gmra.mxu3 %vm529_vm1, %v462_v3  ;;  %v6644_v11 = vor.u32 %v8588_v9, %v6643_v8  ;;  %v6645_v12 = vld [vmem:[#allocation2 + $0x118] sm:$0x30]  ;;  %v6687_v13 = vld [vmem:[#allocation2 + $0x150] sm:$0xf]  ;;  %v8598_v14 = vld [vmem:[#allocation2 + $0x164] sm:$0x30]  ;;  %v9251_v29 = vsel %vm942_vm3, %v943_v25, %v9247_v24 }
  0x3a   : > { %v6648_v15 = vor.u32 %v8585_v10, %v6645_v12  ;;  %v6688_v16 = vor.u32 %v8598_v14, %v6687_v13  ;;  %v8595_v17 = vld [vmem:[#allocation2 + $0x154] sm:$0xf]  ;;  %v6689_v18 = vld [vmem:[#allocation2 + $0x168] sm:$0x30]  ;;  %v6619_v26 = vld [vmem:[#allocation2 + $0xd0] sm:$0xf] }
  0x3b   : > { %v1019_v19 = vsel %vm536_vm0, %v6644_v11, 0  ;;  %v6692_v20 = vor.u32 %v8595_v17, %v6689_v18  ;;  %v8582_v27 = vld [vmem:[#allocation2 + $0xe4] sm:$0xf0]  ;;  %v8579_v28 = vld [vmem:[#allocation2 + $0xd4] sm:$0xf]  ;;  %v1164_v40 = vrot.slane %v709_v4, 1 }
  0x3c   : > { %v1022_v21 = vsel %vm536_vm0, %v6648_v15, 0  ;;  %v1232_v22 = vsel %vm536_vm0, %v6688_v16, 0  ;;  %v6620_v30 = vor.u32 %v8582_v27, %v6619_v26  ;;  %v6621_v32 = vld [vmem:[#allocation2 + $0xe8] sm:$0xf0]  ;;  %v6663_v33 = vld [vmem:[#allocation2 + $0x120] sm:$0xf] }
  0x3d   : > { %v1235_v23 = vsel %vm536_vm0, %v6692_v20, 0  ;;  %v6624_v34 = vor.u32 %v8579_v28, %v6621_v32  ;;  %v8592_v35 = vld [vmem:[#allocation2 + $0x134] sm:$0xf0]  ;;  %v8589_v36 = vld [vmem:[#allocation2 + $0x124] sm:$0xf]  ;;  %v1165_v41 = vrot.slane %v711_v5, 2 }
  0x3e   : > { %v6664_v37 = vor.u32 %v8592_v35, %v6663_v33  ;;  %v6695_v42 = vld [vmem:[#allocation2 + $0x158] sm:$0xf]  ;;  %v8599_v43 = vld [vmem:[#allocation2 + $0x16c] sm:$0x30]  ;;  %v8596_v45 = vld [vmem:[#allocation2 + $0x15c] sm:$0xf] }
  0x3f   : > { %v6696_v46 = vor.u32 %v8599_v43, %v6695_v42  ;;  %v6697_v47 = vld [vmem:[#allocation2 + $0x170] sm:$0x30]  ;;  %v6703_v48 = vld [vmem:[#allocation2 + $0x160] sm:$0xf]  ;;  %v8600_v49 = vld [vmem:[#allocation2 + $0x174] sm:$0x30]  ;;  %v1166_v56 = vor.u32 %v1165_v41, %v1164_v40 }
  0x40   : > { %v6700_v50 = vor.u32 %v8596_v45, %v6697_v47  ;;  %v6704_v51 = vor.u32 %v8600_v49, %v6703_v48  ;;  %v8597_v52 = vld [vmem:[#allocation2 + $0x164] sm:$0xf]  ;;  %vm1163_vm4 = vsmask.f32 6400  ;;  %v8590_v60 = vld [vmem:[#allocation2 + $0x12c] sm:$0xf] }
  0x41   : > { %v1238_v54 = vsel %vm536_vm0, %v6696_v46, 0  ;;  %v8591_v8 = vld [vmem:[#allocation2 + $0x134] sm:$0xf]  ;;  %v6681_v10 = vld [vmem:[#allocation2 + $0x148] sm:$0xf0]  ;;  %vm5206_vm6 = vcmask 1041408  }
  0x42   : > { %v1241_v4 = vsel %vm536_vm0, %v6700_v50, 0  ;;  %v1244_v5 = vsel %vm536_vm0, %v6704_v51, 0  ;;  %v6684_v11 = vor.u32 %v8591_v8, %v6681_v10  ;;  %v6747_v25 = vld [vmem:[#allocation2 + $0x1b0] sm:$0xf]  ;;  %v8610_v26 = vld [vmem:[#allocation2 + $0x1c4] sm:$0x30] }
  0x43   : > { %v8607_v27 = vld [vmem:[#allocation2 + $0x1b4] sm:$0xf]  ;;  %v6748_v28 = vor.u32 %v8610_v26, %v6747_v25  ;;  %v8611_v32 = vld [vmem:[#allocation2 + $0x1cc] sm:$0x30]  ;;  %v6723_v42 = vld [vmem:[#allocation2 + $0x180] sm:$0xf] }
  0x44   : > { %v6757_v35 = vld [vmem:[#allocation2 + $0x1d0] sm:$0x30]  ;;  %v8604_v43 = vld [vmem:[#allocation2 + $0x194] sm:$0xf0]  ;;  %v8601_v45 = vld [vmem:[#allocation2 + $0x184] sm:$0xf] }
  0x45   : > { %v6724_v48 = vor.u32 %v8604_v43, %v6723_v42  ;;  %v6725_v49 = vld [vmem:[#allocation2 + $0x198] sm:$0xf0]  ;;  %v6731_v50 = vld [vmem:[#allocation2 + $0x188] sm:$0xf]  ;;  %v8605_v51 = vld [vmem:[#allocation2 + $0x19c] sm:$0xf0] }
  0x46   : > { %v8612_v10 = vld [vmem:[#allocation2 + $0x1d4] sm:$0x30]  ;;  %v1390_v26 = vrot.slane %v9188_v44, 2  ;;  %vm5202_vm7 = vcmask 80896   ;;  %vm5424_vm8 = vcmask 523264   ;;  %vm5836_vm9 = vcmask 261120  }
  0x47   : > { %6537 = vmatmul.msk.bf16.vlgmr.msrb.gmra.mxu0 %vm529_vm1, %v9185_v31  ;;  %vm6379_vm10 = vcmask 73728   ;;  %s8986_s22 = sshra.s32 %s6407_s1, 4  ;;  %s8992_s15 = scalar_lea.hbm %s13692_s13, 2  ;;  %s8987_s22 = int_to_ptr.hbm [resolvable:$true] %s8986_s22 }
  0x48   : > { %6539 = vmatmul.msk.bf16.vlgmr.msrb.gmra.mxu1 %vm529_vm1, %v9185_v31  ;;  %1030 = vmatpush.bf16.msrb.mxu0 %v1007_v53  ;;  %v6705_v53 = vld [vmem:[#allocation2 + $0x178] sm:$0x30]  ;;  %s8988_s24 = scalar_lea.hbm %s8987_s22, 1  ;;  %p8993_p3 = scmp.lt.s32.totalorder %s8987_s22, %s13692_s13 }
  0x49   : > { %6589 = vmatmul.msk.bf16.vlgmr.msrb.gmra.mxu2 %vm529_vm1, %v719_v38  ;;  %6591 = vmatmul.msk.bf16.vlgmr.msrb.gmra.mxu3 %vm529_vm1, %v719_v38  ;;  %v6708_v55 = vor.u32 %v8597_v52, %v6705_v53  ;;  %v6728_v53 = vor.u32 %v8601_v45, %v6725_v49  ;;  %p8989_p0 = scmp.ne.s32.totalorder %s8987_s22, %s8988_s24  ;;  %p8994_p4 = scmp.lt.s32.totalorder %s8992_s15, %s8988_s24 }
  0x4a   : > { %1048 = vmatpush.bf16.msrb.mxu1 %v1010_v57  ;;  %1066 = vmatpush.bf16.msrb.mxu2 %v1013_v58  ;;  %v6671_v58 = vld [vmem:[#allocation2 + $0x128] sm:$0xf] }
  0x4b   : > { %1084 = vmatpush.bf16.msrb.mxu3 %v1016_v62  ;;  %v1247_v57 = vsel %vm536_vm0, %v6708_v55, 0  ;;  %v8602_v55 = vld [vmem:[#allocation2 + $0x18c] sm:$0xf]  ;;  %p8990_p1 = pnand %p8989_p0, %p9151_p5  ;;  %p8995_p7 = por %p8994_p4, %p8993_p3 }
  0x4c   : > { %1031 = vmatpush.bf16.msrb.mxu0 %v6604_v59  ;;  %v8593_v59 = vld [vmem:[#allocation2 + $0x13c] sm:$0xf0] }
  0x4d   : > { %v6672_v62 = vor.u32 %v8593_v59, %v6671_v58  ;;  %p8991_p2 = pneg %p8990_p1 }
  0x4e   : > { %1049 = vmatpush.bf16.msrb.mxu1 %v6608_v63  ;;  %v6673_v63 = vld [vmem:[#allocation2 + $0x140] sm:$0xf0] }
  0x4f   : > { %1085 = vmatpush.bf16.msrb.mxu3 %v6616_v7  ;;  %v6676_v6 = vor.u32 %v8590_v60, %v6673_v63  ;;  %v8594_v7 = vld [vmem:[#allocation2 + $0x144] sm:$0xf0]  ;;  %p8996_p8 = pnand %p8995_p7, %p8991_p2 }
  0x57   : > { %6538 = vmatmul.msk.bf16.gmra.mxu0 %vm529_vm1, %v462_v3 }
  0x58   : > { %6540 = vmatmul.msk.bf16.gmra.mxu1 %vm529_vm1, %v462_v3  ;;  %v6612_v3 = vor.u32 %v8581_v0, %v6611_v61  ;;  %v6679_v0 = vld [vmem:[#allocation2 + $0x130] sm:$0xf] }
  0x59   : > { %6590 = vmatmul.msk.bf16.gmra.mxu2 %vm529_vm1, %v722_v39  ;;  %6592 = vmatmul.msk.bf16.gmra.mxu3 %vm529_vm1, %v722_v39  ;;  %v6680_v9 = vor.u32 %v8594_v7, %v6679_v0 }
  0x5a   : > { %1067 = vmatpush.bf16.msrb.mxu2 %v6612_v3  ;;  %v9282_v3 = vsel %vm1163_vm4, %v1166_v56, %v9204_v2  ;;  %v6733_v56 = vld [vmem:[#allocation2 + $0x1a0] sm:$0xf0] }
  0x67   : > { %6593 = vmatmul.msk.bf16.vlgmr.msra.gmra.mxu0 %vm529_vm1, %v719_v38 }
  0x68   : > { %6595 = vmatmul.msk.bf16.vlgmr.msra.gmra.mxu1 %vm529_vm1, %v719_v38  ;;  %1102 = vmatpush.bf16.msra.mxu0 %v1019_v19 }
  0x69   : > { %6597 = vmatmul.msk.bf16.vlgmr.msra.gmra.mxu2 %vm529_vm1, %v719_v38  ;;  %6599 = vmatmul.msk.bf16.vlgmr.msra.gmra.mxu3 %vm529_vm1, %v719_v38  ;;  %v6665_v38 = vld [vmem:[#allocation2 + $0x138] sm:$0xf0] }
  0x6a   : > { %1120 = vmatpush.bf16.msra.mxu1 %v1022_v21  ;;  %1255 = vmatpush.bf16.msra.mxu2 %v1232_v22 }
  0x6b   : > { %1273 = vmatpush.bf16.msra.mxu3 %v1235_v23 }
  0x6c   : > { %1103 = vmatpush.bf16.msra.mxu0 %v6620_v30  ;;  %v6755_v30 = vld [vmem:[#allocation2 + $0x1b8] sm:$0xf] }
  0x6d   : > { %v6756_v33 = vor.u32 %v8611_v32, %v6755_v30  ;;  %v6739_v30 = vld [vmem:[#allocation2 + $0x190] sm:$0xf]  ;;  %v8606_v32 = vld [vmem:[#allocation2 + $0x1a4] sm:$0xf0] }
  0x6e   : > { %1121 = vmatpush.bf16.msra.mxu1 %v6624_v34  ;;  %1256 = vmatpush.bf16.msra.mxu2 %v6664_v37  ;;  %v8608_v34 = vld [vmem:[#allocation2 + $0x1bc] sm:$0xf] }
  0x6f   : > { %v6760_v37 = vor.u32 %v8608_v34, %v6757_v35 }
  0x71   : > { %v1462_v40 = vsel %vm536_vm0, %v6760_v37, 0  ;;  %v6741_v37 = vld [vmem:[#allocation2 + $0x1a8] sm:$0xf0] }
  0x77   : > { %6594 = vmatmul.msk.bf16.gmra.mxu0 %vm529_vm1, %v722_v39 }
  0x78   : > { %6596 = vmatmul.msk.bf16.gmra.mxu1 %vm529_vm1, %v722_v39 }
  0x79   : > { %6598 = vmatmul.msk.bf16.gmra.mxu2 %vm529_vm1, %v722_v39  ;;  %6600 = vmatmul.msk.bf16.gmra.mxu3 %vm529_vm1, %v722_v39  ;;  %v6668_v39 = vor.u32 %v8589_v36, %v6665_v38  ;;  %v1453_v36 = vsel %vm536_vm0, %v6748_v28, 0 }
  0x7b   : > { %1274 = vmatpush.bf16.msra.mxu3 %v6668_v39  ;;  %v1459_v39 = vsel %vm536_vm0, %v6756_v33, 0 }
  0x87   : > { %6649 = vmatmul.msk.bf16.vlgmr.msrb.gmra.mxu0 %vm529_vm1, %v9251_v29 }
  0x88   : > { %6651 = vmatmul.msk.bf16.vlgmr.msrb.gmra.mxu1 %vm529_vm1, %v9251_v29  ;;  %1291 = vmatpush.bf16.msrb.mxu0 %v1238_v54  ;;  %v6732_v54 = vor.u32 %v8605_v51, %v6731_v50 }
  0x89   : > { %6653 = vmatmul.msk.bf16.vlgmr.msrb.gmra.mxu2 %vm529_vm1, %v9251_v29  ;;  %6655 = vmatmul.msk.bf16.vlgmr.msrb.gmra.mxu3 %vm529_vm1, %v9251_v29 }
  0x8a   : > { %1309 = vmatpush.bf16.msrb.mxu1 %v1241_v4  ;;  %1327 = vmatpush.bf16.msrb.mxu2 %v1244_v5  ;;  %v6736_v4 = vor.u32 %v8602_v55, %v6733_v56 }
  0x8b   : > { %1345 = vmatpush.bf16.msrb.mxu3 %v1247_v57 }
  0x8c   : > { %1292 = vmatpush.bf16.msrb.mxu0 %v6672_v62 }
  0x8e   : > { %1310 = vmatpush.bf16.msrb.mxu1 %v6676_v6  ;;  %1328 = vmatpush.bf16.msrb.mxu2 %v6680_v9  ;;  %v6763_v9 = vld [vmem:[#allocation2 + $0x1c0] sm:$0xf] }
  0x8f   : > { %1346 = vmatpush.bf16.msrb.mxu3 %v6684_v11  ;;  %v8609_v11 = vld [vmem:[#allocation2 + $0x1c4] sm:$0xf] }
  0x97   : > { %6650 = vmatmul.msk.bf16.gmra.mxu0 %vm529_vm1, %v9247_v24 }
  0x98   : > { %6652 = vmatmul.msk.bf16.gmra.mxu1 %vm529_vm1, %v9247_v24 }
  0x99   : > { %6654 = vmatmul.msk.bf16.gmra.mxu2 %vm529_vm1, %v9247_v24  ;;  %6656 = vmatmul.msk.bf16.gmra.mxu3 %vm529_vm1, %v9247_v24 }
  0xa4   : > { %v9277_v61 = vpop.f32.mrf.mxu0 }
  0xa5   : > { %v9279_v1 = vpop.f32.mrf.mxu1 }
  0xa7   : > { %6657 = vmatmul.msk.bf16.vlgmr.msra.gmra.mxu0 %vm529_vm1, %v9251_v29 }
  0xa8   : > { %6659 = vmatmul.msk.bf16.vlgmr.msra.gmra.mxu1 %vm529_vm1, %v9251_v29  ;;  %v6749_v29 = vld [vmem:[#allocation2 + $0x1c8] sm:$0x30]  ;;  %1476 = vmatpush.bf16.msra.mxu0 %v1453_v36  ;;  %v6740_v36 = vor.u32 %v8606_v32, %v6739_v30 }
  0xa9   : > { %6709 = vmatmul.msk.bf16.vlgmr.msra.gmra.mxu2 %vm529_vm1, %v9282_v3  ;;  %6711 = vmatmul.msk.bf16.vlgmr.msra.gmra.mxu3 %vm529_vm1, %v9282_v3 }
  0xaa   : > { %1512 = vmatpush.bf16.msra.mxu2 %v1459_v39  ;;  %1530 = vmatpush.bf16.msra.mxu3 %v1462_v40 }
  0xac   : > { %v9292_v12 = vpop.f32.mrf.mxu2  ;;  %v9294_v13 = vpop.f32.mrf.mxu3  ;;  %1477 = vmatpush.bf16.msra.mxu0 %v6724_v48 }
  0xad   : > { %v9296_v14 = vpop.f32.mrf.mxu0  ;;  %v9298_v15 = vpop.f32.mrf.mxu1 }
  0xae   : > { %1513 = vmatpush.bf16.msra.mxu2 %v6732_v54  ;;  %1531 = vmatpush.bf16.msra.mxu3 %v6736_v4 }
  0xb4   : > { %v9300_v16 = vpop.f32.mrf.mxu2  ;;  %v9302_v17 = vpop.f32.mrf.mxu3 }
  0xb5   : > { %v9304_v18 = vpop.f32.mrf.mxu0  ;;  %v9306_v19 = vpop.f32.mrf.mxu1 }
  0xb7   : > { %6658 = vmatmul.msk.bf16.gmra.mxu0 %vm529_vm1, %v9247_v24 }
  0xb8   : > { %6660 = vmatmul.msk.bf16.gmra.mxu1 %vm529_vm1, %v9247_v24  ;;  %v6752_v24 = vor.u32 %v8607_v27, %v6749_v29  ;;  %v1389_v27 = vrot.slane %v9185_v31, 2 }
  0xb9   : > { %6710 = vmatmul.msk.bf16.gmra.mxu2 %vm529_vm1, %v9204_v2  ;;  %6712 = vmatmul.msk.bf16.gmra.mxu3 %vm529_vm1, %v9204_v2 }
  0xba   : > { %v1456_v38 = vsel %vm536_vm0, %v6752_v24, 0  ;;  %v8603_v24 = vld [vmem:[#allocation2 + $0x194] sm:$0xf]  ;;  %v1391_v35 = vsel %vm536_vm0, %v1389_v27, %v1390_v26 }
  0xbb   : > { %1494 = vmatpush.bf16.msra.mxu1 %v1456_v38  ;;  %v6744_v31 = vor.u32 %v8603_v24, %v6741_v37 }
  0xbc   : > { %v9316_v20 = vpop.f32.mrf.mxu2  ;;  %v9318_v21 = vpop.f32.mrf.mxu3 }
  0xbd   : > { %v571_v22 = vpop.f32.mrf.mxu0  ;;  %v589_v23 = vpop.f32.mrf.mxu1 }
  0xbe   : > { %v6764_v22 = vor.u32 %v8612_v10, %v6763_v9  ;;  %v6765_v23 = vld [vmem:[#allocation2 + $0x1d8] sm:$0x30] }
  0xbf   : > { %1495 = vmatpush.bf16.msra.mxu1 %v6728_v53  ;;  %v6768_v25 = vor.u32 %v8609_v11, %v6765_v23 }
  0xc0   : > { %v1465_v28 = vsel %vm536_vm0, %v6764_v22, 0 }
  0xc4   : > { %v607_v41 = vpop.f32.mrf.mxu2  ;;  %v625_v46 = vpop.f32.mrf.mxu3 }
  0xc5   : > { %v9324_v47 = vpop.f32.mrf.mxu0  ;;  %v9326_v52 = vpop.f32.mrf.mxu1 }
  0xc6   : > { %13703 = vst [vmem:[#allocation8_spill] sm:$0xff] %v9324_v47 }
  0xc7   : > { %13704 = vst [vmem:[#allocation9_spill] sm:$0xff] %v9326_v52  ;;  %6713 = vmatmul.msk.bf16.vlgmr.msrb.gmra.mxu0 %vm529_vm1, %v9282_v3 }
  0xc8   : > { %6715 = vmatmul.msk.bf16.vlgmr.msrb.gmra.mxu1 %vm529_vm1, %v9282_v3  ;;  %1548 = vmatpush.bf16.msrb.mxu0 %v1465_v28 }
  0xc9   : > { %6717 = vmatmul.msk.bf16.vlgmr.msrb.gmra.mxu2 %vm529_vm1, %v9282_v3  ;;  %6719 = vmatmul.msk.bf16.vlgmr.msrb.gmra.mxu3 %vm529_vm1, %v9282_v3 }
  0xcc   : > { %v9336_v5 = vpop.f32.mrf.mxu2  ;;  %v9338_v57 = vpop.f32.mrf.mxu3  ;;  %1549 = vmatpush.bf16.msrb.mxu0 %v6740_v36 }
  0xcd   : > { %v9340_v58 = vpop.f32.mrf.mxu0  ;;  %v9342_v59 = vpop.f32.mrf.mxu1 }
  0xce   : > { %13705 = vst [vmem:[#allocation10_spill] sm:$0xff] %v9340_v58 }
  0xcf   : > { %13706 = vst [vmem:[#allocation11_spill] sm:$0xff] %v9342_v59 }
  0xd4   : > { %v9344_v60 = vpop.f32.mrf.mxu2  ;;  %v9346_v62 = vpop.f32.mrf.mxu3 }
  0xd5   : > { %v9348_v63 = vpop.f32.mrf.mxu0  ;;  %v9350_v0 = vpop.f32.mrf.mxu1 }
  0xd6   : > { %13707 = vst [vmem:[#allocation12_spill] sm:$0xff] %v9348_v63 }
  0xd7   : > { %13708 = vst [vmem:[#allocation13_spill] sm:$0xff] %v9350_v0  ;;  %6714 = vmatmul.msk.bf16.gmra.mxu0 %vm529_vm1, %v9204_v2 }
  0xd8   : > { %6716 = vmatmul.msk.bf16.gmra.mxu1 %vm529_vm1, %v9204_v2 }
  0xd9   : > { %6718 = vmatmul.msk.bf16.gmra.mxu2 %vm529_vm1, %v9204_v2  ;;  %6720 = vmatmul.msk.bf16.gmra.mxu3 %vm529_vm1, %v9204_v2  ;;  %v1468_v2 = vsel %vm536_vm0, %v6768_v25, 0 }
  0xda   : > { %1566 = vmatpush.bf16.msrb.mxu1 %v1468_v2 }
  0xdc   : > { %v9360_v3 = vpop.f32.mrf.mxu2  ;;  %v9362_v6 = vpop.f32.mrf.mxu3 }
  0xdd   : > { %v643_v7 = vpop.f32.mrf.mxu0  ;;  %v661_v8 = vpop.f32.mrf.mxu1 }
  0xde   : > { %1567 = vmatpush.bf16.msrb.mxu1 %v6744_v31 }
  0xe4   : > { %v817_v29 = vpop.f32.mrf.mxu2  ;;  %v835_v33 = vpop.f32.mrf.mxu3 }
  0xe5   : > { %v9368_v34 = vpop.f32.mrf.mxu0  ;;  %v9371_v44 = vpop.f32.mrf.mxu1 }
  0xe7   : > { %6769 = vmatmul.msk.bf16.vlgmr.msra.gmra.mxu0 %vm529_vm1, %v1391_v35 }
  0xe8   : > { %6771 = vmatmul.msk.bf16.vlgmr.msra.gmra.mxu1 %vm529_vm1, %v1391_v35 }
  0xe9   : > { %6773 = vmatmul.msk.bf16.vlgmr.msra.gmra.mxu2 %vm529_vm1, %v1391_v35  ;;  %6775 = vmatmul.msk.bf16.vlgmr.msra.gmra.mxu3 %vm529_vm1, %v1391_v35 }
  0xec   : > { %v9377_v38 = vpop.f32.mrf.mxu2  ;;  %v9379_v39 = vpop.f32.mrf.mxu3 }
  0xed   : > { %13709 = vst [vmem:[#allocation14_spill] sm:$0xff] %v9377_v38  ;;  %v9381_v40 = vpop.f32.mrf.mxu0  ;;  %v9383_v41 = vpop.f32.mrf.mxu1 }
  0xee   : > { %13710 = vst [vmem:[#allocation15_spill] sm:$0xff] %v9379_v39 }
  0xf4   : > { %v9385_v42 = vpop.f32.mrf.mxu2  ;;  %v9387_v43 = vpop.f32.mrf.mxu3 }
  0xf5   : > { %13711 = vst [vmem:[#allocation16_spill] sm:$0xff] %v9385_v42  ;;  %v9389_v45 = vpop.f32.mrf.mxu0  ;;  %v9391_v46 = vpop.f32.mrf.mxu1 }
  0xf6   : > { %13712 = vst [vmem:[#allocation17_spill] sm:$0xff] %v9387_v43 }
  0xf7   : > { %6770 = vmatmul.msk.bf16.gmra.mxu0 %vm529_vm1, %v1390_v26 }
  0xf8   : > { %6772 = vmatmul.msk.bf16.gmra.mxu1 %vm529_vm1, %v1390_v26 }
  0xf9   : > { %6774 = vmatmul.msk.bf16.gmra.mxu2 %vm529_vm1, %v1390_v26  ;;  %6776 = vmatmul.msk.bf16.gmra.mxu3 %vm529_vm1, %v1390_v26 }
  0xfc   : > { %v9397_v48 = vpop.f32.mrf.mxu2  ;;  %v9399_v49 = vpop.f32.mrf.mxu3 }
  0xfd   : > { %13713 = vst [vmem:[#allocation18_spill] sm:$0xff] %v9397_v48  ;;  %v853_v50 = vpop.f32.mrf.mxu0  ;;  %v871_v51 = vpop.f32.mrf.mxu1 }
  0xfe   : > { %13714 = vst [vmem:[#allocation19_spill] sm:$0xff] %v9399_v49 }
 0x104   : > { %v889_v53 = vpop.f32.mrf.mxu2  ;;  %v907_v54 = vpop.f32.mrf.mxu3 }
 0x105   : > { %v9401_v55 = vpop.f32.mrf.mxu0  ;;  %v9403_v56 = vpop.f32.mrf.mxu1 }
 0x107   : > { %6777 = vmatmul.msk.bf16.vlgmr.msrb.gmra.mxu0 %vm529_vm1, %v1391_v35 }
 0x108   : > { %6779 = vmatmul.msk.bf16.vlgmr.msrb.gmra.mxu1 %vm529_vm1, %v1391_v35 }
 0x10c   : > { %v9407_v4 = vpop.f32.mrf.mxu2  ;;  %v9409_v7 = vpop.f32.mrf.mxu3 }
 0x10d   : > { %v9411_v8 = vpop.f32.mrf.mxu0  ;;  %v9413_v9 = vpop.f32.mrf.mxu1 }
 0x114   : > { %v9415_v10 = vpop.f32.mrf.mxu2  ;;  %v9417_v11 = vpop.f32.mrf.mxu3 }
 0x115   : > { %v1038_v22 = vpop.f32.mrf.mxu0  ;;  %v9419_v23 = vpop.f32.mrf.mxu1 }
 0x117   : > { %6778 = vmatmul.msk.bf16.gmra.mxu0 %vm529_vm1, %v1390_v26 }
 0x118   : > { %6780 = vmatmul.msk.bf16.gmra.mxu1 %vm529_vm1, %v1390_v26 }
 0x11c   : > { %v9423_v25 = vpop.f32.mrf.mxu2  ;;  %v9425_v27 = vpop.f32.mrf.mxu3 }
 0x11d   : > { %v1040_v28 = vpop.f32.mrf.mxu0  ;;  %v1058_v2 = vpop.f32.mrf.mxu1 }
 0x124   : > { %v1076_v29 = vpop.f32.mrf.mxu2  ;;  %v1094_v30 = vpop.f32.mrf.mxu3 }
 0x125   : > { %v9427_v32 = vpop.f32.mrf.mxu0  ;;  %v9429_v24 = vpop.f32.mrf.mxu1 }
 0x126   : > { %13715 = vst [vmem:[#allocation20_spill] sm:$0xff] %v9427_v32 }
 0x127   : > { %13716 = vst [vmem:[#allocation21_spill] sm:$0xff] %v9429_v24 }
 0x12c   : > { %v9431_v33 = vpop.f32.mrf.mxu2  ;;  %v9433_v35 = vpop.f32.mrf.mxu3 }
 0x12d   : > { %v9435_v36 = vpop.f32.mrf.mxu0  ;;  %v9437_v37 = vpop.f32.mrf.mxu1 }
 0x12e   : > { %13717 = vst [vmem:[#allocation22_spill] sm:$0xff] %v9435_v36 }
 0x12f   : > { %13718 = vst [vmem:[#allocation23_spill] sm:$0xff] %v9437_v37 }
 0x134   : > { %v9439_v26 = vpop.f32.mrf.mxu2  ;;  %v9441_v31 = vpop.f32.mrf.mxu3 }
 0x135   : > { %v9443_v50 = vpop.f32.mrf.mxu0  ;;  %v9445_v51 = vpop.f32.mrf.mxu1 }
 0x136   : > { %13719 = vst [vmem:[#allocation24_spill] sm:$0xff] %v9443_v50 }
 0x137   : > { %13720 = vst [vmem:[#allocation25_spill] sm:$0xff] %v9445_v51 }
 0x13c   : > { %v1263_v53 = vpop.f32.mrf.mxu2  ;;  %v1281_v54 = vpop.f32.mrf.mxu3 }
 0x13d   : > { %v1112_v28 = vpop.f32.mrf.mxu0  ;;  %v1130_v2 = vpop.f32.mrf.mxu1 }
 0x144   : > { %v1265_v29 = vpop.f32.mrf.mxu2  ;;  %v1283_v30 = vpop.f32.mrf.mxu3 }
 0x145   : > { %v9447_v24 = vpop.f32.mrf.mxu0  ;;  %v9449_v32 = vpop.f32.mrf.mxu1 }
 0x146   : > { %13721 = vst [vmem:[#allocation26_spill] sm:$0xff] %v9447_v24 }
 0x147   : > { %13722 = vst [vmem:[#allocation27_spill] sm:$0xff] %v9449_v32 }
 0x14c   : > { %v9451_v39 = vpop.f32.mrf.mxu2  ;;  %v9453_v37 = vpop.f32.mrf.mxu3 }
 0x14d   : > { %13723 = vst [vmem:[#allocation28_spill] sm:$0xff] %v9451_v39  ;;  %v9455_v36 = vpop.f32.mrf.mxu0  ;;  %v9457_v38 = vpop.f32.mrf.mxu1 }
 0x14e   : > { %13724 = vst [vmem:[#allocation29_spill] sm:$0xff] %v9453_v37 }
 0x14f   : > { %13725 = vst [vmem:[#allocation30_spill] sm:$0xff] %v9457_v38 }
 0x154   : > { %v9459_v43 = vpop.f32.mrf.mxu2  ;;  %v9461_v51 = vpop.f32.mrf.mxu3 }
 0x155   : > { %13726 = vst [vmem:[#allocation31_spill] sm:$0xff] %v9459_v43  ;;  %v9463_v28 = vpop.f32.mrf.mxu0  ;;  %v9465_v2 = vpop.f32.mrf.mxu1  ;;  %v9476_v43 = vld [vmem:[%s13730_s2] sm:$0x3f] }
 0x156   : > { %13727 = vst [vmem:[#allocation32_spill] sm:$0xff] %v9461_v51  ;;  %v664_v51 = vperm.slane %v9476_v43, 0 }
 0x157   : > { %13731 = vst [vmem:[#allocation35_spill] sm:$0xff] %v9476_v43 }
 0x158   : > { %v682_v58 = vadd.f32 %v664_v51, %v9296_v14 }
 0x15c   : > { %v9467_v29 = vpop.f32.mrf.mxu2  ;;  %v9469_v30 = vpop.f32.mrf.mxu3 }
 0x15d   : > { %13728 = vst [vmem:[#allocation33_spill] sm:$0xff] %v9467_v29  ;;  %v1301_v52 = vpop.f32.mrf.mxu0  ;;  %v1319_v39 = vpop.f32.mrf.mxu1  ;;  %v665_v29 = vperm.slane %v9476_v43, 1 }
 0x15e   : > { %13729 = vst [vmem:[#allocation34_spill] sm:$0xff] %v9469_v30  ;;  %v688_v39 = vadd.f32 %v664_v51, %v9304_v18  ;;  %v667_v30 = vperm.slane %v9476_v43, 3  ;;  %v915_v18 = vadd.f32 %v9344_v60, %v682_v58 }
 0x15f   : > { %v689_v48 = vadd.f32 %v665_v29, %v9306_v19  ;;  %v683_v63 = vadd.f32 %v665_v29, %v9298_v15  ;;  %v677_v32 = vadd.f32 %v665_v29, %v9279_v1 }
 0x160   : > { %v921_v0 = vadd.f32 %v9360_v3, %v688_v39 }
 0x161   : > { %v916_v19 = vadd.f32 %v9346_v62, %v683_v63  ;;  %v910_v58 = vadd.f32 %v9338_v57, %v677_v32  ;;  %v691_v62 = vadd.f32 %v667_v30, %v9318_v21 }
 0x162   : > { %v1144_v24 = vadd.f32 %v1038_v22, %v921_v0 }
 0x163   : > { %v924_v22 = vadd.f32 %v9391_v46, %v691_v62 }
 0x164   : > { %v1337_v50 = vpop.f32.mrf.mxu2  ;;  %v1355_v37 = vpop.f32.mrf.mxu3 }
 0x165   : > { %v1479_v42 = vpop.f32.mrf.mxu0  ;;  %v9471_v47 = vpop.f32.mrf.mxu1  ;;  %v666_v50 = vperm.slane %v9476_v43, 2  ;;  %v679_v43 = vadd.f32 %v667_v30, %v9294_v13 }
 0x167   : > { %v678_v38 = vadd.f32 %v666_v50, %v9292_v12  ;;  %v684_v3 = vadd.f32 %v666_v50, %v9300_v16  ;;  %v690_v1 = vadd.f32 %v666_v50, %v9316_v20  ;;  %v1139_v12 = vadd.f32 %v9413_v9, %v916_v19  ;;  %v9562_v50 = vld [vmem:[%s13734_s3 + $0x8] sm:$0xf] }
 0x168   : > { %v685_v9 = vadd.f32 %v667_v30, %v9302_v17  ;;  %v9522_v17 = vld [vmem:[%s13734_s3] sm:$0xff] }
 0x169   : > { %v1364_v20 = vadd.f32 %v9441_v31, %v1139_v12 }
 0x16c   : > { %v9479_v49 = vpop.f32.mrf.mxu2  ;;  %v9482_v59 = vpop.f32.mrf.mxu3 }
 0x16d   : > { %13732 = vst [vmem:[#allocation36_spill] sm:$0xff] %v9479_v49  ;;  %v1481_v52 = vpop.f32.mrf.mxu0  ;;  %v1499_v37 = vpop.f32.mrf.mxu1  ;;  %v922_v49 = vadd.f32 %v9362_v6, %v689_v48  ;;  %v1138_v6 = vadd.f32 %v9411_v8, %v915_v18  ;;  %v1133_v8 = vadd.f32 %v9403_v56, %v910_v58  ;;  %v918_v56 = vadd.f32 %v9383_v41, %v685_v9  ;;  %v13748_v9 = vld [vmem:[#allocation16_spill] sm:$0xff] }
 0x16e   : > { %13733 = vst [vmem:[#allocation37_spill] sm:$0xff] %v9482_v59  ;;  %v676_v59 = vadd.f32 %v664_v51, %v9277_v61  ;;  %v1369_v61 = vadd.f32 %v1263_v53, %v1144_v24  ;;  %v912_v41 = vadd.f32 %v9371_v44, %v679_v43  ;;  %v13735_v44 = vld [vmem:[#allocation30_spill] sm:$0xff] }
 0x16f   : > { %v1145_v14 = vadd.f32 %v9419_v23, %v922_v49  ;;  %v1363_v16 = vadd.f32 %v9439_v26, %v1138_v6  ;;  %v923_v49 = vadd.f32 %v9389_v45, %v690_v1  ;;  %v1358_v24 = vadd.f32 %v9433_v35, %v1133_v8  ;;  %v13741_v1 = vld [vmem:[#allocation12_spill] sm:$0xff] }
 0x170   : > { %v909_v15 = vadd.f32 %v9336_v5, %v676_v59  ;;  %v1585_v45 = vadd.f32 %v1499_v37, %v1364_v20  ;;  %v1147_v26 = vadd.f32 %v9425_v27, %v924_v22  ;;  %v13747_v20 = vld [vmem:[#allocation8_spill] sm:$0xff] }
 0x171   : > { %v1370_v60 = vadd.f32 %v1281_v54, %v1145_v14  ;;  %v1584_v21 = vadd.f32 %v1481_v52, %v1363_v16  ;;  %v1146_v32 = vadd.f32 %v9423_v25, %v923_v49  ;;  %v13746_v49 = vld [vmem:[#allocation19_spill] sm:$0xff] }
 0x172   : > { %v1132_v63 = vadd.f32 %v9401_v55, %v909_v15  ;;  %v917_v55 = vadd.f32 %v9381_v40, %v684_v3  ;;  %v911_v40 = vadd.f32 %v9368_v34, %v678_v38  ;;  %v1372_v27 = vadd.f32 %v9465_v2, %v1147_v26  ;;  %v13737_v2 = vld [vmem:[#allocation27_spill] sm:$0xff] }
 0x173   : > { %v1371_v25 = vadd.f32 %v9463_v28, %v1146_v32  ;;  %v13740_v15 = vld [vmem:[#allocation35_spill] sm:$0xff] }
 0x174   : > { %v1517_v48 = vpop.f32.mrf.mxu2  ;;  %v1535_v13 = vpop.f32.mrf.mxu3  ;;  %v1357_v23 = vadd.f32 %v9431_v33, %v1132_v63  ;;  %v1140_v46 = vadd.f32 %v9415_v10, %v917_v55  ;;  %v1579_v33 = vadd.f32 %v9471_v47, %v1358_v24  ;;  %v1134_v51 = vadd.f32 %v9407_v4, %v911_v40  ;;  %v13736_v4 = vld [vmem:[#allocation26_spill] sm:$0xff]  ;;  %v13750_v55 = vld [vmem:[#allocation9_spill] sm:$0xff] }
 0x175   : > { %v1484_v0 = vpop.f32.mrf.mxu0  ;;  %v1502_v59 = vpop.f32.mrf.mxu1  ;;  %v1135_v47 = vadd.f32 %v9409_v7, %v912_v41  ;;  %v13738_v7 = vld [vmem:[#allocation36_spill] sm:$0xff]  ;;  %v13739_v39 = vld [vmem:[#allocation37_spill] sm:$0xff]  ;;  %v668_v6 = vperm.slane %v13740_v15, 4  ;;  %v13744_v63 = vld [vmem:[#allocation18_spill] sm:$0xff] }
 0x176   : > { %v1590_v5 = vadd.f32 %v1484_v0, %v1369_v61  ;;  %v1591_v57 = vadd.f32 %v1502_v59, %v1370_v60  ;;  %v1578_v31 = vadd.f32 %v1479_v42, %v1357_v23  ;;  %v1141_v42 = vadd.f32 %v9417_v11, %v918_v56  ;;  %v13742_v60 = vld [vmem:[#allocation13_spill] sm:$0xff]  ;;  %v13743_v0 = vld [vmem:[#allocation10_spill] sm:$0xff]  ;;  %v13749_v23 = vld [vmem:[#allocation24_spill] sm:$0xff] }
 0x177   : > { %v1365_v53 = vadd.f32 %v9455_v36, %v1140_v46  ;;  %v1359_v36 = vadd.f32 %v13736_v4, %v1134_v51  ;;  %v1360_v29 = vadd.f32 %v13737_v2, %v1135_v47  ;;  %v669_v61 = vperm.slane %v13740_v15, 5  ;;  %v13751_v24 = vld [vmem:[#allocation17_spill] sm:$0xff]  ;;  %v13754_v46 = vld [vmem:[#allocation22_spill] sm:$0xff]  ;;  %v13759_v47 = vld [vmem:[#allocation20_spill] sm:$0xff] }
 0x178   : > { %1618 = vmatpush.msrb.mxu2 %v1590_v5  ;;  %1641 = vmatpush.msrb.mxu3 %v1591_v57  ;;  %v1366_v43 = vadd.f32 %v13735_v44, %v1141_v42  ;;  %v692_v58 = vadd.f32 %v668_v6, %v13741_v1  ;;  %v686_v62 = vadd.f32 %v668_v6, %v13743_v0  ;;  %v13752_v56 = vld [vmem:[#allocation25_spill] sm:$0xff]  ;;  %v13756_v42 = vld [vmem:[#allocation15_spill] sm:$0xff] }
 0x179   : > { %v9544_v28 = vadd.f32 %v1517_v48, %v1365_v53  ;;  %v9552_v52 = vadd.f32 %v13738_v7, %v1359_v36  ;;  %v9556_v37 = vadd.f32 %v13739_v39, %v1360_v29  ;;  %v681_v32 = vadd.f32 %v669_v61, %v13750_v55  ;;  %v13758_v53 = vld [vmem:[#allocation34_spill] sm:$0xff]  ;;  %v13761_v2 = vld [vmem:[#allocation21_spill] sm:$0xff]  ;;  %v13762_v7 = vld [vmem:[#allocation32_spill] sm:$0xff] }
 0x17a   : > { %1619 = vmatpush.msrb.mxu2 %v1584_v21  ;;  %1642 = vmatpush.msrb.mxu3 %v1585_v45  ;;  %v9548_v30 = vadd.f32 %v1535_v13, %v1366_v43  ;;  %v693_v13 = vadd.f32 %v669_v61, %v13742_v60  ;;  %v925_v16 = vadd.f32 %v13744_v63, %v692_v58  ;;  %v13760_v43 = vld [vmem:[#allocation31_spill] sm:$0xff]  ;;  %v9607_v0 = vld [vmem:[%s13734_s3 + $0x10] sm:$0xff] }
 0x17b   : > { %v919_v22 = vadd.f32 %v13748_v9, %v686_v62  ;;  %v9636_v63 = vld [vmem:[%s13734_s3 + $0x18] sm:$0xf]  ;;  %v1980_v55 = vld [vmem:[%s13683_s4 + $0x270] sm:$0xff]  ;;  %s448_s3 = sand.u32 1, %s9030_s26  }
 0x17c   : > { %v1520_v35 = vpop.f32.mrf.mxu2  ;;  %1620 = vmatpush.msrb.mxu2 %v1578_v31  ;;  %v1538_v38 = vpop.f32.mrf.mxu3  ;;  %1643 = vmatpush.msrb.mxu3 %v1579_v33  ;;  %v926_v8 = vadd.f32 %v13746_v49, %v693_v13  ;;  %v2088_v49 = vld [vmem:[%s13683_s4 + $0x5d0] sm:$0xff]  ;;  %v2025_v9 = vld [vmem:[%s13683_s4 + $0x3d8] sm:$0xff]  ;;  %s449_s21 = scalar_lea.vmem [#allocation5], %s448_s3  ;;  %s6394_s23 = scalar_lea.sflag [#allocation4], %s448_s3 }
 0x17d   : > { %v9533_v34 = vadd.f32 %v1520_v35, %v1371_v25  ;;  %v1486_v10 = vpop.f32.mrf.mxu0  ;;  %6781 = vmatmul.msk.f32.vlgmr.msrb.gmra.mxu2 %vm1598_vm5, %v9522_v17  ;;  %v9539_v11 = vadd.f32 %v1538_v38, %v1372_v27  ;;  %v1504_v54 = vpop.f32.mrf.mxu1  ;;  %6783 = vmatmul.msk.f32.vlgmr.msrb.gmra.mxu3 %vm1598_vm5, %v9522_v17  ;;  %v1142_v25 = vadd.f32 %v13754_v46, %v919_v22  ;;  %v13757_v35 = vld [vmem:[#allocation23_spill] sm:$0xff]  ;;  %v1983_v22 = vld [vmem:[%s13683_s4 + $0x288] sm:$0xff]  ;;  %v2016_v46 = vld [vmem:[%s13683_s4 + $0x390] sm:$0xff]  ;;  %s6404_s0 = sshll.u32 %s449_s21, 4  ;;  %s6405_s0 = int_to_ptr.vmem [resolvable:$true] %s6404_s0 }
 0x17e   : > { %v1149_v26 = vadd.f32 %v13752_v56, %v926_v8  ;;  %v914_v27 = vadd.f32 %v13756_v42, %v681_v32  ;;  %v2028_v8 = vld [vmem:[%s13683_s4 + $0x3f0] sm:$0xff]  ;;  %v2082_v32 = vld [vmem:[%s13683_s4 + $0x5a0] sm:$0xff]  ;;  %v1977_v56 = vld [vmem:[%s13683_s4 + $0x258] sm:$0xff] }
 0x17f   : > { %1664 = vmatpush.msra.mxu2 %v9533_v34  ;;  %1687 = vmatpush.msra.mxu3 %v9539_v11  ;;  %v1367_v54 = vadd.f32 %v13760_v43, %v1142_v25  ;;  %v1923_v25 = vld [vmem:[%s13683_s4 + $0xa8] sm:$0xff]  ;;  %v1920_v42 = vld [vmem:[%s13683_s4 + $0x90] sm:$0xff] }
 0x180   : > { %v1374_v38 = vadd.f32 %v13758_v53, %v1149_v26  ;;  %v1137_v29 = vadd.f32 %v13761_v2, %v914_v27  ;;  %v2079_v26 = vld [vmem:[%s13683_s4 + $0x588] sm:$0xff]  ;;  %v1968_v27 = vld [vmem:[%s13683_s4 + $0x210] sm:$0xff]  ;;  %v1953_v2 = vld [vmem:[%s13683_s4 + $0x198] sm:$0xff] }
 0x181   : > { %1665 = vmatpush.msra.mxu2 %v9544_v28  ;;  %1688 = vmatpush.msra.mxu3 %v9548_v30  ;;  %v2007_v53 = vld [vmem:[%s13683_s4 + $0x348] sm:$0xff] }
 0x182   : > { %v1959_v43 = vld [vmem:[%s13683_s4 + $0x1c8] sm:$0xff] }
 0x183   : > { %1666 = vmatpush.msra.mxu2 %v9552_v52  ;;  %1689 = vmatpush.msra.mxu3 %v9556_v37 }
 0x184   : > { %v1522_v18 = vpop.f32.mrf.mxu2  ;;  %v1540_v14 = vpop.f32.mrf.mxu3 }
 0x185   : > { %1765 = vmatpush.msrb.mxu2 %v1590_v5  ;;  %1788 = vmatpush.msrb.mxu3 %v1591_v57  ;;  %v1551_v19 = vpop.f32.mrf.mxu0  ;;  %v1569_v3 = vpop.f32.mrf.mxu1  ;;  %v13745_v5 = vld [vmem:[#allocation11_spill] sm:$0xff]  ;;  %v680_v57 = vadd.f32 %v668_v6, %v13747_v20  ;;  %v13763_v14 = vld [vmem:[#allocation28_spill] sm:$0xff] }
 0x186   : > { %6782 = vmatmul.msk.f32.gmra.mxu2 %vm1598_vm5, %v9562_v50  ;;  %6784 = vmatmul.msk.f32.gmra.mxu3 %vm1598_vm5, %v9562_v50  ;;  %v687_v59 = vadd.f32 %v669_v61, %v13745_v5  ;;  %v13764_v61 = vld [vmem:[#allocation29_spill] sm:$0xff]  ;;  %v1986_v20 = vld [vmem:[%s13683_s4 + $0x2a0] sm:$0xff] }
 0x187   : > { %1766 = vmatpush.msrb.mxu2 %v1584_v21  ;;  %1789 = vmatpush.msrb.mxu3 %v1585_v45  ;;  %v1148_v21 = vadd.f32 %v13749_v23, %v925_v16  ;;  %v1362_v1 = vadd.f32 %v13764_v61, %v1137_v29  ;;  %v2091_v16 = vld [vmem:[%s13683_s4 + $0x5e8] sm:$0xff]  ;;  %v2085_v23 = vld [vmem:[%s13683_s4 + $0x5b8] sm:$0xff]  ;;  %v2004_v29 = vld [vmem:[%s13683_s4 + $0x330] sm:$0xff] }
 0x188   : > { %v920_v45 = vadd.f32 %v13751_v24, %v687_v59  ;;  %v2031_v5 = vld [vmem:[%s13683_s4 + $0x408] sm:$0xff]  ;;  %v1938_v59 = vld [vmem:[%s13683_s4 + $0x120] sm:$0xff]  ;;  %v1929_v24 = vld [vmem:[%s13683_s4 + $0xd8] sm:$0xff] }
 0x189   : > { %1767 = vmatpush.msrb.mxu2 %v1578_v31  ;;  %1790 = vmatpush.msrb.mxu3 %v1579_v33  ;;  %v13753_v31 = vld [vmem:[#allocation14_spill] sm:$0xff]  ;;  %v13755_v33 = vld [vmem:[#allocation33_spill] sm:$0xff]  ;;  %v1583_v13 = vadd.f32 %v1569_v3, %v1362_v1  ;;  %v1998_v1 = vld [vmem:[%s13683_s4 + $0x300] sm:$0xff] }
 0x18a   : > { %v913_v40 = vadd.f32 %v13753_v31, %v680_v57  ;;  %v1373_v41 = vadd.f32 %v13755_v33, %v1148_v21  ;;  %v1143_v51 = vadd.f32 %v13757_v35, %v920_v45  ;;  %v2040_v3 = vld [vmem:[%s13683_s4 + $0x450] sm:$0xff]  ;;  %v1935_v57 = vld [vmem:[%s13683_s4 + $0x108] sm:$0xff]  ;;  %v1926_v31 = vld [vmem:[%s13683_s4 + $0xc0] sm:$0xff] }
 0x18b   : > { %v1932_v21 = vld [vmem:[%s13683_s4 + $0xf0] sm:$0xff]  ;;  %v2019_v45 = vld [vmem:[%s13683_s4 + $0x3a8] sm:$0xff]  ;;  %v2010_v35 = vld [vmem:[%s13683_s4 + $0x360] sm:$0xff] }
 0x18c   : > { %v1136_v44 = vadd.f32 %v13759_v47, %v913_v40  ;;  %v1368_v39 = vadd.f32 %v13762_v7, %v1143_v51  ;;  %v1974_v40 = vld [vmem:[%s13683_s4 + $0x240] sm:$0xff]  ;;  %v1971_v33 = vld [vmem:[%s13683_s4 + $0x228] sm:$0xff]  ;;  %v1917_v51 = vld [vmem:[%s13683_s4 + $0x78] sm:$0xff] }
 0x18d   : > { %v1553_v48 = vpop.f32.mrf.mxu0  ;;  %v1571_v12 = vpop.f32.mrf.mxu1  ;;  %v1962_v47 = vld [vmem:[%s13683_s4 + $0x1e0] sm:$0xff]  ;;  %v2076_v7 = vld [vmem:[%s13683_s4 + $0x570] sm:$0xff]  ;;  %v2187_v61 = vld [vmem:[%s13683_s4 + $0x8e8] sm:$0xff] }
 0x18e   : > { %6785 = vmatmul.msk.f32.vlgmr.msra.gmra.mxu2 %vm1598_vm5, %v9522_v17  ;;  %6787 = vmatmul.msk.f32.vlgmr.msra.gmra.mxu3 %vm1598_vm5, %v9522_v17  ;;  %v1361_v15 = vadd.f32 %v13763_v14, %v1136_v44  ;;  %v1588_v6 = vadd.f32 %v1553_v48, %v1367_v54  ;;  %v1589_v58 = vadd.f32 %v1571_v12, %v1368_v39  ;;  %v1947_v12 = vld [vmem:[%s13683_s4 + $0x168] sm:$0xff]  ;;  %v1908_v54 = vld [vmem:[%s13683_s4 + $0x30] sm:$0xff]  ;;  %v1902_v39 = vld [vmem:[%s13683_s4] sm:$0xff] }
 0x18f   : > { %v1911_v44 = vld [vmem:[%s13683_s4 + $0x48] sm:$0xff]  ;;  %v2001_v14 = vld [vmem:[%s13683_s4 + $0x318] sm:$0xff] }
 0x190   : > { %v1582_v60 = vadd.f32 %v1551_v19, %v1361_v15  ;;  %v2043_v19 = vld [vmem:[%s13683_s4 + $0x468] sm:$0xff]  ;;  %v2073_v15 = vld [vmem:[%s13683_s4 + $0x558] sm:$0xff] }
 0x195   : > { %v1556_v10 = vpop.f32.mrf.mxu0  ;;  %v1574_v36 = vpop.f32.mrf.mxu1 }
 0x196   : > { %6786 = vmatmul.msk.f32.gmra.mxu2 %vm1598_vm5, %v9562_v50  ;;  %v1594_v4 = vadd.f32 %v1556_v10, %v1373_v41  ;;  %6788 = vmatmul.msk.f32.gmra.mxu3 %vm1598_vm5, %v9562_v50  ;;  %v1595_v18 = vadd.f32 %v1574_v36, %v1374_v38  ;;  %v2013_v41 = vld [vmem:[%s13683_s4 + $0x378] sm:$0xff]  ;;  %v1914_v10 = vld [vmem:[%s13683_s4 + $0x60] sm:$0xff] }
 0x197   : > { %v1965_v38 = vld [vmem:[%s13683_s4 + $0x1f8] sm:$0xff] }
 0x198   : > { %1710 = vmatpush.msra.mxu0 %v1594_v4  ;;  %8883 = vmatpush.msra.mxu1 %v1594_v4  ;;  %v1905_v36 = vld [vmem:[%s13683_s4 + $0x18] sm:$0xff] }
 0x199   : > { %1857 = vmatpush.msra.mxu2 %v1594_v4  ;;  %1880 = vmatpush.msra.mxu3 %v1595_v18  ;;  %v1956_v4 = vld [vmem:[%s13683_s4 + $0x1b0] sm:$0xff] }
 0x19a   : > { %1711 = vmatpush.msra.mxu0 %v1588_v6  ;;  %8884 = vmatpush.msra.mxu1 %v1588_v6 }
 0x19b   : > { %1858 = vmatpush.msra.mxu2 %v1588_v6  ;;  %1881 = vmatpush.msra.mxu3 %v1589_v58  ;;  %v2139_v6 = vld [vmem:[%s13683_s4 + $0x768] sm:$0xff] }
 0x19c   : > { %1712 = vmatpush.msra.mxu0 %v1582_v60  ;;  %8885 = vmatpush.msra.mxu1 %v1582_v60 }
 0x19d   : > { %1859 = vmatpush.msra.mxu2 %v1582_v60  ;;  %1882 = vmatpush.msra.mxu3 %v1583_v13  ;;  %v1558_v48 = vpop.f32.mrf.mxu0  ;;  %v1576_v62 = vpop.f32.mrf.mxu1  ;;  %v2136_v60 = vld [vmem:[%s13683_s4 + $0x750] sm:$0xff] }
 0x19e   : > { %6789 = vmatmul.msk.f32.vlgmr.msra.gmra.mxu0 %vm1598_vm5, %v9522_v17  ;;  %6790 = vmatmul.msk.f32.vlgmr.msra.gmra.mxu1 %vm1598_vm5, %v9562_v50  ;;  %v2067_v48 = vld [vmem:[%s13683_s4 + $0x528] sm:$0xff]  ;;  %v2133_v62 = vld [vmem:[%s13683_s4 + $0x738] sm:$0xff] }
 0x19f   : > { %1733 = vmatpush.msrb.mxu1 %v1595_v18  ;;  %6795 = vmatmul.msk.f32.vlgmr.msrb.gmra.mxu2 %vm1598_vm5, %v9607_v0  ;;  %v1950_v18 = vld [vmem:[%s13683_s4 + $0x180] sm:$0xff] }
 0x1a0   : > { %6797 = vmatmul.msk.f32.vlgmr.msrb.gmra.mxu3 %vm1598_vm5, %v9607_v0  ;;  %1811 = vmatpush.msrb.mxu0 %v9533_v34  ;;  %v2037_v34 = vld [vmem:[%s13683_s4 + $0x438] sm:$0xff] }
 0x1a1   : > { %1734 = vmatpush.msrb.mxu1 %v1589_v58  ;;  %2236 = vmatpush.msrb.mxu2 %v2043_v19  ;;  %v2070_v58 = vld [vmem:[%s13683_s4 + $0x540] sm:$0xff]  ;;  %v2181_v19 = vld [vmem:[%s13683_s4 + $0x8b8] sm:$0xff] }
 0x1a2   : > { %1812 = vmatpush.msrb.mxu0 %v9544_v28  ;;  %v1995_v28 = vld [vmem:[%s13683_s4 + $0x2e8] sm:$0xff]  ;;  %2259 = vmatpush.msrb.mxu3 %v2091_v16  ;;  %v2058_v16 = vld [vmem:[%s13683_s4 + $0x4e0] sm:$0xff] }
 0x1a3   : > { %1735 = vmatpush.msrb.mxu1 %v1583_v13  ;;  %2237 = vmatpush.msrb.mxu2 %v2040_v3  ;;  %v2184_v13 = vld [vmem:[%s13683_s4 + $0x8d0] sm:$0xff]  ;;  %v1945_v3 = vld [vmem:[%s13683_s4 + $0x158] sm:$0xff] }
 0x1a4   : > { %1813 = vmatpush.msrb.mxu0 %v9552_v52  ;;  %v1992_v52 = vld [vmem:[%s13683_s4 + $0x2d0] sm:$0xff]  ;;  %2260 = vmatpush.msrb.mxu3 %v2088_v49  ;;  %v2055_v49 = vld [vmem:[%s13683_s4 + $0x4c8] sm:$0xff] }
 0x1a5   : > { %1834 = vmatpush.msra.mxu1 %v9539_v11  ;;  %2238 = vmatpush.msrb.mxu2 %v2037_v34  ;;  %v1944_v11 = vld [vmem:[%s13683_s4 + $0x150] sm:$0xff]  ;;  %v2130_v34 = vld [vmem:[%s13683_s4 + $0x720] sm:$0xff] }
 0x1a6   : > { %2190 = vmatpush.msra.mxu0 %v1947_v12  ;;  %6791 = vmatmul.msk.f32.vlgmr.msrb.gmra.mxu1 %vm1598_vm5, %v9522_v17  ;;  %v1941_v17 = vld [vmem:[%s13683_s4 + $0x138] sm:$0xff]  ;;  %v2064_v12 = vld [vmem:[%s13683_s4 + $0x510] sm:$0xff] }
 0x1a7   : > { %1835 = vmatpush.msra.mxu1 %v9548_v30  ;;  %6799 = vmatmul.msk.f32.vlgmr.msrb.gmra.mxu0 %vm1598_vm5, %v9607_v0  ;;  %v2034_v30 = vld [vmem:[%s13683_s4 + $0x420] sm:$0xff] }
 0x1a8   : > { %6796 = vmatmul.msk.f32.gmra.mxu2 %vm1598_vm5, %v9636_v63  ;;  %6798 = vmatmul.msk.f32.gmra.mxu3 %vm1598_vm5, %v9636_v63 }
 0x1a9   : > { %1836 = vmatpush.msra.mxu1 %v9556_v37  ;;  %2191 = vmatpush.msra.mxu0 %v1944_v11  ;;  %v1989_v37 = vld [vmem:[%s13683_s4 + $0x2b8] sm:$0xff] }
 0x1aa   : > { %2239 = vmatpush.msrb.mxu2 %v2034_v30  ;;  %2261 = vmatpush.msrb.mxu3 %v2085_v23  ;;  %v2061_v11 = vld [vmem:[%s13683_s4 + $0x4f8] sm:$0xff]  ;;  %v2127_v30 = vld [vmem:[%s13683_s4 + $0x708] sm:$0xff]  ;;  %v2166_v23 = vld [vmem:[%s13683_s4 + $0x840] sm:$0xff] }
 0x1ab   : > { %2213 = vmatpush.msrb.mxu1 %v1995_v28  ;;  %2192 = vmatpush.msra.mxu0 %v1941_v17  ;;  %v1942_v28 = vld [vmem:[%s13683_s4 + $0x140] sm:$0xff]  ;;  %v1939_v17 = vld [vmem:[%s13683_s4 + $0x128] sm:$0xff] }
 0x1ac   : > { %2240 = vmatpush.msrb.mxu2 %v2031_v5  ;;  %2262 = vmatpush.msrb.mxu3 %v2082_v32  ;;  %v2124_v5 = vld [vmem:[%s13683_s4 + $0x6f0] sm:$0xff]  ;;  %v2163_v32 = vld [vmem:[%s13683_s4 + $0x828] sm:$0xff] }
 0x1ad   : > { %2214 = vmatpush.msrb.mxu1 %v1992_v52  ;;  %2193 = vmatpush.msra.mxu0 %v1938_v59  ;;  %v2175_v52 = vld [vmem:[%s13683_s4 + $0x888] sm:$0xff]  ;;  %v1936_v59 = vld [vmem:[%s13683_s4 + $0x110] sm:$0xff] }
 0x1ae   : > { %2241 = vmatpush.msrb.mxu2 %v2028_v8  ;;  %6792 = vmatmul.msk.f32.gmra.mxu1 %vm1598_vm5, %v9562_v50  ;;  %v2022_v50 = vld [vmem:[%s13683_s4 + $0x3c0] sm:$0xff]  ;;  %v2121_v8 = vld [vmem:[%s13683_s4 + $0x6d8] sm:$0xff] }
 0x1af   : > { %2215 = vmatpush.msrb.mxu1 %v1989_v37  ;;  %6800 = vmatmul.msk.f32.gmra.mxu0 %vm1598_vm5, %v9636_v63  ;;  %v2172_v37 = vld [vmem:[%s13683_s4 + $0x870] sm:$0xff] }
 0x1b0   : > { %6803 = vmatmul.msk.f32.vlgmr.msra.gmra.mxu2 %vm1598_vm5, %v9607_v0  ;;  %6805 = vmatmul.msk.f32.vlgmr.msra.gmra.mxu3 %vm1598_vm5, %v9607_v0 }
 0x1b1   : > { %2216 = vmatpush.msrb.mxu1 %v1986_v20  ;;  %2194 = vmatpush.msra.mxu0 %v1935_v57  ;;  %v2169_v20 = vld [vmem:[%s13683_s4 + $0x858] sm:$0xff] }
 0x1b2   : > { %2242 = vmatpush.msrb.mxu2 %v2025_v9  ;;  %2263 = vmatpush.msrb.mxu3 %v2079_v26  ;;  %v1933_v57 = vld [vmem:[%s13683_s4 + $0xf8] sm:$0xff]  ;;  %v2052_v9 = vld [vmem:[%s13683_s4 + $0x4b0] sm:$0xff] }
 0x1b3   : > { %2217 = vmatpush.msrb.mxu1 %v1983_v22  ;;  %2195 = vmatpush.msra.mxu0 %v1932_v21  ;;  %v2118_v22 = vld [vmem:[%s13683_s4 + $0x6c0] sm:$0xff]  ;;  %v2160_v26 = vld [vmem:[%s13683_s4 + $0x810] sm:$0xff] }
 0x1b4   : > { %2243 = vmatpush.msrb.mxu2 %v2022_v50  ;;  %2264 = vmatpush.msrb.mxu3 %v2076_v7  ;;  %v1930_v21 = vld [vmem:[%s13683_s4 + $0xe0] sm:$0xff]  ;;  %v2049_v50 = vld [vmem:[%s13683_s4 + $0x498] sm:$0xff] }
 0x1b5   : > { %2218 = vmatpush.msrb.mxu1 %v1980_v55  ;;  %2196 = vmatpush.msra.mxu0 %v1929_v24  ;;  %v2115_v55 = vld [vmem:[%s13683_s4 + $0x6a8] sm:$0xff]  ;;  %v2145_v7 = vld [vmem:[%s13683_s4 + $0x798] sm:$0xff] }
 0x1b6   : > { %2244 = vmatpush.msrb.mxu2 %v2019_v45  ;;  %6801 = vmatmul.msk.f32.vlgmr.msra.gmra.mxu1 %vm1598_vm5, %v9607_v0  ;;  %v1948_v0 = vld [vmem:[%s13683_s4 + $0x170] sm:$0xff]  ;;  %v1927_v24 = vld [vmem:[%s13683_s4 + $0xc8] sm:$0xff]  ;;  %v2046_v45 = vld [vmem:[%s13683_s4 + $0x480] sm:$0xff] }
 0x1b7   : > { %2219 = vmatpush.msrb.mxu1 %v1977_v56  ;;  %2197 = vmatpush.msra.mxu0 %v1926_v31  ;;  %v2112_v56 = vld [vmem:[%s13683_s4 + $0x690] sm:$0xff] }
 0x1b8   : > { %6804 = vmatmul.msk.f32.gmra.mxu2 %vm1598_vm5, %v9636_v63  ;;  %6806 = vmatmul.msk.f32.gmra.mxu3 %vm1598_vm5, %v9636_v63  ;;  %v1924_v31 = vld [vmem:[%s13683_s4 + $0xb0] sm:$0xff] }
 0x1b9   : > { %2220 = vmatpush.msrb.mxu1 %v1974_v40  ;;  %2245 = vmatpush.msrb.mxu2 %v2016_v46  ;;  %v1996_v40 = vld [vmem:[%s13683_s4 + $0x2f0] sm:$0xff]  ;;  %v2109_v46 = vld [vmem:[%s13683_s4 + $0x678] sm:$0xff] }
 0x1ba   : > { %2198 = vmatpush.msra.mxu0 %v1923_v25  ;;  %2265 = vmatpush.msrb.mxu3 %v2073_v15  ;;  %v2157_v25 = vld [vmem:[%s13683_s4 + $0x7f8] sm:$0xff]  ;;  %v2142_v15 = vld [vmem:[%s13683_s4 + $0x780] sm:$0xff] }
 0x1bb   : > { %2221 = vmatpush.msrb.mxu1 %v1971_v33  ;;  %2246 = vmatpush.msrb.mxu2 %v2013_v41  ;;  %v1921_v33 = vld [vmem:[%s13683_s4 + $0x98] sm:$0xff] }
 0x1bc   : > { %2199 = vmatpush.msra.mxu0 %v1920_v42  ;;  %2266 = vmatpush.msrb.mxu3 %v2070_v58  ;;  %v1993_v41 = vld [vmem:[%s13683_s4 + $0x2d8] sm:$0xff]  ;;  %v2106_v42 = vld [vmem:[%s13683_s4 + $0x660] sm:$0xff]  ;;  %v1975_v58 = vld [vmem:[%s13683_s4 + $0x248] sm:$0xff] }
 0x1bd   : > { %2222 = vmatpush.msrb.mxu1 %v1968_v27  ;;  %2247 = vmatpush.msrb.mxu2 %v2010_v35  ;;  %v2154_v27 = vld [vmem:[%s13683_s4 + $0x7e0] sm:$0xff] }
 0x1be   : > { %2200 = vmatpush.msra.mxu0 %v1917_v51  ;;  %6802 = vmatmul.msk.f32.gmra.mxu1 %vm1598_vm5, %v9636_v63  ;;  %v2178_v63 = vld [vmem:[%s13683_s4 + $0x8a0] sm:$0xff] }
 0x1bf   : > { %2248 = vmatpush.msrb.mxu2 %v2007_v53  ;;  %2223 = vmatpush.msrb.mxu1 %v1965_v38  ;;  %v1918_v35 = vld [vmem:[%s13683_s4 + $0x80] sm:$0xff]  ;;  %v2103_v53 = vld [vmem:[%s13683_s4 + $0x648] sm:$0xff] }
 0x1c0   : > { %2201 = vmatpush.msra.mxu0 %v1914_v10  ;;  %2267 = vmatpush.msrb.mxu3 %v2067_v48  ;;  %v1990_v51 = vld [vmem:[%s13683_s4 + $0x2c0] sm:$0xff]  ;;  %v2151_v38 = vld [vmem:[%s13683_s4 + $0x7c8] sm:$0xff]  ;;  %v1969_v48 = vld [vmem:[%s13683_s4 + $0x218] sm:$0xff] }
 0x1c1   : > { %2224 = vmatpush.msrb.mxu1 %v1962_v47  ;;  %2249 = vmatpush.msrb.mxu2 %v2004_v29  ;;  %v1915_v10 = vld [vmem:[%s13683_s4 + $0x68] sm:$0xff]  ;;  %v2097_v29 = vld [vmem:[%s13683_s4 + $0x618] sm:$0xff] }
 0x1c2   : > { %2202 = vmatpush.msra.mxu0 %v1911_v44  ;;  %2268 = vmatpush.msrb.mxu3 %v2064_v12  ;;  %v1987_v47 = vld [vmem:[%s13683_s4 + $0x2a8] sm:$0xff]  ;;  %v2100_v44 = vld [vmem:[%s13683_s4 + $0x630] sm:$0xff] }
 0x1c3   : > { %2225 = vmatpush.msrb.mxu1 %v1959_v43  ;;  %2250 = vmatpush.msrb.mxu2 %v2001_v14  ;;  %v2148_v43 = vld [vmem:[%s13683_s4 + $0x7b0] sm:$0xff]  ;;  %v2094_v14 = vld [vmem:[%s13683_s4 + $0x600] sm:$0xff] }
 0x1c4   : > { %2203 = vmatpush.msra.mxu0 %v1908_v54  ;;  %2269 = vmatpush.msrb.mxu3 %v2061_v11  ;;  %v1912_v54 = vld [vmem:[%s13683_s4 + $0x50] sm:$0xff] }
 0x1c5   : > { %2226 = vmatpush.msrb.mxu1 %v1956_v4  ;;  %2251 = vmatpush.msrb.mxu2 %v1998_v1  ;;  %v1984_v4 = vld [vmem:[%s13683_s4 + $0x290] sm:$0xff]  ;;  %v1903_v1 = vld [vmem:[%s13683_s4 + $0x8] sm:$0xff] }
 0x1c6   : > { %2204 = vmatpush.msra.mxu0 %v1905_v36  ;;  %2270 = vmatpush.msrb.mxu3 %v2058_v16 }
 0x1c7   : > { %2227 = vmatpush.msrb.mxu1 %v1953_v2  ;;  %2328 = vmatpush.msra.mxu2 %v1948_v0  ;;  %v1972_v0 = vld [vmem:[%s13683_s4 + $0x230] sm:$0xff] }
 0x1c8   : > { %2205 = vmatpush.msra.mxu0 %v1902_v39  ;;  %2271 = vmatpush.msrb.mxu3 %v2055_v49  ;;  %v1909_v39 = vld [vmem:[%s13683_s4 + $0x38] sm:$0xff] }
 0x1c9   : > { %2228 = vmatpush.msrb.mxu1 %v1950_v18  ;;  %2329 = vmatpush.msra.mxu2 %v1945_v3  ;;  %v1981_v18 = vld [vmem:[%s13683_s4 + $0x278] sm:$0xff] }
 0x1ca   : > { %2282 = vmatpush.msrb.mxu0 %v2139_v6  ;;  %2272 = vmatpush.msrb.mxu3 %v2052_v9  ;;  %v1906_v6 = vld [vmem:[%s13683_s4 + $0x20] sm:$0xff] }
 0x1cb   : > { %2305 = vmatpush.msra.mxu1 %v2187_v61  ;;  %2330 = vmatpush.msra.mxu2 %v1942_v28  ;;  %v1978_v61 = vld [vmem:[%s13683_s4 + $0x260] sm:$0xff] }
 0x1cc   : > { %2283 = vmatpush.msrb.mxu0 %v2136_v60  ;;  %2273 = vmatpush.msrb.mxu3 %v2049_v50  ;;  %v1954_v28 = vld [vmem:[%s13683_s4 + $0x1a0] sm:$0xff]  ;;  %v2089_v50 = vld [vmem:[%s13683_s4 + $0x5d8] sm:$0xff] }
 0x1cd   : > { %2306 = vmatpush.msra.mxu1 %v2184_v13  ;;  %2331 = vmatpush.msra.mxu2 %v1939_v17 }
 0x1ce   : > { %2284 = vmatpush.msrb.mxu0 %v2133_v62  ;;  %2274 = vmatpush.msrb.mxu3 %v2046_v45  ;;  %v1966_v62 = vld [vmem:[%s13683_s4 + $0x200] sm:$0xff]  ;;  %v2035_v45 = vld [vmem:[%s13683_s4 + $0x428] sm:$0xff] }
 0x1cf   : > { %2307 = vmatpush.msra.mxu1 %v2181_v19  ;;  %2332 = vmatpush.msra.mxu2 %v1936_v59  ;;  %v1963_v19 = vld [vmem:[%s13683_s4 + $0x1e8] sm:$0xff] }
 0x1d0   : > { %2285 = vmatpush.msrb.mxu0 %v2130_v34  ;;  %2351 = vmatpush.msra.mxu3 %v1996_v40  ;;  %v1960_v34 = vld [vmem:[%s13683_s4 + $0x1d0] sm:$0xff] }
 0x1d1   : > { %2308 = vmatpush.msra.mxu1 %v2178_v63  ;;  %2333 = vmatpush.msra.mxu2 %v1933_v57  ;;  %v1957_v63 = vld [vmem:[%s13683_s4 + $0x1b8] sm:$0xff] }
 0x1d2   : > { %2286 = vmatpush.msrb.mxu0 %v2127_v30  ;;  %2352 = vmatpush.msra.mxu3 %v1993_v41  ;;  %v1951_v30 = vld [vmem:[%s13683_s4 + $0x188] sm:$0xff] }
 0x1d3   : > { %2309 = vmatpush.msra.mxu1 %v2175_v52  ;;  %2334 = vmatpush.msra.mxu2 %v1930_v21  ;;  %v2140_v21 = vld [vmem:[%s13683_s4 + $0x770] sm:$0xff] }
 0x1d4   : > { %2287 = vmatpush.msrb.mxu0 %v2124_v5  ;;  %2353 = vmatpush.msra.mxu3 %v1990_v51  ;;  %v2131_v51 = vld [vmem:[%s13683_s4 + $0x728] sm:$0xff] }
 0x1d5   : > { %2310 = vmatpush.msra.mxu1 %v2172_v37  ;;  %2335 = vmatpush.msra.mxu2 %v1927_v24  ;;  %v2086_v24 = vld [vmem:[%s13683_s4 + $0x5c0] sm:$0xff] }
 0x1d6   : > { %2288 = vmatpush.msrb.mxu0 %v2121_v8  ;;  %2354 = vmatpush.msra.mxu3 %v1987_v47  ;;  %v2044_v8 = vld [vmem:[%s13683_s4 + $0x470] sm:$0xff]  ;;  %v2026_v47 = vld [vmem:[%s13683_s4 + $0x3e0] sm:$0xff] }
 0x1d7   : > { %2311 = vmatpush.msra.mxu1 %v2169_v20  ;;  %2336 = vmatpush.msra.mxu2 %v1924_v31  ;;  %v2083_v31 = vld [vmem:[%s13683_s4 + $0x5a8] sm:$0xff] }
 0x1d8   : > { %2289 = vmatpush.msrb.mxu0 %v2118_v22  ;;  %2355 = vmatpush.msra.mxu3 %v1984_v4  ;;  %v2092_v22 = vld [vmem:[%s13683_s4 + $0x5f0] sm:$0xff] }
 0x1d9   : > { %2312 = vmatpush.msra.mxu1 %v2166_v23  ;;  %2337 = vmatpush.msra.mxu2 %v1921_v33  ;;  %v2041_v23 = vld [vmem:[%s13683_s4 + $0x458] sm:$0xff]  ;;  %v2032_v33 = vld [vmem:[%s13683_s4 + $0x410] sm:$0xff] }
 0x1da   : > { %2290 = vmatpush.msrb.mxu0 %v2115_v55  ;;  %2356 = vmatpush.msra.mxu3 %v1981_v18  ;;  %v2038_v55 = vld [vmem:[%s13683_s4 + $0x440] sm:$0xff] }
 0x1db   : > { %2313 = vmatpush.msra.mxu1 %v2163_v32  ;;  %2338 = vmatpush.msra.mxu2 %v1918_v35  ;;  %v2137_v32 = vld [vmem:[%s13683_s4 + $0x758] sm:$0xff]  ;;  %v2080_v35 = vld [vmem:[%s13683_s4 + $0x590] sm:$0xff] }
 0x1dc   : > { %2291 = vmatpush.msrb.mxu0 %v2112_v56  ;;  %2357 = vmatpush.msra.mxu3 %v1978_v61  ;;  %v2134_v56 = vld [vmem:[%s13683_s4 + $0x740] sm:$0xff]  ;;  %v2119_v61 = vld [vmem:[%s13683_s4 + $0x6c8] sm:$0xff] }
 0x1dd   : > { %2314 = vmatpush.msra.mxu1 %v2160_v26  ;;  %2339 = vmatpush.msra.mxu2 %v1915_v10  ;;  %v2128_v10 = vld [vmem:[%s13683_s4 + $0x710] sm:$0xff] }
 0x1de   : > { %2292 = vmatpush.msrb.mxu0 %v2109_v46  ;;  %2358 = vmatpush.msra.mxu3 %v1975_v58  ;;  %v2065_v58 = vld [vmem:[%s13683_s4 + $0x518] sm:$0xff] }
 0x1df   : > { %2315 = vmatpush.msra.mxu1 %v2157_v25  ;;  %2340 = vmatpush.msra.mxu2 %v1912_v54  ;;  %v2023_v54 = vld [vmem:[%s13683_s4 + $0x3c8] sm:$0xff] }
 0x1e0   : > { %2293 = vmatpush.msrb.mxu0 %v2106_v42  ;;  %2359 = vmatpush.msra.mxu3 %v1972_v0  ;;  %v2014_v0 = vld [vmem:[%s13683_s4 + $0x380] sm:$0xff] }
 0x1e1   : > { %2316 = vmatpush.msra.mxu1 %v2154_v27  ;;  %2341 = vmatpush.msra.mxu2 %v1909_v39 }
 0x1e2   : > { %2294 = vmatpush.msrb.mxu0 %v2103_v53  ;;  %2360 = vmatpush.msra.mxu3 %v1969_v48  ;;  %v2029_v53 = vld [vmem:[%s13683_s4 + $0x3f8] sm:$0xff]  ;;  %v2062_v48 = vld [vmem:[%s13683_s4 + $0x500] sm:$0xff] }
 0x1e3   : > { %2317 = vmatpush.msra.mxu1 %v2151_v38  ;;  %2342 = vmatpush.msra.mxu2 %v1906_v6  ;;  %v2077_v38 = vld [vmem:[%s13683_s4 + $0x578] sm:$0xff] }
 0x1e4   : > { %2295 = vmatpush.msrb.mxu0 %v2100_v44  ;;  %2361 = vmatpush.msra.mxu3 %v1966_v62  ;;  %v2074_v44 = vld [vmem:[%s13683_s4 + $0x560] sm:$0xff]  ;;  %v2113_v62 = vld [vmem:[%s13683_s4 + $0x698] sm:$0xff] }
 0x1e5   : > { %2318 = vmatpush.msra.mxu1 %v2148_v43  ;;  %2343 = vmatpush.msra.mxu2 %v1903_v1  ;;  %v2125_v43 = vld [vmem:[%s13683_s4 + $0x6f8] sm:$0xff] }
 0x1e6   : > { %2296 = vmatpush.msrb.mxu0 %v2097_v29  ;;  %2362 = vmatpush.msra.mxu3 %v1963_v19  ;;  %v2017_v1 = vld [vmem:[%s13683_s4 + $0x398] sm:$0xff] }
 0x1e7   : > { %2319 = vmatpush.msra.mxu1 %v2145_v7  ;;  %v2185_v19 = vld [vmem:[%s13683_s4 + $0x8d8] sm:$0xff] }
 0x1e8   : > { %2297 = vmatpush.msrb.mxu0 %v2094_v14  ;;  %2363 = vmatpush.msra.mxu3 %v1960_v34  ;;  %v2020_v14 = vld [vmem:[%s13683_s4 + $0x3b0] sm:$0xff] }
 0x1e9   : > { %2320 = vmatpush.msra.mxu1 %v2142_v15  ;;  %v2068_v15 = vld [vmem:[%s13683_s4 + $0x530] sm:$0xff] }
 0x1ea   : > { %2364 = vmatpush.msra.mxu3 %v1957_v63 }
 0x1ec   : > { %2365 = vmatpush.msra.mxu3 %v1954_v28  ;;  %v2059_v28 = vld [vmem:[%s13683_s4 + $0x4e8] sm:$0xff] }
 0x1ee   : > { %2366 = vmatpush.msra.mxu3 %v1951_v30 }
 0x200   : > { %v1622_v36 = vpop.f32.mrf.mxu2  ;;  %v1645_v2 = vpop.f32.mrf.mxu3 }
 0x209   : > { %v1625_v60 = vpop.f32.mrf.mxu2  ;;  %v1648_v13 = vpop.f32.mrf.mxu3 }
 0x211   : > { %v1668_v3 = vpop.f32.mrf.mxu2  ;;  %v10024_v12 = vpop.f32.mrf.mxu3 }
 0x219   : > { %v1671_v11 = vpop.f32.mrf.mxu2  ;;  %v10038_v52 = vpop.f32.mrf.mxu3 }
 0x21b   : > { %v10040_v17 = vpop.f32.mrf.mxu0  ;;  %v10042_v16 = vpop.f32.mrf.mxu1 }
 0x222   : > { %v1769_v5 = vpop.f32.mrf.mxu2 }
 0x223   : > { %v10044_v37 = vmax.f32 %v1622_v36, %v1769_v5  ;;  %v1792_v59 = vpop.f32.mrf.mxu3  ;;  %v1737_v57 = vpop.f32.mrf.mxu1  ;;  %v2071_v36 = vld [vmem:[%s13683_s4 + $0x548] sm:$0xff]  ;;  %v2008_v5 = vld [vmem:[%s13683_s4 + $0x350] sm:$0xff] }
 0x224   : > { %v1815_v49 = vpop.f32.mrf.mxu0  ;;  %v10049_v20 = vmax.f32 %v1645_v2, %v1792_v59  ;;  %v2122_v2 = vld [vmem:[%s13683_s4 + $0x6e0] sm:$0xff]  ;;  %v2056_v59 = vld [vmem:[%s13683_s4 + $0x4d0] sm:$0xff] }
 0x225   : > { %v10051_v9 = vmax.f32 %v1668_v3, %v1815_v49  ;;  %2206 = vmatmul.f32.vlgmr.msra.gmra.mxu0 %v10044_v37  ;;  %v2107_v49 = vld [vmem:[%s13683_s4 + $0x668] sm:$0xff] }
 0x226   : > { %2229 = vmatmul.f32.vlgmr.msrb.gmra.mxu1 %v10049_v20  ;;  %2374 = vmatpush.msra.mxu0 %v2044_v8 }
 0x227   : > { %2397 = vmatpush.msrb.mxu1 %v2092_v22  ;;  %2252 = vmatmul.f32.vlgmr.msrb.gmra.mxu2 %v10051_v9  ;;  %v2005_v22 = vld [vmem:[%s13683_s4 + $0x338] sm:$0xff] }
 0x228   : > { %2375 = vmatpush.msra.mxu0 %v2041_v23  ;;  %2420 = vmatpush.msrb.mxu2 %v2140_v21  ;;  %v2104_v23 = vld [vmem:[%s13683_s4 + $0x650] sm:$0xff] }
 0x229   : > { %2398 = vmatpush.msrb.mxu1 %v2089_v50  ;;  %v2176_v21 = vld [vmem:[%s13683_s4 + $0x890] sm:$0xff]  ;;  %v2002_v50 = vld [vmem:[%s13683_s4 + $0x320] sm:$0xff] }
 0x22a   : > { %2376 = vmatpush.msra.mxu0 %v2038_v55  ;;  %2421 = vmatpush.msrb.mxu2 %v2137_v32  ;;  %v2050_v55 = vld [vmem:[%s13683_s4 + $0x4a0] sm:$0xff]  ;;  %v2101_v32 = vld [vmem:[%s13683_s4 + $0x638] sm:$0xff] }
 0x22b   : > { %v1772_v26 = vpop.f32.mrf.mxu2  ;;  %2399 = vmatpush.msrb.mxu1 %v2086_v24  ;;  %v1795_v46 = vpop.f32.mrf.mxu3  ;;  %v2173_v24 = vld [vmem:[%s13683_s4 + $0x878] sm:$0xff] }
 0x22c   : > { %v10086_v40 = vmax.f32 %v1625_v60, %v1772_v26  ;;  %v1818_v25 = vpop.f32.mrf.mxu0  ;;  %v10091_v41 = vmax.f32 %v1648_v13, %v1795_v46  ;;  %2377 = vmatpush.msra.mxu0 %v2035_v45  ;;  %2422 = vmatpush.msrb.mxu2 %v2134_v56  ;;  %v10093_v42 = vpop.f32.mrf.mxu1  ;;  %v2116_v60 = vld [vmem:[%s13683_s4 + $0x6b0] sm:$0xff]  ;;  %v1999_v45 = vld [vmem:[%s13683_s4 + $0x308] sm:$0xff]  ;;  %v2098_v26 = vld [vmem:[%s13683_s4 + $0x620] sm:$0xff] }
 0x22d   : > { %v10095_v27 = vmax.f32 %v1671_v11, %v1818_v25  ;;  %2400 = vmatpush.msrb.mxu1 %v2083_v31  ;;  %v2188_v13 = vld [vmem:[%s13683_s4 + $0x8f0] sm:$0xff]  ;;  %v2110_v11 = vld [vmem:[%s13683_s4 + $0x680] sm:$0xff]  ;;  %v2047_v56 = vld [vmem:[%s13683_s4 + $0x488] sm:$0xff] }
 0x22e   : > { %2209 = vmatmul.f32.gmra.mxu0 %v10086_v40  ;;  %2232 = vmatmul.f32.gmra.mxu1 %v10091_v41  ;;  %v2170_v31 = vld [vmem:[%s13683_s4 + $0x860] sm:$0xff]  ;;  %v1949_v46 = vld [vmem:[%s13683_s4 + $0x178] sm:$0xff] }
 0x22f   : > { %2378 = vmatpush.msra.mxu0 %v2032_v33  ;;  %2401 = vmatpush.msrb.mxu1 %v2080_v35  ;;  %v1997_v25 = vld [vmem:[%s13683_s4 + $0x2f8] sm:$0xff]  ;;  %v2095_v33 = vld [vmem:[%s13683_s4 + $0x608] sm:$0xff]  ;;  %v1946_v35 = vld [vmem:[%s13683_s4 + $0x160] sm:$0xff] }
 0x230   : > { %2423 = vmatpush.msrb.mxu2 %v2131_v51  ;;  %v1994_v51 = vld [vmem:[%s13683_s4 + $0x2e0] sm:$0xff] }
 0x231   : > { %2255 = vmatmul.f32.gmra.mxu2 %v10095_v27  ;;  %2379 = vmatpush.msra.mxu0 %v2029_v53  ;;  %v2045_v53 = vld [vmem:[%s13683_s4 + $0x478] sm:$0xff] }
 0x232   : > { %2402 = vmatpush.msrb.mxu1 %v2077_v38  ;;  %2424 = vmatpush.msrb.mxu2 %v2128_v10  ;;  %v2164_v38 = vld [vmem:[%s13683_s4 + $0x830] sm:$0xff]  ;;  %v1943_v10 = vld [vmem:[%s13683_s4 + $0x148] sm:$0xff] }
 0x233   : > { %2380 = vmatpush.msra.mxu0 %v2026_v47  ;;  %v1861_v4 = vpop.f32.mrf.mxu2  ;;  %v1884_v7 = vpop.f32.mrf.mxu3  ;;  %v1991_v47 = vld [vmem:[%s13683_s4 + $0x2c8] sm:$0xff] }
 0x234   : > { %2403 = vmatpush.msrb.mxu1 %v2074_v44  ;;  %2425 = vmatpush.msrb.mxu2 %v2125_v43  ;;  %v10134_v29 = vmax.f32 %v10040_v17, %v1861_v4  ;;  %v10136_v39 = vmax.f32 %v1737_v57, %v1884_v7  ;;  %v1838_v18 = vpop.f32.mrf.mxu1  ;;  %v2182_v17 = vld [vmem:[%s13683_s4 + $0x8c0] sm:$0xff]  ;;  %v2179_v57 = vld [vmem:[%s13683_s4 + $0x8a8] sm:$0xff]  ;;  %v2161_v43 = vld [vmem:[%s13683_s4 + $0x818] sm:$0xff] }
 0x235   : > { %2381 = vmatpush.msra.mxu0 %v2023_v54  ;;  %v10145_v6 = vmax.f32 %v10024_v12, %v1838_v18  ;;  %v2011_v12 = vld [vmem:[%s13683_s4 + $0x368] sm:$0xff]  ;;  %v2042_v44 = vld [vmem:[%s13683_s4 + $0x460] sm:$0xff]  ;;  %v1940_v54 = vld [vmem:[%s13683_s4 + $0x130] sm:$0xff] }
 0x236   : > { %2404 = vmatpush.msrb.mxu1 %v2071_v36  ;;  %2426 = vmatpush.msrb.mxu2 %v2122_v2  ;;  %v1988_v4 = vld [vmem:[%s13683_s4 + $0x2b0] sm:$0xff]  ;;  %v2039_v36 = vld [vmem:[%s13683_s4 + $0x448] sm:$0xff]  ;;  %v2158_v2 = vld [vmem:[%s13683_s4 + $0x800] sm:$0xff] }
 0x237   : > { %2298 = vmatmul.f32.vlgmr.msrb.gmra.mxu0 %v10134_v29  ;;  %2321 = vmatmul.f32.vlgmr.msra.gmra.mxu1 %v10136_v39  ;;  %v1937_v7 = vld [vmem:[%s13683_s4 + $0x118] sm:$0xff] }
 0x238   : > { %2382 = vmatpush.msra.mxu0 %v2020_v14  ;;  %2405 = vmatpush.msrb.mxu1 %v2068_v15  ;;  %v1985_v18 = vld [vmem:[%s13683_s4 + $0x298] sm:$0xff]  ;;  %v2036_v14 = vld [vmem:[%s13683_s4 + $0x430] sm:$0xff]  ;;  %v2155_v15 = vld [vmem:[%s13683_s4 + $0x7e8] sm:$0xff] }
 0x239   : > { %2427 = vmatpush.msrb.mxu2 %v2119_v61  ;;  %2275 = vmatmul.f32.vlgmr.msrb.gmra.mxu3 %v10145_v6  ;;  %v1934_v61 = vld [vmem:[%s13683_s4 + $0x100] sm:$0xff] }
 0x23a   : > { %2344 = vmatmul.f32.vlgmr.msra.gmra.mxu2 %v10044_v37  ;;  %2383 = vmatpush.msra.mxu0 %v2017_v1  ;;  %v1982_v1 = vld [vmem:[%s13683_s4 + $0x280] sm:$0xff] }
 0x23b   : > { %2406 = vmatpush.msrb.mxu1 %v2065_v58  ;;  %2428 = vmatpush.msrb.mxu2 %v2116_v60  ;;  %v1864_v3 = vpop.f32.mrf.mxu2  ;;  %v1887_v63 = vpop.f32.mrf.mxu3  ;;  %v2033_v58 = vld [vmem:[%s13683_s4 + $0x418] sm:$0xff]  ;;  %v2152_v60 = vld [vmem:[%s13683_s4 + $0x7d0] sm:$0xff] }
 0x23c   : > { %2443 = vmatpush.msrb.mxu3 %v2188_v13  ;;  %2384 = vmatpush.msra.mxu0 %v2014_v0  ;;  %v10182_v34 = vmax.f32 %v10042_v16, %v1864_v3  ;;  %v10191_v30 = vmax.f32 %v10093_v42, %v1887_v63  ;;  %v1841_v16 = vpop.f32.mrf.mxu1  ;;  %v2167_v42 = vld [vmem:[%s13683_s4 + $0x848] sm:$0xff]  ;;  %v1976_v3 = vld [vmem:[%s13683_s4 + $0x250] sm:$0xff]  ;;  %v2146_v63 = vld [vmem:[%s13683_s4 + $0x7a0] sm:$0xff] }
 0x23d   : > { %2407 = vmatpush.msrb.mxu1 %v2062_v48  ;;  %2429 = vmatpush.msrb.mxu2 %v2113_v62  ;;  %v10206_v8 = vmax.f32 %v10038_v52, %v1841_v16  ;;  %v2053_v52 = vld [vmem:[%s13683_s4 + $0x4b8] sm:$0xff]  ;;  %v1931_v13 = vld [vmem:[%s13683_s4 + $0xe8] sm:$0xff]  ;;  %v2030_v48 = vld [vmem:[%s13683_s4 + $0x400] sm:$0xff] }
 0x23e   : > { %2444 = vmatpush.msrb.mxu3 %v2185_v19  ;;  %2385 = vmatpush.msra.mxu0 %v2011_v12  ;;  %v1979_v0 = vld [vmem:[%s13683_s4 + $0x268] sm:$0xff]  ;;  %v2149_v62 = vld [vmem:[%s13683_s4 + $0x7b8] sm:$0xff]  ;;  %v1928_v19 = vld [vmem:[%s13683_s4 + $0xd0] sm:$0xff] }
 0x23f   : > { %2408 = vmatpush.msrb.mxu1 %v2059_v28  ;;  %2430 = vmatpush.msrb.mxu2 %v2110_v11  ;;  %v2027_v12 = vld [vmem:[%s13683_s4 + $0x3e8] sm:$0xff]  ;;  %v1925_v28 = vld [vmem:[%s13683_s4 + $0xb8] sm:$0xff] }
 0x240   : > { %2445 = vmatpush.msrb.mxu3 %v2182_v17  ;;  %2301 = vmatmul.f32.gmra.mxu0 %v10182_v34  ;;  %v1973_v11 = vld [vmem:[%s13683_s4 + $0x238] sm:$0xff]  ;;  %v2024_v17 = vld [vmem:[%s13683_s4 + $0x3d0] sm:$0xff]  ;;  %v2143_v16 = vld [vmem:[%s13683_s4 + $0x788] sm:$0xff] }
 0x241   : > { %2324 = vmatmul.f32.gmra.mxu1 %v10191_v30  ;;  %2386 = vmatpush.msra.mxu0 %v2008_v5  ;;  %v1922_v5 = vld [vmem:[%s13683_s4 + $0xa0] sm:$0xff] }
 0x242   : > { %2409 = vmatpush.msrb.mxu1 %v2056_v59  ;;  %2431 = vmatpush.msrb.mxu2 %v2107_v49  ;;  %v1970_v59 = vld [vmem:[%s13683_s4 + $0x220] sm:$0xff]  ;;  %v2021_v49 = vld [vmem:[%s13683_s4 + $0x3b8] sm:$0xff] }
 0x243   : > { %2446 = vmatpush.msrb.mxu3 %v2179_v57  ;;  %2347 = vmatmul.f32.gmra.mxu2 %v10086_v40  ;;  %v2093_v57 = vld [vmem:[%s13683_s4 + $0x5f8] sm:$0xff] }
 0x244   : > { %2278 = vmatmul.f32.gmra.mxu3 %v10206_v8  ;;  %2387 = vmatpush.msra.mxu0 %v2005_v22  ;;  %v1919_v22 = vld [vmem:[%s13683_s4 + $0x88] sm:$0xff] }
 0x245   : > { %2410 = vmatpush.msrb.mxu1 %v2053_v52  ;;  %2432 = vmatpush.msrb.mxu2 %v2104_v23  ;;  %v1967_v52 = vld [vmem:[%s13683_s4 + $0x208] sm:$0xff]  ;;  %v2018_v23 = vld [vmem:[%s13683_s4 + $0x3a0] sm:$0xff] }
 0x246   : > { %2447 = vmatpush.msrb.mxu3 %v2176_v21  ;;  %2388 = vmatpush.msra.mxu0 %v2002_v50  ;;  %v2090_v21 = vld [vmem:[%s13683_s4 + $0x5e0] sm:$0xff]  ;;  %v1916_v50 = vld [vmem:[%s13683_s4 + $0x70] sm:$0xff] }
 0x247   : > { %2411 = vmatpush.msrb.mxu1 %v2050_v55  ;;  %2433 = vmatpush.msrb.mxu2 %v2101_v32  ;;  %v1964_v55 = vld [vmem:[%s13683_s4 + $0x1f0] sm:$0xff]  ;;  %v2015_v32 = vld [vmem:[%s13683_s4 + $0x388] sm:$0xff] }
 0x248   : > { %2448 = vmatpush.msrb.mxu3 %v2173_v24  ;;  %2389 = vmatpush.msra.mxu0 %v1999_v45  ;;  %v2087_v24 = vld [vmem:[%s13683_s4 + $0x5c8] sm:$0xff]  ;;  %v1913_v45 = vld [vmem:[%s13683_s4 + $0x58] sm:$0xff] }
 0x249   : > { %2412 = vmatpush.msrb.mxu1 %v2047_v56  ;;  %2434 = vmatpush.msrb.mxu2 %v2098_v26  ;;  %v1961_v56 = vld [vmem:[%s13683_s4 + $0x1d8] sm:$0xff]  ;;  %v2012_v26 = vld [vmem:[%s13683_s4 + $0x370] sm:$0xff] }
 0x24a   : > { %2449 = vmatpush.msrb.mxu3 %v2170_v31  ;;  %2466 = vmatpush.msrb.mxu0 %v1949_v46  ;;  %v2084_v31 = vld [vmem:[%s13683_s4 + $0x5b0] sm:$0xff]  ;;  %v1910_v46 = vld [vmem:[%s13683_s4 + $0x40] sm:$0xff] }
 0x24b   : > { %2489 = vmatpush.msra.mxu1 %v1997_v25  ;;  %2390 = vmatmul.f32.vlgmr.msra.gmra.mxu0 %v10051_v9  ;;  %v1958_v25 = vld [vmem:[%s13683_s4 + $0x1c0] sm:$0xff] }
 0x24c   : > { %2413 = vmatmul.f32.vlgmr.msrb.gmra.mxu1 %v10145_v6  ;;  %2435 = vmatpush.msrb.mxu2 %v2095_v33  ;;  %v2009_v33 = vld [vmem:[%s13683_s4 + $0x358] sm:$0xff] }
 0x24d   : > { %2450 = vmatpush.msrb.mxu3 %v2167_v42  ;;  %2467 = vmatpush.msrb.mxu0 %v1946_v35  ;;  %v2081_v42 = vld [vmem:[%s13683_s4 + $0x598] sm:$0xff]  ;;  %v1907_v35 = vld [vmem:[%s13683_s4 + $0x28] sm:$0xff] }
 0x24e   : > { %2490 = vmatpush.msra.mxu1 %v1994_v51  ;;  %2512 = vmatpush.msra.mxu2 %v2045_v53  ;;  %v1955_v51 = vld [vmem:[%s13683_s4 + $0x1a8] sm:$0xff]  ;;  %v2006_v53 = vld [vmem:[%s13683_s4 + $0x340] sm:$0xff] }
 0x24f   : > { %2367 = vmatmul.f32.vlgmr.msra.gmra.mxu3 %v10049_v20  ;;  %2436 = vmatmul.f32.vlgmr.msrb.gmra.mxu2 %v10134_v29 }
 0x250   : > { %2451 = vmatpush.msrb.mxu3 %v2164_v38  ;;  %2468 = vmatpush.msrb.mxu0 %v1943_v10  ;;  %v2078_v38 = vld [vmem:[%s13683_s4 + $0x580] sm:$0xff]  ;;  %v1904_v10 = vld [vmem:[%s13683_s4 + $0x10] sm:$0xff] }
 0x251   : > { %2491 = vmatpush.msra.mxu1 %v1991_v47  ;;  %2513 = vmatpush.msra.mxu2 %v2042_v44  ;;  %v1952_v47 = vld [vmem:[%s13683_s4 + $0x190] sm:$0xff]  ;;  %v2003_v44 = vld [vmem:[%s13683_s4 + $0x328] sm:$0xff] }
 0x252   : > { %2452 = vmatpush.msrb.mxu3 %v2161_v43  ;;  %2469 = vmatpush.msrb.mxu0 %v1940_v54  ;;  %v2075_v43 = vld [vmem:[%s13683_s4 + $0x568] sm:$0xff]  ;;  %v2141_v54 = vld [vmem:[%s13683_s4 + $0x778] sm:$0xff] }
 0x253   : > { %2492 = vmatpush.msra.mxu1 %v1988_v4  ;;  %2514 = vmatpush.msra.mxu2 %v2039_v36  ;;  %v2189_v4 = vld [vmem:[%s13683_s4 + $0x8f8] sm:$0xff]  ;;  %v2000_v36 = vld [vmem:[%s13683_s4 + $0x310] sm:$0xff] }
 0x254   : > { %2453 = vmatpush.msrb.mxu3 %v2158_v2  ;;  %2470 = vmatpush.msrb.mxu0 %v1937_v7  ;;  %v2072_v2 = vld [vmem:[%s13683_s4 + $0x550] sm:$0xff]  ;;  %v2138_v7 = vld [vmem:[%s13683_s4 + $0x760] sm:$0xff] }
 0x255   : > { %2493 = vmatpush.msra.mxu1 %v1985_v18  ;;  %2515 = vmatpush.msra.mxu2 %v2036_v14  ;;  %v2186_v18 = vld [vmem:[%s13683_s4 + $0x8e0] sm:$0xff]  ;;  %v6852_v14 = vld [vmem:[%s13683_s4 + $0xa68] sm:$0xff] }
 0x256   : > { %2393 = vmatmul.f32.gmra.mxu0 %v10095_v27  ;;  %2416 = vmatmul.f32.gmra.mxu1 %v10206_v8 }
 0x257   : > { %2454 = vmatpush.msrb.mxu3 %v2155_v15  ;;  %2471 = vmatpush.msrb.mxu0 %v1934_v61  ;;  %v2069_v15 = vld [vmem:[%s13683_s4 + $0x538] sm:$0xff]  ;;  %v2135_v61 = vld [vmem:[%s13683_s4 + $0x748] sm:$0xff] }
 0x258   : > { %2494 = vmatpush.msra.mxu1 %v1982_v1  ;;  %2516 = vmatpush.msra.mxu2 %v2033_v58  ;;  %v2183_v1 = vld [vmem:[%s13683_s4 + $0x8c8] sm:$0xff]  ;;  %v6849_v58 = vld [vmem:[%s13683_s4 + $0xa50] sm:$0xff] }
 0x259   : > { %2370 = vmatmul.f32.gmra.mxu3 %v10091_v41  ;;  %2439 = vmatmul.f32.gmra.mxu2 %v10182_v34 }
 0x25a   : > { %2455 = vmatpush.msrb.mxu3 %v2152_v60  ;;  %2472 = vmatpush.msrb.mxu0 %v1931_v13  ;;  %v2066_v60 = vld [vmem:[%s13683_s4 + $0x520] sm:$0xff]  ;;  %v2132_v13 = vld [vmem:[%s13683_s4 + $0x730] sm:$0xff] }
 0x25b   : > { %2495 = vmatpush.msra.mxu1 %v1979_v0  ;;  %2517 = vmatpush.msra.mxu2 %v2030_v48  ;;  %v2180_v0 = vld [vmem:[%s13683_s4 + $0x8b0] sm:$0xff]  ;;  %v6846_v48 = vld [vmem:[%s13683_s4 + $0xa38] sm:$0xff] }
 0x25c   : > { %2456 = vmatpush.msrb.mxu3 %v2149_v62  ;;  %2473 = vmatpush.msrb.mxu0 %v1928_v19  ;;  %v2063_v62 = vld [vmem:[%s13683_s4 + $0x508] sm:$0xff]  ;;  %v2129_v19 = vld [vmem:[%s13683_s4 + $0x718] sm:$0xff] }
 0x25d   : > { %2496 = vmatpush.msra.mxu1 %v1976_v3  ;;  %2518 = vmatpush.msra.mxu2 %v2027_v12  ;;  %v2177_v3 = vld [vmem:[%s13683_s4 + $0x898] sm:$0xff]  ;;  %v6843_v12 = vld [vmem:[%s13683_s4 + $0xa20] sm:$0xff] }
 0x25e   : > { %2457 = vmatpush.msrb.mxu3 %v2146_v63  ;;  %2474 = vmatpush.msrb.mxu0 %v1925_v28  ;;  %v2060_v63 = vld [vmem:[%s13683_s4 + $0x4f0] sm:$0xff]  ;;  %v2126_v28 = vld [vmem:[%s13683_s4 + $0x700] sm:$0xff] }
 0x25f   : > { %2497 = vmatpush.msra.mxu1 %v1973_v11  ;;  %2519 = vmatpush.msra.mxu2 %v2024_v17  ;;  %v2174_v11 = vld [vmem:[%s13683_s4 + $0x880] sm:$0xff]  ;;  %v6840_v17 = vld [vmem:[%s13683_s4 + $0xa08] sm:$0xff] }
 0x260   : > { %2458 = vmatpush.msrb.mxu3 %v2143_v16  ;;  %2475 = vmatpush.msrb.mxu0 %v1922_v5  ;;  %v2057_v16 = vld [vmem:[%s13683_s4 + $0x4d8] sm:$0xff]  ;;  %v2123_v5 = vld [vmem:[%s13683_s4 + $0x6e8] sm:$0xff] }
 0x261   : > { %2498 = vmatpush.msra.mxu1 %v1970_v59  ;;  %2520 = vmatpush.msra.mxu2 %v2021_v49  ;;  %v2171_v59 = vld [vmem:[%s13683_s4 + $0x868] sm:$0xff]  ;;  %v6837_v49 = vld [vmem:[%s13683_s4 + $0x9f0] sm:$0xff] }
 0x262   : > { %2535 = vmatpush.msra.mxu3 %v2093_v57  ;;  %2476 = vmatpush.msrb.mxu0 %v1919_v22  ;;  %v2054_v57 = vld [vmem:[%s13683_s4 + $0x4c0] sm:$0xff]  ;;  %v2120_v22 = vld [vmem:[%s13683_s4 + $0x6d0] sm:$0xff] }
 0x263   : > { %2459 = vmatmul.f32.vlgmr.msrb.gmra.mxu3 %v10136_v39  ;;  %2499 = vmatpush.msra.mxu1 %v1967_v52  ;;  %v2168_v52 = vld [vmem:[%s13683_s4 + $0x850] sm:$0xff] }
 0x264   : > { %2521 = vmatpush.msra.mxu2 %v2018_v23  ;;  %2536 = vmatpush.msra.mxu3 %v2090_v21  ;;  %v6834_v23 = vld [vmem:[%s13683_s4 + $0x9d8] sm:$0xff]  ;;  %v2051_v21 = vld [vmem:[%s13683_s4 + $0x4a8] sm:$0xff] }
 0x265   : > { %2477 = vmatpush.msrb.mxu0 %v1916_v50  ;;  %2500 = vmatpush.msra.mxu1 %v1964_v55  ;;  %v2117_v50 = vld [vmem:[%s13683_s4 + $0x6b8] sm:$0xff] }
 0x266   : > { %2522 = vmatpush.msra.mxu2 %v2015_v32  ;;  %2537 = vmatpush.msra.mxu3 %v2087_v24  ;;  %v2165_v55 = vld [vmem:[%s13683_s4 + $0x838] sm:$0xff]  ;;  %v6831_v32 = vld [vmem:[%s13683_s4 + $0x9c0] sm:$0xff]  ;;  %v2048_v24 = vld [vmem:[%s13683_s4 + $0x490] sm:$0xff] }
 0x267   : > { %2478 = vmatpush.msrb.mxu0 %v1913_v45  ;;  %2501 = vmatpush.msra.mxu1 %v1961_v56  ;;  %v2114_v45 = vld [vmem:[%s13683_s4 + $0x6a0] sm:$0xff] }
 0x268   : > { %2523 = vmatpush.msra.mxu2 %v2012_v26  ;;  %2538 = vmatpush.msra.mxu3 %v2084_v31  ;;  %v2162_v56 = vld [vmem:[%s13683_s4 + $0x820] sm:$0xff]  ;;  %v6828_v26 = vld [vmem:[%s13683_s4 + $0x9a8] sm:$0xff] }
 0x269   : > { %2479 = vmatpush.msrb.mxu0 %v1910_v46  ;;  %2502 = vmatpush.msra.mxu1 %v1958_v25  ;;  %v6900_v31 = vld [vmem:[%s13683_s4 + $0xbe8] sm:$0xff] }
 0x26a   : > { %2524 = vmatpush.msra.mxu2 %v2009_v33  ;;  %2539 = vmatpush.msra.mxu3 %v2081_v42  ;;  %v2111_v46 = vld [vmem:[%s13683_s4 + $0x688] sm:$0xff]  ;;  %v6825_v33 = vld [vmem:[%s13683_s4 + $0x990] sm:$0xff] }
 0x26b   : > { %2462 = vmatmul.f32.gmra.mxu3 %v10191_v30  ;;  %2480 = vmatpush.msrb.mxu0 %v1907_v35  ;;  %v2159_v25 = vld [vmem:[%s13683_s4 + $0x808] sm:$0xff]  ;;  %v6897_v42 = vld [vmem:[%s13683_s4 + $0xbd0] sm:$0xff] }
 0x26c   : > { %2503 = vmatpush.msra.mxu1 %v1955_v51  ;;  %2525 = vmatpush.msra.mxu2 %v2006_v53  ;;  %v2108_v35 = vld [vmem:[%s13683_s4 + $0x670] sm:$0xff]  ;;  %v6822_v53 = vld [vmem:[%s13683_s4 + $0x978] sm:$0xff] }
 0x26d   : > { %2540 = vmatpush.msra.mxu3 %v2078_v38  ;;  %2481 = vmatpush.msrb.mxu0 %v1904_v10  ;;  %v2156_v51 = vld [vmem:[%s13683_s4 + $0x7f0] sm:$0xff]  ;;  %v6894_v38 = vld [vmem:[%s13683_s4 + $0xbb8] sm:$0xff] }
 0x26e   : > { %2504 = vmatpush.msra.mxu1 %v1952_v47  ;;  %2526 = vmatpush.msra.mxu2 %v2003_v44  ;;  %v2105_v10 = vld [vmem:[%s13683_s4 + $0x658] sm:$0xff]  ;;  %v6819_v44 = vld [vmem:[%s13683_s4 + $0x960] sm:$0xff] }
 0x26f   : > { %2541 = vmatpush.msra.mxu3 %v2075_v43  ;;  %2482 = vmatmul.f32.vlgmr.msrb.gmra.mxu0 %v10044_v37  ;;  %v2153_v47 = vld [vmem:[%s13683_s4 + $0x7d8] sm:$0xff]  ;;  %v6891_v43 = vld [vmem:[%s13683_s4 + $0xba0] sm:$0xff] }
 0x270   : > { %2505 = vmatmul.f32.vlgmr.msra.gmra.mxu1 %v10049_v20  ;;  %2558 = vmatpush.msra.mxu0 %v2141_v54  ;;  %v2102_v54 = vld [vmem:[%s13683_s4 + $0x640] sm:$0xff] }
 0x271   : > { %2581 = vmatpush.msrb.mxu1 %v2189_v4  ;;  %2527 = vmatpush.msra.mxu2 %v2000_v36  ;;  %v2150_v4 = vld [vmem:[%s13683_s4 + $0x7c0] sm:$0xff]  ;;  %v6816_v36 = vld [vmem:[%s13683_s4 + $0x948] sm:$0xff] }
 0x272   : > { %2542 = vmatpush.msra.mxu3 %v2072_v2  ;;  %2528 = vmatmul.f32.vlgmr.msra.gmra.mxu2 %v10051_v9  ;;  %v6888_v2 = vld [vmem:[%s13683_s4 + $0xb88] sm:$0xff] }
 0x273   : > { %2559 = vmatpush.msra.mxu0 %v2138_v7  ;;  %2582 = vmatpush.msrb.mxu1 %v2186_v18  ;;  %v2099_v7 = vld [vmem:[%s13683_s4 + $0x628] sm:$0xff] }
 0x274   : > { %2893 = vmatpush.msrb.mxu2 %v6852_v14  ;;  %2543 = vmatpush.msra.mxu3 %v2069_v15  ;;  %v2147_v18 = vld [vmem:[%s13683_s4 + $0x7a8] sm:$0xff]  ;;  %v6813_v14 = vld [vmem:[%s13683_s4 + $0x930] sm:$0xff] }
 0x275   : > { %2560 = vmatpush.msra.mxu0 %v2135_v61  ;;  %2583 = vmatpush.msrb.mxu1 %v2183_v1  ;;  %v6885_v15 = vld [vmem:[%s13683_s4 + $0xb70] sm:$0xff] }
 0x276   : > { %2894 = vmatpush.msrb.mxu2 %v6849_v58  ;;  %2544 = vmatpush.msra.mxu3 %v2066_v60  ;;  %v2096_v61 = vld [vmem:[%s13683_s4 + $0x610] sm:$0xff]  ;;  %v6810_v58 = vld [vmem:[%s13683_s4 + $0x918] sm:$0xff] }
 0x277   : > { %2561 = vmatpush.msra.mxu0 %v2132_v13  ;;  %2584 = vmatpush.msrb.mxu1 %v2180_v0  ;;  %v2144_v1 = vld [vmem:[%s13683_s4 + $0x790] sm:$0xff]  ;;  %v6882_v60 = vld [vmem:[%s13683_s4 + $0xb58] sm:$0xff]  ;;  %v6948_v13 = vld [vmem:[%s13683_s4 + $0xd68] sm:$0xff] }
 0x278   : > { %2895 = vmatpush.msrb.mxu2 %v6846_v48  ;;  %2545 = vmatpush.msra.mxu3 %v2063_v62  ;;  %v6996_v0 = vld [vmem:[%s13683_s4 + $0xee8] sm:$0xff]  ;;  %v6807_v48 = vld [vmem:[%s13683_s4 + $0x900] sm:$0xff] }
 0x279   : > { %2485 = vmatmul.f32.gmra.mxu0 %v10086_v40  ;;  %2508 = vmatmul.f32.gmra.mxu1 %v10091_v41  ;;  %v6879_v62 = vld [vmem:[%s13683_s4 + $0xb40] sm:$0xff] }
 0x27a   : > { %2562 = vmatpush.msra.mxu0 %v2129_v19  ;;  %2585 = vmatpush.msrb.mxu1 %v2177_v3  ;;  %v6945_v19 = vld [vmem:[%s13683_s4 + $0xd50] sm:$0xff] }
 0x27b   : > { %2896 = vmatpush.msrb.mxu2 %v6843_v12  ;;  %2546 = vmatpush.msra.mxu3 %v2060_v63  ;;  %v6993_v3 = vld [vmem:[%s13683_s4 + $0xed0] sm:$0xff]  ;;  %v7044_v12 = vld [vmem:[%s13683_s4 + $0x1068] sm:$0xff] }
 0x27c   : > { %2531 = vmatmul.f32.gmra.mxu2 %v10095_v27  ;;  %2563 = vmatpush.msra.mxu0 %v2126_v28  ;;  %v6876_v63 = vld [vmem:[%s13683_s4 + $0xb28] sm:$0xff]  ;;  %v6942_v28 = vld [vmem:[%s13683_s4 + $0xd38] sm:$0xff] }
 0x27d   : > { %2586 = vmatpush.msrb.mxu1 %v2174_v11  ;;  %2897 = vmatpush.msrb.mxu2 %v6840_v17  ;;  %v6990_v11 = vld [vmem:[%s13683_s4 + $0xeb8] sm:$0xff]  ;;  %v7041_v17 = vld [vmem:[%s13683_s4 + $0x1050] sm:$0xff] }
 0x27e   : > { %2547 = vmatpush.msra.mxu3 %v2057_v16  ;;  %2564 = vmatpush.msra.mxu0 %v2123_v5  ;;  %v6873_v16 = vld [vmem:[%s13683_s4 + $0xb10] sm:$0xff]  ;;  %v6939_v5 = vld [vmem:[%s13683_s4 + $0xd20] sm:$0xff] }
 0x27f   : > { %2587 = vmatpush.msrb.mxu1 %v2171_v59  ;;  %2898 = vmatpush.msrb.mxu2 %v6837_v49  ;;  %v6987_v59 = vld [vmem:[%s13683_s4 + $0xea0] sm:$0xff]  ;;  %v7038_v49 = vld [vmem:[%s13683_s4 + $0x1038] sm:$0xff] }
 0x280   : > { %2548 = vmatpush.msra.mxu3 %v2054_v57  ;;  %2565 = vmatpush.msra.mxu0 %v2120_v22  ;;  %v6870_v57 = vld [vmem:[%s13683_s4 + $0xaf8] sm:$0xff]  ;;  %v6936_v22 = vld [vmem:[%s13683_s4 + $0xd08] sm:$0xff] }
 0x281   : > { %2588 = vmatpush.msrb.mxu1 %v2168_v52  ;;  %2899 = vmatpush.msrb.mxu2 %v6834_v23  ;;  %v6984_v52 = vld [vmem:[%s13683_s4 + $0xe88] sm:$0xff]  ;;  %v7035_v23 = vld [vmem:[%s13683_s4 + $0x1020] sm:$0xff] }
 0x282   : > { %2549 = vmatpush.msra.mxu3 %v2051_v21  ;;  %2566 = vmatpush.msra.mxu0 %v2117_v50  ;;  %v6867_v21 = vld [vmem:[%s13683_s4 + $0xae0] sm:$0xff]  ;;  %v6933_v50 = vld [vmem:[%s13683_s4 + $0xcf0] sm:$0xff] }
 0x283   : > { %2589 = vmatpush.msrb.mxu1 %v2165_v55  ;;  %2900 = vmatpush.msrb.mxu2 %v6831_v32  ;;  %v6981_v55 = vld [vmem:[%s13683_s4 + $0xe70] sm:$0xff]  ;;  %v7032_v32 = vld [vmem:[%s13683_s4 + $0x1008] sm:$0xff] }
 0x284   : > { %2550 = vmatpush.msra.mxu3 %v2048_v24  ;;  %2567 = vmatpush.msra.mxu0 %v2114_v45  ;;  %v6864_v24 = vld [vmem:[%s13683_s4 + $0xac8] sm:$0xff]  ;;  %v6930_v45 = vld [vmem:[%s13683_s4 + $0xcd8] sm:$0xff] }
 0x285   : > { %2551 = vmatmul.f32.vlgmr.msra.gmra.mxu3 %v10145_v6  ;;  %2590 = vmatpush.msrb.mxu1 %v2162_v56  ;;  %v6978_v56 = vld [vmem:[%s13683_s4 + $0xe58] sm:$0xff] }
 0x286   : > { %2901 = vmatpush.msrb.mxu2 %v6828_v26  ;;  %2916 = vmatpush.msrb.mxu3 %v6900_v31  ;;  %v7029_v26 = vld [vmem:[%s13683_s4 + $0xff0] sm:$0xff] }
 0x287   : > { %2568 = vmatpush.msra.mxu0 %v2111_v46  ;;  %2591 = vmatpush.msrb.mxu1 %v2159_v25  ;;  %v6861_v31 = vld [vmem:[%s13683_s4 + $0xab0] sm:$0xff]  ;;  %v6927_v46 = vld [vmem:[%s13683_s4 + $0xcc0] sm:$0xff] }
 0x288   : > { %2902 = vmatpush.msrb.mxu2 %v6825_v33  ;;  %2917 = vmatpush.msrb.mxu3 %v6897_v42  ;;  %v6975_v25 = vld [vmem:[%s13683_s4 + $0xe40] sm:$0xff]  ;;  %v7026_v33 = vld [vmem:[%s13683_s4 + $0xfd8] sm:$0xff] }
 0x289   : > { %2569 = vmatpush.msra.mxu0 %v2108_v35  ;;  %2592 = vmatpush.msrb.mxu1 %v2156_v51  ;;  %v6858_v42 = vld [vmem:[%s13683_s4 + $0xa98] sm:$0xff]  ;;  %v6924_v35 = vld [vmem:[%s13683_s4 + $0xca8] sm:$0xff] }
 0x28a   : > { %2903 = vmatpush.msrb.mxu2 %v6822_v53  ;;  %2918 = vmatpush.msrb.mxu3 %v6894_v38  ;;  %v6972_v53 = vld [vmem:[%s13683_s4 + $0xe28] sm:$0xff]  ;;  %v7023_v38 = vld [vmem:[%s13683_s4 + $0xfc0] sm:$0xff] }
 0x28b   : > { %2570 = vmatpush.msra.mxu0 %v2105_v10  ;;  %2593 = vmatpush.msrb.mxu1 %v2153_v47  ;;  %v6855_v47 = vld [vmem:[%s13683_s4 + $0xa80] sm:$0xff] }
 0x28c   : > { %2904 = vmatpush.msrb.mxu2 %v6819_v44  ;;  %2919 = vmatpush.msrb.mxu3 %v6891_v43  ;;  %v6921_v44 = vld [vmem:[%s13683_s4 + $0xc90] sm:$0xff] }
 0x28d   : > { %2554 = vmatmul.f32.gmra.mxu3 %v10206_v8  ;;  %2571 = vmatpush.msra.mxu0 %v2102_v54  ;;  %v6969_v54 = vld [vmem:[%s13683_s4 + $0xe10] sm:$0xff] }
 0x28e   : > { %2594 = vmatpush.msrb.mxu1 %v2150_v4  ;;  %2905 = vmatpush.msrb.mxu2 %v6816_v36  ;;  %v7020_v4 = vld [vmem:[%s13683_s4 + $0xfa8] sm:$0xff] }
 0x28f   : > { %2920 = vmatpush.msrb.mxu3 %v6888_v2  ;;  %2572 = vmatpush.msra.mxu0 %v2099_v7  ;;  %v7092_v36 = vld [vmem:[%s13683_s4 + $0x11e8] sm:$0xff]  ;;  %v6918_v2 = vld [vmem:[%s13683_s4 + $0xc78] sm:$0xff] }
 0x290   : > { %2595 = vmatpush.msrb.mxu1 %v2147_v18  ;;  %2906 = vmatpush.msrb.mxu2 %v6813_v14  ;;  %v6966_v7 = vld [vmem:[%s13683_s4 + $0xdf8] sm:$0xff]  ;;  %v7017_v18 = vld [vmem:[%s13683_s4 + $0xf90] sm:$0xff] }
 0x291   : > { %2921 = vmatpush.msrb.mxu3 %v6885_v15  ;;  %2573 = vmatpush.msra.mxu0 %v2096_v61  ;;  %v7089_v14 = vld [vmem:[%s13683_s4 + $0x11d0] sm:$0xff]  ;;  %v6915_v15 = vld [vmem:[%s13683_s4 + $0xc60] sm:$0xff] }
 0x292   : > { %2596 = vmatpush.msrb.mxu1 %v2144_v1  ;;  %2907 = vmatpush.msrb.mxu2 %v6810_v58  ;;  %v6963_v61 = vld [vmem:[%s13683_s4 + $0xde0] sm:$0xff]  ;;  %v7014_v1 = vld [vmem:[%s13683_s4 + $0xf78] sm:$0xff] }
 0x293   : > { %2922 = vmatpush.msrb.mxu3 %v6882_v60  ;;  %2574 = vmatmul.f32.vlgmr.msra.gmra.mxu0 %v10134_v29  ;;  %v7086_v58 = vld [vmem:[%s13683_s4 + $0x11b8] sm:$0xff] }
 0x294   : > { %2597 = vmatmul.f32.vlgmr.msrb.gmra.mxu1 %v10136_v39  ;;  %2939 = vmatpush.msrb.mxu0 %v6948_v13  ;;  %v6912_v13 = vld [vmem:[%s13683_s4 + $0xc48] sm:$0xff] }
 0x295   : > { %2962 = vmatpush.msra.mxu1 %v6996_v0  ;;  %2908 = vmatpush.msrb.mxu2 %v6807_v48  ;;  %v6960_v0 = vld [vmem:[%s13683_s4 + $0xdc8] sm:$0xff] }
 0x296   : > { %2923 = vmatpush.msrb.mxu3 %v6879_v62  ;;  %2909 = vmatmul.f32.vlgmr.msrb.gmra.mxu2 %v10044_v37  ;;  %v7011_v62 = vld [vmem:[%s13683_s4 + $0xf60] sm:$0xff] }
 0x297   : > { %2940 = vmatpush.msrb.mxu0 %v6945_v19  ;;  %2963 = vmatpush.msra.mxu1 %v6993_v3  ;;  %v7083_v19 = vld [vmem:[%s13683_s4 + $0x11a0] sm:$0xff]  ;;  %v6909_v3 = vld [vmem:[%s13683_s4 + $0xc30] sm:$0xff] }
 0x298   : > { %2985 = vmatpush.msra.mxu2 %v7044_v12  ;;  %2924 = vmatpush.msrb.mxu3 %v6876_v63  ;;  %v6957_v12 = vld [vmem:[%s13683_s4 + $0xdb0] sm:$0xff]  ;;  %v7008_v63 = vld [vmem:[%s13683_s4 + $0xf48] sm:$0xff] }
 0x299   : > { %2941 = vmatpush.msrb.mxu0 %v6942_v28  ;;  %2964 = vmatpush.msra.mxu1 %v6990_v11  ;;  %v7080_v28 = vld [vmem:[%s13683_s4 + $0x1188] sm:$0xff]  ;;  %v6906_v11 = vld [vmem:[%s13683_s4 + $0xc18] sm:$0xff] }
 0x29a   : > { %2986 = vmatpush.msra.mxu2 %v7041_v17  ;;  %2925 = vmatpush.msrb.mxu3 %v6873_v16  ;;  %v6954_v17 = vld [vmem:[%s13683_s4 + $0xd98] sm:$0xff]  ;;  %v7005_v16 = vld [vmem:[%s13683_s4 + $0xf30] sm:$0xff] }
 0x29b   : > { %2942 = vmatpush.msrb.mxu0 %v6939_v5  ;;  %2965 = vmatpush.msra.mxu1 %v6987_v59  ;;  %v7077_v5 = vld [vmem:[%s13683_s4 + $0x1170] sm:$0xff]  ;;  %v6903_v59 = vld [vmem:[%s13683_s4 + $0xc00] sm:$0xff] }
 0x29c   : > { %2987 = vmatpush.msra.mxu2 %v7038_v49  ;;  %2926 = vmatpush.msrb.mxu3 %v6870_v57  ;;  %v6951_v49 = vld [vmem:[%s13683_s4 + $0xd80] sm:$0xff]  ;;  %v7002_v57 = vld [vmem:[%s13683_s4 + $0xf18] sm:$0xff] }
 0x29d   : > { %2577 = vmatmul.f32.gmra.mxu0 %v10182_v34  ;;  %2600 = vmatmul.f32.gmra.mxu1 %v10191_v30 }
 0x29e   : > { %2943 = vmatpush.msrb.mxu0 %v6936_v22  ;;  %2966 = vmatpush.msra.mxu1 %v6984_v52  ;;  %v7074_v22 = vld [vmem:[%s13683_s4 + $0x1158] sm:$0xff] }
 0x29f   : > { %2988 = vmatpush.msra.mxu2 %v7035_v23  ;;  %2927 = vmatpush.msrb.mxu3 %v6867_v21  ;;  %v6853_v23 = vld [vmem:[%s13683_s4 + $0xa70] sm:$0xff] }
 0x2a0   : > { %2912 = vmatmul.f32.gmra.mxu2 %v10086_v40  ;;  %2944 = vmatpush.msrb.mxu0 %v6933_v50  ;;  %v6901_v21 = vld [vmem:[%s13683_s4 + $0xbf0] sm:$0xff]  ;;  %v6999_v50 = vld [vmem:[%s13683_s4 + $0xf00] sm:$0xff] }
 0x2a1   : > { %2967 = vmatpush.msra.mxu1 %v6981_v55  ;;  %2989 = vmatpush.msra.mxu2 %v7032_v32  ;;  %v7071_v32 = vld [vmem:[%s13683_s4 + $0x1140] sm:$0xff] }
 0x2a2   : > { %2928 = vmatpush.msrb.mxu3 %v6864_v24  ;;  %2945 = vmatpush.msrb.mxu0 %v6930_v45  ;;  %v2207_v51 = vpop.f32.mrf.mxu0  ;;  %v6850_v24 = vld [vmem:[%s13683_s4 + $0xa58] sm:$0xff] }
 0x2a3   : > { %2968 = vmatpush.msra.mxu1 %v6978_v56  ;;  %2990 = vmatpush.msra.mxu2 %v7029_v26  ;;  %v2230_v10 = vpop.f32.mrf.mxu1  ;;  %v6898_v45 = vld [vmem:[%s13683_s4 + $0xbd8] sm:$0xff]  ;;  %v6949_v56 = vld [vmem:[%s13683_s4 + $0xd70] sm:$0xff]  ;;  %v7068_v26 = vld [vmem:[%s13683_s4 + $0x1128] sm:$0xff] }
 0x2a4   : > { %2929 = vmatpush.msrb.mxu3 %v6861_v31  ;;  %2946 = vmatpush.msrb.mxu0 %v6927_v46  ;;  %v2231_v43 = vadd.f32 %v2230_v10, %v2207_v51  ;;  %v6847_v31 = vld [vmem:[%s13683_s4 + $0xa40] sm:$0xff]  ;;  %v6892_v51 = vld [vmem:[%s13683_s4 + $0xba8] sm:$0xff]  ;;  %v7062_v10 = vld [vmem:[%s13683_s4 + $0x10f8] sm:$0xff] }
 0x2a5   : > { %2969 = vmatpush.msra.mxu1 %v6975_v25  ;;  %2991 = vmatpush.msra.mxu2 %v7026_v33  ;;  %v6895_v46 = vld [vmem:[%s13683_s4 + $0xbc0] sm:$0xff]  ;;  %v6946_v33 = vld [vmem:[%s13683_s4 + $0xd58] sm:$0xff] }
 0x2a6   : > { %2930 = vmatpush.msrb.mxu3 %v6858_v42  ;;  %2947 = vmatpush.msrb.mxu0 %v6924_v35  ;;  %v7065_v42 = vld [vmem:[%s13683_s4 + $0x1110] sm:$0xff]  ;;  %v6844_v35 = vld [vmem:[%s13683_s4 + $0xa28] sm:$0xff] }
 0x2a7   : > { %2970 = vmatpush.msra.mxu1 %v6972_v53  ;;  %2992 = vmatpush.msra.mxu2 %v7023_v38  ;;  %v6943_v38 = vld [vmem:[%s13683_s4 + $0xd40] sm:$0xff] }
 0x2a8   : > { %2931 = vmatpush.msrb.mxu3 %v6855_v47  ;;  %2948 = vmatpush.msrb.mxu0 %v6921_v44 }
 0x2a9   : > { %2932 = vmatmul.f32.vlgmr.msrb.gmra.mxu3 %v10049_v20  ;;  %2971 = vmatpush.msra.mxu1 %v6969_v54  ;;  %v6889_v54 = vld [vmem:[%s13683_s4 + $0xb90] sm:$0xff] }
 0x2aa   : > { %2993 = vmatpush.msra.mxu2 %v7020_v4  ;;  %3008 = vmatpush.msra.mxu3 %v7092_v36  ;;  %v2253_v60 = vpop.f32.mrf.mxu2  ;;  %v6940_v36 = vld [vmem:[%s13683_s4 + $0xd28] sm:$0xff] }
 0x2ab   : > { %2949 = vmatpush.msrb.mxu0 %v6918_v2  ;;  %2972 = vmatpush.msra.mxu1 %v6966_v7  ;;  %v10810_v48 = vadd.f32 %v2253_v60, %v2231_v43  ;;  %v10855_v52 = vpop.f32.mrf.mxu0  ;;  %v10866_v55 = vpop.f32.mrf.mxu1  ;;  %v6841_v43 = vld [vmem:[%s13683_s4 + $0xa10] sm:$0xff]  ;;  %v7059_v2 = vld [vmem:[%s13683_s4 + $0x10e0] sm:$0xff] }
 0x2ac   : > { %2994 = vmatpush.msra.mxu2 %v7017_v18  ;;  %3009 = vmatpush.msra.mxu3 %v7089_v14  ;;  %v6838_v18 = vld [vmem:[%s13683_s4 + $0x9f8] sm:$0xff]  ;;  %v6883_v60 = vld [vmem:[%s13683_s4 + $0xb60] sm:$0xff] }
 0x2ad   : > { %2950 = vmatpush.msrb.mxu0 %v6915_v15  ;;  %2973 = vmatpush.msra.mxu1 %v6963_v61  ;;  %v6886_v15 = vld [vmem:[%s13683_s4 + $0xb78] sm:$0xff]  ;;  %v6937_v61 = vld [vmem:[%s13683_s4 + $0xd10] sm:$0xff] }
 0x2ae   : > { %2995 = vmatpush.msra.mxu2 %v7014_v1  ;;  %3010 = vmatpush.msra.mxu3 %v7086_v58  ;;  %v7056_v1 = vld [vmem:[%s13683_s4 + $0x10c8] sm:$0xff]  ;;  %v6835_v58 = vld [vmem:[%s13683_s4 + $0x9e0] sm:$0xff] }
 0x2af   : > { %2951 = vmatpush.msrb.mxu0 %v6912_v13  ;;  %2974 = vmatpush.msra.mxu1 %v6960_v0  ;;  %v6934_v13 = vld [vmem:[%s13683_s4 + $0xcf8] sm:$0xff] }
 0x2b0   : > { %2996 = vmatpush.msra.mxu2 %v7011_v62  ;;  %3011 = vmatpush.msra.mxu3 %v7083_v19  ;;  %v6832_v62 = vld [vmem:[%s13683_s4 + $0x9c8] sm:$0xff] }
 0x2b1   : > { %2935 = vmatmul.f32.gmra.mxu3 %v10091_v41  ;;  %2952 = vmatpush.msrb.mxu0 %v6909_v3  ;;  %v6880_v19 = vld [vmem:[%s13683_s4 + $0xb48] sm:$0xff]  ;;  %v6931_v3 = vld [vmem:[%s13683_s4 + $0xce0] sm:$0xff] }
 0x2b2   : > { %2975 = vmatpush.msra.mxu1 %v6957_v12  ;;  %2997 = vmatpush.msra.mxu2 %v7008_v63  ;;  %v7050_v12 = vld [vmem:[%s13683_s4 + $0x1098] sm:$0xff]  ;;  %v6829_v63 = vld [vmem:[%s13683_s4 + $0x9b0] sm:$0xff] }
 0x2b3   : > { %3012 = vmatpush.msra.mxu3 %v7080_v28  ;;  %2953 = vmatpush.msrb.mxu0 %v6906_v11  ;;  %v6877_v28 = vld [vmem:[%s13683_s4 + $0xb30] sm:$0xff]  ;;  %v6928_v11 = vld [vmem:[%s13683_s4 + $0xcc8] sm:$0xff] }
 0x2b4   : > { %2976 = vmatpush.msra.mxu1 %v6954_v17  ;;  %2998 = vmatpush.msra.mxu2 %v7005_v16  ;;  %v10892_v25 = vpop.f32.mrf.mxu2  ;;  %v2299_v44 = vpop.f32.mrf.mxu0  ;;  %v7047_v16 = vld [vmem:[%s13683_s4 + $0x1080] sm:$0xff] }
 0x2b5   : > { %3013 = vmatpush.msra.mxu3 %v7077_v5  ;;  %2954 = vmatpush.msrb.mxu0 %v6903_v59  ;;  %v2322_v7 = vpop.f32.mrf.mxu1  ;;  %v6826_v5 = vld [vmem:[%s13683_s4 + $0x998] sm:$0xff] }
 0x2b6   : > { %2977 = vmatpush.msra.mxu1 %v6951_v49  ;;  %2999 = vmatpush.msra.mxu2 %v7002_v57  ;;  %v6874_v59 = vld [vmem:[%s13683_s4 + $0xb18] sm:$0xff]  ;;  %v6925_v57 = vld [vmem:[%s13683_s4 + $0xcb0] sm:$0xff] }
 0x2b7   : > { %3014 = vmatpush.msra.mxu3 %v7074_v22  ;;  %2955 = vmatmul.f32.vlgmr.msrb.gmra.mxu0 %v10051_v9  ;;  %v6997_v22 = vld [vmem:[%s13683_s4 + $0xef0] sm:$0xff] }
 0x2b8   : > { %2978 = vmatmul.f32.vlgmr.msra.gmra.mxu1 %v10145_v6  ;;  %3031 = vmatpush.msra.mxu0 %v6853_v23  ;;  %v6823_v23 = vld [vmem:[%s13683_s4 + $0x980] sm:$0xff] }
 0x2b9   : > { %3054 = vmatpush.msrb.mxu1 %v6901_v21  ;;  %3000 = vmatpush.msra.mxu2 %v6999_v50  ;;  %v6871_v21 = vld [vmem:[%s13683_s4 + $0xb00] sm:$0xff] }
 0x2ba   : > { %3015 = vmatpush.msra.mxu3 %v7071_v32  ;;  %3001 = vmatmul.f32.vlgmr.msra.gmra.mxu2 %v10134_v29  ;;  %v6922_v32 = vld [vmem:[%s13683_s4 + $0xc98] sm:$0xff] }
 0x2bb   : > { %3032 = vmatpush.msra.mxu0 %v6850_v24  ;;  %3055 = vmatpush.msrb.mxu1 %v6898_v45  ;;  %v6994_v24 = vld [vmem:[%s13683_s4 + $0xed8] sm:$0xff]  ;;  %v6820_v45 = vld [vmem:[%s13683_s4 + $0x968] sm:$0xff] }
 0x2bc   : > { %3077 = vmatpush.msrb.mxu2 %v6949_v56  ;;  %3016 = vmatpush.msra.mxu3 %v7068_v26  ;;  %v2276_v53 = vpop.f32.mrf.mxu3  ;;  %v6868_v56 = vld [vmem:[%s13683_s4 + $0xae8] sm:$0xff] }
 0x2bd   : > { %3033 = vmatpush.msra.mxu0 %v6847_v31  ;;  %3056 = vmatpush.msrb.mxu1 %v6895_v46  ;;  %v2277_v47 = vadd.f32 %v2276_v53, %v10810_v48  ;;  %v10951_v0 = vpop.f32.mrf.mxu2  ;;  %v7053_v48 = vld [vmem:[%s13683_s4 + $0x10b0] sm:$0xff]  ;;  %v10988_v49 = vpop.f32.mrf.mxu0  ;;  %v6919_v31 = vld [vmem:[%s13683_s4 + $0xc80] sm:$0xff]  ;;  %v6814_v53 = vld [vmem:[%s13683_s4 + $0x938] sm:$0xff] }
 0x2be   : > { %3078 = vmatpush.msrb.mxu2 %v6946_v33  ;;  %3017 = vmatpush.msra.mxu3 %v7065_v42  ;;  %v11002_v50 = vpop.f32.mrf.mxu1  ;;  %v6991_v46 = vld [vmem:[%s13683_s4 + $0xec0] sm:$0xff]  ;;  %v6817_v33 = vld [vmem:[%s13683_s4 + $0x950] sm:$0xff] }
 0x2bf   : > { %3034 = vmatpush.msra.mxu0 %v6844_v35  ;;  %3057 = vmatpush.msrb.mxu1 %v6892_v51  ;;  %v2300_v4 = vadd.f32 %v2299_v44, %v2277_v47  ;;  %v6865_v42 = vld [vmem:[%s13683_s4 + $0xad0] sm:$0xff]  ;;  %v6916_v35 = vld [vmem:[%s13683_s4 + $0xc68] sm:$0xff] }
 0x2c0   : > { %3079 = vmatpush.msrb.mxu2 %v6943_v38  ;;  %3018 = vmatpush.msra.mxu3 %v7062_v10  ;;  %v6988_v51 = vld [vmem:[%s13683_s4 + $0xea8] sm:$0xff]  ;;  %v6862_v10 = vld [vmem:[%s13683_s4 + $0xab8] sm:$0xff]  ;;  %v6913_v47 = vld [vmem:[%s13683_s4 + $0xc50] sm:$0xff] }
 0x2c1   : > { %2958 = vmatmul.f32.gmra.mxu0 %v10095_v27  ;;  %2981 = vmatmul.f32.gmra.mxu1 %v10206_v8  ;;  %v10930_v14 = vadd.f32 %v2322_v7, %v2300_v4 }
 0x2c2   : > { %3035 = vmatpush.msra.mxu0 %v6841_v43  ;;  %3058 = vmatpush.msrb.mxu1 %v6889_v54  ;;  %v6985_v43 = vld [vmem:[%s13683_s4 + $0xe90] sm:$0xff]  ;;  %v6811_v54 = vld [vmem:[%s13683_s4 + $0x920] sm:$0xff] }
 0x2c3   : > { %3080 = vmatpush.msrb.mxu2 %v6940_v36  ;;  %3019 = vmatpush.msra.mxu3 %v7059_v2  ;;  %v6859_v36 = vld [vmem:[%s13683_s4 + $0xaa0] sm:$0xff]  ;;  %v6910_v2 = vld [vmem:[%s13683_s4 + $0xc38] sm:$0xff] }
 0x2c4   : > { %3004 = vmatmul.f32.gmra.mxu2 %v10182_v34  ;;  %3036 = vmatpush.msra.mxu0 %v6838_v18  ;;  %v6982_v18 = vld [vmem:[%s13683_s4 + $0xe78] sm:$0xff] }
 0x2c5   : > { %3059 = vmatpush.msrb.mxu1 %v6886_v15  ;;  %3081 = vmatpush.msrb.mxu2 %v6937_v61  ;;  %v6808_v15 = vld [vmem:[%s13683_s4 + $0x908] sm:$0xff] }
 0x2c6   : > { %3020 = vmatpush.msra.mxu3 %v7056_v1  ;;  %3037 = vmatpush.msra.mxu0 %v6835_v58  ;;  %v11017_v26 = vpop.f32.mrf.mxu2  ;;  %v6856_v1 = vld [vmem:[%s13683_s4 + $0xa88] sm:$0xff]  ;;  %v6907_v58 = vld [vmem:[%s13683_s4 + $0xc20] sm:$0xff] }
 0x2c7   : > { %3060 = vmatpush.msrb.mxu1 %v6883_v60  ;;  %3082 = vmatpush.msrb.mxu2 %v6934_v13  ;;  %v10977_v17 = vpop.f32.mrf.mxu3  ;;  %v6979_v13 = vld [vmem:[%s13683_s4 + $0xe60] sm:$0xff] }
 0x2c8   : > { %3021 = vmatpush.msra.mxu3 %v7053_v48  ;;  %3038 = vmatpush.msra.mxu0 %v6832_v62  ;;  %v2391_v4 = vpop.f32.mrf.mxu0  ;;  %v7045_v48 = vld [vmem:[%s13683_s4 + $0x1070] sm:$0xff] }
 0x2c9   : > { %3061 = vmatpush.msrb.mxu1 %v6880_v19  ;;  %3083 = vmatpush.msrb.mxu2 %v6931_v3  ;;  %v2414_v61 = vpop.f32.mrf.mxu1  ;;  %v7093_v19 = vld [vmem:[%s13683_s4 + $0x11f0] sm:$0xff]  ;;  %v6904_v3 = vld [vmem:[%s13683_s4 + $0xc08] sm:$0xff] }
 0x2ca   : > { %3022 = vmatpush.msra.mxu3 %v7050_v12  ;;  %3039 = vmatpush.msra.mxu0 %v6829_v63  ;;  %v6976_v12 = vld [vmem:[%s13683_s4 + $0xe48] sm:$0xff]  ;;  %v7042_v63 = vld [vmem:[%s13683_s4 + $0x1058] sm:$0xff] }
 0x2cb   : > { %3062 = vmatpush.msrb.mxu1 %v6877_v28  ;;  %3084 = vmatpush.msrb.mxu2 %v6928_v11  ;;  %v7090_v28 = vld [vmem:[%s13683_s4 + $0x11d8] sm:$0xff] }
 0x2cc   : > { %3023 = vmatpush.msra.mxu3 %v7047_v16  ;;  %3040 = vmatpush.msra.mxu0 %v6826_v5  ;;  %v6854_v16 = vld [vmem:[%s13683_s4 + $0xa78] sm:$0xff]  ;;  %v6973_v5 = vld [vmem:[%s13683_s4 + $0xe30] sm:$0xff] }
 0x2cd   : > { %3024 = vmatmul.f32.vlgmr.msra.gmra.mxu3 %v10136_v39  ;;  %3063 = vmatpush.msrb.mxu1 %v6874_v59  ;;  %v7039_v59 = vld [vmem:[%s13683_s4 + $0x1040] sm:$0xff] }
 0x2ce   : > { %3085 = vmatpush.msrb.mxu2 %v6925_v57  ;;  %3100 = vmatpush.msrb.mxu3 %v6997_v22  ;;  %v7087_v57 = vld [vmem:[%s13683_s4 + $0x11c0] sm:$0xff] }
 0x2cf   : > { %3041 = vmatpush.msra.mxu0 %v6823_v23  ;;  %3064 = vmatpush.msrb.mxu1 %v6871_v21  ;;  %v6851_v22 = vld [vmem:[%s13683_s4 + $0xa60] sm:$0xff]  ;;  %v6970_v23 = vld [vmem:[%s13683_s4 + $0xe18] sm:$0xff]  ;;  %v7036_v21 = vld [vmem:[%s13683_s4 + $0x1028] sm:$0xff] }
 0x2d0   : > { %3086 = vmatpush.msrb.mxu2 %v6922_v32  ;;  %3101 = vmatpush.msrb.mxu3 %v6994_v24  ;;  %v7084_v32 = vld [vmem:[%s13683_s4 + $0x11a8] sm:$0xff] }
 0x2d1   : > { %3042 = vmatpush.msra.mxu0 %v6820_v45  ;;  %3065 = vmatpush.msrb.mxu1 %v6868_v56  ;;  %v6848_v24 = vld [vmem:[%s13683_s4 + $0xa48] sm:$0xff]  ;;  %v6967_v45 = vld [vmem:[%s13683_s4 + $0xe00] sm:$0xff]  ;;  %v7033_v56 = vld [vmem:[%s13683_s4 + $0x1010] sm:$0xff] }
 0x2d2   : > { %3087 = vmatpush.msrb.mxu2 %v6919_v31  ;;  %3102 = vmatpush.msrb.mxu3 %v6991_v46  ;;  %v2368_v38 = vpop.f32.mrf.mxu3  ;;  %v7081_v31 = vld [vmem:[%s13683_s4 + $0x1190] sm:$0xff] }
 0x2d3   : > { %3043 = vmatpush.msra.mxu0 %v6817_v33  ;;  %3066 = vmatpush.msrb.mxu1 %v6865_v42  ;;  %v2369_v44 = vadd.f32 %v2368_v38, %v10951_v0  ;;  %v2437_v0 = vpop.f32.mrf.mxu2  ;;  %v6845_v46 = vld [vmem:[%s13683_s4 + $0xa30] sm:$0xff]  ;;  %v6964_v33 = vld [vmem:[%s13683_s4 + $0xde8] sm:$0xff]  ;;  %v11140_v42 = vpop.f32.mrf.mxu0  ;;  %v6842_v38 = vld [vmem:[%s13683_s4 + $0xa18] sm:$0xff] }
 0x2d4   : > { %3088 = vmatpush.msrb.mxu2 %v6916_v35  ;;  %3103 = vmatpush.msrb.mxu3 %v6988_v51  ;;  %v11144_v35 = vpop.f32.mrf.mxu1  ;;  %v7030_v51 = vld [vmem:[%s13683_s4 + $0xff8] sm:$0xff] }
 0x2d5   : > { %3027 = vmatmul.f32.gmra.mxu3 %v10191_v30  ;;  %3044 = vmatpush.msra.mxu0 %v6814_v53  ;;  %v2392_v7 = vadd.f32 %v2391_v4, %v2369_v44  ;;  %v7078_v53 = vld [vmem:[%s13683_s4 + $0x1178] sm:$0xff]  ;;  %v7027_v44 = vld [vmem:[%s13683_s4 + $0xfe0] sm:$0xff] }
 0x2d6   : > { %3067 = vmatpush.msrb.mxu1 %v6862_v10  ;;  %3089 = vmatpush.msrb.mxu2 %v6913_v47  ;;  %v6961_v47 = vld [vmem:[%s13683_s4 + $0xdd0] sm:$0xff]  ;;  %v6839_v4 = vld [vmem:[%s13683_s4 + $0xa00] sm:$0xff] }
 0x2d7   : > { %3104 = vmatpush.msrb.mxu3 %v6985_v43  ;;  %3045 = vmatpush.msra.mxu0 %v6811_v54  ;;  %v2415_v60 = vadd.f32 %v2414_v61, %v2392_v7  ;;  %v7075_v54 = vld [vmem:[%s13683_s4 + $0x1160] sm:$0xff]  ;;  %v7072_v7 = vld [vmem:[%s13683_s4 + $0x1148] sm:$0xff]  ;;  %v7021_v61 = vld [vmem:[%s13683_s4 + $0xfb0] sm:$0xff] }
 0x2d8   : > { %3068 = vmatpush.msrb.mxu1 %v6859_v36  ;;  %3090 = vmatpush.msrb.mxu2 %v6910_v2  ;;  %v6958_v36 = vld [vmem:[%s13683_s4 + $0xdb8] sm:$0xff]  ;;  %v7024_v2 = vld [vmem:[%s13683_s4 + $0xfc8] sm:$0xff] }
 0x2d9   : > { %3105 = vmatpush.msrb.mxu3 %v6982_v18  ;;  %3046 = vmatpush.msra.mxu0 %v6808_v15  ;;  %v2438_v62 = vadd.f32 %v2437_v0, %v2415_v60  ;;  %v6836_v18 = vld [vmem:[%s13683_s4 + $0x9e8] sm:$0xff]  ;;  %v6955_v15 = vld [vmem:[%s13683_s4 + $0xda0] sm:$0xff] }
 0x2da   : > { %3069 = vmatpush.msrb.mxu1 %v6856_v1  ;;  %3091 = vmatpush.msrb.mxu2 %v6907_v58  ;;  %v7069_v1 = vld [vmem:[%s13683_s4 + $0x1130] sm:$0xff] }
 0x2db   : > { %3106 = vmatpush.msrb.mxu3 %v6979_v13  ;;  %3047 = vmatmul.f32.vlgmr.msra.gmra.mxu0 %v10044_v37  ;;  %v6833_v58 = vld [vmem:[%s13683_s4 + $0x9d0] sm:$0xff]  ;;  %v6952_v13 = vld [vmem:[%s13683_s4 + $0xd88] sm:$0xff] }
 0x2dc   : > { %3070 = vmatmul.f32.vlgmr.msrb.gmra.mxu1 %v10049_v20  ;;  %3123 = vmatpush.msrb.mxu0 %v7045_v48  ;;  %v11095_v11 = vpop.f32.mrf.mxu3  ;;  %v11197_v0 = vpop.f32.mrf.mxu2  ;;  %v7018_v48 = vld [vmem:[%s13683_s4 + $0xf98] sm:$0xff] }
 0x2dd   : > { %3146 = vmatpush.msra.mxu1 %v7093_v19  ;;  %3092 = vmatpush.msrb.mxu2 %v6904_v3  ;;  %v7066_v19 = vld [vmem:[%s13683_s4 + $0x1118] sm:$0xff] }
 0x2de   : > { %3107 = vmatpush.msrb.mxu3 %v6976_v12  ;;  %3093 = vmatmul.f32.vlgmr.msrb.gmra.mxu2 %v10051_v9  ;;  %v6830_v12 = vld [vmem:[%s13683_s4 + $0x9b8] sm:$0xff] }
 0x2df   : > { %3124 = vmatpush.msrb.mxu0 %v7042_v63  ;;  %3147 = vmatpush.msra.mxu1 %v7090_v28  ;;  %v6902_v63 = vld [vmem:[%s13683_s4 + $0xbf8] sm:$0xff]  ;;  %v7015_v28 = vld [vmem:[%s13683_s4 + $0xf80] sm:$0xff] }
 0x2e0   : > { %3169 = vmatpush.msra.mxu2 %v6854_v16  ;;  %3108 = vmatpush.msrb.mxu3 %v6973_v5  ;;  %v7063_v16 = vld [vmem:[%s13683_s4 + $0x1100] sm:$0xff] }
 0x2e1   : > { %3125 = vmatpush.msrb.mxu0 %v7039_v59  ;;  %3148 = vmatpush.msra.mxu1 %v7087_v57  ;;  %v6827_v5 = vld [vmem:[%s13683_s4 + $0x9a0] sm:$0xff]  ;;  %v7012_v57 = vld [vmem:[%s13683_s4 + $0xf68] sm:$0xff] }
 0x2e2   : > { %3170 = vmatpush.msra.mxu2 %v6851_v22  ;;  %3109 = vmatpush.msrb.mxu3 %v6970_v23  ;;  %v6899_v59 = vld [vmem:[%s13683_s4 + $0xbe0] sm:$0xff]  ;;  %v7060_v22 = vld [vmem:[%s13683_s4 + $0x10e8] sm:$0xff] }
 0x2e3   : > { %3126 = vmatpush.msrb.mxu0 %v7036_v21  ;;  %3149 = vmatpush.msra.mxu1 %v7084_v32  ;;  %v6824_v23 = vld [vmem:[%s13683_s4 + $0x988] sm:$0xff]  ;;  %v7009_v32 = vld [vmem:[%s13683_s4 + $0xf50] sm:$0xff] }
 0x2e4   : > { %3171 = vmatpush.msra.mxu2 %v6848_v24  ;;  %3110 = vmatpush.msrb.mxu3 %v6967_v45  ;;  %v6896_v21 = vld [vmem:[%s13683_s4 + $0xbc8] sm:$0xff]  ;;  %v7057_v24 = vld [vmem:[%s13683_s4 + $0x10d0] sm:$0xff] }
 0x2e5   : > { %3050 = vmatmul.f32.gmra.mxu0 %v10086_v40  ;;  %3073 = vmatmul.f32.gmra.mxu1 %v10091_v41  ;;  %v6821_v45 = vld [vmem:[%s13683_s4 + $0x970] sm:$0xff] }
 0x2e6   : > { %3127 = vmatpush.msrb.mxu0 %v7033_v56  ;;  %3150 = vmatpush.msra.mxu1 %v7081_v31  ;;  %v2460_v10 = vpop.f32.mrf.mxu3  ;;  %v6893_v56 = vld [vmem:[%s13683_s4 + $0xbb0] sm:$0xff] }
 0x2e7   : > { %3172 = vmatpush.msra.mxu2 %v6845_v46  ;;  %3111 = vmatpush.msrb.mxu3 %v6964_v33  ;;  %v11161_v43 = vadd.f32 %v2460_v10, %v2438_v62  ;;  %v7006_v46 = vld [vmem:[%s13683_s4 + $0xf38] sm:$0xff]  ;;  %v7003_v10 = vld [vmem:[%s13683_s4 + $0xf20] sm:$0xff] }
 0x2e8   : > { %3096 = vmatmul.f32.gmra.mxu2 %v10095_v27  ;;  %3128 = vmatpush.msrb.mxu0 %v7030_v51  ;;  %v7054_v51 = vld [vmem:[%s13683_s4 + $0x10b8] sm:$0xff] }
 0x2e9   : > { %3151 = vmatpush.msra.mxu1 %v7078_v53  ;;  %3173 = vmatpush.msra.mxu2 %v6842_v38  ;;  %v6818_v53 = vld [vmem:[%s13683_s4 + $0x958] sm:$0xff] }
 0x2ea   : > { %3112 = vmatpush.msrb.mxu3 %v6961_v47  ;;  %3129 = vmatpush.msrb.mxu0 %v7027_v44  ;;  %v6890_v38 = vld [vmem:[%s13683_s4 + $0xb98] sm:$0xff]  ;;  %v7051_v47 = vld [vmem:[%s13683_s4 + $0x10a0] sm:$0xff] }
 0x2eb   : > { %3152 = vmatpush.msra.mxu1 %v7075_v54  ;;  %3174 = vmatpush.msra.mxu2 %v6839_v4  ;;  %v6815_v44 = vld [vmem:[%s13683_s4 + $0x940] sm:$0xff]  ;;  %v7000_v4 = vld [vmem:[%s13683_s4 + $0xf08] sm:$0xff] }
 0x2ec   : > { %3113 = vmatpush.msrb.mxu3 %v6958_v36  ;;  %3130 = vmatpush.msrb.mxu0 %v7024_v2  ;;  %v2483_v60 = vpop.f32.mrf.mxu0  ;;  %v6887_v54 = vld [vmem:[%s13683_s4 + $0xb80] sm:$0xff]  ;;  %v7048_v36 = vld [vmem:[%s13683_s4 + $0x1088] sm:$0xff] }
 0x2ed   : > { %3153 = vmatpush.msra.mxu1 %v7072_v7  ;;  %3175 = vmatpush.msra.mxu2 %v6836_v18  ;;  %v2506_v62 = vpop.f32.mrf.mxu1  ;;  %v6812_v2 = vld [vmem:[%s13683_s4 + $0x928] sm:$0xff]  ;;  %v6950_v18 = vld [vmem:[%s13683_s4 + $0xd78] sm:$0xff] }
 0x2ee   : > { %3114 = vmatpush.msrb.mxu3 %v6955_v15  ;;  %3131 = vmatpush.msrb.mxu0 %v7021_v61  ;;  %v2507_v3 = vadd.f32 %v2506_v62, %v2483_v60  ;;  %v6884_v7 = vld [vmem:[%s13683_s4 + $0xb68] sm:$0xff]  ;;  %v6998_v15 = vld [vmem:[%s13683_s4 + $0xef8] sm:$0xff]  ;;  %v6809_v61 = vld [vmem:[%s13683_s4 + $0x910] sm:$0xff] }
 0x2ef   : > { %3154 = vmatpush.msra.mxu1 %v7069_v1  ;;  %3176 = vmatpush.msra.mxu2 %v6833_v58  ;;  %v6881_v1 = vld [vmem:[%s13683_s4 + $0xb50] sm:$0xff]  ;;  %v6947_v58 = vld [vmem:[%s13683_s4 + $0xd60] sm:$0xff]  ;;  %v6944_v62 = vld [vmem:[%s13683_s4 + $0xd48] sm:$0xff] }
 0x2f0   : > { %3115 = vmatpush.msrb.mxu3 %v6952_v13  ;;  %3132 = vmatpush.msrb.mxu0 %v7018_v48  ;;  %v6995_v60 = vld [vmem:[%s13683_s4 + $0xee0] sm:$0xff]  ;;  %v7046_v13 = vld [vmem:[%s13683_s4 + $0x1078] sm:$0xff] }
 0x2f1   : > { %3116 = vmatmul.f32.vlgmr.msrb.gmra.mxu3 %v10145_v6  ;;  %3155 = vmatpush.msra.mxu1 %v7066_v19  ;;  %v6878_v48 = vld [vmem:[%s13683_s4 + $0xb38] sm:$0xff]  ;;  %v6992_v19 = vld [vmem:[%s13683_s4 + $0xec8] sm:$0xff] }
 0x2f2   : > { %3177 = vmatpush.msra.mxu2 %v6830_v12  ;;  %3192 = vmatpush.msra.mxu3 %v6902_v63  ;;  %v6875_v12 = vld [vmem:[%s13683_s4 + $0xb20] sm:$0xff]  ;;  %v6989_v63 = vld [vmem:[%s13683_s4 + $0xeb0] sm:$0xff] }
 0x2f3   : > { %3133 = vmatpush.msrb.mxu0 %v7015_v28  ;;  %3156 = vmatpush.msra.mxu1 %v7063_v16  ;;  %v7040_v28 = vld [vmem:[%s13683_s4 + $0x1048] sm:$0xff] }
 0x2f4   : > { %3178 = vmatpush.msra.mxu2 %v6827_v5  ;;  %3193 = vmatpush.msra.mxu3 %v6899_v59  ;;  %v6872_v16 = vld [vmem:[%s13683_s4 + $0xb08] sm:$0xff]  ;;  %v6938_v5 = vld [vmem:[%s13683_s4 + $0xd18] sm:$0xff] }
 0x2f5   : > { %3134 = vmatpush.msrb.mxu0 %v7012_v57  ;;  %3157 = vmatpush.msra.mxu1 %v7060_v22  ;;  %v2529_v31 = vpop.f32.mrf.mxu2  ;;  %v6986_v59 = vld [vmem:[%s13683_s4 + $0xe98] sm:$0xff]  ;;  %v7037_v57 = vld [vmem:[%s13683_s4 + $0x1030] sm:$0xff] }
 0x2f6   : > { %3179 = vmatpush.msra.mxu2 %v6824_v23  ;;  %3194 = vmatpush.msra.mxu3 %v6896_v21  ;;  %v11251_v33 = vadd.f32 %v2529_v31, %v2507_v3  ;;  %v7043_v3 = vld [vmem:[%s13683_s4 + $0x1060] sm:$0xff]  ;;  %v6869_v22 = vld [vmem:[%s13683_s4 + $0xaf0] sm:$0xff] }
 0x2f7   : > { %3135 = vmatpush.msrb.mxu0 %v7009_v32  ;;  %3158 = vmatpush.msra.mxu1 %v7057_v24  ;;  %v6935_v23 = vld [vmem:[%s13683_s4 + $0xd00] sm:$0xff]  ;;  %v7034_v32 = vld [vmem:[%s13683_s4 + $0x1018] sm:$0xff] }
 0x2f8   : > { %3180 = vmatpush.msra.mxu2 %v6821_v45  ;;  %3195 = vmatpush.msra.mxu3 %v6893_v56  ;;  %v6983_v21 = vld [vmem:[%s13683_s4 + $0xe80] sm:$0xff]  ;;  %v6866_v24 = vld [vmem:[%s13683_s4 + $0xad8] sm:$0xff]  ;;  %v6932_v45 = vld [vmem:[%s13683_s4 + $0xce8] sm:$0xff] }
 0x2f9   : > { %3119 = vmatmul.f32.gmra.mxu3 %v10206_v8  ;;  %3136 = vmatpush.msrb.mxu0 %v7006_v46  ;;  %v6980_v56 = vld [vmem:[%s13683_s4 + $0xe68] sm:$0xff]  ;;  %v7031_v31 = vld [vmem:[%s13683_s4 + $0x1000] sm:$0xff] }
 0x2fa   : > { %3159 = vmatpush.msra.mxu1 %v7054_v51  ;;  %3181 = vmatpush.msra.mxu2 %v6818_v53  ;;  %v6863_v46 = vld [vmem:[%s13683_s4 + $0xac0] sm:$0xff]  ;;  %v6929_v51 = vld [vmem:[%s13683_s4 + $0xcd0] sm:$0xff]  ;;  %v7028_v53 = vld [vmem:[%s13683_s4 + $0xfe8] sm:$0xff] }
 0x2fb   : > { %3196 = vmatpush.msra.mxu3 %v6890_v38  ;;  %3137 = vmatpush.msrb.mxu0 %v7003_v10  ;;  %v6860_v38 = vld [vmem:[%s13683_s4 + $0xaa8] sm:$0xff]  ;;  %v6926_v10 = vld [vmem:[%s13683_s4 + $0xcb8] sm:$0xff] }
 0x2fc   : > { %3160 = vmatpush.msra.mxu1 %v7051_v47  ;;  %3182 = vmatpush.msra.mxu2 %v6815_v44  ;;  %v6974_v47 = vld [vmem:[%s13683_s4 + $0xe38] sm:$0xff]  ;;  %v7025_v44 = vld [vmem:[%s13683_s4 + $0xfd0] sm:$0xff] }
 0x2fd   : > { %3197 = vmatpush.msra.mxu3 %v6887_v54  ;;  %3138 = vmatpush.msrb.mxu0 %v7000_v4  ;;  %v6857_v54 = vld [vmem:[%s13683_s4 + $0xa90] sm:$0xff]  ;;  %v6923_v4 = vld [vmem:[%s13683_s4 + $0xca0] sm:$0xff] }
 0x2fe   : > { %3161 = vmatpush.msra.mxu1 %v7048_v36  ;;  %3183 = vmatpush.msra.mxu2 %v6812_v2  ;;  %v6971_v36 = vld [vmem:[%s13683_s4 + $0xe20] sm:$0xff]  ;;  %v7022_v2 = vld [vmem:[%s13683_s4 + $0xfb8] sm:$0xff] }
 0x2ff   : > { %3198 = vmatpush.msra.mxu3 %v6884_v7  ;;  %3139 = vmatmul.f32.vlgmr.msrb.gmra.mxu0 %v10134_v29  ;;  %v7094_v7 = vld [vmem:[%s13683_s4 + $0x11f8] sm:$0xff] }
 0x300   : > { %3162 = vmatmul.f32.vlgmr.msra.gmra.mxu1 %v10136_v39  ;;  %3215 = vmatpush.msra.mxu0 %v6950_v18  ;;  %v6920_v18 = vld [vmem:[%s13683_s4 + $0xc88] sm:$0xff] }
 0x301   : > { %3238 = vmatpush.msrb.mxu1 %v6998_v15  ;;  %3184 = vmatpush.msra.mxu2 %v6809_v61  ;;  %v6968_v15 = vld [vmem:[%s13683_s4 + $0xe08] sm:$0xff]  ;;  %v7019_v61 = vld [vmem:[%s13683_s4 + $0xfa0] sm:$0xff] }
 0x302   : > { %3199 = vmatpush.msra.mxu3 %v6881_v1  ;;  %3185 = vmatmul.f32.vlgmr.msra.gmra.mxu2 %v10044_v37  ;;  %v6941_v37 = vld [vmem:[%s13683_s4 + $0xd30] sm:$0xff]  ;;  %v7091_v1 = vld [vmem:[%s13683_s4 + $0x11e0] sm:$0xff] }
 0x303   : > { %3216 = vmatpush.msra.mxu0 %v6947_v58  ;;  %3239 = vmatpush.msrb.mxu1 %v6995_v60  ;;  %v6917_v58 = vld [vmem:[%s13683_s4 + $0xc70] sm:$0xff] }
 0x304   : > { %3261 = vmatpush.msrb.mxu2 %v7046_v13  ;;  %3200 = vmatpush.msra.mxu3 %v6878_v48  ;;  %v6965_v60 = vld [vmem:[%s13683_s4 + $0xdf0] sm:$0xff]  ;;  %v7088_v13 = vld [vmem:[%s13683_s4 + $0x11c8] sm:$0xff]  ;;  %v6914_v48 = vld [vmem:[%s13683_s4 + $0xc58] sm:$0xff] }
 0x305   : > { %3217 = vmatpush.msra.mxu0 %v6944_v62  ;;  %3240 = vmatpush.msrb.mxu1 %v6992_v19  ;;  %v6962_v62 = vld [vmem:[%s13683_s4 + $0xdd8] sm:$0xff]  ;;  %v7013_v19 = vld [vmem:[%s13683_s4 + $0xf70] sm:$0xff] }
 0x306   : > { %3262 = vmatpush.msrb.mxu2 %v7043_v3  ;;  %3201 = vmatpush.msra.mxu3 %v6875_v12  ;;  %v7085_v3 = vld [vmem:[%s13683_s4 + $0x11b0] sm:$0xff]  ;;  %v6911_v12 = vld [vmem:[%s13683_s4 + $0xc40] sm:$0xff] }
 0x307   : > { %3218 = vmatpush.msra.mxu0 %v6941_v37  ;;  %3241 = vmatpush.msrb.mxu1 %v6989_v63  ;;  %v6959_v37 = vld [vmem:[%s13683_s4 + $0xdc0] sm:$0xff]  ;;  %v7010_v63 = vld [vmem:[%s13683_s4 + $0xf58] sm:$0xff] }
 0x308   : > { %3263 = vmatpush.msrb.mxu2 %v7040_v28  ;;  %3202 = vmatpush.msra.mxu3 %v6872_v16  ;;  %v7082_v28 = vld [vmem:[%s13683_s4 + $0x1198] sm:$0xff]  ;;  %v6908_v16 = vld [vmem:[%s13683_s4 + $0xc28] sm:$0xff] }
 0x309   : > { %3142 = vmatmul.f32.gmra.mxu0 %v10182_v34  ;;  %3165 = vmatmul.f32.gmra.mxu1 %v10191_v30 }
 0x30a   : > { %3219 = vmatpush.msra.mxu0 %v6938_v5  ;;  %3242 = vmatpush.msrb.mxu1 %v6986_v59  ;;  %v6956_v5 = vld [vmem:[%s13683_s4 + $0xda8] sm:$0xff]  ;;  %v7007_v59 = vld [vmem:[%s13683_s4 + $0xf40] sm:$0xff] }
 0x30b   : > { %3264 = vmatpush.msrb.mxu2 %v7037_v57  ;;  %3203 = vmatpush.msra.mxu3 %v6869_v22  ;;  %v7079_v57 = vld [vmem:[%s13683_s4 + $0x1180] sm:$0xff]  ;;  %v6905_v22 = vld [vmem:[%s13683_s4 + $0xc10] sm:$0xff] }
 0x30c   : > { %3188 = vmatmul.f32.gmra.mxu2 %v10086_v40  ;;  %3220 = vmatpush.msra.mxu0 %v6935_v23  ;;  %v6977_v40 = vld [vmem:[%s13683_s4 + $0xe50] sm:$0xff]  ;;  %v7004_v23 = vld [vmem:[%s13683_s4 + $0xf28] sm:$0xff] }
 0x30d   : > { %3243 = vmatpush.msrb.mxu1 %v6983_v21  ;;  %3265 = vmatpush.msrb.mxu2 %v7034_v32  ;;  %v7076_v21 = vld [vmem:[%s13683_s4 + $0x1168] sm:$0xff]  ;;  %v7001_v32 = vld [vmem:[%s13683_s4 + $0xf10] sm:$0xff] }
 0x30e   : > { %3204 = vmatpush.msra.mxu3 %v6866_v24  ;;  %3221 = vmatpush.msra.mxu0 %v6932_v45  ;;  %v7181_v24 = vld [vmem:[%s13684_s5 + $0xa8] sm:$0xf]  ;;  %v8635_v45 = vld [vmem:[%s13684_s5 + $0xb0] sm:$0xf0] }
 0x30f   : > { %3244 = vmatpush.msrb.mxu1 %v6980_v56  ;;  %3266 = vmatpush.msrb.mxu2 %v7031_v31  ;;  %v7073_v56 = vld [vmem:[%s13683_s4 + $0x1150] sm:$0xff]  ;;  %v7182_v31 = vor.u32 %v8635_v45, %v7181_v24  ;;  %v8622_v45 = vld [vmem:[%s13684_s5 + $0x4c] sm:$0xf] }
 0x310   : > { %3205 = vmatpush.msra.mxu3 %v6863_v46  ;;  %3222 = vmatpush.msra.mxu0 %v6929_v51  ;;  %v7169_v46 = vld [vmem:[%s13684_s5 + $0x90] sm:$0xf]  ;;  %v8632_v51 = vld [vmem:[%s13684_s5 + $0x98] sm:$0xf0] }
 0x311   : > { %3245 = vmatpush.msrb.mxu1 %v6977_v40  ;;  %3267 = vmatpush.msrb.mxu2 %v7028_v53  ;;  %v11506_v40 = vpop.f32.mrf.mxu3  ;;  %v7070_v53 = vld [vmem:[%s13683_s4 + $0x1138] sm:$0xff] }
 0x312   : > { %3206 = vmatpush.msra.mxu3 %v6860_v38  ;;  %3223 = vmatpush.msra.mxu0 %v6926_v10  ;;  %v7170_v38 = vor.u32 %v8632_v51, %v7169_v46  ;;  %v7064_v10 = vld [vmem:[%s13683_s4 + $0x1108] sm:$0xff]  ;;  %v7135_v46 = vld [vmem:[%s13684_s5 + $0x54] sm:$0xf0] }
 0x313   : > { %3246 = vmatpush.msrb.mxu1 %v6974_v47  ;;  %3268 = vmatpush.msrb.mxu2 %v7025_v44  ;;  %v8629_v47 = vld [vmem:[%s13684_s5 + $0x80] sm:$0xf0]  ;;  %v7061_v44 = vld [vmem:[%s13683_s4 + $0x10f0] sm:$0xff] }
 0x314   : > { %3207 = vmatpush.msra.mxu3 %v6857_v54  ;;  %3224 = vmatpush.msra.mxu0 %v6923_v4  ;;  %v7145_v4 = vld [vmem:[%s13684_s5 + $0x60] sm:$0xf] }
 0x315   : > { %3208 = vmatmul.f32.vlgmr.msra.gmra.mxu3 %v10049_v20  ;;  %3247 = vmatpush.msrb.mxu1 %v6971_v36  ;;  %v7016_v20 = vld [vmem:[%s13683_s4 + $0xf88] sm:$0xff] }
 0x316   : > { %3269 = vmatpush.msrb.mxu2 %v7022_v2  ;;  %3284 = vmatpush.msrb.mxu3 %v7094_v7  ;;  %v8626_v36 = vld [vmem:[%s13684_s5 + $0x68] sm:$0xf0]  ;;  %v7058_v7 = vld [vmem:[%s13683_s4 + $0x10d8] sm:$0xff] }
 0x317   : > { %3225 = vmatpush.msra.mxu0 %v6920_v18  ;;  %3248 = vmatpush.msrb.mxu1 %v6968_v15  ;;  %v7146_v18 = vor.u32 %v8626_v36, %v7145_v4  ;;  %v11547_v15 = vpop.f32.mrf.mxu1 }
 0x318   : > { %3270 = vmatpush.msrb.mxu2 %v7019_v61  ;;  %3285 = vmatpush.msrb.mxu3 %v7091_v1  ;;  %v11549_v61 = vpop.f32.mrf.mxu2  ;;  %v8634_v1 = vld [vmem:[%s13684_s5 + $0xac] sm:$0xf] }
 0x319   : > { %3226 = vmatpush.msra.mxu0 %v6917_v58  ;;  %3249 = vmatpush.msrb.mxu1 %v6965_v60  ;;  %v11537_v2 = vpop.f32.mrf.mxu3  ;;  %v7049_v60 = vld [vmem:[%s13683_s4 + $0x1090] sm:$0xff] }
 0x31a   : > { %3271 = vmatpush.msrb.mxu2 %v7016_v20  ;;  %3286 = vmatpush.msrb.mxu3 %v7088_v13  ;;  %v8631_v13 = vld [vmem:[%s13684_s5 + $0x94] sm:$0xf] }
 0x31b   : > { %3227 = vmatpush.msra.mxu0 %v6914_v48  ;;  %3250 = vmatpush.msrb.mxu1 %v6962_v62  ;;  %v7171_v48 = vld [vmem:[%s13684_s5 + $0x9c] sm:$0xf0]  ;;  %v7133_v62 = vld [vmem:[%s13684_s5 + $0x48] sm:$0xf] }
 0x31c   : > { %3272 = vmatpush.msrb.mxu2 %v7013_v19  ;;  %3287 = vmatpush.msrb.mxu3 %v7085_v3  ;;  %v8623_v19 = vld [vmem:[%s13684_s5 + $0x50] sm:$0xf0] }
 0x31d   : > { %3211 = vmatmul.f32.gmra.mxu3 %v10091_v41  ;;  %3228 = vmatpush.msra.mxu0 %v6911_v12  ;;  %v6953_v41 = vld [vmem:[%s13683_s4 + $0xd90] sm:$0xff]  ;;  %v7134_v12 = vor.u32 %v8623_v19, %v7133_v62  ;;  %v8658_v19 = vld [vmem:[%s13684_s5 + $0x16c] sm:$0xf] }
 0x31e   : > { %3251 = vmatpush.msrb.mxu1 %v6959_v37  ;;  %3273 = vmatpush.msrb.mxu2 %v7010_v63  ;;  %v7121_v37 = vld [vmem:[%s13684_s5 + $0x30] sm:$0xf]  ;;  %v8620_v63 = vld [vmem:[%s13684_s5 + $0x38] sm:$0xf0]  ;;  %v8659_v62 = vld [vmem:[%s13684_s5 + $0x170] sm:$0xf0] }
 0x31f   : > { %3288 = vmatpush.msrb.mxu3 %v7082_v28  ;;  %3229 = vmatpush.msra.mxu0 %v6908_v16  ;;  %v7174_v28 = vor.u32 %v8631_v13, %v7171_v48  ;;  %v11586_v16 = vpop.f32.mrf.mxu1  ;;  %v2234_v13 = vadd.f32 %v10866_v55, %v10855_v52  ;;  %v7277_v48 = vld [vmem:[%s13684_s5 + $0x168] sm:$0xf]  ;;  %v7285_v52 = vld [vmem:[%s13684_s5 + $0x170] sm:$0xf]  ;;  %v8660_v55 = vld [vmem:[%s13684_s5 + $0x178] sm:$0xf0] }
 0x320   : > { %3252 = vmatpush.msrb.mxu1 %v6956_v5  ;;  %3274 = vmatpush.msrb.mxu2 %v7007_v59  ;;  %v2910_v5 = vpop.f32.mrf.mxu2  ;;  %v8628_v59 = vld [vmem:[%s13684_s5 + $0x7c] sm:$0xf] }
 0x321   : > { %3289 = vmatpush.msrb.mxu3 %v7079_v57  ;;  %3230 = vmatpush.msra.mxu0 %v6905_v22  ;;  %v11577_v3 = vpop.f32.mrf.mxu3  ;;  %v7122_v57 = vor.u32 %v8620_v63, %v7121_v37  ;;  %v7278_v37 = vor.u32 %v8659_v62, %v7277_v48  ;;  %v7279_v63 = vld [vmem:[%s13684_s5 + $0x174] sm:$0xf0] }
 0x322   : > { %3253 = vmatpush.msrb.mxu1 %v6953_v41  ;;  %3275 = vmatpush.msrb.mxu2 %v7004_v23  ;;  %v8625_v23 = vld [vmem:[%s13684_s5 + $0x64] sm:$0xf] }
 0x323   : > { %3290 = vmatpush.msrb.mxu3 %v7076_v21  ;;  %3231 = vmatmul.f32.vlgmr.msra.gmra.mxu0 %v10051_v9  ;;  %v7067_v9 = vld [vmem:[%s13683_s4 + $0x1120] sm:$0xff]  ;;  %v7147_v21 = vld [vmem:[%s13684_s5 + $0x6c] sm:$0xf0] }
 0x324   : > { %3254 = vmatmul.f32.vlgmr.msrb.gmra.mxu1 %v10145_v6  ;;  %3276 = vmatpush.msrb.mxu2 %v7001_v32  ;;  %v7157_v6 = vld [vmem:[%s13684_s5 + $0x78] sm:$0xf]  ;;  %v7150_v24 = vor.u32 %v8625_v23, %v7147_v21 }
 0x325   : > { %3291 = vmatpush.msrb.mxu3 %v7073_v56  ;;  %3277 = vmatmul.f32.vlgmr.msrb.gmra.mxu2 %v10134_v29  ;;  %v11525_v29 = vpop.f32.mrf.mxu0  ;;  %v7158_v54 = vor.u32 %v8629_v47, %v7157_v6  ;;  %v7109_v56 = vld [vmem:[%s13684_s5 + $0x18] sm:$0xf]  ;;  %v7138_v6 = vor.u32 %v8622_v45, %v7135_v46  ;;  %v7286_v45 = vor.u32 %v8660_v55, %v7285_v52 }
 0x326   : > { %3803 = vmatpush.bf16.msrb.mxu0 %v7182_v31  ;;  %v8617_v31 = vld [vmem:[%s13684_s5 + $0x20] sm:$0xf0]  ;;  %3817 = vmatpush.bf16.msra.mxu1 %v7278_v37 }
 0x327   : > { %3292 = vmatpush.msrb.mxu3 %v7070_v53  ;;  %v7110_v51 = vor.u32 %v8617_v31, %v7109_v56  ;;  %v8614_v53 = vld [vmem:[%s13684_s5 + $0x8] sm:$0xf0] }
 0x329   : > { %3293 = vmatpush.msrb.mxu3 %v7067_v9  ;;  %v11621_v9 = vpop.f32.mrf.mxu1 }
 0x32a   : > { %3804 = vmatpush.bf16.msrb.mxu0 %v7170_v38  ;;  %v2913_v38 = vpop.f32.mrf.mxu2 }
 0x32b   : > { %3294 = vmatpush.msrb.mxu3 %v7064_v10  ;;  %3234 = vmatmul.f32.gmra.mxu0 %v10095_v27  ;;  %v7055_v27 = vld [vmem:[%s13683_s4 + $0x10c0] sm:$0xff] }
 0x32c   : > { %3257 = vmatmul.f32.gmra.mxu1 %v10206_v8  ;;  %v7052_v8 = vld [vmem:[%s13683_s4 + $0x10a8] sm:$0xff]  ;;  %v2933_v32 = vpop.f32.mrf.mxu3 }
 0x32d   : > { %3295 = vmatpush.msrb.mxu3 %v7061_v44  ;;  %3280 = vmatmul.f32.gmra.mxu2 %v10182_v34  ;;  %v7183_v34 = vld [vmem:[%s13684_s5 + $0xb4] sm:$0xf0]  ;;  %v11560_v58 = vpop.f32.mrf.mxu0  ;;  %v8619_v44 = vld [vmem:[%s13684_s5 + $0x34] sm:$0xf] }
 0x32e   : > { %3805 = vmatpush.bf16.msrb.mxu0 %v7158_v54  ;;  %v7186_v20 = vor.u32 %v8634_v1, %v7183_v34  ;;  %v7123_v54 = vld [vmem:[%s13684_s5 + $0x3c] sm:$0xf0]  ;;  %v2934_v1 = vadd.f32 %v2933_v32, %v2910_v5 }
 0x32f   : > { %3296 = vmatpush.msrb.mxu3 %v7058_v7  ;;  %v7126_v4 = vor.u32 %v8619_v44, %v7123_v54  ;;  %v8616_v7 = vld [vmem:[%s13684_s5 + $0x1c] sm:$0xf] }
 0x331   : > { %3297 = vmatpush.msrb.mxu3 %v7055_v27  ;;  %v7111_v27 = vld [vmem:[%s13684_s5 + $0x24] sm:$0xf0] }
 0x332   : > { %3806 = vmatpush.bf16.msrb.mxu0 %v7146_v18  ;;  %v7114_v34 = vor.u32 %v8616_v7, %v7111_v27  ;;  %v8652_v27 = vld [vmem:[%s13684_s5 + $0x13c] sm:$0xf] }
 0x333   : > { %3298 = vmatpush.msrb.mxu3 %v7052_v8 }
 0x334   : > { %v2936_v36 = vpop.f32.mrf.mxu3 }
 0x335   : > { %3299 = vmatpush.msrb.mxu3 %v7049_v60  ;;  %v11594_v41 = vpop.f32.mrf.mxu0  ;;  %v2979_v18 = vpop.f32.mrf.mxu1  ;;  %v8613_v60 = vld [vmem:[%s13684_s5 + $0x4] sm:$0xf]  ;;  %v2937_v23 = vadd.f32 %v2936_v36, %v2913_v38 }
 0x336   : > { %3300 = vmatmul.f32.vlgmr.msrb.gmra.mxu3 %v10136_v39  ;;  %v7159_v39 = vld [vmem:[%s13684_s5 + $0x84] sm:$0xf0]  ;;  %3807 = vmatpush.bf16.msrb.mxu0 %v7134_v12  ;;  %v8653_v36 = vld [vmem:[%s13684_s5 + $0x140] sm:$0xf0] }
 0x337   : > { %3845 = vmatpush.bf16.msra.mxu3 %v7186_v20  ;;  %v7162_v22 = vor.u32 %v8628_v59, %v7159_v39  ;;  %v7099_v20 = vld [vmem:[%s13684_s5 + $0xc] sm:$0xf0]  ;;  %v7282_v59 = vor.u32 %v8658_v19, %v7279_v63  ;;  %v8649_v19 = vld [vmem:[%s13684_s5 + $0x124] sm:$0xf] }
 0x338   : > { %v7265_v39 = vld [vmem:[%s13684_s5 + $0x150] sm:$0xf]  ;;  %v7102_v21 = vor.u32 %v8613_v60, %v7099_v20  ;;  %v7241_v60 = vld [vmem:[%s13684_s5 + $0x120] sm:$0xf]  ;;  %v8650_v20 = vld [vmem:[%s13684_s5 + $0x128] sm:$0xf0] }
 0x339   : > { %v7242_v62 = vor.u32 %v8650_v20, %v7241_v60  ;;  %v7193_v60 = vld [vmem:[%s13684_s5 + $0xc0] sm:$0xf]  ;;  %v8638_v20 = vld [vmem:[%s13684_s5 + $0xc8] sm:$0xf0] }
 0x33a   : > { %3808 = vmatpush.bf16.msrb.mxu0 %v7122_v57  ;;  %v8656_v57 = vld [vmem:[%s13684_s5 + $0x158] sm:$0xf0] }
 0x33b   : > { %3846 = vmatpush.bf16.msra.mxu3 %v7174_v28  ;;  %v2257_v28 = vadd.f32 %v10892_v25, %v2234_v13  ;;  %v7266_v32 = vor.u32 %v8656_v57, %v7265_v39  ;;  %v7267_v25 = vld [vmem:[%s13684_s5 + $0x15c] sm:$0xf0]  ;;  %v7249_v57 = vld [vmem:[%s13684_s5 + $0x128] sm:$0xf] }
 0x33d   : > { %v2956_v47 = vpop.f32.mrf.mxu0  ;;  %v3002_v8 = vpop.f32.mrf.mxu2  ;;  %v2280_v31 = vadd.f32 %v10977_v17, %v2257_v28  ;;  %3818 = vmatpush.bf16.msra.mxu1 %v7266_v32 }
 0x33e   : > { %3303 = vmatmul.f32.gmra.mxu3 %v10191_v30  ;;  %v7097_v30 = vld [vmem:[%s13684_s5] sm:$0xf]  ;;  %3809 = vmatpush.bf16.msrb.mxu0 %v7110_v51  ;;  %v2957_v12 = vadd.f32 %v2956_v47, %v2934_v1 }
 0x33f   : > { %3847 = vmatpush.bf16.msra.mxu3 %v7162_v22  ;;  %v7098_v10 = vor.u32 %v8614_v53, %v7097_v30  ;;  %v8655_v22 = vld [vmem:[%s13684_s5 + $0x154] sm:$0xf]  ;;  %v7273_v30 = vld [vmem:[%s13684_s5 + $0x158] sm:$0xf]  ;;  %v8657_v53 = vld [vmem:[%s13684_s5 + $0x160] sm:$0xf0]  ;;  %v2303_v17 = vadd.f32 %v10988_v49, %v2280_v31 }
 0x340   : > { %v7270_v56 = vor.u32 %v8655_v22, %v7267_v25  ;;  %v2980_v46 = vadd.f32 %v2979_v18, %v2957_v12  ;;  %v7274_v47 = vor.u32 %v8657_v53, %v7273_v30  ;;  %v7255_v18 = vld [vmem:[%s13684_s5 + $0x144] sm:$0xf0]  ;;  %v7261_v49 = vld [vmem:[%s13684_s5 + $0x140] sm:$0xf]  ;;  %v7243_v12 = vld [vmem:[%s13684_s5 + $0x12c] sm:$0xf0] }
 0x341   : > { %v7258_v1 = vor.u32 %v8652_v27, %v7255_v18  ;;  %v2326_v63 = vadd.f32 %v11002_v50, %v2303_v17  ;;  %v7246_v55 = vor.u32 %v8649_v19, %v7243_v12  ;;  %v7229_v22 = vld [vmem:[%s13684_s5 + $0x108] sm:$0xf]  ;;  %v7231_v25 = vld [vmem:[%s13684_s5 + $0x114] sm:$0xf0]  ;;  %v7217_v31 = vld [vmem:[%s13684_s5 + $0xf0] sm:$0xf] }
 0x342   : > { %3810 = vmatpush.bf16.msrb.mxu0 %v7098_v10  ;;  %v3003_v38 = vadd.f32 %v3002_v8, %v2980_v46  ;;  %v2982_v10 = vpop.f32.mrf.mxu1  ;;  %v8643_v30 = vld [vmem:[%s13684_s5 + $0xf4] sm:$0xf]  ;;  %v7219_v53 = vld [vmem:[%s13684_s5 + $0xfc] sm:$0xf0]  ;;  %v7373_v19 = vld [vmem:[%s13684_s5 + $0x228] sm:$0xf] }
 0x343   : > { %3848 = vmatpush.bf16.msra.mxu3 %v7150_v24  ;;  %v8683_v12 = vld [vmem:[%s13684_s5 + $0x230] sm:$0xf0] }
 0x345   : > { %v2959_v5 = vpop.f32.mrf.mxu0 }
 0x346   : > { %3859 = vmatpush.bf16.msra.mxu0 %v7282_v59  ;;  %v2960_v51 = vadd.f32 %v2959_v5, %v2937_v23  ;;  %v8647_v23 = vld [vmem:[%s13684_s5 + $0x110] sm:$0xf0] }
 0x347   : > { %3849 = vmatpush.bf16.msra.mxu3 %v7138_v6  ;;  %v3005_v6 = vpop.f32.mrf.mxu2  ;;  %v7230_v32 = vor.u32 %v8647_v23, %v7229_v22  ;;  %v7361_v23 = vld [vmem:[%s13684_s5 + $0x210] sm:$0xf] }
 0x348   : > { %v2983_v44 = vadd.f32 %v2982_v10, %v2960_v51  ;;  %v8644_v51 = vld [vmem:[%s13684_s5 + $0xf8] sm:$0xf0]  ;;  %v7222_v10 = vor.u32 %v8643_v30, %v7219_v53  ;;  %v8755_v30 = vld [vmem:[%s13684_s5 + $0x470] sm:$0xf0]  ;;  %v7349_v53 = vld [vmem:[%s13684_s5 + $0x1f8] sm:$0xf] }
 0x34a   : > { %3860 = vmatpush.bf16.msra.mxu0 %v7270_v56  ;;  %v3006_v8 = vadd.f32 %v3005_v6, %v2983_v44  ;;  %v8648_v56 = vld [vmem:[%s13684_s5 + $0x118] sm:$0xf0]  ;;  %v7225_v6 = vld [vmem:[%s13684_s5 + $0xf8] sm:$0xf] }
 0x34b   : > { %3850 = vmatpush.bf16.msra.mxu3 %v7126_v4  ;;  %v7253_v4 = vld [vmem:[%s13684_s5 + $0x138] sm:$0xf] }
 0x34c   : > { %v7254_v7 = vor.u32 %v8653_v36, %v7253_v4  ;;  %v7205_v44 = vld [vmem:[%s13684_s5 + $0xd8] sm:$0xf]  ;;  %v8640_v4 = vld [vmem:[%s13684_s5 + $0xdc] sm:$0xf] }
 0x34e   : > { %3819 = vmatpush.bf16.msra.mxu1 %v7254_v7  ;;  %3861 = vmatpush.bf16.msra.mxu0 %v7258_v1  ;;  %v7207_v7 = vld [vmem:[%s13684_s5 + $0xe4] sm:$0xf0] }
 0x34f   : > { %3851 = vmatpush.bf16.msra.mxu3 %v7114_v34  ;;  %v8654_v34 = vld [vmem:[%s13684_s5 + $0x148] sm:$0xf0]  ;;  %v7210_v18 = vor.u32 %v8640_v4, %v7207_v7 }
 0x350   : > { %v3025_v24 = vpop.f32.mrf.mxu3  ;;  %v7262_v48 = vor.u32 %v8654_v34, %v7261_v49  ;;  %v7213_v49 = vld [vmem:[%s13684_s5 + $0xe0] sm:$0xf]  ;;  %v8678_v4 = vld [vmem:[%s13684_s5 + $0x208] sm:$0xf0] }
 0x351   : > { %v3026_v54 = vadd.f32 %v3025_v24, %v3003_v38  ;;  %v7218_v38 = vor.u32 %v8644_v51, %v7217_v31  ;;  %v7757_v51 = vld [vmem:[%s13684_s5 + $0x468] sm:$0xf] }
 0x352   : > { %3820 = vmatpush.bf16.msra.mxu1 %v7242_v62  ;;  %3862 = vmatpush.bf16.msra.mxu0 %v7246_v55  ;;  %v7195_v62 = vld [vmem:[%s13684_s5 + $0xcc] sm:$0xf0]  ;;  %v7375_v55 = vld [vmem:[%s13684_s5 + $0x234] sm:$0xf0] }
 0x353   : > { %3852 = vmatpush.bf16.msra.mxu3 %v7102_v21  ;;  %v3307_v37 = vmax.f32 %v10930_v14, %v3026_v54  ;;  %v8651_v14 = vld [vmem:[%s13684_s5 + $0x130] sm:$0xf0]  ;;  %v8646_v21 = vld [vmem:[%s13684_s5 + $0x10c] sm:$0xf]  ;;  %v8641_v54 = vld [vmem:[%s13684_s5 + $0xe0] sm:$0xf0] }
 0x354   : > { %v7250_v50 = vor.u32 %v8651_v14, %v7249_v57  ;;  %v7234_v24 = vor.u32 %v8646_v21, %v7231_v25  ;;  %v7206_v36 = vor.u32 %v8641_v54, %v7205_v44  ;;  %v7201_v57 = vld [vmem:[%s13684_s5 + $0xc8] sm:$0xf]  ;;  %v8639_v14 = vld [vmem:[%s13684_s5 + $0xd0] sm:$0xf0]  ;;  %v8680_v21 = vld [vmem:[%s13684_s5 + $0x218] sm:$0xf0] }
 0x355   : > { %v3313_v5 = vmax.f32 %v3307_v37, 0.0  ;;  %v7202_v22 = vor.u32 %v8639_v14, %v7201_v57  ;;  %v7362_v25 = vor.u32 %v8680_v21, %v7361_v23  ;;  %v7357_v54 = vld [vmem:[%s13684_s5 + $0x200] sm:$0xf]  ;;  %v8749_v57 = vld [vmem:[%s13684_s5 + $0x440] sm:$0xf0] }
 0x356   : > { %3821 = vmatpush.bf16.msra.mxu1 %v7230_v32  ;;  %3863 = vmatpush.bf16.msra.mxu0 %v7234_v24  ;;  %v8679_v32 = vld [vmem:[%s13684_s5 + $0x214] sm:$0xf]  ;;  %v7363_v24 = vld [vmem:[%s13684_s5 + $0x21c] sm:$0xf0]  ;;  %v7325_v14 = vld [vmem:[%s13684_s5 + $0x1c8] sm:$0xf] }
 0x357   : > { %3901 = vmatpush.bf16.msrb.mxu3 %v7286_v45  ;;  %v7237_v45 = vld [vmem:[%s13684_s5 + $0x110] sm:$0xf]  ;;  %v7366_v31 = vor.u32 %v8679_v32, %v7363_v24 }
 0x358   : > { %v3028_v13 = vpop.f32.mrf.mxu3  ;;  %v7238_v46 = vor.u32 %v8648_v56, %v7237_v45  ;;  %v11772_v27 = vpop.f32.mrf.mxu0  ;;  %v7369_v45 = vld [vmem:[%s13684_s5 + $0x218] sm:$0xf]  ;;  %v8681_v56 = vld [vmem:[%s13684_s5 + $0x220] sm:$0xf0]  ;;  %v7333_v32 = vld [vmem:[%s13684_s5 + $0x1d0] sm:$0xf] }
 0x359   : > { %v3029_v52 = vadd.f32 %v3028_v13, %v3006_v8  ;;  %v8642_v8 = vld [vmem:[%s13684_s5 + $0xe8] sm:$0xf0]  ;;  %v11780_v1 = vpop.f32.mrf.mxu1  ;;  %v8637_v13 = vld [vmem:[%s13684_s5 + $0xc4] sm:$0xf] }
 0x35a   : > { %3822 = vmatpush.bf16.msra.mxu1 %v7218_v38  ;;  %3864 = vmatpush.bf16.msra.mxu0 %v7222_v10  ;;  %v7214_v34 = vor.u32 %v8642_v8, %v7213_v49  ;;  %v7198_v37 = vor.u32 %v8637_v13, %v7195_v62  ;;  %v7758_v38 = vor.u32 %v8755_v30, %v7757_v51  ;;  %v8677_v10 = vld [vmem:[%s13684_s5 + $0x200] sm:$0xf0]  ;;  %v7745_v8 = vld [vmem:[%s13684_s5 + $0x450] sm:$0xf]  ;;  %v7337_v13 = vld [vmem:[%s13684_s5 + $0x1e0] sm:$0xf] }
 0x35b   : > { %3902 = vmatpush.bf16.msrb.mxu3 %v7274_v47  ;;  %v3310_v28 = vmax.f32 %v2326_v63, %v3029_v52  ;;  %v8645_v47 = vld [vmem:[%s13684_s5 + $0x100] sm:$0xf0]  ;;  %v7374_v63 = vor.u32 %v8683_v12, %v7373_v19  ;;  %v8682_v52 = vld [vmem:[%s13684_s5 + $0x22c] sm:$0xf]  ;;  %v7350_v44 = vor.u32 %v8677_v10, %v7349_v53  ;;  %v7358_v49 = vor.u32 %v8678_v4, %v7357_v54  ;;  %v7339_v12 = vld [vmem:[%s13684_s5 + $0x1ec] sm:$0xf0] }
 0x35c   : > { %v7226_v17 = vor.u32 %v8645_v47, %v7225_v6  ;;  %v8676_v6 = vld [vmem:[%s13684_s5 + $0x1fc] sm:$0xf]  ;;  %v7351_v47 = vld [vmem:[%s13684_s5 + $0x204] sm:$0xf0]  ;;  %v8673_v62 = vld [vmem:[%s13684_s5 + $0x1e4] sm:$0xf] }
 0x35d   : > { %v3316_v59 = vmax.f32 %v3310_v28, 0.0  ;;  %v7381_v28 = vld [vmem:[%s13684_s5 + $0x230] sm:$0xf]  ;;  %3831 = vmatpush.bf16.msra.mxu2 %v7374_v63  ;;  %v8675_v63 = vld [vmem:[%s13684_s5 + $0x1f0] sm:$0xf0] }
 0x35e   : > { %3823 = vmatpush.bf16.msra.mxu1 %v7206_v36  ;;  %3865 = vmatpush.bf16.msra.mxu0 %v7210_v18  ;;  %v7354_v36 = vor.u32 %v8676_v6, %v7351_v47  ;;  %v8746_v51 = vld [vmem:[%s13684_s5 + $0x428] sm:$0xf0]  ;;  %v7313_v6 = vld [vmem:[%s13684_s5 + $0x1b0] sm:$0xf]  ;;  %v8667_v47 = vld [vmem:[%s13684_s5 + $0x1b4] sm:$0xf] }
 0x35f   : > { %3903 = vmatpush.bf16.msrb.mxu3 %v7262_v48  ;;  %v11714_v39 = vpack.c.bf16 %v3316_v59, %v3313_v5  ;;  %v7194_v48 = vor.u32 %v8638_v20, %v7193_v60  ;;  %v7378_v5 = vor.u32 %v8682_v52, %v7375_v55  ;;  %v8684_v59 = vld [vmem:[%s13684_s5 + $0x238] sm:$0xf0]  ;;  %v2372_v52 = vadd.f32 %v11095_v11, %v11017_v26  ;;  %v8671_v11 = vld [vmem:[%s13684_s5 + $0x1d0] sm:$0xf0]  ;;  %v7321_v4 = vld [vmem:[%s13684_s5 + $0x1b8] sm:$0xf] }
 0x360   : > { %v3072_v55 = vadd.f32 %v11780_v1, %v11772_v27  ;;  %v8670_v27 = vld [vmem:[%s13684_s5 + $0x1cc] sm:$0xf]  ;;  %v7327_v1 = vld [vmem:[%s13684_s5 + $0x1d4] sm:$0xf0]  ;;  %v7326_v23 = vor.u32 %v8671_v11, %v7325_v14  ;;  %v7697_v14 = vld [vmem:[%s13684_s5 + $0x3f0] sm:$0xf] }
 0x361   : > { %3811 = vmatmul.bf16.vlgmr.msrb.gmra.mxu0 %v11714_v39  ;;  %3853 = vmatmul.bf16.vlgmr.msra.gmra.mxu3 %v11714_v39  ;;  %v3094_v18 = vpop.f32.mrf.mxu2  ;;  %v7330_v21 = vor.u32 %v8670_v27, %v7327_v1 }
 0x362   : > { %3824 = vmatpush.bf16.msra.mxu1 %v7194_v48  ;;  %3866 = vmatpush.bf16.msra.mxu0 %v7198_v37  ;;  %v3074_v7 = vpop.f32.mrf.mxu1  ;;  %v8674_v48 = vld [vmem:[%s13684_s5 + $0x1e8] sm:$0xf0]  ;;  %v7345_v37 = vld [vmem:[%s13684_s5 + $0x1e8] sm:$0xf] }
 0x363   : > { %3904 = vmatpush.bf16.msrb.mxu3 %v7250_v50  ;;  %v7382_v50 = vor.u32 %v8684_v59, %v7381_v28  ;;  %3832 = vmatpush.bf16.msra.mxu2 %v7362_v25  ;;  %v7338_v19 = vor.u32 %v8674_v48, %v7337_v13  ;;  %v7342_v28 = vor.u32 %v8673_v62, %v7339_v12  ;;  %v7733_v59 = vld [vmem:[%s13684_s5 + $0x438] sm:$0xf]  ;;  %v8672_v25 = vld [vmem:[%s13684_s5 + $0x1d8] sm:$0xf0] }
 0x364   : > { %v7734_v26 = vor.u32 %v8749_v57, %v7733_v59  ;;  %v7301_v13 = vld [vmem:[%s13684_s5 + $0x198] sm:$0xf]  ;;  %v8664_v48 = vld [vmem:[%s13684_s5 + $0x19c] sm:$0xf] }
 0x366   : > { %3873 = vmatpush.bf16.msrb.mxu1 %v7378_v5  ;;  %3915 = vmatpush.bf16.msrb.mxu0 %v7382_v50  ;;  %v7346_v5 = vor.u32 %v8675_v63, %v7345_v37  ;;  %v7303_v37 = vld [vmem:[%s13684_s5 + $0x1a4] sm:$0xf0]  ;;  %v7309_v63 = vld [vmem:[%s13684_s5 + $0x1a0] sm:$0xf] }
 0x367   : > { %3905 = vmatpush.bf16.msrb.mxu3 %v7238_v46  ;;  %v7370_v46 = vor.u32 %v8681_v56, %v7369_v45  ;;  %3833 = vmatpush.bf16.msra.mxu2 %v7350_v44  ;;  %v7334_v45 = vor.u32 %v8672_v25, %v7333_v32  ;;  %v2395_v56 = vadd.f32 %v11140_v42, %v2372_v52  ;;  %v8668_v42 = vld [vmem:[%s13684_s5 + $0x1b8] sm:$0xf0]  ;;  %v8666_v52 = vld [vmem:[%s13684_s5 + $0x1a8] sm:$0xf0]  ;;  %v8663_v25 = vld [vmem:[%s13684_s5 + $0x190] sm:$0xf0] }
 0x368   : > { %v7314_v54 = vor.u32 %v8668_v42, %v7313_v6 }
 0x36a   : > { %3874 = vmatpush.bf16.msrb.mxu1 %v7366_v31  ;;  %3916 = vmatpush.bf16.msrb.mxu0 %v7370_v46  ;;  %v7721_v46 = vld [vmem:[%s13684_s5 + $0x420] sm:$0xf] }
 0x36b   : > { %3906 = vmatpush.bf16.msrb.mxu3 %v7226_v17  ;;  %v3051_v17 = vpop.f32.mrf.mxu0  ;;  %3834 = vmatpush.bf16.msra.mxu2 %v7338_v19  ;;  %v3097_v30 = vpop.f32.mrf.mxu2  ;;  %v7722_v53 = vor.u32 %v8746_v51, %v7721_v46  ;;  %v8636_v46 = vld [vmem:[%s13684_s5 + $0xb8] sm:$0xf0]  ;;  %v7565_v51 = vld [vmem:[%s13684_s5 + $0x2e8] sm:$0xf] }
 0x36e   : > { %3875 = vmatpush.bf16.msrb.mxu1 %v7354_v36  ;;  %3917 = vmatpush.bf16.msrb.mxu0 %v7358_v49  ;;  %v8669_v36 = vld [vmem:[%s13684_s5 + $0x1c0] sm:$0xf0] }
 0x36f   : > { %3907 = vmatpush.bf16.msrb.mxu3 %v7214_v34  ;;  %v8752_v34 = vld [vmem:[%s13684_s5 + $0x458] sm:$0xf0]  ;;  %3835 = vmatpush.bf16.msra.mxu2 %v7326_v23  ;;  %v8662_v23 = vld [vmem:[%s13684_s5 + $0x188] sm:$0xf0] }
 0x370   : > { %v7746_v20 = vor.u32 %v8752_v34, %v7745_v8  ;;  %v7322_v8 = vor.u32 %v8669_v36, %v7321_v4  ;;  %v7709_v34 = vld [vmem:[%s13684_s5 + $0x408] sm:$0xf]  ;;  %v7177_v4 = vld [vmem:[%s13684_s5 + $0x98] sm:$0xf]  ;;  %v8633_v36 = vld [vmem:[%s13684_s5 + $0xa0] sm:$0xf0] }
 0x372   : > { %3876 = vmatpush.bf16.msrb.mxu1 %v7342_v28  ;;  %3918 = vmatpush.bf16.msrb.mxu0 %v7346_v5  ;;  %v7306_v28 = vor.u32 %v8664_v48, %v7303_v37  ;;  %v7310_v5 = vor.u32 %v8666_v52, %v7309_v63  ;;  %v7573_v48 = vld [vmem:[%s13684_s5 + $0x2f0] sm:$0xf]  ;;  %v8630_v37 = vld [vmem:[%s13684_s5 + $0x88] sm:$0xf0] }
 0x373   : > { %3908 = vmatpush.bf16.msrb.mxu3 %v7202_v22  ;;  %v3095_v22 = vadd.f32 %v3094_v18, %v3072_v55  ;;  %3836 = vmatpush.bf16.msra.mxu2 %v7314_v54 }
 0x374   : > { %v3117_v60 = vpop.f32.mrf.mxu3 }
 0x375   : > { %v3118_v31 = vadd.f32 %v3117_v60, %v3095_v22  ;;  %v8743_v60 = vld [vmem:[%s13684_s5 + $0x410] sm:$0xf0] }
 0x376   : > { %3877 = vmatpush.bf16.msrb.mxu1 %v7330_v21  ;;  %3919 = vmatpush.bf16.msrb.mxu0 %v7334_v45  ;;  %v8661_v21 = vld [vmem:[%s13684_s5 + $0x184] sm:$0xf] }
 0x377   : > { %4475 = vmatpush.bf16.msra.mxu3 %v7758_v38  ;;  %v3075_v38 = vadd.f32 %v3074_v7, %v3051_v17  ;;  %v7315_v17 = vld [vmem:[%s13684_s5 + $0x1bc] sm:$0xf0]  ;;  %v2418_v7 = vadd.f32 %v11144_v35, %v2395_v56  ;;  %v8665_v35 = vld [vmem:[%s13684_s5 + $0x1a0] sm:$0xf0] }
 0x378   : > { %v7318_v49 = vor.u32 %v8667_v47, %v7315_v17  ;;  %v7302_v12 = vor.u32 %v8665_v35, %v7301_v13  ;;  %v7685_v47 = vld [vmem:[%s13684_s5 + $0x3d8] sm:$0xf]  ;;  %v7673_v13 = vld [vmem:[%s13684_s5 + $0x3c0] sm:$0xf]  ;;  %v8734_v35 = vld [vmem:[%s13684_s5 + $0x3c8] sm:$0xf0] }
 0x379   : > { %v3098_v18 = vadd.f32 %v3097_v30, %v3075_v38  ;;  %v2441_v59 = vadd.f32 %v11197_v0, %v2418_v7  ;;  %v7289_v0 = vld [vmem:[%s13684_s5 + $0x180] sm:$0xf]  ;;  %v8706_v38 = vld [vmem:[%s13684_s5 + $0x2ec] sm:$0xf]  ;;  %v7553_v7 = vld [vmem:[%s13684_s5 + $0x2d0] sm:$0xf] }
 0x37a   : > { %3878 = vmatpush.bf16.msrb.mxu1 %v7318_v49  ;;  %3920 = vmatpush.bf16.msrb.mxu0 %v7322_v8  ;;  %v7290_v32 = vor.u32 %v8662_v23, %v7289_v0  ;;  %v7178_v8 = vor.u32 %v8633_v36, %v7177_v4  ;;  %v8621_v4 = vld [vmem:[%s13684_s5 + $0x40] sm:$0xf0] }
 0x37b   : > { %4476 = vmatpush.bf16.msra.mxu3 %v7746_v20  ;;  %v7710_v20 = vor.u32 %v8743_v60, %v7709_v34  ;;  %3837 = vmatpush.bf16.msra.mxu2 %v7302_v12  ;;  %v2464_v27 = vadd.f32 %v11506_v40, %v2441_v59  ;;  %v7297_v40 = vld [vmem:[%s13684_s5 + $0x188] sm:$0xf]  ;;  %v8704_v34 = vld [vmem:[%s13684_s5 + $0x2d8] sm:$0xf0]  ;;  %v8703_v60 = vld [vmem:[%s13684_s5 + $0x2d4] sm:$0xf] }
 0x37c   : > { %v3140_v50 = vpop.f32.mrf.mxu0  ;;  %v3120_v44 = vpop.f32.mrf.mxu3  ;;  %v7298_v56 = vor.u32 %v8663_v25, %v7297_v40  ;;  %v7165_v12 = vld [vmem:[%s13684_s5 + $0x80] sm:$0xf]  ;;  %v7554_v63 = vor.u32 %v8704_v34, %v7553_v7  ;;  %v8701_v59 = vld [vmem:[%s13684_s5 + $0x2c0] sm:$0xf0]  ;;  %v7531_v40 = vld [vmem:[%s13684_s5 + $0x2ac] sm:$0xf0] }
 0x37d   : > { %v3163_v24 = vpop.f32.mrf.mxu1  ;;  %v3141_v10 = vadd.f32 %v3140_v50, %v3118_v31  ;;  %v3121_v19 = vadd.f32 %v3120_v44, %v3098_v18  ;;  %v8740_v50 = vld [vmem:[%s13684_s5 + $0x3f8] sm:$0xf0]  ;;  %v7189_v31 = vld [vmem:[%s13684_s5 + $0xb0] sm:$0xf]  ;;  %v8737_v44 = vld [vmem:[%s13684_s5 + $0x3e0] sm:$0xf0] }
 0x37e   : > { %v7698_v11 = vor.u32 %v8740_v50, %v7697_v14  ;;  %3879 = vmatpush.bf16.msrb.mxu1 %v7306_v28  ;;  %3921 = vmatpush.bf16.msrb.mxu0 %v7310_v5  ;;  %v7190_v30 = vor.u32 %v8636_v46, %v7189_v31  ;;  %v7686_v17 = vor.u32 %v8737_v44, %v7685_v47  ;;  %v8705_v14 = vld [vmem:[%s13684_s5 + $0x2e0] sm:$0xf0]  ;;  %v8700_v50 = vld [vmem:[%s13684_s5 + $0x2bc] sm:$0xf]  ;;  %v7549_v25 = vld [vmem:[%s13684_s5 + $0x2c0] sm:$0xf] }
 0x37f   : > { %4477 = vmatpush.bf16.msra.mxu3 %v7734_v26  ;;  %v3164_v62 = vadd.f32 %v3163_v24, %v3141_v10  ;;  %3838 = vmatpush.bf16.msra.mxu2 %v7290_v32  ;;  %v7567_v10 = vld [vmem:[%s13684_s5 + $0x2f4] sm:$0xf0]  ;;  %v7166_v5 = vor.u32 %v8630_v37, %v7165_v12  ;;  %v8698_v32 = vld [vmem:[%s13684_s5 + $0x2a8] sm:$0xf0]  ;;  %v7141_v31 = vld [vmem:[%s13684_s5 + $0x50] sm:$0xf] }
 0x380   : > { %v7570_v49 = vor.u32 %v8706_v38, %v7567_v10  ;;  %v8624_v46 = vld [vmem:[%s13684_s5 + $0x58] sm:$0xf0]  ;;  %v8695_v38 = vld [vmem:[%s13684_s5 + $0x290] sm:$0xf0]  ;;  %v8694_v10 = vld [vmem:[%s13684_s5 + $0x28c] sm:$0xf] }
 0x381   : > { %v3308_v1 = vmax.f32 %v11161_v43, %v3164_v62  ;;  %v7291_v43 = vld [vmem:[%s13684_s5 + $0x18c] sm:$0xf0]  ;;  %v7674_v62 = vor.u32 %v8734_v35, %v7673_v13  ;;  %v8699_v47 = vld [vmem:[%s13684_s5 + $0x2b0] sm:$0xf0]  ;;  %v8696_v13 = vld [vmem:[%s13684_s5 + $0x298] sm:$0xf0] }
 0x382   : > { %v7294_v45 = vor.u32 %v8661_v21, %v7291_v43  ;;  %3922 = vmatpush.bf16.msrb.mxu0 %v7298_v56  ;;  %v7529_v21 = vld [vmem:[%s13684_s5 + $0x2a0] sm:$0xf]  ;;  %v8697_v43 = vld [vmem:[%s13684_s5 + $0x2a4] sm:$0xf]  ;;  %v8691_v34 = vld [vmem:[%s13684_s5 + $0x274] sm:$0xf] }
 0x383   : > { %4478 = vmatpush.bf16.msra.mxu3 %v7722_v53  ;;  %v8707_v53 = vld [vmem:[%s13684_s5 + $0x2f0] sm:$0xf0]  ;;  %v3314_v6 = vmax.f32 %v3308_v1, 0.0  ;;  %3887 = vmatpush.bf16.msrb.mxu2 %v7190_v30  ;;  %v7153_v1 = vld [vmem:[%s13684_s5 + $0x68] sm:$0xf]  ;;  %v7530_v56 = vor.u32 %v8698_v32, %v7529_v21  ;;  %v7142_v30 = vor.u32 %v8624_v46, %v7141_v31 }
 0x384   : > { %3880 = vmatpush.bf16.msrb.mxu1 %v7294_v45  ;;  %v7566_v54 = vor.u32 %v8707_v53, %v7565_v51  ;;  %v7534_v51 = vor.u32 %v8697_v43, %v7531_v40  ;;  %v7517_v53 = vld [vmem:[%s13684_s5 + $0x288] sm:$0xf]  ;;  %v8618_v12 = vld [vmem:[%s13684_s5 + $0x28] sm:$0xf0]  ;;  %v8685_v21 = vld [vmem:[%s13684_s5 + $0x244] sm:$0xf] }
 0x385   : > { %v3186_v35 = vpop.f32.mrf.mxu2  ;;  %v7483_v32 = vld [vmem:[%s13684_s5 + $0x24c] sm:$0xf0]  ;;  %v7501_v40 = vld [vmem:[%s13684_s5 + $0x260] sm:$0xf]  ;;  %v7489_v46 = vld [vmem:[%s13684_s5 + $0x248] sm:$0xf] }
 0x386   : > { %v3143_v55 = vpop.f32.mrf.mxu0  ;;  %v3166_v26 = vpop.f32.mrf.mxu1 }
 0x387   : > { %4479 = vmatpush.bf16.msra.mxu3 %v7710_v20  ;;  %v3144_v57 = vadd.f32 %v3143_v55, %v3121_v19  ;;  %v7555_v20 = vld [vmem:[%s13684_s5 + $0x2dc] sm:$0xf0]  ;;  %v8708_v19 = vld [vmem:[%s13684_s5 + $0x2f8] sm:$0xf0]  ;;  %v7541_v55 = vld [vmem:[%s13684_s5 + $0x2b8] sm:$0xf]  ;;  %3888 = vmatpush.bf16.msrb.mxu2 %v7178_v8 }
 0x388   : > { %v7574_v52 = vor.u32 %v8708_v19, %v7573_v48  ;;  %v7558_v28 = vor.u32 %v8703_v60, %v7555_v20  ;;  %v8692_v8 = vld [vmem:[%s13684_s5 + $0x278] sm:$0xf0]  ;;  %v7507_v60 = vld [vmem:[%s13684_s5 + $0x27c] sm:$0xf0]  ;;  %v7525_v20 = vld [vmem:[%s13684_s5 + $0x290] sm:$0xf] }
 0x389   : > { %v3167_v22 = vadd.f32 %v3166_v26, %v3144_v57  ;;  %v7561_v57 = vld [vmem:[%s13684_s5 + $0x2d8] sm:$0xf]  ;;  %v7543_v26 = vld [vmem:[%s13684_s5 + $0x2c4] sm:$0xf0]  ;;  %v7526_v48 = vor.u32 %v8696_v13, %v7525_v20  ;;  %v7117_v19 = vld [vmem:[%s13684_s5 + $0x20] sm:$0xf]  ;;  %v7510_v37 = vor.u32 %v8691_v34, %v7507_v60 }
 0x38a   : > { %v7546_v0 = vor.u32 %v8700_v50, %v7543_v26  ;;  %v7105_v26 = vld [vmem:[%s13684_s5 + $0x8] sm:$0xf] }
 0x38b   : > { %4480 = vmatpush.bf16.msra.mxu3 %v7698_v11  ;;  %v3311_v24 = vmax.f32 %v2464_v27, %v3167_v22  ;;  %v7562_v11 = vor.u32 %v8705_v14, %v7561_v57  ;;  %v7542_v27 = vor.u32 %v8701_v59, %v7541_v55  ;;  %v8627_v22 = vld [vmem:[%s13684_s5 + $0x70] sm:$0xf0]  ;;  %3889 = vmatpush.bf16.msrb.mxu2 %v7166_v5  ;;  %v8689_v55 = vld [vmem:[%s13684_s5 + $0x260] sm:$0xf0]  ;;  %v7495_v5 = vld [vmem:[%s13684_s5 + $0x264] sm:$0xf0] }
 0x38c   : > { %v7154_v23 = vor.u32 %v8627_v22, %v7153_v1  ;;  %v7513_v59 = vld [vmem:[%s13684_s5 + $0x278] sm:$0xf]  ;;  %v8693_v57 = vld [vmem:[%s13684_s5 + $0x280] sm:$0xf0] }
 0x38d   : > { %v3317_v42 = vmax.f32 %v3311_v24, 0.0  ;;  %v8702_v24 = vld [vmem:[%s13684_s5 + $0x2c8] sm:$0xf0]  ;;  %v7514_v14 = vor.u32 %v8693_v57, %v7513_v59  ;;  %v7649_v57 = vld [vmem:[%s13684_s5 + $0x390] sm:$0xf] }
 0x38e   : > { %v7550_v45 = vor.u32 %v8702_v24, %v7549_v25  ;;  %v8690_v25 = vld [vmem:[%s13684_s5 + $0x268] sm:$0xf0] }
 0x38f   : > { %v12022_v18 = vpack.c.bf16 %v3317_v42, %v3314_v6  ;;  %4481 = vmatpush.bf16.msra.mxu3 %v7686_v17  ;;  %3890 = vmatpush.bf16.msrb.mxu2 %v7154_v23  ;;  %v7519_v6 = vld [vmem:[%s13684_s5 + $0x294] sm:$0xf0]  ;;  %v7537_v42 = vld [vmem:[%s13684_s5 + $0x2a8] sm:$0xf]  ;;  %v8686_v23 = vld [vmem:[%s13684_s5 + $0x248] sm:$0xf0]  ;;  %v3189_v24 = vpop.f32.mrf.mxu2 }
 0x390   : > { %v7538_v44 = vor.u32 %v8699_v47, %v7537_v42  ;;  %v7129_v17 = vld [vmem:[%s13684_s5 + $0x38] sm:$0xf]  ;;  %v7522_v36 = vor.u32 %v8694_v10, %v7519_v6 }
 0x391   : > { %3825 = vmatmul.bf16.vlgmr.msra.gmra.mxu1 %v12022_v18  ;;  %3867 = vmatmul.bf16.vlgmr.msra.gmra.mxu0 %v12022_v18  ;;  %v7130_v7 = vor.u32 %v8621_v4, %v7129_v17 }
 0x392   : > { %3909 = vmatmul.bf16.vlgmr.msrb.gmra.mxu3 %v12022_v18  ;;  %4447 = vmatpush.bf16.msra.mxu1 %v7566_v54  ;;  %v7518_v54 = vor.u32 %v8695_v38, %v7517_v53 }
 0x393   : > { %4489 = vmatpush.bf16.msra.mxu0 %v7570_v49  ;;  %4482 = vmatpush.bf16.msra.mxu3 %v7674_v62  ;;  %v7505_v49 = vld [vmem:[%s13684_s5 + $0x270] sm:$0xf] }
 0x394   : > { %3891 = vmatpush.bf16.msrb.mxu2 %v7142_v30  ;;  %v7506_v62 = vor.u32 %v8692_v8, %v7505_v49 }
 0x396   : > { %4448 = vmatpush.bf16.msra.mxu1 %v7554_v63  ;;  %v7118_v63 = vor.u32 %v8618_v12, %v7117_v19 }
 0x397   : > { %4531 = vmatpush.bf16.msrb.mxu3 %v7574_v52  ;;  %4490 = vmatpush.bf16.msra.mxu0 %v7558_v28  ;;  %v7493_v52 = vld [vmem:[%s13684_s5 + $0x258] sm:$0xf]  ;;  %v8688_v28 = vld [vmem:[%s13684_s5 + $0x25c] sm:$0xf] }
 0x398   : > { %3892 = vmatpush.bf16.msrb.mxu2 %v7130_v7  ;;  %v7494_v50 = vor.u32 %v8689_v55, %v7493_v52  ;;  %v7498_v1 = vor.u32 %v8688_v28, %v7495_v5 }
 0x39a   : > { %4449 = vmatpush.bf16.msra.mxu1 %v7542_v27  ;;  %v3209_v27 = vpop.f32.mrf.mxu3 }
 0x39b   : > { %4532 = vmatpush.bf16.msrb.mxu3 %v7562_v11  ;;  %4491 = vmatpush.bf16.msra.mxu0 %v7546_v0  ;;  %v8615_v11 = vld [vmem:[%s13684_s5 + $0x10] sm:$0xf0]  ;;  %v7481_v0 = vld [vmem:[%s13684_s5 + $0x240] sm:$0xf]  ;;  %v3210_v6 = vadd.f32 %v3209_v27, %v3186_v35  ;;  %v8729_v27 = vld [vmem:[%s13684_s5 + $0x3a0] sm:$0xf0] }
 0x39c   : > { %3893 = vmatpush.bf16.msrb.mxu2 %v7118_v63  ;;  %v7106_v22 = vor.u32 %v8615_v11, %v7105_v26  ;;  %v7482_v43 = vor.u32 %v8686_v23, %v7481_v0  ;;  %v7651_v26 = vld [vmem:[%s13684_s5 + $0x39c] sm:$0xf0]  ;;  %v7657_v11 = vld [vmem:[%s13684_s5 + $0x398] sm:$0xf]  ;;  %v8045_v0 = vld [vmem:[%s13684_s5 + $0x5e8] sm:$0xf] }
 0x39d   : > { %v8803_v23 = vld [vmem:[%s13684_s5 + $0x5f0] sm:$0xf0] }
 0x39e   : > { %4450 = vmatpush.bf16.msra.mxu1 %v7530_v56  ;;  %v7502_v56 = vor.u32 %v8690_v25, %v7501_v40 }
 0x39f   : > { %4533 = vmatpush.bf16.msrb.mxu3 %v7550_v45  ;;  %4492 = vmatpush.bf16.msra.mxu0 %v7534_v51  ;;  %v7486_v45 = vor.u32 %v8685_v21, %v7483_v32  ;;  %v8687_v51 = vld [vmem:[%s13684_s5 + $0x250] sm:$0xf0]  ;;  %v7637_v21 = vld [vmem:[%s13684_s5 + $0x378] sm:$0xf] }
 0x3a0   : > { %3894 = vmatpush.bf16.msrb.mxu2 %v7106_v22  ;;  %v3232_v31 = vpop.f32.mrf.mxu0  ;;  %v7490_v30 = vor.u32 %v8687_v51, %v7489_v46  ;;  %v8726_v46 = vld [vmem:[%s13684_s5 + $0x388] sm:$0xf0] }
 0x3a1   : > { %v3255_v38 = vpop.f32.mrf.mxu1  ;;  %v3233_v42 = vadd.f32 %v3232_v31, %v3210_v6  ;;  %v7645_v31 = vld [vmem:[%s13684_s5 + $0x380] sm:$0xf]  ;;  %v4042_v6 = vshll.u32 %v11714_v39, 16 }
 0x3a2   : > { %4451 = vmatpush.bf16.msra.mxu1 %v7518_v54  ;;  %v3212_v53 = vpop.f32.mrf.mxu3 }
 0x3a3   : > { %4534 = vmatpush.bf16.msrb.mxu3 %v7538_v44  ;;  %4493 = vmatpush.bf16.msra.mxu0 %v7522_v36  ;;  %v2510_v44 = vadd.f32 %v11547_v15, %v11525_v29  ;;  %v3213_v54 = vadd.f32 %v3212_v53, %v3189_v24  ;;  %v2553_v36 = vadd.f32 %v11537_v2, %v11251_v33  ;;  %v8725_v24 = vld [vmem:[%s13684_s5 + $0x380] sm:$0xf0] }
 0x3a4   : > { %v3256_v7 = vadd.f32 %v3255_v38, %v3233_v42  ;;  %v7638_v53 = vor.u32 %v8725_v24, %v7637_v21  ;;  %v8033_v38 = vld [vmem:[%s13684_s5 + $0x5d0] sm:$0xf]  ;;  %v4049_v21 = vshll.u32 %v12022_v18, 16 }
 0x3a5   : > { %v2533_v4 = vadd.f32 %v11549_v61, %v2510_v44  ;;  %v2576_v8 = vadd.f32 %v11560_v58, %v2553_v36  ;;  %v7661_v58 = vld [vmem:[%s13684_s5 + $0x3a8] sm:$0xf]  ;;  %v7625_v44 = vld [vmem:[%s13684_s5 + $0x360] sm:$0xf] }
 0x3a6   : > { %4452 = vmatpush.bf16.msra.mxu1 %v7506_v62  ;;  %v7633_v36 = vld [vmem:[%s13684_s5 + $0x368] sm:$0xf] }
 0x3a7   : > { %4535 = vmatpush.bf16.msrb.mxu3 %v7526_v48  ;;  %4494 = vmatpush.bf16.msra.mxu0 %v7510_v37  ;;  %v2556_v34 = vadd.f32 %v11577_v3, %v2533_v4  ;;  %v2599_v15 = vadd.f32 %v11586_v16, %v2576_v8  ;;  %v8731_v3 = vld [vmem:[%s13684_s5 + $0x3b0] sm:$0xf0]  ;;  %v7663_v16 = vld [vmem:[%s13684_s5 + $0x3b4] sm:$0xf0]  ;;  %v8732_v37 = vld [vmem:[%s13684_s5 + $0x3b8] sm:$0xf0] }
 0x3a8   : > { %v3278_v10 = vpop.f32.mrf.mxu2  ;;  %v3235_v47 = vpop.f32.mrf.mxu0  ;;  %v7662_v55 = vor.u32 %v8731_v3, %v7661_v58  ;;  %v7627_v4 = vld [vmem:[%s13684_s5 + $0x36c] sm:$0xf0]  ;;  %v8009_v58 = vld [vmem:[%s13684_s5 + $0x5a0] sm:$0xf]  ;;  %v8794_v3 = vld [vmem:[%s13684_s5 + $0x5a8] sm:$0xf0] }
 0x3a9   : > { %v3236_v49 = vadd.f32 %v3235_v47, %v3213_v54  ;;  %v3279_v60 = vadd.f32 %v3278_v10, %v3256_v7  ;;  %v3258_v20 = vpop.f32.mrf.mxu1  ;;  %v2579_v35 = vadd.f32 %v11594_v41, %v2556_v34  ;;  %v8730_v41 = vld [vmem:[%s13684_s5 + $0x3ac] sm:$0xf]  ;;  %v8800_v10 = vld [vmem:[%s13684_s5 + $0x5d8] sm:$0xf0]  ;;  %v7646_v47 = vor.u32 %v8726_v46, %v7645_v31  ;;  %v8723_v7 = vld [vmem:[%s13684_s5 + $0x370] sm:$0xf0] }
 0x3aa   : > { %4453 = vmatpush.bf16.msra.mxu1 %v7494_v50  ;;  %v7666_v5 = vor.u32 %v8730_v41, %v7663_v16  ;;  %v8727_v50 = vld [vmem:[%s13684_s5 + $0x394] sm:$0xf]  ;;  %v8722_v54 = vld [vmem:[%s13684_s5 + $0x368] sm:$0xf0]  ;;  %v8021_v34 = vld [vmem:[%s13684_s5 + $0x5b8] sm:$0xf] }
 0x3ab   : > { %4536 = vmatpush.bf16.msrb.mxu3 %v7514_v14  ;;  %4495 = vmatpush.bf16.msra.mxu0 %v7498_v1  ;;  %v3259_v48 = vadd.f32 %v3258_v20, %v3236_v49  ;;  %v2602_v19 = vadd.f32 %v11621_v9, %v2579_v35  ;;  %v7669_v9 = vld [vmem:[%s13684_s5 + $0x3b0] sm:$0xf]  ;;  %v8728_v14 = vld [vmem:[%s13684_s5 + $0x398] sm:$0xf0]  ;;  %v7654_v32 = vor.u32 %v8727_v50, %v7651_v26  ;;  %v7613_v35 = vld [vmem:[%s13684_s5 + $0x348] sm:$0xf] }
 0x3ac   : > { %v7670_v59 = vor.u32 %v8732_v37, %v7669_v9  ;;  %v7650_v22 = vor.u32 %v8728_v14, %v7649_v57  ;;  %v8034_v49 = vor.u32 %v8800_v10, %v8033_v38  ;;  %v7626_v8 = vor.u32 %v8722_v54, %v7625_v44  ;;  %v7601_v16 = vld [vmem:[%s13684_s5 + $0x330] sm:$0xf]  ;;  %v8716_v9 = vld [vmem:[%s13684_s5 + $0x338] sm:$0xf0]  ;;  %v8717_v57 = vld [vmem:[%s13684_s5 + $0x340] sm:$0xf0] }
 0x3ad   : > { %v7602_v14 = vor.u32 %v8716_v9, %v7601_v16  ;;  %v7997_v50 = vld [vmem:[%s13684_s5 + $0x588] sm:$0xf]  ;;  %v8791_v26 = vld [vmem:[%s13684_s5 + $0x590] sm:$0xf0]  ;;  %v8710_v31 = vld [vmem:[%s13684_s5 + $0x308] sm:$0xf0] }
 0x3ae   : > { %4454 = vmatpush.bf16.msra.mxu1 %v7482_v43  ;;  %v7658_v43 = vor.u32 %v8729_v27, %v7657_v11  ;;  %v7589_v27 = vld [vmem:[%s13684_s5 + $0x318] sm:$0xf]  ;;  %v7585_v38 = vld [vmem:[%s13684_s5 + $0x308] sm:$0xf]  ;;  %v7765_v54 = vld [vmem:[%s13684_s5 + $0x470] sm:$0xf] }
 0x3af   : > { %4537 = vmatpush.bf16.msrb.mxu3 %v7502_v56  ;;  %4496 = vmatpush.bf16.msra.mxu0 %v7486_v45  ;;  %v8724_v45 = vld [vmem:[%s13684_s5 + $0x37c] sm:$0xf]  ;;  %v7639_v56 = vld [vmem:[%s13684_s5 + $0x384] sm:$0xf0]  ;;  %v8826_v16 = vld [vmem:[%s13684_s5 + $0x6ac] sm:$0xf] }
 0x3b0   : > { %v3281_v13 = vpop.f32.mrf.mxu2  ;;  %v7642_v42 = vor.u32 %v8724_v45, %v7639_v56  ;;  %v8788_v45 = vld [vmem:[%s13684_s5 + $0x578] sm:$0xf0]  ;;  %v7577_v56 = vld [vmem:[%s13684_s5 + $0x300] sm:$0xf]  ;;  %v8143_v9 = vld [vmem:[%s13684_s5 + $0x6b4] sm:$0xf0] }
 0x3b1   : > { %v3282_v62 = vadd.f32 %v3281_v13, %v3259_v48  ;;  %v7634_v13 = vor.u32 %v8723_v7, %v7633_v36  ;;  %v8719_v48 = vld [vmem:[%s13684_s5 + $0x350] sm:$0xf0]  ;;  %v7578_v36 = vor.u32 %v8710_v31, %v7577_v56  ;;  %v8818_v56 = vld [vmem:[%s13684_s5 + $0x668] sm:$0xf0] }
 0x3b2   : > { %v8827_v7 = vld [vmem:[%s13684_s5 + $0x6b0] sm:$0xf0] }
 0x3b3   : > { %4538 = vmatpush.bf16.msrb.mxu3 %v7490_v30  ;;  %v8046_v30 = vor.u32 %v8803_v23, %v8045_v0  ;;  %v8712_v0 = vld [vmem:[%s13684_s5 + $0x31c] sm:$0xf]  ;;  %v7591_v23 = vld [vmem:[%s13684_s5 + $0x324] sm:$0xf0] }
 0x3b4   : > { %v7594_v46 = vor.u32 %v8712_v0, %v7591_v23  ;;  %v8745_v23 = vld [vmem:[%s13684_s5 + $0x424] sm:$0xf] }
 0x3b9   : > { %v3301_v17 = vpop.f32.mrf.mxu3 }
 0x3ba   : > { %v3302_v29 = vadd.f32 %v3301_v17, %v3279_v60  ;;  %v8721_v17 = vld [vmem:[%s13684_s5 + $0x364] sm:$0xf] }
 0x3bb   : > { %v8797_v60 = vld [vmem:[%s13684_s5 + $0x5c0] sm:$0xf0]  ;;  %v7630_v20 = vor.u32 %v8721_v17, %v7627_v4  ;;  %v8756_v17 = vld [vmem:[%s13684_s5 + $0x478] sm:$0xf0]  ;;  %v8141_v4 = vld [vmem:[%s13684_s5 + $0x6a8] sm:$0xf] }
 0x3bc   : > { %v3309_v33 = vmax.f32 %v2599_v15, %v3302_v29  ;;  %v4044_v29 = vrot.slane %v4042_v6, 1  ;;  %v8718_v15 = vld [vmem:[%s13684_s5 + $0x34c] sm:$0xf]  ;;  %v8711_v6 = vld [vmem:[%s13684_s5 + $0x310] sm:$0xf0] }
 0x3be   : > { %v3315_v63 = vmax.f32 %v3309_v33, 0.0  ;;  %v8720_v33 = vld [vmem:[%s13684_s5 + $0x358] sm:$0xf0] }
 0x3c1   : > { %v3304_v61 = vpop.f32.mrf.mxu3 }
 0x3c2   : > { %v3305_v2 = vadd.f32 %v3304_v61, %v3282_v62  ;;  %v7615_v62 = vld [vmem:[%s13684_s5 + $0x354] sm:$0xf0]  ;;  %v8022_v61 = vor.u32 %v8797_v60, %v8021_v34 }
 0x3c3   : > { %v7618_v41 = vor.u32 %v8718_v15, %v7615_v62  ;;  %v7747_v15 = vld [vmem:[%s13684_s5 + $0x45c] sm:$0xf0]  ;;  %v8142_v62 = vor.u32 %v8827_v7, %v8141_v4  ;;  %v8817_v4 = vld [vmem:[%s13684_s5 + $0x664] sm:$0xf] }
 0x3c4   : > { %v3312_v12 = vmax.f32 %v2602_v19, %v3305_v2  ;;  %v7621_v19 = vld [vmem:[%s13684_s5 + $0x350] sm:$0xf]  ;;  %v4040_v2 = vshrl.u32 %v11714_v39, 16 }
 0x3c6   : > { %v3318_v52 = vmax.f32 %v3312_v12, 0.0  ;;  %v7614_v12 = vor.u32 %v8719_v48, %v7613_v35  ;;  %v4045_v37 = vor.u32 %v4044_v29, %v4040_v2  ;;  %v4047_v35 = vshrl.u32 %v12022_v18, 16  ;;  %v8751_v29 = vld [vmem:[%s13684_s5 + $0x454] sm:$0xf]  ;;  %v8129_v2 = vld [vmem:[%s13684_s5 + $0x690] sm:$0xf] }
 0x3c7   : > { %v4051_v48 = vrot.slane %v4049_v21, 1  ;;  %v7723_v21 = vld [vmem:[%s13684_s5 + $0x42c] sm:$0xf0] }
 0x3c8   : > { %v12226_v28 = vpack.c.bf16 %v3318_v52, %v3315_v63  ;;  %v7622_v63 = vor.u32 %v8720_v33, %v7621_v19  ;;  %v8715_v52 = vld [vmem:[%s13684_s5 + $0x334] sm:$0xf]  ;;  %v7753_v19 = vld [vmem:[%s13684_s5 + $0x458] sm:$0xf]  ;;  %v8753_v33 = vld [vmem:[%s13684_s5 + $0x460] sm:$0xf0]  ;;  %v7726_v31 = vor.u32 %v8745_v23, %v7723_v21 }
 0x3c9   : > { %v7951_v23 = vld [vmem:[%s13684_s5 + $0x534] sm:$0xf0]  ;;  %v7957_v21 = vld [vmem:[%s13684_s5 + $0x530] sm:$0xf] }
 0x3ca   : > { %3839 = vmatmul.bf16.vlgmr.msra.gmra.mxu2 %v12226_v28  ;;  %3881 = vmatmul.bf16.vlgmr.msrb.gmra.mxu1 %v12226_v28  ;;  %v4056_v1 = vshll.u32 %v12226_v28, 16  ;;  %v4054_v40 = vshrl.u32 %v12226_v28, 16 }
 0x3cb   : > { %3923 = vmatmul.bf16.vlgmr.msrb.gmra.mxu0 %v12226_v28  ;;  %4461 = vmatpush.bf16.msra.mxu2 %v7662_v55  ;;  %v7603_v55 = vld [vmem:[%s13684_s5 + $0x33c] sm:$0xf0] }
 0x3cc   : > { %4503 = vmatpush.bf16.msrb.mxu1 %v7666_v5  ;;  %4545 = vmatpush.bf16.msrb.mxu0 %v7670_v59  ;;  %v4058_v25 = vrot.slane %v4056_v1, 1  ;;  %v8010_v5 = vor.u32 %v8794_v3, %v8009_v58  ;;  %v7609_v59 = vld [vmem:[%s13684_s5 + $0x338] sm:$0xf]  ;;  %v7606_v11 = vor.u32 %v8715_v52, %v7603_v55  ;;  %v8713_v1 = vld [vmem:[%s13684_s5 + $0x320] sm:$0xf0] }
 0x3cd   : > { %v7590_v24 = vor.u32 %v8713_v1, %v7589_v27  ;;  %v7961_v58 = vld [vmem:[%s13684_s5 + $0x540] sm:$0xf]  ;;  %v8782_v3 = vld [vmem:[%s13684_s5 + $0x548] sm:$0xf0]  ;;  %v8748_v52 = vld [vmem:[%s13684_s5 + $0x43c] sm:$0xf] }
 0x3ce   : > { %v12275_v51 = vor.u32 %v4058_v25, %v4054_v40  ;;  %v8714_v40 = vld [vmem:[%s13684_s5 + $0x328] sm:$0xf0]  ;;  %v7985_v25 = vld [vmem:[%s13684_s5 + $0x570] sm:$0xf]  ;;  %v7735_v55 = vld [vmem:[%s13684_s5 + $0x444] sm:$0xf0] }
 0x3cf   : > { %4462 = vmatpush.bf16.msra.mxu2 %v7650_v22  ;;  %v7610_v22 = vor.u32 %v8717_v57, %v7609_v59  ;;  %v7986_v44 = vor.u32 %v8788_v45, %v7985_v25  ;;  %v7962_v59 = vor.u32 %v8782_v3, %v7961_v58  ;;  %v7741_v57 = vld [vmem:[%s13684_s5 + $0x440] sm:$0xf]  ;;  %v7738_v27 = vor.u32 %v8748_v52, %v7735_v55  ;;  %v8823_v1 = vld [vmem:[%s13684_s5 + $0x694] sm:$0xf]  ;;  %v8738_v58 = vld [vmem:[%s13684_s5 + $0x3e8] sm:$0xf0] }
 0x3d0   : > { %4504 = vmatpush.bf16.msrb.mxu1 %v7654_v32  ;;  %4546 = vmatpush.bf16.msrb.mxu0 %v7658_v43  ;;  %v7998_v32 = vor.u32 %v8791_v26, %v7997_v50  ;;  %v7597_v43 = vld [vmem:[%s13684_s5 + $0x320] sm:$0xf]  ;;  %v8146_v50 = vor.u32 %v8826_v16, %v8143_v9  ;;  %v8117_v26 = vld [vmem:[%s13684_s5 + $0x678] sm:$0xf]  ;;  %v12494_v25 = vrot.slane %v12022_v18, 1 }
 0x3d1   : > { %4483 = vmatmul.bf16.vlgmr.msra.gmra.mxu3 %v12275_v51  ;;  %v7598_v10 = vor.u32 %v8714_v40, %v7597_v43  ;;  %v7729_v43 = vld [vmem:[%s13684_s5 + $0x428] sm:$0xf]  ;;  %v8747_v40 = vld [vmem:[%s13684_s5 + $0x430] sm:$0xf0]  ;;  %v8105_v45 = vld [vmem:[%s13684_s5 + $0x660] sm:$0xf] }
 0x3d2   : > { %5083 = vmatpush.bf16.msra.mxu3 %v8046_v30  ;;  %v8709_v30 = vld [vmem:[%s13684_s5 + $0x304] sm:$0xf]  ;;  %v8119_v18 = vld [vmem:[%s13684_s5 + $0x684] sm:$0xf0]  ;;  %v8811_v9 = vld [vmem:[%s13684_s5 + $0x634] sm:$0xf] }
 0x3d3   : > { %4463 = vmatpush.bf16.msra.mxu2 %v7638_v53  ;;  %v7579_v53 = vld [vmem:[%s13684_s5 + $0x30c] sm:$0xf0]  ;;  %v8809_v16 = vld [vmem:[%s13684_s5 + $0x620] sm:$0xf0]  ;;  %v8083_v52 = vld [vmem:[%s13684_s5 + $0x63c] sm:$0xf0] }
 0x3d4   : > { %4505 = vmatpush.bf16.msrb.mxu1 %v7642_v42  ;;  %4547 = vmatpush.bf16.msrb.mxu0 %v7646_v47  ;;  %v8754_v42 = vld [vmem:[%s13684_s5 + $0x46c] sm:$0xf]  ;;  %v7759_v47 = vld [vmem:[%s13684_s5 + $0x474] sm:$0xf0]  ;;  %v7582_v34 = vor.u32 %v8709_v30, %v7579_v53  ;;  %v7730_v30 = vor.u32 %v8747_v40, %v7729_v43  ;;  %v8733_v55 = vld [vmem:[%s13684_s5 + $0x3c4] sm:$0xf] }
 0x3d5   : > { %v7762_v60 = vor.u32 %v8754_v42, %v7759_v47  ;;  %v8742_v53 = vld [vmem:[%s13684_s5 + $0x40c] sm:$0xf]  ;;  %v8744_v42 = vld [vmem:[%s13684_s5 + $0x418] sm:$0xf0] }
 0x3d6   : > { %5084 = vmatpush.bf16.msra.mxu3 %v8034_v49  ;;  %v7973_v49 = vld [vmem:[%s13684_s5 + $0x558] sm:$0xf]  ;;  %v8780_v43 = vld [vmem:[%s13684_s5 + $0x538] sm:$0xf0] }
 0x3d7   : > { %4464 = vmatpush.bf16.msra.mxu2 %v7626_v8  ;;  %v8785_v8 = vld [vmem:[%s13684_s5 + $0x560] sm:$0xf0]  ;;  %v8808_v40 = vld [vmem:[%s13684_s5 + $0x61c] sm:$0xf] }
 0x3d8   : > { %4506 = vmatpush.bf16.msrb.mxu1 %v7630_v20  ;;  %4548 = vmatpush.bf16.msrb.mxu0 %v7634_v13  ;;  %v7586_v20 = vor.u32 %v8711_v6, %v7585_v38  ;;  %v7766_v13 = vor.u32 %v8756_v17, %v7765_v54  ;;  %v7711_v38 = vld [vmem:[%s13684_s5 + $0x414] sm:$0xf0]  ;;  %v7717_v6 = vld [vmem:[%s13684_s5 + $0x410] sm:$0xf]  ;;  %v8815_v54 = vld [vmem:[%s13684_s5 + $0x650] sm:$0xf0] }
 0x3d9   : > { %v7714_v17 = vor.u32 %v8742_v53, %v7711_v38  ;;  %v7718_v7 = vor.u32 %v8744_v42, %v7717_v6  ;;  %v7958_v53 = vor.u32 %v8780_v43, %v7957_v21  ;;  %v7939_v6 = vld [vmem:[%s13684_s5 + $0x51c] sm:$0xf0]  ;;  %v7945_v42 = vld [vmem:[%s13684_s5 + $0x518] sm:$0xf] }
 0x3da   : > { %5085 = vmatpush.bf16.msra.mxu3 %v8022_v61  ;;  %3895 = vmatmul.bf16.vlgmr.msrb.gmra.mxu2 %v11714_v39  ;;  %v7974_v61 = vor.u32 %v8785_v8, %v7973_v49  ;;  %v8739_v49 = vld [vmem:[%s13684_s5 + $0x3f4] sm:$0xf]  ;;  %v7699_v8 = vld [vmem:[%s13684_s5 + $0x3fc] sm:$0xf0] }
 0x3db   : > { %4455 = vmatmul.bf16.vlgmr.msra.gmra.mxu1 %v4045_v37  ;;  %4465 = vmatpush.bf16.msra.mxu2 %v7614_v12  ;;  %v8824_v12 = vld [vmem:[%s13684_s5 + $0x698] sm:$0xf0] }
 0x3dc   : > { %4497 = vmatmul.bf16.vlgmr.msra.gmra.mxu0 %v4045_v37  ;;  %4507 = vmatpush.bf16.msrb.mxu1 %v7618_v41  ;;  %v7750_v41 = vor.u32 %v8751_v29, %v7747_v15  ;;  %v7702_v29 = vor.u32 %v8739_v49, %v7699_v8  ;;  %v8814_v15 = vld [vmem:[%s13684_s5 + $0x64c] sm:$0xf]  ;;  %v8773_v49 = vld [vmem:[%s13684_s5 + $0x500] sm:$0xf0]  ;;  %v12658_v8 = vrot.slane %v12226_v28, 1 }
 0x3dd   : > { %4549 = vmatpush.bf16.msrb.mxu0 %v7622_v63  ;;  %v7754_v63 = vor.u32 %v8753_v33, %v7753_v19  ;;  %v8736_v19 = vld [vmem:[%s13684_s5 + $0x3dc] sm:$0xf]  ;;  %v7687_v33 = vld [vmem:[%s13684_s5 + $0x3e4] sm:$0xf0]  ;;  %v8774_v28 = vld [vmem:[%s13684_s5 + $0x508] sm:$0xf0] }
 0x3de   : > { %5086 = vmatpush.bf16.msra.mxu3 %v8010_v5  ;;  %v8130_v5 = vor.u32 %v8824_v12, %v8129_v2  ;;  %v7693_v12 = vld [vmem:[%s13684_s5 + $0x3e0] sm:$0xf] }
 0x3df   : > { %4466 = vmatpush.bf16.msra.mxu2 %v7602_v14  ;;  %v8750_v14 = vld [vmem:[%s13684_s5 + $0x448] sm:$0xf0] }
 0x3e0   : > { %4508 = vmatpush.bf16.msrb.mxu1 %v7606_v11  ;;  %v8821_v11 = vld [vmem:[%s13684_s5 + $0x680] sm:$0xf0]  ;;  %v7742_v0 = vor.u32 %v8750_v14, %v7741_v57  ;;  %v7681_v57 = vld [vmem:[%s13684_s5 + $0x3c8] sm:$0xf]  ;;  %v8735_v14 = vld [vmem:[%s13684_s5 + $0x3d0] sm:$0xf0] }
 0x3e1   : > { %4550 = vmatpush.bf16.msrb.mxu0 %v7610_v22  ;;  %4539 = vmatmul.bf16.vlgmr.msrb.gmra.mxu3 %v4045_v37  ;;  %v4052_v37 = vor.u32 %v4051_v48, %v4047_v35  ;;  %v8131_v22 = vld [vmem:[%s13684_s5 + $0x69c] sm:$0xf0]  ;;  %v8081_v35 = vld [vmem:[%s13684_s5 + $0x630] sm:$0xf]  ;;  %v8812_v48 = vld [vmem:[%s13684_s5 + $0x638] sm:$0xf0] }
 0x3e2   : > { %5087 = vmatpush.bf16.msra.mxu3 %v7998_v32  ;;  %v8118_v32 = vor.u32 %v8821_v11, %v8117_v26  ;;  %v8082_v2 = vor.u32 %v8812_v48, %v8081_v35  ;;  %v8806_v11 = vld [vmem:[%s13684_s5 + $0x608] sm:$0xf0]  ;;  %v7933_v35 = vld [vmem:[%s13684_s5 + $0x500] sm:$0xf] }
 0x3e3   : > { %4467 = vmatpush.bf16.msra.mxu2 %v7590_v24  ;;  %v8134_v24 = vor.u32 %v8823_v1, %v8131_v22  ;;  %v8779_v1 = vld [vmem:[%s13684_s5 + $0x530] sm:$0xf0]  ;;  %v8086_v22 = vor.u32 %v8811_v9, %v8083_v52  ;;  %v8766_v52 = vld [vmem:[%s13684_s5 + $0x4cc] sm:$0xf] }
 0x3e4   : > { %4509 = vmatpush.bf16.msrb.mxu1 %v7594_v46  ;;  %v8820_v46 = vld [vmem:[%s13684_s5 + $0x67c] sm:$0xf]  ;;  %v8767_v9 = vld [vmem:[%s13684_s5 + $0x4d0] sm:$0xf0] }
 0x3e5   : > { %4551 = vmatpush.bf16.msrb.mxu0 %v7598_v10  ;;  %v8106_v10 = vor.u32 %v8818_v56, %v8105_v45  ;;  %v8122_v47 = vor.u32 %v8820_v46, %v8119_v18  ;;  %v7682_v45 = vor.u32 %v8735_v14, %v7681_v57  ;;  %v7937_v18 = vld [vmem:[%s13684_s5 + $0x510] sm:$0xf] }
 0x3e6   : > { %5088 = vmatpush.bf16.msra.mxu3 %v7986_v44  ;;  %v8093_v44 = vld [vmem:[%s13684_s5 + $0x648] sm:$0xf] }
 0x3e7   : > { %4468 = vmatpush.bf16.msra.mxu2 %v7578_v36  ;;  %v8107_v36 = vld [vmem:[%s13684_s5 + $0x66c] sm:$0xf0] }
 0x3e8   : > { %4510 = vmatpush.bf16.msrb.mxu1 %v7582_v34  ;;  %v8094_v34 = vor.u32 %v8815_v54, %v8093_v44  ;;  %v8805_v44 = vld [vmem:[%s13684_s5 + $0x604] sm:$0xf]  ;;  %v8059_v54 = vld [vmem:[%s13684_s5 + $0x60c] sm:$0xf0] }
 0x3e9   : > { %4552 = vmatpush.bf16.msrb.mxu0 %v7586_v20  ;;  %v8741_v20 = vld [vmem:[%s13684_s5 + $0x400] sm:$0xf0] }
 0x3ea   : > { %5089 = vmatpush.bf16.msra.mxu3 %v7974_v61  ;;  %4469 = vmatmul.bf16.vlgmr.msra.gmra.mxu2 %v4052_v37 }
 0x3eb   : > { %4517 = vmatpush.bf16.msrb.mxu2 %v7762_v60  ;;  %4511 = vmatmul.bf16.vlgmr.msrb.gmra.mxu1 %v4052_v37  ;;  %v7705_v60 = vld [vmem:[%s13684_s5 + $0x3f8] sm:$0xf] }
 0x3ec   : > { %4559 = vmatpush.bf16.msra.mxu1 %v7766_v13  ;;  %4553 = vmatmul.bf16.vlgmr.msrb.gmra.mxu0 %v4052_v37  ;;  %v8110_v13 = vor.u32 %v8817_v4, %v8107_v36  ;;  %v7706_v61 = vor.u32 %v8741_v20, %v7705_v60  ;;  %v12578_v37 = vpop.f32.mrf.mxu0  ;;  %v8062_v60 = vor.u32 %v8805_v44, %v8059_v54  ;;  %v8772_v20 = vld [vmem:[%s13684_s5 + $0x4fc] sm:$0xf]  ;;  %v7873_v54 = vld [vmem:[%s13684_s5 + $0x488] sm:$0xf] }
 0x3ed   : > { %5097 = vmatpush.bf16.msra.mxu0 %v8142_v62  ;;  %v8095_v62 = vld [vmem:[%s13684_s5 + $0x654] sm:$0xf0] }
 0x3ee   : > { %5090 = vmatpush.bf16.msra.mxu3 %v7962_v59  ;;  %v8098_v3 = vor.u32 %v8814_v15, %v8095_v62  ;;  %v7694_v59 = vor.u32 %v8738_v58, %v7693_v12  ;;  %v7913_v15 = vld [vmem:[%s13684_s5 + $0x4e0] sm:$0xf]  ;;  %v7934_v62 = vor.u32 %v8774_v28, %v7933_v35  ;;  %v8771_v12 = vld [vmem:[%s13684_s5 + $0x4f0] sm:$0xf0] }
 0x3ef   : > { %4518 = vmatpush.bf16.msrb.mxu2 %v7750_v41  ;;  %v8069_v41 = vld [vmem:[%s13684_s5 + $0x618] sm:$0xf] }
 0x3f0   : > { %4560 = vmatpush.bf16.msra.mxu1 %v7754_v63  ;;  %v7690_v63 = vor.u32 %v8736_v19, %v7687_v33  ;;  %v8070_v26 = vor.u32 %v8809_v16, %v8069_v41  ;;  %v7915_v19 = vld [vmem:[%s13684_s5 + $0x4ec] sm:$0xf0]  ;;  %v12687_v33 = vpop.f32.mrf.mxu3  ;;  %v7901_v16 = vld [vmem:[%s13684_s5 + $0x4c8] sm:$0xf] }
 0x3f1   : > { %5098 = vmatpush.bf16.msra.mxu0 %v8130_v5  ;;  %5091 = vmatmul.bf16.vlgmr.msra.gmra.mxu3 %v12494_v25  ;;  %v7675_v5 = vld [vmem:[%s13684_s5 + $0x3cc] sm:$0xf0]  ;;  %v7902_v57 = vor.u32 %v8767_v9, %v7901_v16  ;;  %v8793_v9 = vld [vmem:[%s13684_s5 + $0x5a4] sm:$0xf] }
 0x3f2   : > { %5139 = vmatpush.bf16.msrb.mxu3 %v8146_v50  ;;  %v8057_v50 = vld [vmem:[%s13684_s5 + $0x600] sm:$0xf] }
 0x3f3   : > { %4519 = vmatpush.bf16.msrb.mxu2 %v7738_v27  ;;  %v7949_v27 = vld [vmem:[%s13684_s5 + $0x528] sm:$0xf] }
 0x3f4   : > { %4561 = vmatpush.bf16.msra.mxu1 %v7742_v0  ;;  %v8778_v0 = vld [vmem:[%s13684_s5 + $0x52c] sm:$0xf]  ;;  %v7950_v56 = vor.u32 %v8779_v1, %v7949_v27  ;;  %v12649_v4 = vpop.f32.mrf.mxu0  ;;  %v8763_v27 = vld [vmem:[%s13684_s5 + $0x4b4] sm:$0xf]  ;;  %v7891_v1 = vld [vmem:[%s13684_s5 + $0x4bc] sm:$0xf0] }
 0x3f5   : > { %5099 = vmatpush.bf16.msra.mxu0 %v8118_v32  ;;  %v7678_v32 = vor.u32 %v8733_v55, %v7675_v5  ;;  %v7954_v46 = vor.u32 %v8778_v0, %v7951_v23  ;;  %v7903_v55 = vld [vmem:[%s13684_s5 + $0x4d4] sm:$0xf0]  ;;  %v7909_v5 = vld [vmem:[%s13684_s5 + $0x4d0] sm:$0xf]  ;;  %v8765_v0 = vld [vmem:[%s13684_s5 + $0x4c0] sm:$0xf0] }
 0x3f6   : > { %5140 = vmatpush.bf16.msrb.mxu3 %v8134_v24  ;;  %v8071_v24 = vld [vmem:[%s13684_s5 + $0x624] sm:$0xf0]  ;;  %v7906_v14 = vor.u32 %v8766_v52, %v7903_v55  ;;  %v8795_v55 = vld [vmem:[%s13684_s5 + $0x5b0] sm:$0xf0] }
 0x3f7   : > { %4520 = vmatpush.bf16.msrb.mxu2 %v7726_v31  ;;  %v8058_v31 = vor.u32 %v8806_v11, %v8057_v50  ;;  %v8074_v38 = vor.u32 %v8808_v40, %v8071_v24  ;;  %v7889_v50 = vld [vmem:[%s13684_s5 + $0x4b0] sm:$0xf]  ;;  %v7877_v40 = vld [vmem:[%s13684_s5 + $0x498] sm:$0xf]  ;;  %v8761_v24 = vld [vmem:[%s13684_s5 + $0x4a0] sm:$0xf0] }
 0x3f8   : > { %4562 = vmatpush.bf16.msra.mxu1 %v7730_v30  ;;  %v8776_v30 = vld [vmem:[%s13684_s5 + $0x518] sm:$0xf0]  ;;  %v3856_v21 = vpop.f32.mrf.mxu3  ;;  %v8017_v52 = vld [vmem:[%s13684_s5 + $0x5a8] sm:$0xf] }
 0x3f9   : > { %5100 = vmatpush.bf16.msra.mxu0 %v8106_v10  ;;  %v8775_v10 = vld [vmem:[%s13684_s5 + $0x514] sm:$0xf] }
 0x3fa   : > { %5141 = vmatpush.bf16.msrb.mxu3 %v8122_v47  ;;  %v8777_v47 = vld [vmem:[%s13684_s5 + $0x520] sm:$0xf0]  ;;  %v7942_v36 = vor.u32 %v8775_v10, %v7939_v6  ;;  %v8758_v6 = vld [vmem:[%s13684_s5 + $0x488] sm:$0xf0] }
 0x3fb   : > { %4521 = vmatpush.bf16.msrb.mxu2 %v7714_v17  ;;  %v7938_v17 = vor.u32 %v8776_v30, %v7937_v18  ;;  %v7885_v18 = vld [vmem:[%s13684_s5 + $0x4a0] sm:$0xf]  ;;  %v8762_v30 = vld [vmem:[%s13684_s5 + $0x4a8] sm:$0xf0] }
 0x3fc   : > { %4563 = vmatpush.bf16.msra.mxu1 %v7718_v7  ;;  %v7925_v7 = vld [vmem:[%s13684_s5 + $0x4f8] sm:$0xf]  ;;  %v7886_v44 = vor.u32 %v8762_v30, %v7885_v18  ;;  %v8781_v30 = vld [vmem:[%s13684_s5 + $0x544] sm:$0xf] }
 0x3fd   : > { %5101 = vmatpush.bf16.msra.mxu0 %v8094_v34  ;;  %v7946_v34 = vor.u32 %v8777_v47, %v7945_v42  ;;  %v7926_v48 = vor.u32 %v8773_v49, %v7925_v7  ;;  %v8757_v42 = vld [vmem:[%s13684_s5 + $0x484] sm:$0xf]  ;;  %v7867_v47 = vld [vmem:[%s13684_s5 + $0x48c] sm:$0xf0]  ;;  %v8759_v7 = vld [vmem:[%s13684_s5 + $0x490] sm:$0xf0] }
 0x3fe   : > { %5142 = vmatpush.bf16.msrb.mxu3 %v8110_v13  ;;  %v7927_v13 = vld [vmem:[%s13684_s5 + $0x504] sm:$0xf0]  ;;  %v8053_v49 = vld [vmem:[%s13684_s5 + $0x5f0] sm:$0xf]  ;;  %v7874_v35 = vor.u32 %v8759_v7, %v7873_v54 }
 0x3ff   : > { %4522 = vmatpush.bf16.msrb.mxu2 %v7702_v29  ;;  %v7930_v29 = vor.u32 %v8772_v20, %v7927_v13  ;;  %v7870_v20 = vor.u32 %v8757_v42, %v7867_v47  ;;  %v8828_v42 = vld [vmem:[%s13684_s5 + $0x6b8] sm:$0xf0] }
 0x400   : > { %4564 = vmatpush.bf16.msra.mxu1 %v7706_v61  ;;  %v8769_v61 = vld [vmem:[%s13684_s5 + $0x4e4] sm:$0xf] }
 0x401   : > { %5102 = vmatpush.bf16.msra.mxu0 %v8082_v2  ;;  %v7921_v2 = vld [vmem:[%s13684_s5 + $0x4e8] sm:$0xf] }
 0x402   : > { %5143 = vmatpush.bf16.msrb.mxu3 %v8098_v3  ;;  %v7918_v3 = vor.u32 %v8769_v61, %v7915_v19 }
 0x403   : > { %4523 = vmatpush.bf16.msrb.mxu2 %v7690_v63  ;;  %v7922_v63 = vor.u32 %v8771_v12, %v7921_v2  ;;  %v8796_v2 = vld [vmem:[%s13684_s5 + $0x5bc] sm:$0xf]  ;;  %v8023_v12 = vld [vmem:[%s13684_s5 + $0x5c4] sm:$0xf0] }
 0x404   : > { %4565 = vmatpush.bf16.msra.mxu1 %v7694_v59  ;;  %v8768_v59 = vld [vmem:[%s13684_s5 + $0x4d8] sm:$0xf0] }
 0x405   : > { %5103 = vmatpush.bf16.msra.mxu0 %v8070_v26  ;;  %v8764_v26 = vld [vmem:[%s13684_s5 + $0x4b8] sm:$0xf0]  ;;  %v7910_v11 = vor.u32 %v8768_v59, %v7909_v5  ;;  %v8018_v59 = vor.u32 %v8795_v55, %v8017_v52  ;;  %v8065_v55 = vld [vmem:[%s13684_s5 + $0x608] sm:$0xf] }
 0x406   : > { %5144 = vmatpush.bf16.msrb.mxu3 %v8086_v22  ;;  %v7897_v22 = vld [vmem:[%s13684_s5 + $0x4b8] sm:$0xf]  ;;  %v7890_v23 = vor.u32 %v8764_v26, %v7889_v50  ;;  %v8005_v50 = vld [vmem:[%s13684_s5 + $0x590] sm:$0xf]  ;;  %v8792_v26 = vld [vmem:[%s13684_s5 + $0x598] sm:$0xf0] }
 0x407   : > { %4524 = vmatpush.bf16.msrb.mxu2 %v7678_v32  ;;  %v7894_v32 = vor.u32 %v8763_v27, %v7891_v1  ;;  %v8006_v27 = vor.u32 %v8792_v26, %v8005_v50  ;;  %v8787_v1 = vld [vmem:[%s13684_s5 + $0x574] sm:$0xf] }
 0x408   : > { %4566 = vmatpush.bf16.msra.mxu1 %v7682_v45  ;;  %v7898_v45 = vor.u32 %v8765_v0, %v7897_v22  ;;  %v7987_v22 = vld [vmem:[%s13684_s5 + $0x57c] sm:$0xf0]  ;;  %v7993_v0 = vld [vmem:[%s13684_s5 + $0x578] sm:$0xf] }
 0x409   : > { %5104 = vmatpush.bf16.msra.mxu0 %v8058_v31  ;;  %v8760_v31 = vld [vmem:[%s13684_s5 + $0x49c] sm:$0xf] }
 0x40a   : > { %5145 = vmatpush.bf16.msrb.mxu3 %v8074_v38  ;;  %4525 = vmatmul.bf16.vlgmr.msrb.gmra.mxu2 %v12275_v51  ;;  %v7865_v38 = vld [vmem:[%s13684_s5 + $0x480] sm:$0xf] }
 0x40b   : > { %5069 = vmatpush.bf16.msra.mxu2 %v7950_v56  ;;  %4567 = vmatmul.bf16.vlgmr.msra.gmra.mxu1 %v12275_v51  ;;  %v8770_v51 = vld [vmem:[%s13684_s5 + $0x4e8] sm:$0xf0] }
 0x40c   : > { %5111 = vmatpush.bf16.msrb.mxu1 %v7954_v46  ;;  %5105 = vmatmul.bf16.vlgmr.msra.gmra.mxu0 %v12658_v8  ;;  %v7914_v58 = vor.u32 %v8770_v51, %v7913_v15  ;;  %v7879_v46 = vld [vmem:[%s13684_s5 + $0x4a4] sm:$0xf0]  ;;  %v8041_v15 = vld [vmem:[%s13684_s5 + $0x5d8] sm:$0xf]  ;;  %v8801_v51 = vld [vmem:[%s13684_s5 + $0x5e0] sm:$0xf0] }
 0x40d   : > { %5153 = vmatpush.bf16.msrb.mxu0 %v7958_v53  ;;  %v7878_v53 = vor.u32 %v8761_v24, %v7877_v40  ;;  %v7882_v10 = vor.u32 %v8760_v31, %v7879_v46  ;;  %v8042_v19 = vor.u32 %v8801_v51, %v8041_v15  ;;  %v7975_v40 = vld [vmem:[%s13684_s5 + $0x564] sm:$0xf0]  ;;  %v7981_v24 = vld [vmem:[%s13684_s5 + $0x560] sm:$0xf] }
 0x40e   : > { %5146 = vmatpush.bf16.msrb.mxu3 %v8062_v60  ;;  %v12696_v41 = vpop.f32.mrf.mxu0  ;;  %v7866_v60 = vor.u32 %v8758_v6, %v7865_v38  ;;  %v3826_v31 = vpop.f32.mrf.mxu1  ;;  %v7969_v38 = vld [vmem:[%s13684_s5 + $0x548] sm:$0xf]  ;;  %v8149_v6 = vld [vmem:[%s13684_s5 + $0x6b0] sm:$0xf] }
 0x40f   : > { %5070 = vmatpush.bf16.msra.mxu2 %v7938_v17  ;;  %v8802_v17 = vld [vmem:[%s13684_s5 + $0x5ec] sm:$0xf]  ;;  %v8150_v54 = vor.u32 %v8828_v42, %v8149_v6 }
 0x410   : > { %5112 = vmatpush.bf16.msrb.mxu1 %v7942_v36  ;;  %v8047_v36 = vld [vmem:[%s13684_s5 + $0x5f4] sm:$0xf0] }
 0x411   : > { %5154 = vmatpush.bf16.msrb.mxu0 %v7946_v34  ;;  %5147 = vmatmul.bf16.vlgmr.msrb.gmra.mxu3 %v12658_v8  ;;  %v8804_v34 = vld [vmem:[%s13684_s5 + $0x5f8] sm:$0xf0]  ;;  %v8050_v13 = vor.u32 %v8802_v17, %v8047_v36  ;;  %v8137_v17 = vld [vmem:[%s13684_s5 + $0x698] sm:$0xf]  ;;  %v8825_v36 = vld [vmem:[%s13684_s5 + $0x6a0] sm:$0xf0] }
 0x412   : > { %v8054_v28 = vor.u32 %v8804_v34, %v8053_v49  ;;  %v8138_v49 = vor.u32 %v8825_v36, %v8137_v17  ;;  %v8125_v34 = vld [vmem:[%s13684_s5 + $0x680] sm:$0xf] }
 0x413   : > { %5071 = vmatpush.bf16.msra.mxu2 %v7926_v48  ;;  %v8799_v48 = vld [vmem:[%s13684_s5 + $0x5d4] sm:$0xf] }
 0x414   : > { %5113 = vmatpush.bf16.msrb.mxu1 %v7930_v29  ;;  %v8035_v29 = vld [vmem:[%s13684_s5 + $0x5dc] sm:$0xf0] }
 0x415   : > { %5155 = vmatpush.bf16.msrb.mxu0 %v7934_v62  ;;  %v4679_v62 = vrot.slane %v11714_v39, 1  ;;  %v8038_v61 = vor.u32 %v8799_v48, %v8035_v29  ;;  %v8798_v39 = vld [vmem:[%s13684_s5 + $0x5c8] sm:$0xf0]  ;;  %v3869_v48 = vadd.f32 %v12696_v41, %v12687_v33  ;;  %v8089_v33 = vld [vmem:[%s13684_s5 + $0x638] sm:$0xf] }
 0x416   : > { %v3870_v43 = vpop.f32.mrf.mxu0  ;;  %v12881_v7 = vpop.f32.mrf.mxu1  ;;  %v8813_v41 = vld [vmem:[%s13684_s5 + $0x640] sm:$0xf0] }
 0x417   : > { %5072 = vmatpush.bf16.msra.mxu2 %v7914_v58  ;;  %v12740_v56 = vadd.f32 %v3870_v43, %v3856_v21  ;;  %v8029_v58 = vld [vmem:[%s13684_s5 + $0x5c0] sm:$0xf]  ;;  %v7990_v21 = vor.u32 %v8787_v1, %v7987_v22  ;;  %v8784_v43 = vld [vmem:[%s13684_s5 + $0x55c] sm:$0xf] }
 0x418   : > { %5114 = vmatpush.bf16.msrb.mxu1 %v7918_v3  ;;  %v8026_v3 = vor.u32 %v8796_v2, %v8023_v12  ;;  %v8030_v16 = vor.u32 %v8798_v39, %v8029_v58  ;;  %v7978_v46 = vor.u32 %v8784_v43, %v7975_v40  ;;  %v3827_v2 = vadd.f32 %v3826_v31, %v12578_v37  ;;  %v8810_v37 = vld [vmem:[%s13684_s5 + $0x628] sm:$0xf0] }
 0x419   : > { %5156 = vmatpush.bf16.msrb.mxu0 %v7922_v63  ;;  %v8011_v63 = vld [vmem:[%s13684_s5 + $0x5ac] sm:$0xf0] }
 0x41a   : > { %v8014_v5 = vor.u32 %v8793_v9, %v8011_v63  ;;  %v8077_v9 = vld [vmem:[%s13684_s5 + $0x620] sm:$0xf] }
 0x41b   : > { %5073 = vmatpush.bf16.msra.mxu2 %v7902_v57  ;;  %v8790_v57 = vld [vmem:[%s13684_s5 + $0x58c] sm:$0xf]  ;;  %v8078_v63 = vor.u32 %v8810_v37, %v8077_v9 }
 0x41c   : > { %5115 = vmatpush.bf16.msrb.mxu1 %v7906_v14  ;;  %v7999_v14 = vld [vmem:[%s13684_s5 + $0x594] sm:$0xf0] }
 0x41d   : > { %5157 = vmatpush.bf16.msrb.mxu0 %v7910_v11  ;;  %v8002_v11 = vor.u32 %v8790_v57, %v7999_v14 }
 0x41f   : > { %5074 = vmatpush.bf16.msra.mxu2 %v7890_v23  ;;  %v8789_v23 = vld [vmem:[%s13684_s5 + $0x580] sm:$0xf0] }
 0x420   : > { %5116 = vmatpush.bf16.msrb.mxu1 %v7894_v32  ;;  %v7994_v32 = vor.u32 %v8789_v23, %v7993_v0 }
 0x421   : > { %5158 = vmatpush.bf16.msrb.mxu0 %v7898_v45  ;;  %v8786_v45 = vld [vmem:[%s13684_s5 + $0x568] sm:$0xf0] }
 0x422   : > { %v7982_v18 = vor.u32 %v8786_v45, %v7981_v24 }
 0x423   : > { %5075 = vmatpush.bf16.msra.mxu2 %v7878_v53  ;;  %v7963_v53 = vld [vmem:[%s13684_s5 + $0x54c] sm:$0xf0] }
 0x424   : > { %5117 = vmatpush.bf16.msrb.mxu1 %v7882_v10  ;;  %v8783_v10 = vld [vmem:[%s13684_s5 + $0x550] sm:$0xf0]  ;;  %v7966_v47 = vor.u32 %v8781_v30, %v7963_v53 }
 0x425   : > { %5159 = vmatpush.bf16.msrb.mxu0 %v7886_v44  ;;  %v7970_v44 = vor.u32 %v8783_v10, %v7969_v38 }
 0x427   : > { %5076 = vmatpush.bf16.msra.mxu2 %v7866_v60  ;;  %v8822_v60 = vld [vmem:[%s13684_s5 + $0x688] sm:$0xf0] }
 0x428   : > { %5118 = vmatpush.bf16.msrb.mxu1 %v7870_v20  ;;  %v3910_v20 = vpop.f32.mrf.mxu3 }
 0x429   : > { %5160 = vmatpush.bf16.msrb.mxu0 %v7874_v35  ;;  %v8113_v35 = vld [vmem:[%s13684_s5 + $0x668] sm:$0xf] }
 0x42a   : > { %5077 = vmatmul.bf16.vlgmr.msra.gmra.mxu2 %v4679_v62 }
 0x42b   : > { %5125 = vmatpush.bf16.msrb.mxu2 %v8050_v13  ;;  %5119 = vmatmul.bf16.vlgmr.msrb.gmra.mxu1 %v4679_v62  ;;  %v8126_v13 = vor.u32 %v8822_v60, %v8125_v34 }
 0x42c   : > { %5167 = vmatpush.bf16.msra.mxu1 %v8054_v28  ;;  %5161 = vmatmul.bf16.vlgmr.msrb.gmra.mxu0 %v4679_v62  ;;  %v8819_v28 = vld [vmem:[%s13684_s5 + $0x670] sm:$0xf0] }
 0x42d   : > { %v8114_v15 = vor.u32 %v8819_v28, %v8113_v35 }
 0x42f   : > { %5126 = vmatpush.bf16.msrb.mxu2 %v8038_v61  ;;  %v8816_v61 = vld [vmem:[%s13684_s5 + $0x658] sm:$0xf0] }
 0x430   : > { %5168 = vmatpush.bf16.msra.mxu1 %v8042_v19  ;;  %v3912_v12 = vpop.f32.mrf.mxu3 }
 0x433   : > { %5127 = vmatpush.bf16.msrb.mxu2 %v8026_v3  ;;  %v8090_v3 = vor.u32 %v8813_v41, %v8089_v33 }
 0x434   : > { %5169 = vmatpush.bf16.msra.mxu1 %v8030_v16 }
 0x437   : > { %5128 = vmatpush.bf16.msrb.mxu2 %v8014_v5  ;;  %v8807_v5 = vld [vmem:[%s13684_s5 + $0x610] sm:$0xf0] }
 0x438   : > { %5170 = vmatpush.bf16.msra.mxu1 %v8018_v59  ;;  %v8066_v14 = vor.u32 %v8807_v5, %v8065_v55 }
 0x43b   : > { %5129 = vmatpush.bf16.msrb.mxu2 %v8002_v11 }
 0x43c   : > { %5171 = vmatpush.bf16.msra.mxu1 %v8006_v27 }
 0x43f   : > { %5130 = vmatpush.bf16.msrb.mxu2 %v7990_v21 }
 0x440   : > { %5172 = vmatpush.bf16.msra.mxu1 %v7994_v32 }
 0x443   : > { %5131 = vmatpush.bf16.msrb.mxu2 %v7978_v46 }
 0x444   : > { %5173 = vmatpush.bf16.msra.mxu1 %v7982_v18 }
 0x447   : > { %5132 = vmatpush.bf16.msrb.mxu2 %v7966_v47  ;;  %v3882_v29 = vpop.f32.mrf.mxu1 }
 0x448   : > { %5174 = vmatpush.bf16.msra.mxu1 %v7970_v44  ;;  %v3883_v51 = vadd.f32 %v3882_v29, %v3869_v48  ;;  %v3924_v62 = vpop.f32.mrf.mxu0 }
 0x44a   : > { %5133 = vmatmul.bf16.vlgmr.msrb.gmra.mxu2 %v12494_v25 }
 0x44b   : > { %5181 = vmatpush.bf16.msra.mxu2 %v8150_v54  ;;  %5175 = vmatmul.bf16.vlgmr.msra.gmra.mxu1 %v12494_v25  ;;  %v8101_v25 = vld [vmem:[%s13684_s5 + $0x650] sm:$0xf] }
 0x44c   : > { %v8102_v19 = vor.u32 %v8816_v61, %v8101_v25  ;;  %v3829_v61 = vadd.f32 %v12881_v7, %v12649_v4 }
 0x44d   : > { %v3840_v58 = vpop.f32.mrf.mxu2 }
 0x44e   : > { %v12912_v39 = vadd.f32 %v3840_v58, %v3827_v2 }
 0x44f   : > { %5182 = vmatpush.bf16.msra.mxu2 %v8138_v49  ;;  %v12926_v59 = vpop.f32.mrf.mxu1 }
 0x450   : > { %v3926_v16 = vpop.f32.mrf.mxu0 }
 0x453   : > { %5183 = vmatpush.bf16.msra.mxu2 %v8126_v13 }
 0x454   : > { %v4484_v52 = vpop.f32.mrf.mxu3 }
 0x455   : > { %v3842_v57 = vpop.f32.mrf.mxu2 }
 0x456   : > { %v3843_v2 = vadd.f32 %v3842_v57, %v3829_v61  ;;  %v5368_v61 = vld [vmem:[%s13687_s8 + $0xc0] sm:$0xff] }
 0x457   : > { %5184 = vmatpush.bf16.msra.mxu2 %v8114_v15 }
 0x458   : > { %v4456_v1 = vpop.f32.mrf.mxu1 }
 0x459   : > { %v4498_v50 = vpop.f32.mrf.mxu0 }
 0x45b   : > { %5185 = vmatpush.bf16.msra.mxu2 %v8102_v19 }
 0x45c   : > { %v4486_v26 = vpop.f32.mrf.mxu3 }
 0x45d   : > { %v3896_v11 = vpop.f32.mrf.mxu2 }
 0x45e   : > { %v3911_v27 = vadd.f32 %v3910_v20, %v3896_v11 }
 0x45f   : > { %5186 = vmatpush.bf16.msra.mxu2 %v8090_v3 }
 0x460   : > { %v3925_v22 = vadd.f32 %v3924_v62, %v3911_v27  ;;  %v4458_v40 = vpop.f32.mrf.mxu1  ;;  %v3885_v27 = vadd.f32 %v12926_v59, %v12740_v56  ;;  %v12960_v56 = vld [vmem:[%s13686_s7 + $0x8] sm:$0x1f] }
 0x461   : > { %v12929_v0 = vpop.f32.mrf.mxu0 }
 0x463   : > { %5187 = vmatpush.bf16.msra.mxu2 %v8078_v63 }
 0x464   : > { %v4540_v32 = vpop.f32.mrf.mxu3 }
 0x465   : > { %v3898_v23 = vpop.f32.mrf.mxu2 }
 0x466   : > { %v3913_v21 = vadd.f32 %v3912_v12, %v3898_v23 }
 0x467   : > { %5188 = vmatpush.bf16.msra.mxu2 %v8066_v14 }
 0x468   : > { %v3927_v43 = vadd.f32 %v3926_v16, %v3913_v21  ;;  %v4512_v30 = vpop.f32.mrf.mxu1 }
 0x469   : > { %v4554_v24 = vpop.f32.mrf.mxu0  ;;  %v4513_v36 = vadd.f32 %v4512_v30, %v4498_v50 }
 0x46a   : > { %5189 = vmatmul.bf16.vlgmr.msra.gmra.mxu2 %v12658_v8  ;;  %v4555_v45 = vadd.f32 %v4554_v24, %v4540_v32  ;;  %v3319_v8 = vld [vmem:[%s13685_s6] sm:$0x7] }
 0x46b   : > { %v3932_v10 = vperm.slane %v3319_v8, 2  ;;  %v3931_v54 = vperm.slane %v3319_v8, 1  ;;  %v3930_v33 = vperm.slane %v3319_v8, 0 }
 0x46c   : > { %v4542_v31 = vpop.f32.mrf.mxu3 }
 0x46d   : > { %v4470_v53 = vpop.f32.mrf.mxu2  ;;  %v3938_v47 = vadd.f32 %v3932_v10, %v3925_v22  ;;  %v3937_v34 = vadd.f32 %v3931_v54, %v3883_v51  ;;  %v3941_v35 = vadd.f32 %v3932_v10, %v3927_v43  ;;  %v3939_v16 = vadd.f32 %v3930_v33, %v3843_v2  ;;  %v5420_v10 = vld [vmem:[%s13687_s8 + $0x260] sm:$0xff] }
 0x46e   : > { %v4471_v12 = vadd.f32 %v4470_v53, %v4456_v1  ;;  %v3936_v55 = vadd.f32 %v3930_v33, %v12912_v39  ;;  %v3940_v43 = vadd.f32 %v3931_v54, %v3885_v27  ;;  %v5408_v2 = vld [vmem:[%s13687_s8 + $0x200] sm:$0xff]  ;;  %v5407_v33 = vld [vmem:[%s13687_s8 + $0x1f8] sm:$0xff]  ;;  %v5394_v27 = vld [vmem:[%s13687_s8 + $0x190] sm:$0xff] }
 0x470   : > { %v4514_v38 = vpop.f32.mrf.mxu1  ;;  %v4485_v9 = vadd.f32 %v4484_v52, %v4471_v12  ;;  %v5201_v52 = vld [vmem:[%s13686_s7] sm:$0x1f] }
 0x471   : > { %v4556_v46 = vpop.f32.mrf.mxu0  ;;  %v4515_v1 = vadd.f32 %v4514_v38, %v12929_v0  ;;  %v5422_v38 = vld [vmem:[%s13687_s8 + $0x270] sm:$0xff]  ;;  %v5404_v12 = vld [vmem:[%s13687_s8 + $0x1e0] sm:$0xff] }
 0x472   : > { %v4557_v18 = vadd.f32 %v4556_v46, %v4542_v31  ;;  %v4573_v11 = vadd.f32 %v4485_v9, %v3936_v55  ;;  %v5364_v9 = vld [vmem:[%s13687_s8 + $0xa0] sm:$0xff]  ;;  %v5365_v55 = vld [vmem:[%s13687_s8 + $0xa8] sm:$0xff] }
 0x474   : > { %v5092_v15 = vpop.f32.mrf.mxu3 }
 0x475   : > { %v4472_v6 = vpop.f32.mrf.mxu2 }
 0x476   : > { %v4473_v19 = vadd.f32 %v4472_v6, %v4458_v40 }
 0x478   : > { %v4487_v41 = vadd.f32 %v4486_v26, %v4473_v19  ;;  %v5371_v19 = vld [vmem:[%s13687_s8 + $0xd8] sm:$0xff] }
 0x47a   : > { %v4576_v5 = vadd.f32 %v4487_v41, %v3939_v16  ;;  %v5369_v41 = vld [vmem:[%s13687_s8 + $0xc8] sm:$0xff]  ;;  %v5367_v16 = vld [vmem:[%s13687_s8 + $0xb8] sm:$0xff] }
 0x47c   : > { %v5094_v58 = vpop.f32.mrf.mxu3 }
 0x488   : > { %v4568_v42 = vpop.f32.mrf.mxu1 }
 0x489   : > { %v4569_v44 = vadd.f32 %v4568_v42, %v4555_v45  ;;  %v5106_v62 = vpop.f32.mrf.mxu0 }
 0x48b   : > { %v12934_v17 = vadd.f32 %v4569_v44, %v3938_v47  ;;  %v5418_v44 = vld [vmem:[%s13687_s8 + $0x250] sm:$0xff] }
 0x48d   : > { %v4526_v49 = vpop.f32.mrf.mxu2 }
 0x48e   : > { %v4527_v60 = vadd.f32 %v4526_v49, %v4513_v36 }
 0x490   : > { %v4570_v20 = vpop.f32.mrf.mxu1  ;;  %v4574_v13 = vadd.f32 %v4527_v60, %v3937_v34  ;;  %v5416_v34 = vld [vmem:[%s13687_s8 + $0x240] sm:$0xff] }
 0x491   : > { %v4571_v28 = vadd.f32 %v4570_v20, %v4557_v18  ;;  %v5108_v63 = vpop.f32.mrf.mxu0  ;;  %v5374_v20 = vld [vmem:[%s13687_s8 + $0xf0] sm:$0xff] }
 0x492   : > { %5428 = vmatpush.msrb.mxu2 %v5374_v20  ;;  %v8182_v20 = vld [vmem:[%s13687_s8 + $0x300] sm:$0xff] }
 0x493   : > { %v12936_v48 = vadd.f32 %v4571_v28, %v3941_v35  ;;  %v5372_v28 = vld [vmem:[%s13687_s8 + $0xe0] sm:$0xff] }
 0x494   : > { %v5148_v39 = vpop.f32.mrf.mxu3  ;;  %5429 = vmatpush.msrb.mxu2 %v5372_v28  ;;  %v5350_v28 = vld [vmem:[%s13687_s8 + $0x30] sm:$0xff] }
 0x495   : > { %v4528_v29 = vpop.f32.mrf.mxu2 }
 0x496   : > { %v4529_v22 = vadd.f32 %v4528_v29, %v4515_v1  ;;  %v5375_v29 = vld [vmem:[%s13687_s8 + $0xf8] sm:$0xff] }
 0x497   : > { %v5359_v1 = vld [vmem:[%s13687_s8 + $0x78] sm:$0xff] }
 0x498   : > { %v4577_v45 = vadd.f32 %v4529_v22, %v3940_v43  ;;  %v5356_v22 = vld [vmem:[%s13687_s8 + $0x60] sm:$0xff]  ;;  %v5355_v43 = vld [vmem:[%s13687_s8 + $0x58] sm:$0xff] }
 0x49c   : > { %v5150_v24 = vpop.f32.mrf.mxu3 }
 0x4a8   : > { %v5120_v57 = vpop.f32.mrf.mxu1 }
 0x4a9   : > { %v5162_v0 = vpop.f32.mrf.mxu0 }
 0x4ad   : > { %v5078_v25 = vpop.f32.mrf.mxu2 }
 0x4ae   : > { %v5093_v51 = vadd.f32 %v5092_v15, %v5078_v25  ;;  %v5410_v15 = vld [vmem:[%s13687_s8 + $0x210] sm:$0xff] }
 0x4af   : > { %v5406_v25 = vld [vmem:[%s13687_s8 + $0x1f0] sm:$0xff] }
 0x4b0   : > { %v5107_v14 = vadd.f32 %v5106_v62, %v5093_v51  ;;  %v5122_v21 = vpop.f32.mrf.mxu1  ;;  %v5373_v62 = vld [vmem:[%s13687_s8 + $0xe8] sm:$0xff]  ;;  %v5366_v51 = vld [vmem:[%s13687_s8 + $0xb0] sm:$0xff] }
 0x4b1   : > { %v5164_v6 = vpop.f32.mrf.mxu0 }
 0x4b2   : > { %v12945_v7 = vadd.f32 %v5107_v14, %v4573_v11  ;;  %v5401_v14 = vld [vmem:[%s13687_s8 + $0x1c8] sm:$0xff]  ;;  %v5363_v11 = vld [vmem:[%s13687_s8 + $0x98] sm:$0xff] }
 0x4b5   : > { %v5080_v3 = vpop.f32.mrf.mxu2 }
 0x4b6   : > { %v5095_v37 = vadd.f32 %v5094_v58, %v5080_v3  ;;  %v5405_v58 = vld [vmem:[%s13687_s8 + $0x1e8] sm:$0xff]  ;;  %v5402_v3 = vld [vmem:[%s13687_s8 + $0x1d0] sm:$0xff] }
 0x4b8   : > { %v5109_v50 = vadd.f32 %v5108_v63, %v5095_v37  ;;  %v5403_v37 = vld [vmem:[%s13687_s8 + $0x1d8] sm:$0xff]  ;;  %v5400_v63 = vld [vmem:[%s13687_s8 + $0x1c0] sm:$0xff] }
 0x4ba   : > { %v12941_v4 = vadd.f32 %v5109_v50, %v4576_v5  ;;  %v5362_v5 = vld [vmem:[%s13687_s8 + $0x90] sm:$0xff] }
 0x4bb   : > { %v5398_v50 = vld [vmem:[%s13687_s8 + $0x1b0] sm:$0xff] }
 0x4bc   : > { %8151 = vmatpush.msk.msra.mxu3 %vm5206_vm6, %v12941_v4 }
 0x4be   : > { %5231 = vmatpush.msra.mxu3 %v12945_v7 }
 0x4bf   : > { %8152 = vmatmul.msk.f32.vlgmr.msra.gmra.mxu3 %vm5202_vm7, %v5201_v52 }
 0x4c8   : > { %v5176_v59 = vpop.f32.mrf.mxu1 }
 0x4c9   : > { %v5177_v42 = vadd.f32 %v5176_v59, %v5162_v0  ;;  %v5378_v59 = vld [vmem:[%s13687_s8 + $0x110] sm:$0xff]  ;;  %v5376_v0 = vld [vmem:[%s13687_s8 + $0x100] sm:$0xff] }
 0x4cd   : > { %v5134_v26 = vpop.f32.mrf.mxu2 }
 0x4ce   : > { %v5135_v23 = vadd.f32 %v5134_v26, %v5120_v57  ;;  %v5396_v57 = vld [vmem:[%s13687_s8 + $0x1a0] sm:$0xff]  ;;  %v5397_v26 = vld [vmem:[%s13687_s8 + $0x1a8] sm:$0xff] }
 0x4d0   : > { %v5149_v31 = vadd.f32 %v5148_v39, %v5135_v23  ;;  %v5178_v8 = vpop.f32.mrf.mxu1  ;;  %v5358_v39 = vld [vmem:[%s13687_s8 + $0x70] sm:$0xff]  ;;  %v5392_v23 = vld [vmem:[%s13687_s8 + $0x180] sm:$0xff] }
 0x4d1   : > { %v5179_v47 = vadd.f32 %v5178_v8, %v5164_v6  ;;  %v8192_v8 = vld [vmem:[%s13687_s8 + $0x350] sm:$0xff] }
 0x4d2   : > { %v5196_v30 = vadd.f32 %v5149_v31, %v4574_v13  ;;  %v5414_v13 = vld [vmem:[%s13687_s8 + $0x230] sm:$0xff]  ;;  %v5351_v31 = vld [vmem:[%s13687_s8 + $0x38] sm:$0xff] }
 0x4d3   : > { %v8188_v6 = vld [vmem:[%s13687_s8 + $0x330] sm:$0xff] }
 0x4d5   : > { %v5136_v32 = vpop.f32.mrf.mxu2 }
 0x4d6   : > { %v5137_v40 = vadd.f32 %v5136_v32, %v5122_v21  ;;  %v5357_v21 = vld [vmem:[%s13687_s8 + $0x68] sm:$0xff]  ;;  %v5390_v32 = vld [vmem:[%s13687_s8 + $0x170] sm:$0xff] }
 0x4d8   : > { %v5151_v46 = vadd.f32 %v5150_v24, %v5137_v40  ;;  %v5388_v40 = vld [vmem:[%s13687_s8 + $0x160] sm:$0xff]  ;;  %v5353_v24 = vld [vmem:[%s13687_s8 + $0x48] sm:$0xff] }
 0x4da   : > { %v5199_v18 = vadd.f32 %v5151_v46, %v4577_v45  ;;  %v5386_v45 = vld [vmem:[%s13687_s8 + $0x150] sm:$0xff]  ;;  %v5384_v46 = vld [vmem:[%s13687_s8 + $0x140] sm:$0xff] }
 0x4dc   : > { %8153 = vmatpush.msk.msrb.mxu3 %vm5206_vm6, %v5199_v18  ;;  %8160 = vmatpush.msk.msra.mxu0 %vm5206_vm6, %v5199_v18  ;;  %v5349_v18 = vld [vmem:[%s13687_s8 + $0x28] sm:$0xff] }
 0x4de   : > { %5251 = vmatpush.msrb.mxu3 %v5196_v30  ;;  %5316 = vmatpush.msra.mxu0 %v5196_v30  ;;  %v5382_v30 = vld [vmem:[%s13687_s8 + $0x130] sm:$0xff] }
 0x4df   : > { %8154 = vmatmul.msk.f32.vlgmr.msrb.gmra.mxu3 %vm5202_vm7, %v5201_v52  ;;  %8161 = vmatmul.msk.f32.vlgmr.msra.gmra.mxu0 %vm5202_vm7, %v12960_v56 }
 0x4e0   : > { %5476 = vmatpush.msrb.mxu0 %v5422_v38  ;;  %v8194_v38 = vld [vmem:[%s13687_s8 + $0x360] sm:$0xff] }
 0x4e2   : > { %5477 = vmatpush.msrb.mxu0 %v5420_v10  ;;  %v8190_v10 = vld [vmem:[%s13687_s8 + $0x340] sm:$0xff] }
 0x4e4   : > { %5478 = vmatpush.msrb.mxu0 %v5418_v44  ;;  %v5354_v44 = vld [vmem:[%s13687_s8 + $0x50] sm:$0xff] }
 0x4e6   : > { %5479 = vmatpush.msrb.mxu0 %v5416_v34  ;;  %v5352_v34 = vld [vmem:[%s13687_s8 + $0x40] sm:$0xff] }
 0x4e8   : > { %5480 = vmatpush.msrb.mxu0 %v5414_v13  ;;  %v5391_v13 = vld [vmem:[%s13687_s8 + $0x178] sm:$0xff] }
 0x4ed   : > { %v5190_v53 = vpop.f32.mrf.mxu2 }
 0x4ee   : > { %v5191_v36 = vadd.f32 %v5190_v53, %v5177_v42  ;;  %v8196_v53 = vld [vmem:[%s13687_s8 + $0x370] sm:$0xff]  ;;  %v8186_v42 = vld [vmem:[%s13687_s8 + $0x320] sm:$0xff] }
 0x4f0   : > { %v5197_v35 = vadd.f32 %v5191_v36, %v12934_v17  ;;  %v5370_v17 = vld [vmem:[%s13687_s8 + $0xd0] sm:$0xff] }
 0x4f1   : > { %5430 = vmatpush.msrb.mxu2 %v5370_v17  ;;  %v8184_v36 = vld [vmem:[%s13687_s8 + $0x310] sm:$0xff]  ;;  %v8226_v17 = vld [vmem:[%s13687_s8 + $0x460] sm:$0xff] }
 0x4f3   : > { %5431 = vmatpush.msrb.mxu2 %v5368_v61  ;;  %v8224_v61 = vld [vmem:[%s13687_s8 + $0x450] sm:$0xff] }
 0x4f5   : > { %v5192_v54 = vpop.f32.mrf.mxu2  ;;  %5432 = vmatpush.msrb.mxu2 %v5366_v51  ;;  %v8174_v51 = vld [vmem:[%s13687_s8 + $0x2c0] sm:$0xff] }
 0x4f6   : > { %v5193_v49 = vadd.f32 %v5192_v54, %v5179_v47  ;;  %v5395_v47 = vld [vmem:[%s13687_s8 + $0x198] sm:$0xff] }
 0x4f7   : > { %5433 = vmatpush.msrb.mxu2 %v5364_v9  ;;  %v5347_v54 = vld [vmem:[%s13687_s8 + $0x18] sm:$0xff]  ;;  %v8172_v9 = vld [vmem:[%s13687_s8 + $0x2b0] sm:$0xff] }
 0x4f8   : > { %v5200_v60 = vadd.f32 %v5193_v49, %v12936_v48  ;;  %v5412_v48 = vld [vmem:[%s13687_s8 + $0x220] sm:$0xff]  ;;  %v5393_v49 = vld [vmem:[%s13687_s8 + $0x188] sm:$0xff] }
 0x4f9   : > { %5481 = vmatpush.msrb.mxu0 %v5412_v48  ;;  %5434 = vmatpush.msrb.mxu2 %v5362_v5  ;;  %v8180_v48 = vld [vmem:[%s13687_s8 + $0x2f0] sm:$0xff]  ;;  %v8170_v5 = vld [vmem:[%s13687_s8 + $0x2a0] sm:$0xff] }
 0x4fa   : > { %8155 = vmatpush.msk.msra.mxu3 %vm5206_vm6, %v5200_v60  ;;  %8162 = vmatpush.msk.msrb.mxu1 %vm5206_vm6, %v5200_v60  ;;  %v5345_v60 = vld [vmem:[%s13687_s8 + $0x8] sm:$0xff] }
 0x4fb   : > { %5482 = vmatpush.msrb.mxu0 %v5410_v15  ;;  %v5348_v15 = vld [vmem:[%s13687_s8 + $0x20] sm:$0xff] }
 0x4fc   : > { %5271 = vmatpush.msra.mxu3 %v5197_v35  ;;  %5336 = vmatpush.msrb.mxu1 %v5197_v35  ;;  %v8228_v35 = vld [vmem:[%s13687_s8 + $0x470] sm:$0xff] }
 0x4fd   : > { %8156 = vmatmul.msk.f32.vlgmr.msra.gmra.mxu3 %vm5202_vm7, %v5201_v52  ;;  %8163 = vmatmul.msk.f32.vlgmr.msrb.gmra.mxu1 %vm5202_vm7, %v12960_v56  ;;  %v5361_v52 = vld [vmem:[%s13687_s8 + $0x88] sm:$0xff] }
 0x4fe   : > { %8158 = vmatpush.msk.msrb.mxu3 %vm5206_vm6, %v12941_v4  ;;  %5488 = vmatpush.msra.mxu1 %v5375_v29  ;;  %v5360_v4 = vld [vmem:[%s13687_s8 + $0x80] sm:$0xff]  ;;  %v5389_v29 = vld [vmem:[%s13687_s8 + $0x168] sm:$0xff] }
 0x4ff   : > { %5483 = vmatpush.msrb.mxu0 %v5408_v2  ;;  %5435 = vmatpush.msrb.mxu2 %v5360_v4  ;;  %v8176_v2 = vld [vmem:[%s13687_s8 + $0x2d0] sm:$0xff] }
 0x500   : > { %5296 = vmatpush.msrb.mxu3 %v12945_v7  ;;  %5489 = vmatpush.msra.mxu1 %v5373_v62  ;;  %v5399_v7 = vld [vmem:[%s13687_s8 + $0x1b8] sm:$0xff]  ;;  %v8178_v62 = vld [vmem:[%s13687_s8 + $0x2e0] sm:$0xff]  ;;  %v8216_v4 = vld [vmem:[%s13687_s8 + $0x410] sm:$0xff] }
 0x501   : > { %5508 = vmatpush.msra.mxu0 %v5407_v33  ;;  %5436 = vmatpush.msrb.mxu2 %v5358_v39  ;;  %v8222_v33 = vld [vmem:[%s13687_s8 + $0x440] sm:$0xff] }
 0x502   : > { %5448 = vmatpush.msra.mxu3 %v5406_v25  ;;  %5490 = vmatpush.msra.mxu1 %v5371_v19  ;;  %v5387_v25 = vld [vmem:[%s13687_s8 + $0x158] sm:$0xff]  ;;  %v5346_v19 = vld [vmem:[%s13687_s8 + $0x10] sm:$0xff] }
 0x503   : > { %5509 = vmatpush.msra.mxu0 %v5405_v58  ;;  %5437 = vmatpush.msrb.mxu2 %v5356_v22  ;;  %v5383_v58 = vld [vmem:[%s13687_s8 + $0x138] sm:$0xff]  ;;  %v8212_v22 = vld [vmem:[%s13687_s8 + $0x3f0] sm:$0xff] }
 0x504   : > { %5449 = vmatpush.msra.mxu3 %v5404_v12  ;;  %5491 = vmatpush.msra.mxu1 %v5369_v41  ;;  %v5385_v12 = vld [vmem:[%s13687_s8 + $0x148] sm:$0xff]  ;;  %v5344_v41 = vld [vmem:[%s13687_s8] sm:$0xff] }
 0x505   : > { %8159 = vmatmul.msk.f32.vlgmr.msrb.gmra.mxu3 %vm5202_vm7, %v12960_v56  ;;  %5510 = vmatpush.msra.mxu0 %v5403_v37  ;;  %v5380_v56 = vld [vmem:[%s13687_s8 + $0x120] sm:$0xff]  ;;  %v5381_v37 = vld [vmem:[%s13687_s8 + $0x128] sm:$0xff] }
 0x506   : > { %5450 = vmatpush.msra.mxu3 %v5402_v3  ;;  %5492 = vmatpush.msra.mxu1 %v5367_v16  ;;  %v5423_v3 = vld [vmem:[%s13687_s8 + $0x278] sm:$0xff]  ;;  %v8220_v16 = vld [vmem:[%s13687_s8 + $0x430] sm:$0xff] }
 0x507   : > { %5511 = vmatpush.msra.mxu0 %v5401_v14  ;;  %5438 = vmatpush.msrb.mxu2 %v5354_v44 }
 0x508   : > { %5451 = vmatpush.msra.mxu3 %v5400_v63  ;;  %5493 = vmatpush.msra.mxu1 %v5365_v55  ;;  %v5421_v63 = vld [vmem:[%s13687_s8 + $0x268] sm:$0xff]  ;;  %v8218_v55 = vld [vmem:[%s13687_s8 + $0x420] sm:$0xff] }
 0x509   : > { %5512 = vmatpush.msra.mxu0 %v5399_v7  ;;  %5439 = vmatpush.msrb.mxu2 %v5352_v34  ;;  %v8168_v7 = vld [vmem:[%s13687_s8 + $0x290] sm:$0xff]  ;;  %v8193_v34 = vld [vmem:[%s13687_s8 + $0x358] sm:$0xff] }
 0x50a   : > { %5452 = vmatpush.msra.mxu3 %v5398_v50  ;;  %5494 = vmatpush.msra.mxu1 %v5363_v11  ;;  %v5379_v50 = vld [vmem:[%s13687_s8 + $0x118] sm:$0xff] }
 0x50b   : > { %5513 = vmatpush.msra.mxu0 %v5397_v26  ;;  %5440 = vmatpush.msrb.mxu2 %v5350_v28  ;;  %v5419_v11 = vld [vmem:[%s13687_s8 + $0x258] sm:$0xff]  ;;  %v8214_v26 = vld [vmem:[%s13687_s8 + $0x400] sm:$0xff] }
 0x50c   : > { %5453 = vmatpush.msra.mxu3 %v5396_v57  ;;  %5495 = vmatpush.msra.mxu1 %v5361_v52  ;;  %v5377_v57 = vld [vmem:[%s13687_s8 + $0x108] sm:$0xff]  ;;  %v8189_v28 = vld [vmem:[%s13687_s8 + $0x338] sm:$0xff] }
 0x50d   : > { %5514 = vmatpush.msra.mxu0 %v5395_v47  ;;  %5441 = vmatpush.msrb.mxu2 %v5348_v15  ;;  %v5417_v52 = vld [vmem:[%s13687_s8 + $0x248] sm:$0xff]  ;;  %v8185_v15 = vld [vmem:[%s13687_s8 + $0x318] sm:$0xff] }
 0x50e   : > { %5454 = vmatpush.msra.mxu3 %v5394_v27  ;;  %5496 = vmatpush.msra.mxu1 %v5359_v1  ;;  %v8166_v27 = vld [vmem:[%s13687_s8 + $0x280] sm:$0xff]  ;;  %v5415_v1 = vld [vmem:[%s13687_s8 + $0x238] sm:$0xff] }
 0x50f   : > { %5515 = vmatpush.msra.mxu0 %v5393_v49  ;;  %5442 = vmatpush.msrb.mxu2 %v5346_v19  ;;  %v8195_v49 = vld [vmem:[%s13687_s8 + $0x368] sm:$0xff]  ;;  %v8181_v19 = vld [vmem:[%s13687_s8 + $0x2f8] sm:$0xff] }
 0x510   : > { %5455 = vmatpush.msra.mxu3 %v5392_v23  ;;  %5497 = vmatpush.msra.mxu1 %v5357_v21 }
 0x511   : > { %5516 = vmatpush.msra.mxu0 %v5391_v13  ;;  %5443 = vmatpush.msrb.mxu2 %v5344_v41  ;;  %v8177_v41 = vld [vmem:[%s13687_s8 + $0x2d8] sm:$0xff] }
 0x512   : > { %5456 = vmatpush.msra.mxu3 %v5390_v32  ;;  %5498 = vmatpush.msra.mxu1 %v5355_v43  ;;  %v8245_v32 = vld [vmem:[%s13687_s8 + $0x4f8] sm:$0xff]  ;;  %v5413_v43 = vld [vmem:[%s13687_s8 + $0x228] sm:$0xff] }
 0x513   : > { %5517 = vmatpush.msra.mxu0 %v5389_v29  ;;  %5536 = vmatpush.msra.mxu2 %v5423_v3  ;;  %v8187_v29 = vld [vmem:[%s13687_s8 + $0x328] sm:$0xff]  ;;  %v8229_v3 = vld [vmem:[%s13687_s8 + $0x478] sm:$0xff] }
 0x514   : > { %5457 = vmatpush.msra.mxu3 %v5388_v40  ;;  %5499 = vmatpush.msra.mxu1 %v5353_v24  ;;  %v8210_v40 = vld [vmem:[%s13687_s8 + $0x3e0] sm:$0xff]  ;;  %v8243_v24 = vld [vmem:[%s13687_s8 + $0x4e8] sm:$0xff] }
 0x515   : > { %5518 = vmatpush.msra.mxu0 %v5387_v25  ;;  %5537 = vmatpush.msra.mxu2 %v5421_v63  ;;  %v8183_v25 = vld [vmem:[%s13687_s8 + $0x308] sm:$0xff] }
 0x516   : > { %5458 = vmatpush.msra.mxu3 %v5386_v45  ;;  %5500 = vmatpush.msra.mxu1 %v5351_v31  ;;  %v5411_v45 = vld [vmem:[%s13687_s8 + $0x218] sm:$0xff]  ;;  %v8208_v31 = vld [vmem:[%s13687_s8 + $0x3d0] sm:$0xff]  ;;  %v8171_v63 = vld [vmem:[%s13687_s8 + $0x2a8] sm:$0xff] }
 0x517   : > { %5519 = vmatpush.msra.mxu0 %v5385_v12  ;;  %5538 = vmatpush.msra.mxu2 %v5419_v11  ;;  %v8179_v12 = vld [vmem:[%s13687_s8 + $0x2e8] sm:$0xff]  ;;  %v8221_v11 = vld [vmem:[%s13687_s8 + $0x438] sm:$0xff] }
 0x518   : > { %5459 = vmatpush.msra.mxu3 %v5384_v46  ;;  %5501 = vmatpush.msra.mxu1 %v5349_v18  ;;  %v8241_v46 = vld [vmem:[%s13687_s8 + $0x4d8] sm:$0xff]  ;;  %v5409_v18 = vld [vmem:[%s13687_s8 + $0x208] sm:$0xff] }
 0x519   : > { %5520 = vmatpush.msra.mxu0 %v5383_v58  ;;  %5539 = vmatpush.msra.mxu2 %v5417_v52  ;;  %v8175_v58 = vld [vmem:[%s13687_s8 + $0x2c8] sm:$0xff] }
 0x51a   : > { %5460 = vmatpush.msra.mxu3 %v5382_v30  ;;  %5502 = vmatpush.msra.mxu1 %v5347_v54  ;;  %v8206_v30 = vld [vmem:[%s13687_s8 + $0x3c0] sm:$0xff]  ;;  %v8215_v52 = vld [vmem:[%s13687_s8 + $0x408] sm:$0xff] }
 0x51b   : > { %5521 = vmatpush.msra.mxu0 %v5381_v37  ;;  %5540 = vmatpush.msra.mxu2 %v5415_v1  ;;  %v8836_v37 = vld [vmem:[%s13688_s9 + $0x38] sm:$0xff]  ;;  %v8207_v1 = vld [vmem:[%s13687_s8 + $0x3c8] sm:$0xff] }
 0x51c   : > { %5461 = vmatpush.msra.mxu3 %v5380_v56  ;;  %5503 = vmatpush.msra.mxu1 %v5345_v60  ;;  %v8239_v56 = vld [vmem:[%s13687_s8 + $0x4c8] sm:$0xff] }
 0x51d   : > { %5522 = vmatpush.msra.mxu0 %v5379_v50  ;;  %5541 = vmatpush.msra.mxu2 %v5413_v43  ;;  %v8191_v60 = vld [vmem:[%s13687_s8 + $0x348] sm:$0xff] }
 0x51e   : > { %5462 = vmatpush.msra.mxu3 %v5378_v59  ;;  %5649 = vmatpush.msrb.mxu1 %v8228_v35  ;;  %v8204_v59 = vld [vmem:[%s13687_s8 + $0x3b0] sm:$0xff]  ;;  %v8167_v50 = vld [vmem:[%s13687_s8 + $0x288] sm:$0xff] }
 0x51f   : > { %5523 = vmatpush.msra.mxu0 %v5377_v57  ;;  %5542 = vmatpush.msra.mxu2 %v5411_v45  ;;  %v8244_v35 = vld [vmem:[%s13687_s8 + $0x4f0] sm:$0xff]  ;;  %v8217_v57 = vld [vmem:[%s13687_s8 + $0x418] sm:$0xff]  ;;  %v8199_v43 = vld [vmem:[%s13687_s8 + $0x388] sm:$0xff] }
 0x520   : > { %5463 = vmatpush.msra.mxu3 %v5376_v0  ;;  %5650 = vmatpush.msrb.mxu1 %v8226_v17  ;;  %v8237_v0 = vld [vmem:[%s13687_s8 + $0x4b8] sm:$0xff]  ;;  %v8240_v17 = vld [vmem:[%s13687_s8 + $0x4d0] sm:$0xff]  ;;  %v8834_v45 = vld [vmem:[%s13688_s9 + $0x28] sm:$0xff] }
 0x521   : > { %5543 = vmatpush.msra.mxu2 %v5409_v18  ;;  %v8832_v18 = vld [vmem:[%s13688_s9 + $0x18] sm:$0xff] }
 0x522   : > { %5629 = vmatpush.msrb.mxu3 %v8196_v53  ;;  %5651 = vmatpush.msrb.mxu1 %v8224_v61  ;;  %v8202_v53 = vld [vmem:[%s13687_s8 + $0x3a0] sm:$0xff]  ;;  %v8236_v61 = vld [vmem:[%s13687_s8 + $0x4b0] sm:$0xff] }
 0x524   : > { %5630 = vmatpush.msrb.mxu3 %v8194_v38  ;;  %5652 = vmatpush.msrb.mxu1 %v8222_v33  ;;  %v8235_v38 = vld [vmem:[%s13687_s8 + $0x4a8] sm:$0xff]  ;;  %v8232_v33 = vld [vmem:[%s13687_s8 + $0x490] sm:$0xff] }
 0x526   : > { %5631 = vmatpush.msrb.mxu3 %v8192_v8  ;;  %5653 = vmatpush.msrb.mxu1 %v8220_v16  ;;  %v8200_v8 = vld [vmem:[%s13687_s8 + $0x390] sm:$0xff]  ;;  %v8173_v16 = vld [vmem:[%s13687_s8 + $0x2b8] sm:$0xff] }
 0x528   : > { %5632 = vmatpush.msrb.mxu3 %v8190_v10  ;;  %5654 = vmatpush.msrb.mxu1 %v8218_v55  ;;  %v8233_v10 = vld [vmem:[%s13687_s8 + $0x498] sm:$0xff] }
 0x529   : > { %v8225_v55 = vld [vmem:[%s13687_s8 + $0x458] sm:$0xff] }
 0x52a   : > { %5633 = vmatpush.msrb.mxu3 %v8188_v6  ;;  %5655 = vmatpush.msrb.mxu1 %v8216_v4  ;;  %v8198_v6 = vld [vmem:[%s13687_s8 + $0x380] sm:$0xff]  ;;  %v8846_v4 = vld [vmem:[%s13688_s9 + $0x88] sm:$0xff] }
 0x52c   : > { %5634 = vmatpush.msrb.mxu3 %v8186_v42  ;;  %5656 = vmatpush.msrb.mxu1 %v8214_v26  ;;  %v8231_v42 = vld [vmem:[%s13687_s8 + $0x488] sm:$0xff] }
 0x52d   : > { %v8211_v26 = vld [vmem:[%s13687_s8 + $0x3e8] sm:$0xff] }
 0x52e   : > { %5635 = vmatpush.msrb.mxu3 %v8184_v36  ;;  %5657 = vmatpush.msrb.mxu1 %v8212_v22  ;;  %v8197_v36 = vld [vmem:[%s13687_s8 + $0x378] sm:$0xff] }
 0x52f   : > { %v8205_v22 = vld [vmem:[%s13687_s8 + $0x3b8] sm:$0xff] }
 0x530   : > { %5636 = vmatpush.msrb.mxu3 %v8182_v20  ;;  %5658 = vmatpush.msrb.mxu1 %v8210_v40  ;;  %v8835_v40 = vld [vmem:[%s13688_s9 + $0x30] sm:$0xff] }
 0x532   : > { %5637 = vmatpush.msrb.mxu3 %v8180_v48  ;;  %5659 = vmatpush.msrb.mxu1 %v8208_v31  ;;  %v8242_v48 = vld [vmem:[%s13687_s8 + $0x4e0] sm:$0xff]  ;;  %v8844_v31 = vld [vmem:[%s13688_s9 + $0x78] sm:$0xff] }
 0x534   : > { %5638 = vmatpush.msrb.mxu3 %v8178_v62  ;;  %5660 = vmatpush.msrb.mxu1 %v8206_v30  ;;  %v8238_v62 = vld [vmem:[%s13687_s8 + $0x4c0] sm:$0xff]  ;;  %v8842_v30 = vld [vmem:[%s13688_s9 + $0x68] sm:$0xff] }
 0x536   : > { %5639 = vmatpush.msrb.mxu3 %v8176_v2  ;;  %5661 = vmatpush.msrb.mxu1 %v8204_v59  ;;  %v8234_v2 = vld [vmem:[%s13687_s8 + $0x4a0] sm:$0xff] }
 0x537   : > { %v8841_v59 = vld [vmem:[%s13688_s9 + $0x60] sm:$0xff] }
 0x538   : > { %5640 = vmatpush.msrb.mxu3 %v8174_v51  ;;  %5662 = vmatpush.msrb.mxu1 %v8202_v53  ;;  %v8230_v51 = vld [vmem:[%s13687_s8 + $0x480] sm:$0xff]  ;;  %v8840_v53 = vld [vmem:[%s13688_s9 + $0x58] sm:$0xff] }
 0x53a   : > { %5641 = vmatpush.msrb.mxu3 %v8172_v9  ;;  %5663 = vmatpush.msrb.mxu1 %v8200_v8  ;;  %v8227_v9 = vld [vmem:[%s13687_s8 + $0x468] sm:$0xff] }
 0x53b   : > { %v8866_v8 = vld [vmem:[%s13688_s9 + $0x128] sm:$0xff] }
 0x53c   : > { %5642 = vmatpush.msrb.mxu3 %v8170_v5  ;;  %5664 = vmatpush.msrb.mxu1 %v8198_v6  ;;  %v8169_v5 = vld [vmem:[%s13687_s8 + $0x298] sm:$0xff] }
 0x53d   : > { %v8876_v6 = vld [vmem:[%s13688_s9 + $0x178] sm:$0xff] }
 0x53e   : > { %5643 = vmatpush.msrb.mxu3 %v8168_v7  ;;  %v8219_v7 = vld [vmem:[%s13687_s8 + $0x428] sm:$0xff] }
 0x540   : > { %5644 = vmatpush.msrb.mxu3 %v8166_v27  ;;  %v8209_v27 = vld [vmem:[%s13687_s8 + $0x3d8] sm:$0xff] }
 0x542   : > { %v13253_v14 = vpop.f32.mrf.mxu3 }
 0x55c   : > { %v5318_v39 = vpop.f32.mrf.mxu0 }
 0x562   : > { %v5253_v23 = vpop.f32.mrf.mxu3 }
 0x563   : > { %v13285_v21 = vmax.f32 %v5253_v23, %v5318_v39  ;;  %v8213_v39 = vld [vmem:[%s13687_s8 + $0x3f8] sm:$0xff]  ;;  %v8203_v23 = vld [vmem:[%s13687_s8 + $0x3a8] sm:$0xff] }
 0x565   : > { %5464 = vmatmul.f32.vlgmr.msra.gmra.mxu3 %v13285_v21 }
 0x566   : > { %5737 = vmatpush.msra.mxu3 %v8245_v32  ;;  %v8201_v32 = vld [vmem:[%s13687_s8 + $0x398] sm:$0xff] }
 0x568   : > { %5738 = vmatpush.msra.mxu3 %v8243_v24  ;;  %v8845_v24 = vld [vmem:[%s13688_s9 + $0x80] sm:$0xff] }
 0x56a   : > { %5739 = vmatpush.msra.mxu3 %v8241_v46  ;;  %v8843_v46 = vld [vmem:[%s13688_s9 + $0x70] sm:$0xff] }
 0x56c   : > { %5740 = vmatpush.msra.mxu3 %v8239_v56  ;;  %v8831_v56 = vld [vmem:[%s13688_s9 + $0x10] sm:$0xff] }
 0x56e   : > { %5741 = vmatpush.msra.mxu3 %v8237_v0  ;;  %v8830_v0 = vld [vmem:[%s13688_s9 + $0x8] sm:$0xff] }
 0x570   : > { %5742 = vmatpush.msra.mxu3 %v8235_v38  ;;  %v8829_v38 = vld [vmem:[%s13688_s9] sm:$0xff] }
 0x572   : > { %5743 = vmatpush.msra.mxu3 %v8233_v10  ;;  %v8839_v10 = vld [vmem:[%s13688_s9 + $0x50] sm:$0xff] }
 0x574   : > { %5744 = vmatpush.msra.mxu3 %v8231_v42  ;;  %v8865_v42 = vld [vmem:[%s13688_s9 + $0x120] sm:$0xff] }
 0x57a   : > { %v5338_v47 = vpop.f32.mrf.mxu1 }
 0x580   : > { %v5273_v44 = vpop.f32.mrf.mxu3 }
 0x581   : > { %v5343_v54 = vmax.f32 %v5273_v44, %v5338_v47  ;;  %v8875_v47 = vld [vmem:[%s13688_s9 + $0x170] sm:$0xff]  ;;  %v8864_v44 = vld [vmem:[%s13688_s9 + $0x118] sm:$0xff] }
 0x583   : > { %8164 = vmatmul.msk.f32.vlgmr.msrb.gmra.mxu0 %vm5424_vm8, %v5343_v54 }
 0x584   : > { %5689 = vmatpush.msrb.mxu0 %v8197_v36  ;;  %v8863_v36 = vld [vmem:[%s13688_s9 + $0x110] sm:$0xff] }
 0x586   : > { %5690 = vmatpush.msrb.mxu0 %v8195_v49  ;;  %v8873_v49 = vld [vmem:[%s13688_s9 + $0x160] sm:$0xff] }
 0x588   : > { %5691 = vmatpush.msrb.mxu0 %v8193_v34  ;;  %v5298_v20 = vpop.f32.mrf.mxu3  ;;  %v8862_v34 = vld [vmem:[%s13688_s9 + $0x108] sm:$0xff] }
 0x589   : > { %v5341_v13 = vmax.f32 %v13253_v14, %v5298_v20  ;;  %v8223_v14 = vld [vmem:[%s13687_s8 + $0x448] sm:$0xff]  ;;  %v8861_v20 = vld [vmem:[%s13688_s9 + $0x100] sm:$0xff] }
 0x58a   : > { %5692 = vmatpush.msrb.mxu0 %v8191_v60  ;;  %v8872_v60 = vld [vmem:[%s13688_s9 + $0x158] sm:$0xff] }
 0x58b   : > { %5444 = vmatmul.f32.vlgmr.msrb.gmra.mxu2 %v5341_v13  ;;  %5504 = vmatmul.f32.vlgmr.msra.gmra.mxu1 %v5341_v13 }
 0x58c   : > { %5524 = vmatmul.f32.vlgmr.msra.gmra.mxu0 %v13285_v21  ;;  %5645 = vmatmul.f32.vlgmr.msrb.gmra.mxu3 %v5341_v13 }
 0x58d   : > { %5677 = vmatpush.msrb.mxu2 %v8244_v35  ;;  %5693 = vmatpush.msrb.mxu0 %v8189_v28  ;;  %v8871_v35 = vld [vmem:[%s13688_s9 + $0x150] sm:$0xff] }
 0x58e   : > { %5840 = vmatpush.bf16.msra.mxu1 %v8836_v37 }
 0x58f   : > { %5678 = vmatpush.msrb.mxu2 %v8242_v48  ;;  %5694 = vmatpush.msrb.mxu0 %v8187_v29  ;;  %v8837_v48 = vld [vmem:[%s13688_s9 + $0x40] sm:$0xff]  ;;  %v8860_v29 = vld [vmem:[%s13688_s9 + $0xf8] sm:$0xff] }
 0x591   : > { %5679 = vmatpush.msrb.mxu2 %v8240_v17  ;;  %5695 = vmatpush.msrb.mxu0 %v8185_v15  ;;  %v8870_v17 = vld [vmem:[%s13688_s9 + $0x148] sm:$0xff] }
 0x592   : > { %5841 = vmatpush.bf16.msra.mxu1 %v8835_v40 }
 0x593   : > { %5680 = vmatpush.msrb.mxu2 %v8238_v62  ;;  %5696 = vmatpush.msrb.mxu0 %v8183_v25  ;;  %v8859_v62 = vld [vmem:[%s13688_s9 + $0xf0] sm:$0xff]  ;;  %v8869_v25 = vld [vmem:[%s13688_s9 + $0x140] sm:$0xff] }
 0x594   : > { %8165 = vmatmul.msk.f32.vlgmr.msra.gmra.mxu2 %vm5424_vm8, %v5343_v54  ;;  %5665 = vmatmul.f32.vlgmr.msrb.gmra.mxu1 %v13285_v21 }
 0x595   : > { %5681 = vmatpush.msrb.mxu2 %v8236_v61  ;;  %5697 = vmatpush.msrb.mxu0 %v8181_v19 }
 0x596   : > { %8247 = vmatmul.msk.f32.vlgmr.msra.gmra.mxu3 %vm5424_vm8, %v5343_v54  ;;  %5842 = vmatpush.bf16.msra.mxu1 %v8834_v45 }
 0x597   : > { %5682 = vmatpush.msrb.mxu2 %v8234_v2  ;;  %5698 = vmatpush.msrb.mxu0 %v8179_v12  ;;  %v8856_v2 = vld [vmem:[%s13688_s9 + $0xd8] sm:$0xff] }
 0x599   : > { %5683 = vmatpush.msrb.mxu2 %v8232_v33  ;;  %5699 = vmatpush.msrb.mxu0 %v8177_v41  ;;  %v8855_v41 = vld [vmem:[%s13688_s9 + $0xd0] sm:$0xff] }
 0x59b   : > { %5684 = vmatpush.msrb.mxu2 %v8230_v51  ;;  %5700 = vmatpush.msrb.mxu0 %v8175_v58 }
 0x59c   : > { %8246 = vmatmul.msk.f32.vlgmr.msrb.gmra.mxu2 %vm5424_vm8, %v5343_v54  ;;  %v8874_v54 = vld [vmem:[%s13688_s9 + $0x168] sm:$0xff] }
 0x59d   : > { %5709 = vmatpush.msra.mxu2 %v8229_v3  ;;  %5701 = vmatpush.msrb.mxu0 %v8173_v16 }
 0x59f   : > { %5710 = vmatpush.msra.mxu2 %v8227_v9  ;;  %5702 = vmatpush.msrb.mxu0 %v8171_v63  ;;  %v8854_v63 = vld [vmem:[%s13688_s9 + $0xc8] sm:$0xff] }
 0x5a1   : > { %5711 = vmatpush.msra.mxu2 %v8225_v55  ;;  %5703 = vmatpush.msrb.mxu0 %v8169_v5  ;;  %v8848_v5 = vld [vmem:[%s13688_s9 + $0x98] sm:$0xff] }
 0x5a3   : > { %5712 = vmatpush.msra.mxu2 %v8223_v14  ;;  %5704 = vmatpush.msrb.mxu0 %v8167_v50  ;;  %v8853_v50 = vld [vmem:[%s13688_s9 + $0xc0] sm:$0xff] }
 0x5a4   : > { %5705 = vmatmul.f32.vlgmr.msrb.gmra.mxu0 %v5341_v13  ;;  %v8838_v13 = vld [vmem:[%s13688_s9 + $0x48] sm:$0xff] }
 0x5a5   : > { %5713 = vmatpush.msra.mxu2 %v8221_v11  ;;  %5957 = vmatpush.bf16.msra.mxu0 %v8846_v4  ;;  %v8847_v4 = vld [vmem:[%s13688_s9 + $0x90] sm:$0xff] }
 0x5a6   : > { %5859 = vmatpush.bf16.msrb.mxu3 %v8838_v13 }
 0x5a7   : > { %5714 = vmatpush.msra.mxu2 %v8219_v7 }
 0x5a9   : > { %5715 = vmatpush.msra.mxu2 %v8217_v57  ;;  %5958 = vmatpush.bf16.msra.mxu0 %v8845_v24  ;;  %v8852_v57 = vld [vmem:[%s13688_s9 + $0xb8] sm:$0xff] }
 0x5aa   : > { %5860 = vmatpush.bf16.msrb.mxu3 %v8837_v48 }
 0x5ab   : > { %5716 = vmatpush.msra.mxu2 %v8215_v52  ;;  %v8858_v52 = vld [vmem:[%s13688_s9 + $0xe8] sm:$0xff] }
 0x5ad   : > { %5717 = vmatpush.msra.mxu2 %v8213_v39  ;;  %5959 = vmatpush.bf16.msra.mxu0 %v8844_v31  ;;  %v8851_v39 = vld [vmem:[%s13688_s9 + $0xb0] sm:$0xff] }
 0x5ae   : > { %6073 = vmatpush.bf16.msra.mxu3 %v8856_v2 }
 0x5af   : > { %5718 = vmatpush.msra.mxu2 %v8211_v26  ;;  %v8857_v26 = vld [vmem:[%s13688_s9 + $0xe0] sm:$0xff] }
 0x5b1   : > { %5719 = vmatpush.msra.mxu2 %v8209_v27  ;;  %5960 = vmatpush.bf16.msra.mxu0 %v8843_v46  ;;  %v8850_v27 = vld [vmem:[%s13688_s9 + $0xa8] sm:$0xff] }
 0x5b2   : > { %6074 = vmatpush.bf16.msra.mxu3 %v8855_v41 }
 0x5b3   : > { %5720 = vmatpush.msra.mxu2 %v8207_v1  ;;  %v8849_v1 = vld [vmem:[%s13688_s9 + $0xa0] sm:$0xff] }
 0x5b5   : > { %5721 = vmatpush.msra.mxu2 %v8205_v22  ;;  %5961 = vmatpush.bf16.msra.mxu0 %v8842_v30 }
 0x5b6   : > { %6075 = vmatpush.bf16.msra.mxu3 %v8854_v63 }
 0x5b7   : > { %5722 = vmatpush.msra.mxu2 %v8203_v23 }
 0x5b9   : > { %5723 = vmatpush.msra.mxu2 %v8201_v32  ;;  %5962 = vmatpush.bf16.msra.mxu0 %v8841_v59 }
 0x5ba   : > { %6076 = vmatpush.bf16.msra.mxu3 %v8853_v50 }
 0x5bb   : > { %5724 = vmatpush.msra.mxu2 %v8199_v43 }
 0x5bc   : > { %5725 = vmatmul.f32.vlgmr.msra.gmra.mxu2 %v13285_v21  ;;  %v8833_v21 = vld [vmem:[%s13688_s9 + $0x20] sm:$0xff] }
 0x5bd   : > { %5843 = vmatpush.bf16.msra.mxu1 %v8833_v21  ;;  %5963 = vmatpush.bf16.msra.mxu0 %v8840_v53 }
 0x5be   : > { %5976 = vmatpush.bf16.msrb.mxu2 %v8848_v5  ;;  %6077 = vmatpush.bf16.msra.mxu3 %v8852_v57 }
 0x5c1   : > { %5844 = vmatpush.bf16.msra.mxu1 %v8832_v18  ;;  %5964 = vmatpush.bf16.msra.mxu0 %v8839_v10 }
 0x5c2   : > { %5977 = vmatpush.bf16.msrb.mxu2 %v8847_v4  ;;  %6078 = vmatpush.bf16.msra.mxu3 %v8851_v39 }
 0x5c5   : > { %5845 = vmatpush.bf16.msra.mxu1 %v8831_v56  ;;  %6301 = vmatpush.bf16.msrb.mxu0 %v8876_v6  ;;  %v8878_v56 = vld [vmem:[%s13688_s9 + $0x188] sm:$0xff] }
 0x5c6   : > { %6092 = vmatpush.bf16.msra.mxu2 %v8858_v52  ;;  %6079 = vmatpush.bf16.msra.mxu3 %v8850_v27  ;;  %v6338_v52 = vld [vmem:[%s13691_s12] sm:$0x1] }
 0x5c9   : > { %5846 = vmatpush.bf16.msra.mxu1 %v8830_v0  ;;  %6302 = vmatpush.bf16.msrb.mxu0 %v8875_v47  ;;  %v8868_v0 = vld [vmem:[%s13688_s9 + $0x138] sm:$0xff] }
 0x5ca   : > { %6093 = vmatpush.bf16.msra.mxu2 %v8857_v26  ;;  %6080 = vmatpush.bf16.msra.mxu3 %v8849_v1 }
 0x5cd   : > { %5847 = vmatpush.bf16.msra.mxu1 %v8829_v38  ;;  %6303 = vmatpush.bf16.msrb.mxu0 %v8874_v54  ;;  %v8877_v38 = vld [vmem:[%s13688_s9 + $0x180] sm:$0xff] }
 0x5d1   : > { %6187 = vmatpush.bf16.msrb.mxu1 %v8866_v8  ;;  %6304 = vmatpush.bf16.msrb.mxu0 %v8873_v49  ;;  %v8867_v8 = vld [vmem:[%s13688_s9 + $0x130] sm:$0xff] }
 0x5d5   : > { %6188 = vmatpush.bf16.msrb.mxu1 %v8865_v42  ;;  %6305 = vmatpush.bf16.msrb.mxu0 %v8872_v60 }
 0x5d9   : > { %6189 = vmatpush.bf16.msrb.mxu1 %v8864_v44  ;;  %6306 = vmatpush.bf16.msrb.mxu0 %v8871_v35  ;;  %v8882_v35 = vld [vmem:[%s13690_s11 + $0x18] sm:$0xff] }
 0x5dd   : > { %6190 = vmatpush.bf16.msrb.mxu1 %v8863_v36  ;;  %6307 = vmatpush.bf16.msrb.mxu0 %v8870_v17  ;;  %v8881_v17 = vld [vmem:[%s13690_s11 + $0x10] sm:$0xff] }
 0x5e1   : > { %6191 = vmatpush.bf16.msrb.mxu1 %v8862_v34  ;;  %6308 = vmatpush.bf16.msrb.mxu0 %v8869_v25 }
 0x5e5   : > { %6192 = vmatpush.bf16.msrb.mxu1 %v8861_v20 }
 0x5e8   : > { %v5465_v61 = vpop.f32.mrf.mxu3 }
 0x5e9   : > { %6193 = vmatpush.bf16.msrb.mxu1 %v8860_v29 }
 0x5ed   : > { %6194 = vmatpush.bf16.msrb.mxu1 %v8859_v62 }
 0x600   : > { %v5485_v3 = vpop.f32.mrf.mxu0 }
 0x608   : > { %v5505_v15 = vpop.f32.mrf.mxu1 }
 0x609   : > { %v5525_v22 = vpop.f32.mrf.mxu0 }
 0x60a   : > { %v5526_v24 = vadd.f32 %v5525_v22, %v5505_v15 }
 0x60e   : > { %v5445_v28 = vpop.f32.mrf.mxu2 }
 0x60f   : > { %v5466_v33 = vadd.f32 %v5465_v61, %v5445_v28  ;;  %v5646_v51 = vpop.f32.mrf.mxu3  ;;  %v5753_v28 = vld [vmem:[%s13689_s10] sm:$0x1] }
 0x611   : > { %v5666_v12 = vpop.f32.mrf.mxu1  ;;  %v5486_v9 = vadd.f32 %v5485_v3, %v5466_v33 }
 0x612   : > { %v5667_v58 = vadd.f32 %v5666_v12, %v5646_v51  ;;  %v8879_v12 = vld [vmem:[%s13690_s11] sm:$0xff] }
 0x617   : > { %v5545_v19 = vpop.f32.mrf.mxu2 }
 0x618   : > { %v5546_v21 = vadd.f32 %v5545_v19, %v5526_v24  ;;  %v8880_v19 = vld [vmem:[%s13690_s11 + $0x8] sm:$0xff] }
 0x619   : > { %v5746_v31 = vpop.f32.mrf.mxu3 }
 0x61f   : > { %v5686_v16 = vpop.f32.mrf.mxu2 }
 0x620   : > { %v5687_v37 = vadd.f32 %v5686_v16, %v5667_v58 }
 0x621   : > { %v5706_v43 = vpop.f32.mrf.mxu0 }
 0x622   : > { %v5749_v55 = vmax.f32 %v5486_v9, %v5687_v37 }
 0x624   : > { %v5751_v14 = vmax.f32 %v5749_v55, 0.0 }
 0x626   : > { %v5754_v11 = vpack.c.bf16 %v5751_v14, %v5751_v14 }
 0x628   : > { %v5889_v7 = vshrl.u32 %v5754_v11, 16  ;;  %5848 = vmatmul.bf16.vlgmr.msra.gmra.mxu1 %v5754_v11  ;;  %v6235_v32 = vrot.slane %v5754_v11, 2  ;;  %v6007_v10 = vrot.slane %v5754_v11, 1 }
 0x62a   : > { %5965 = vmatmul.bf16.vlgmr.msra.gmra.mxu0 %v5889_v7  ;;  %v6121_v23 = vrot.slane %v5889_v7, 1 }
 0x638   : > { %6195 = vmatmul.bf16.vlgmr.msrb.gmra.mxu1 %v6121_v23 }
 0x63a   : > { %6309 = vmatmul.bf16.vlgmr.msrb.gmra.mxu0 %v6235_v32 }
 0x63f   : > { %v5726_v40 = vpop.f32.mrf.mxu2 }
 0x640   : > { %v5727_v45 = vadd.f32 %v5726_v40, %v5706_v43 }
 0x642   : > { %v5747_v46 = vadd.f32 %v5746_v31, %v5727_v45 }
 0x644   : > { %v5750_v18 = vmax.f32 %v5546_v21, %v5747_v46 }
 0x646   : > { %v5752_v30 = vmax.f32 %v5750_v18, 0.0 }
 0x648   : > { %v5755_v59 = vpack.c.bf16 %v5752_v30, %v5752_v30 }
 0x64a   : > { %v5891_v53 = vshrl.u32 %v5755_v59, 16  ;;  %8288 = vmatmul.msk.bf16.vlgmr.msrb.gmra.mxu3 %vm5836_vm9, %v5755_v59  ;;  %v6008_v6 = vrot.slane %v5755_v59, 1  ;;  %v6236_v42 = vrot.slane %v5755_v59, 2 }
 0x64b   : > { %6320 = vmatpush.bf16.msrb.mxu3 %v8878_v56 }
 0x64c   : > { %8349 = vmatmul.msk.bf16.vlgmr.msrb.gmra.mxu2 %vm5836_vm9, %v5891_v53  ;;  %v6122_v47 = vrot.slane %v5891_v53, 1 }
 0x64d   : > { %6206 = vmatpush.bf16.msrb.mxu2 %v8868_v0 }
 0x64f   : > { %6321 = vmatpush.bf16.msrb.mxu3 %v8877_v38 }
 0x651   : > { %6207 = vmatpush.bf16.msrb.mxu2 %v8867_v8 }
 0x65a   : > { %6081 = vmatmul.bf16.vlgmr.msra.gmra.mxu3 %v6007_v10 }
 0x65c   : > { %8410 = vmatmul.msk.bf16.vlgmr.msra.gmra.mxu2 %vm5836_vm9, %v6008_v6 }
 0x65d   : > { %6370 = vmatpush.bf16.msra.mxu2 %v8882_v35 }
 0x661   : > { %6371 = vmatpush.bf16.msra.mxu2 %v8881_v17 }
 0x665   : > { %6372 = vmatpush.bf16.msra.mxu2 %v8880_v19 }
 0x669   : > { %6373 = vmatpush.bf16.msra.mxu2 %v8879_v12 }
 0x66a   : > { %8532 = vmatmul.msk.bf16.vlgmr.msrb.gmra.mxu3 %vm5836_vm9, %v6236_v42 }
 0x66c   : > { %8471 = vmatmul.msk.bf16.vlgmr.msrb.gmra.mxu2 %vm5836_vm9, %v6122_v47 }
 0x6a5   : > { %v5849_v44 = vpop.f32.mrf.mxu1 }
 0x6a7   : > { %v5966_v54 = vpop.f32.mrf.mxu0 }
 0x6ad   : > { %v5851_v36 = vpop.f32.mrf.mxu1 }
 0x6af   : > { %v5968_v49 = vpop.f32.mrf.mxu0 }
 0x6b5   : > { %v6196_v34 = vpop.f32.mrf.mxu1 }
 0x6b7   : > { %v6310_v60 = vpop.f32.mrf.mxu0 }
 0x6bd   : > { %v6198_v20 = vpop.f32.mrf.mxu1 }
 0x6bf   : > { %v6312_v13 = vpop.f32.mrf.mxu0 }
 0x6cd   : > { %v5862_v48 = vpop.f32.mrf.mxu3 }
 0x6ce   : > { %v5863_v29 = vadd.f32 %v5862_v48, %v5849_v44 }
 0x6cf   : > { %v5979_v15 = vpop.f32.mrf.mxu2 }
 0x6d0   : > { %v5866_v62 = vadd.f32 %v5863_v29, %v5753_v28  ;;  %v5980_v25 = vadd.f32 %v5979_v15, %v5966_v54 }
 0x6d2   : > { %v5983_v61 = vadd.f32 %v5980_v25, %v5866_v62 }
 0x6d5   : > { %v5864_v2 = vpop.f32.mrf.mxu3 }
 0x6d7   : > { %v5981_v33 = vpop.f32.mrf.mxu2 }
 0x6dd   : > { %v6082_v41 = vpop.f32.mrf.mxu3 }
 0x6df   : > { %v6095_v51 = vpop.f32.mrf.mxu2 }
 0x6e0   : > { %v6096_v16 = vadd.f32 %v6095_v51, %v6082_v41 }
 0x6e2   : > { %v6099_v63 = vadd.f32 %v6096_v16, %v5983_v61 }
 0x6e5   : > { %v6084_v58 = vpop.f32.mrf.mxu3 }
 0x6e7   : > { %v6097_v3 = vpop.f32.mrf.mxu2 }
 0x6ed   : > { %v6323_v9 = vpop.f32.mrf.mxu3 }
 0x6ee   : > { %v6324_v5 = vadd.f32 %v6323_v9, %v6310_v60 }
 0x6ef   : > { %v6209_v37 = vpop.f32.mrf.mxu2 }
 0x6f0   : > { %v6210_v55 = vadd.f32 %v6209_v37, %v6196_v34 }
 0x6f2   : > { %v6213_v14 = vadd.f32 %v6210_v55, %v6099_v63 }
 0x6f4   : > { %v6327_v50 = vadd.f32 %v6324_v5, %v6213_v14 }
 0x6f5   : > { %v6325_v11 = vpop.f32.mrf.mxu3 }
 0x6f6   : > { %v6328_v4 = vmax.f32 %v6327_v50, 0.0 }
 0x6f7   : > { %v6211_v7 = vpop.f32.mrf.mxu2 }
 0x6f8   : > { %v6329_v57 = vpack.c.bf16 %v6328_v4, %v6328_v4 }
 0x6fa   : > { %8549 = vmatmul.msk.bf16.vlgmr.msra.gmra.mxu2 %vm5424_vm8, %v6329_v57 }
 0x77d   : > { %v6375_v39 = vpop.f32.mrf.mxu2 }
 0x77e   : > { %v6376_v26 = vadd.f32 %v6375_v39, %v6338_v52 }
 0x780   : > { %v6380_v27 = vsel %vm6379_vm10, %v6376_v26, -inf }
 0x781   : > { %6381 = vmax.xlane.f32.xlu0 %v6380_v27 }
 0x785   : > { %v6377_v1 = vpop.f32.mrf.mxu2 }
 0x7f4   : > { %v6382_v22 = vpop.xlane.xlu0 %6381 }
 0x7f5   : > { %v6383_v23 = vsub.f32 %v6376_v26, %v6382_v22 }
 0x7f7   : > { %v6384_v32 = vmul.f32 1.442695, %v6383_v23 }
 0x7f9   : > { %8938 = vpow2.f32 %v6384_v32 }
 0x7ff   : > { %v8939_v43 = vpop.eup %8938 }
 0x800   : > { %v6386_v40 = vsel %vm6379_vm10, %v8939_v43, 0.0 }
 0x801   : > { %6387 = vadd.xlane.f32.xlu0 %v6386_v40 }
 0x874   : > { %v6388_v24 = vpop.xlane.xlu0 %6387 }
 0x875   : > { %8940 = vlog2.f32 %v6388_v24 }
 0x87b   : > { %v8941_v45 = vpop.eup %8940 }
 0x87c   : > { %v6390_v31 = vmul.f32 0.6931472, %v8941_v45 }
 0x87e   : > { %v6391_v21 = vsub.f32 %v6383_v23, %v6390_v31 }
 0x880   : > { %6392 = vst.msk [vmem:[%s449_s21] sm:$0x1] %vm6379_vm10, %v6391_v21 }
 0x881   : > { %8999 = shalt.err (!%p8996_p8)
}
 0x882   : > { %8890 = dma.vmem_to_hbm [thread:$0]  (%p9151_p5), %s6405_s0, 16, %s6407_s1, %s6394_s23  }
 0x883 PF: > { %p8902_p9 = scmp.ge.s32.totalorder %s9038_s28, 2  ;;  %s6418_s3 = sand.u32 1, %s9026_s25  }
 0x884   : > { %s6419_s20 = scalar_lea.sflag [#allocation4], %s6418_s3 }
 0x885   : > { %p8897_p10 = pnand %p8902_p9, %p9155_p6 }
 0x887   : > { %p8898_p11 = pneg %p8897_p10 }
 0x889   : > { %9021 = dma.done.wait (%p8898_p11), %s6419_s20, 16  }
 0x88a   : > { %9023 = vsyncadd (%p8898_p11), %s6419_s20, 4294967280  ;;  %p24_p12 = scmp.ge.s32.totalorder %s9138_s14, 4   ;;  %s13765_s25 = smov %s9030_s26 }
 0x88b   : > { %s13766_s26 = smov %s9034_s27  ;;  %s13767_s27 = smov %s9149_s17 }
 0x88c   : > { %s13768_s28 = smov %s9138_s14  ;;  %26 = sbr.rel (!%p24_p12) target bundleno = 9 (0x9), region = 126 }
 0x891   :  { %6424 = vsyncpa [#allocation3], 1 }
 0x892   :  { %6426 = vsyncpa [#allocation3 + $0x1], 1 }
 0x893   :  { %6427 = vsyncpa [#allocation4], 1 }
 0x894   :  { %6429 = vsyncpa [#allocation4 + $0x1], 1 }

</bundles_post_ra>
